<compile_context>
chip_gen: v7x
topology: tpu7x:2x2x1
jax: 0.10.0
libtpu: 0.0.40
codegen_flags: <defaults>
</compile_context>

<pallas_src>
import functools
import math

import jax
import jax.numpy as jnp
from jax.experimental import pallas as pl
from jax.experimental.pallas import tpu as pltpu


# ----------------------------- kernel ---------------------------------------


def _gelu_tanh(x):
    # tanh approximation of nn.GELU (PyTorch default is exact erf; the
    # difference is ~1e-3 absolute).
    c = math.sqrt(2.0 / math.pi)
    return 0.5 * x * (1.0 + jnp.tanh(c * (x + 0.044715 * x * x * x)))


def _layer_norm(x, w, b, eps=1e-6):
    # LayerNorm over the channel (last) dim; x: (M, C), w/b broadcastable.
    u = jnp.mean(x, axis=-1, keepdims=True)
    xc = x - u
    var = jnp.mean(xc * xc, axis=-1, keepdims=True)
    return xc * jax.lax.rsqrt(var + eps) * w + b


def _convnext_block_kernel(
    bt, hs, ws,
    patches_ref,                 # (1, Mw, Kp)  bf16   [indexed by batch tile]
    colmask_ref,                 # (Mw, 1)      f32    [grid-invariant]
    stem_w_ref, stem_b_ref,      # (Kp, C) bf16, (1, C) f32
    sln_w_ref, sln_b_ref,        # (1, C) f32   (channels_first LN of the stem)
    dw_w_ref, dw_b_ref,          # (1, 49, C) f32, (1, 1, C) f32  [per depth]
    ln_w_ref, ln_b_ref,          # (1, 1, C) f32
    pw1_w_ref, pw1_b_ref,        # (1, C, 4C) bf16, (1, 1, 4C) f32
    pw2_w_ref, pw2_b_ref,        # (1, 4C, C) bf16, (1, 1, C) f32
    gamma_ref,                   # (1, 1, C) f32
    out_ref,                     # (1, Mw, C) f32
    x_ref, pad_ref, dwo_ref,     # VMEM scratch
):
    l = pl.program_id(1)
    wsp = ws + 6                 # wide row width (W plus 3+3 halo columns)
    sw = hs * wsp                # wide tokens per image
    simg = (hs + 6) * wsp        # rows per image inside the padded buffer

    valid = colmask_ref[...] > 0.0          # (Mw, 1) True on real tokens

    # ---- stem (runs once per batch tile, at the first depth step) ----------
    @pl.when(l == 0)
    def _():
        y = jnp.dot(patches_ref[0], stem_w_ref[...],
                    preferred_element_type=jnp.float32) + stem_b_ref[...]
        y = _layer_norm(y, sln_w_ref[...], sln_b_ref[...])
        x_ref[...] = jnp.where(valid, y, 0.0)       # halo columns forced to 0
        # Zero the padded dwconv buffer once per batch tile: its halo/guard
        # rows are never written again and the interior is fully rewritten by
        # every block below.  (Do NOT guard this on the batch program id —
        # per-core scratch under v7x megacore.)
        pad_ref[...] = jnp.zeros(pad_ref.shape, pad_ref.dtype)

    # ---- depthwise 7x7 conv, padding 3 --------------------------------------
    # One contiguous interior store per image; tap (di, dj) is a full-slab FMA
    # at static row offset di*wsp + dj (x's halo columns are already zero, so
    # they double as the left/right conv padding).
    for k in range(bt):
        lo = 3 + k * simg + 3 * wsp
        pad_ref[lo:lo + sw, :] = x_ref[k * sw:(k + 1) * sw, :]

    dw_w = dw_w_ref[0]                               # (49, C) f32, loaded once
    for k in range(bt):
        base = k * simg
        part = []
        for di in range(7):                          # 7 independent FMA chains
            o = base + di * wsp
            r = dw_w[di * 7:di * 7 + 1, :] * pad_ref[o:o + sw, :]
            for dj in range(1, 7):
                t = di * 7 + dj
                r = r + dw_w[t:t + 1, :] * pad_ref[o + dj:o + dj + sw, :]
            part.append(r)
        acc = part[0]
        for r in part[1:]:
            acc = acc + r
        dwo_ref[k * sw:(k + 1) * sw, :] = acc        # aligned (sw-row) store
    x_dw = dwo_ref[...] + dw_b_ref[0]                # (Mw, C) f32

    # ---- LN (channels_last) -> pwconv1 -> GELU -> pwconv2 -------------------
    x_ln = _layer_norm(x_dw, ln_w_ref[0], ln_b_ref[0])
    h = jnp.dot(x_ln.astype(jnp.bfloat16), pw1_w_ref[0],
                preferred_element_type=jnp.float32) + pw1_b_ref[0]
    h = _gelu_tanh(h)
    y2 = jnp.dot(h.astype(jnp.bfloat16), pw2_w_ref[0],
                 preferred_element_type=jnp.float32) + pw2_b_ref[0]

    # ---- layer scale (gamma) + residual (drop_path = identity) --------------
    x = x_ref[...]
    x_new = jnp.where(valid, x + gamma_ref[0] * y2, 0.0)
    x_ref[...] = x_new

    @pl.when(l == pl.num_programs(1) - 1)
    def _():
        out_ref[0] = x_new


# ----------------------------- wrapper --------------------------------------


def convnext_block_forward(x, params, *, target_rows=256):
    """ConvNeXt_Block(index=0): x (B, Cin, H, W) f32 -> (B, C, H/4, W/4) f32."""
    b, cin, h, w = x.shape
    assert h % 4 == 0 and w % 4 == 0
    hs, ws = h // 4, w // 4
    wsp = ws + 6
    sw = hs * wsp
    c = params["stem_b"].shape[-1]
    h4 = params["pw1_b"].shape[-1]
    depth = params["dw_w"].shape[0]
    kin = cin * 16
    kp = -(-kin // 128) * 128            # pad the stem contraction dim to 128

    # pack images per grid step so the matmul M dim is >= ~target_rows
    # (at realistic stage-0 sizes sw is already large and bt == 1, leaving the
    #  batch axis as the "parallel" dimension for v7x megacore).
    bt = min(b, max(1, target_rows // sw))
    while b % bt:
        bt -= 1
    nbt = b // bt
    mw = bt * sw

    # --- wrapper-side layout plumbing (pure XLA, fused under jit) ------------
    # patchify the 4x4/stride-4 stem conv; lay tokens out in the "wide" layout
    # (3 zero halo columns each side of every image row); pad K to 128; bf16.
    patches = x.reshape(b, cin, hs, 4, ws, 4)
    patches = jnp.transpose(patches, (0, 2, 4, 1, 3, 5)).reshape(b, hs, ws, kin)
    patches = jnp.pad(patches, ((0, 0), (0, 0), (3, 3), (0, kp - kin)))
    patches = patches.reshape(nbt, mw, kp).astype(jnp.bfloat16)

    stem_w = jnp.pad(params["stem_w"].astype(jnp.bfloat16),
                     ((0, kp - kin), (0, 0)))

    col = jnp.arange(wsp)
    colmask = jnp.tile(((col >= 3) & (col < 3 + ws)).astype(jnp.float32),
                       bt * hs).reshape(mw, 1)

    dw_w = params["dw_w"]                             # (depth, 49, C)
    dw_b = params["dw_b"][:, None, :]                 # (depth, 1, C)
    ln_w = params["ln_w"][:, None, :]
    ln_b = params["ln_b"][:, None, :]
    pw1_w = params["pw1_w"].astype(jnp.bfloat16)      # (depth, C, 4C)
    pw1_b = params["pw1_b"][:, None, :]               # (depth, 1, 4C)
    pw2_w = params["pw2_w"].astype(jnp.bfloat16)      # (depth, 4C, C)
    pw2_b = params["pw2_b"][:, None, :]
    gamma = params["gamma"][:, None, :]

    kern = functools.partial(_convnext_block_kernel, bt, hs, ws)

    def const_spec(shape):
        # grid-invariant input: single-buffered (no DMA overlap to gain, half
        # the VMEM footprint).
        return pl.BlockSpec(shape, lambda bi, l, _nd=len(shape): (0,) * _nd,
                            pipeline_mode=pl.Buffered(1))

    def depth_spec(shape):
        # per-Block weights, streamed along the depth grid axis.
        nd = len(shape)
        return pl.BlockSpec((1,) + shape[1:],
                            lambda bi, l, _nd=nd: (l,) + (0,) * (_nd - 1))

    in_specs = [
        pl.BlockSpec((1, mw, kp), lambda bi, l: (bi, 0, 0)),   # patches
        const_spec((mw, 1)),                                   # column mask
        const_spec((kp, c)),                                   # stem_w
        const_spec((1, c)),                                    # stem_b
        const_spec((1, c)),                                    # sln_w
        const_spec((1, c)),                                    # sln_b
        depth_spec((depth, 49, c)),                            # dw_w
        depth_spec((depth, 1, c)),                             # dw_b
        depth_spec((depth, 1, c)),                             # ln_w
        depth_spec((depth, 1, c)),                             # ln_b
        depth_spec((depth, c, h4)),                            # pw1_w
        depth_spec((depth, 1, h4)),                            # pw1_b
        depth_spec((depth, h4, c)),                            # pw2_w
        depth_spec((depth, 1, c)),                             # pw2_b
        depth_spec((depth, 1, c)),                             # gamma
    ]

    pad_rows = bt * (hs + 6) * wsp + 6
    scratch_shapes = [
        pltpu.VMEM((mw, c), jnp.float32),          # carried activation x
        pltpu.VMEM((pad_rows, c), jnp.float32),    # zero-padded dwconv buffer
        pltpu.VMEM((mw, c), jnp.float32),          # dwconv output
    ]

    # explicit VMEM plan (double-buffered streamed blocks + invariants + scratch)
    f32b, bf16b = 4, 2
    est = (
        2 * (mw * kp * bf16b + mw * c * f32b)                       # patches/out
        + 2 * (49 * c * f32b + 3 * c * f32b + c * h4 * bf16b + h4 * f32b
               + h4 * c * bf16b + 2 * c * f32b)                     # per-depth w
        + (mw * f32b + kp * c * bf16b + 3 * c * f32b)               # invariants
        + (2 * mw * c + pad_rows * c) * f32b                        # scratch
    )
    vmem_limit = int(min(64 * 1024 * 1024, max(32 * 1024 * 1024, 2 * est)))

    out = pl.pallas_call(
        kern,
        out_shape=jax.ShapeDtypeStruct((nbt, mw, c), jnp.float32),
        grid_spec=pltpu.PrefetchScalarGridSpec(
            num_scalar_prefetch=0,
            grid=(nbt, depth),
            in_specs=in_specs,
            out_specs=pl.BlockSpec((1, mw, c), lambda bi, l: (bi, 0, 0)),
            scratch_shapes=scratch_shapes,
        ),
        compiler_params=pltpu.CompilerParams(
            dimension_semantics=("parallel", "arbitrary"),
            vmem_limit_bytes=vmem_limit,
        ),
    )(patches, colmask, stem_w, params["stem_b"], params["sln_w"],
      params["sln_b"], dw_w, dw_b, ln_w, ln_b, pw1_w, pw1_b, pw2_w, pw2_b,
      gamma)

    # wide tokens -> drop the W-halo columns -> NCHW.
    out = out.reshape(b, hs, wsp, c)[:, :, 3:3 + ws, :]
    return jnp.transpose(out, (0, 3, 1, 2))


# ----------------------------- parameters -----------------------------------


def init_params(key, in_chans, dim, depth):
    # dwconv tap layout: t = di*7 + dj of the flattened (dim, 1, 7, 7) weight;
    # stem_w layout: PyTorch (dim, cin, 4, 4) -> reshape(dim, cin*16).T.
    def nxt():
        nonlocal key
        key, sub = jax.random.split(key)
        return sub

    kin = in_chans * 16
    hidden = 4 * dim

    stem_w = 0.02 * jax.random.normal(nxt(), (kin, dim), jnp.float32)
    stem_b = 0.01 * jax.random.normal(nxt(), (1, dim), jnp.float32)
    sln_w = jnp.ones((1, dim), jnp.float32)
    sln_b = jnp.zeros((1, dim), jnp.float32)

    dw_w = 0.02 * jax.random.normal(nxt(), (depth, 49, dim), jnp.float32)
    dw_b = 0.01 * jax.random.normal(nxt(), (depth, dim), jnp.float32)
    ln_w = jnp.ones((depth, dim), jnp.float32)
    ln_b = jnp.zeros((depth, dim), jnp.float32)
    pw1_w = 0.02 * jax.random.normal(nxt(), (depth, dim, hidden), jnp.float32)
    pw1_b = 0.01 * jax.random.normal(nxt(), (depth, hidden), jnp.float32)
    pw2_w = 0.02 * jax.random.normal(nxt(), (depth, hidden, dim), jnp.float32)
    pw2_b = 0.01 * jax.random.normal(nxt(), (depth, dim), jnp.float32)
    gamma = 1e-6 * jnp.ones((depth, dim), jnp.float32)  # layer_scale_init_value

    return {
        "stem_w": stem_w.astype(jnp.bfloat16),
        "stem_b": stem_b,
        "sln_w": sln_w, "sln_b": sln_b,
        "dw_w": dw_w, "dw_b": dw_b,
        "ln_w": ln_w, "ln_b": ln_b,
        "pw1_w": pw1_w.astype(jnp.bfloat16), "pw1_b": pw1_b,
        "pw2_w": pw2_w.astype(jnp.bfloat16), "pw2_b": pw2_b,
        "gamma": gamma,
    }


# ----------------------------- main -----------------------------------------

if __name__ == "__main__":
    B, IN_CHANS = 2, 4
    H = W = 16                                  # stem stride 4 -> 4x4 tokens
    DIMS = (128, 256, 512, 1024)
    DEPTHS = (2, 2, 6, 2)
    INDEX = 0                                   # ConvNeXt_Block(index=0)

    key = jax.random.PRNGKey(0)
    key, xkey = jax.random.split(key)
    x = jax.random.normal(xkey, (B, IN_CHANS, H, W), jnp.float32)

    params = init_params(key, IN_CHANS, DIMS[INDEX], DEPTHS[INDEX])

    out = jax.jit(convnext_block_forward)(x, params)
    out = jax.block_until_ready(out)

    assert out.shape == (B, DIMS[INDEX], H // 4, W // 4), out.shape
    assert bool(jnp.all(jnp.isfinite(out)))
    print("KERNEL_OK")
</pallas_src>

<mosaic_0001>
module attributes {stable_mosaic.version = 11 : i64} {
  func.func @_convnext_block_kernel(%arg0: i32, %arg1: i32, %arg2: memref<1x80x128xbf16, #tpu.memory_space<vmem>>, %arg3: memref<80x1xf32, #tpu.memory_space<vmem>>, %arg4: memref<128x128xbf16, #tpu.memory_space<vmem>>, %arg5: memref<1x128xf32, #tpu.memory_space<vmem>>, %arg6: memref<1x128xf32, #tpu.memory_space<vmem>>, %arg7: memref<1x128xf32, #tpu.memory_space<vmem>>, %arg8: memref<1x49x128xf32, #tpu.memory_space<vmem>>, %arg9: memref<1x1x128xf32, #tpu.memory_space<vmem>>, %arg10: memref<1x1x128xf32, #tpu.memory_space<vmem>>, %arg11: memref<1x1x128xf32, #tpu.memory_space<vmem>>, %arg12: memref<1x128x512xbf16, #tpu.memory_space<vmem>>, %arg13: memref<1x1x512xf32, #tpu.memory_space<vmem>>, %arg14: memref<1x512x128xbf16, #tpu.memory_space<vmem>>, %arg15: memref<1x1x128xf32, #tpu.memory_space<vmem>>, %arg16: memref<1x1x128xf32, #tpu.memory_space<vmem>>, %arg17: memref<1x80x128xf32, #tpu.memory_space<vmem>>, %arg18: memref<80x128xf32, #tpu.memory_space<vmem>>, %arg19: memref<206x128xf32, #tpu.memory_space<vmem>>, %arg20: memref<80x128xf32, #tpu.memory_space<vmem>>) attributes {dimension_semantics = [#tpu.dimension_semantics<parallel>, #tpu.dimension_semantics<arbitrary>], iteration_bounds = array<i64: 1, 2>, scalar_prefetch = 0 : i64, scratch_operands = 3 : i64, tpu.core_type = #tpu.core_type<tc>, window_params = [{transform_indices = @transform_0, window_bounds = array<i64: 1, 80, 128>}, {pipeline_mode = #tpu.pipeline_mode<synchronous>, transform_indices = @transform_1, window_bounds = array<i64: 80, 1>}, {pipeline_mode = #tpu.pipeline_mode<synchronous>, transform_indices = @transform_2, window_bounds = array<i64: 128, 128>}, {pipeline_mode = #tpu.pipeline_mode<synchronous>, transform_indices = @transform_3, window_bounds = array<i64: 1, 128>}, {pipeline_mode = #tpu.pipeline_mode<synchronous>, transform_indices = @transform_4, window_bounds = array<i64: 1, 128>}, {pipeline_mode = #tpu.pipeline_mode<synchronous>, transform_indices = @transform_5, window_bounds = array<i64: 1, 128>}, {transform_indices = @transform_6, window_bounds = array<i64: 1, 49, 128>}, {transform_indices = @transform_7, window_bounds = array<i64: 1, 1, 128>}, {transform_indices = @transform_8, window_bounds = array<i64: 1, 1, 128>}, {transform_indices = @transform_9, window_bounds = array<i64: 1, 1, 128>}, {transform_indices = @transform_10, window_bounds = array<i64: 1, 128, 512>}, {transform_indices = @transform_11, window_bounds = array<i64: 1, 1, 512>}, {transform_indices = @transform_12, window_bounds = array<i64: 1, 512, 128>}, {transform_indices = @transform_13, window_bounds = array<i64: 1, 1, 128>}, {transform_indices = @transform_14, window_bounds = array<i64: 1, 1, 128>}, {transform_indices = @transform_15, window_bounds = array<i64: 1, 80, 128>}]} {
    %c0 = arith.constant 0 : index
    %c0_0 = arith.constant 0 : index
    %0 = vector.load %arg3[%c0, %c0_0] : memref<80x1xf32, #tpu.memory_space<vmem>>, vector<80x1xf32>
    %cst = arith.constant 0.000000e+00 : f32
    %1 = vector.broadcast %cst : f32 to vector<80x1xf32>
    %2 = arith.cmpf ogt, %0, %1 : vector<80x1xf32>
    %c0_i32 = arith.constant 0 : i32
    %3 = arith.cmpi eq, %arg1, %c0_i32 : i32
    %4 = arith.extui %3 : i1 to i32
    %c0_i32_1 = arith.constant 0 : i32
    %5 = arith.cmpi ne, %4, %c0_i32_1 : i32
    scf.if %5 {
      %c0_159 = arith.constant 0 : index
      %c0_160 = arith.constant 0 : index
      %c0_161 = arith.constant 0 : index
      %574 = vector.load %arg2[%c0_159, %c0_160, %c0_161] : memref<1x80x128xbf16, #tpu.memory_space<vmem>>, vector<1x80x128xbf16>
      %575 = vector.shape_cast %574 : vector<1x80x128xbf16> to vector<80x128xbf16>
      %c0_162 = arith.constant 0 : index
      %c0_163 = arith.constant 0 : index
      %576 = vector.load %arg4[%c0_162, %c0_163] : memref<128x128xbf16, #tpu.memory_space<vmem>>, vector<128x128xbf16>
      %cst_164 = arith.constant dense<0.000000e+00> : vector<80x128xf32>
      %577 = tpu.matmul %575, %576, %cst_164 {dimension_numbers = #tpu.dot_dimension_numbers<[1], [0], [0], [1], [0, 0, 1, 1], [], []>} : vector<80x128xbf16>, vector<128x128xbf16>, vector<80x128xf32> -> vector<80x128xf32>
      %c0_165 = arith.constant 0 : index
      %c0_166 = arith.constant 0 : index
      %578 = vector.load %arg5[%c0_165, %c0_166] : memref<1x128xf32, #tpu.memory_space<vmem>>, vector<1x128xf32>
      %579 = vector.broadcast %578 : vector<1x128xf32> to vector<80x128xf32>
      %580 = arith.addf %577, %579 : vector<80x128xf32>
      %c0_167 = arith.constant 0 : index
      %c0_168 = arith.constant 0 : index
      %581 = vector.load %arg6[%c0_167, %c0_168] : memref<1x128xf32, #tpu.memory_space<vmem>>, vector<1x128xf32>
      %c0_169 = arith.constant 0 : index
      %c0_170 = arith.constant 0 : index
      %582 = vector.load %arg7[%c0_169, %c0_170] : memref<1x128xf32, #tpu.memory_space<vmem>>, vector<1x128xf32>
      %cst_171 = arith.constant dense<0.000000e+00> : vector<80xf32>
      %583 = vector.multi_reduction <add>, %580, %cst_171 [1] : vector<80x128xf32> to vector<80xf32>
      %584 = vector.shape_cast %583 : vector<80xf32> to vector<80x1xf32>
      %cst_172 = arith.constant 1.280000e+02 : f32
      %585 = vector.broadcast %cst_172 : f32 to vector<80x1xf32>
      %586 = arith.divf %584, %585 : vector<80x1xf32>
      %587 = vector.broadcast %586 : vector<80x1xf32> to vector<80x128xf32>
      %588 = arith.subf %580, %587 : vector<80x128xf32>
      %589 = arith.mulf %588, %588 : vector<80x128xf32>
      %cst_173 = arith.constant dense<0.000000e+00> : vector<80xf32>
      %590 = vector.multi_reduction <add>, %589, %cst_173 [1] : vector<80x128xf32> to vector<80xf32>
      %591 = vector.shape_cast %590 : vector<80xf32> to vector<80x1xf32>
      %cst_174 = arith.constant 1.280000e+02 : f32
      %592 = vector.broadcast %cst_174 : f32 to vector<80x1xf32>
      %593 = arith.divf %591, %592 : vector<80x1xf32>
      %cst_175 = arith.constant 9.99999997E-7 : f32
      %594 = vector.broadcast %cst_175 : f32 to vector<80x1xf32>
      %595 = arith.addf %593, %594 : vector<80x1xf32>
      %596 = math.rsqrt %595 : vector<80x1xf32>
      %597 = vector.broadcast %596 : vector<80x1xf32> to vector<80x128xf32>
      %598 = arith.mulf %588, %597 : vector<80x128xf32>
      %599 = vector.broadcast %581 : vector<1x128xf32> to vector<80x128xf32>
      %600 = arith.mulf %598, %599 : vector<80x128xf32>
      %601 = vector.broadcast %582 : vector<1x128xf32> to vector<80x128xf32>
      %602 = arith.addf %600, %601 : vector<80x128xf32>
      %cst_176 = arith.constant 0.000000e+00 : f32
      %603 = vector.shape_cast %2 : vector<80x1xi1> to vector<80x1xi1>
      %604 = vector.broadcast %603 : vector<80x1xi1> to vector<80x128xi1>
      %605 = vector.broadcast %cst_176 : f32 to vector<80x128xf32>
      %606 = arith.select %604, %602, %605 : vector<80x128xi1>, vector<80x128xf32>
      %c0_177 = arith.constant 0 : index
      %c0_178 = arith.constant 0 : index
      %607 = vector.load %arg18[%c0_177, %c0_178] : memref<80x128xf32, #tpu.memory_space<vmem>>, vector<80x128xf32>
      tpu.vector_store %arg18[%c0_177, %c0_178], %606 {strides = array<i32>} : memref<80x128xf32, #tpu.memory_space<vmem>>, vector<80x128xf32>,
      %cst_179 = arith.constant 0.000000e+00 : f32
      %608 = vector.broadcast %cst_179 : f32 to vector<206x128xf32>
      %c0_180 = arith.constant 0 : index
      %c0_181 = arith.constant 0 : index
      %609 = vector.load %arg19[%c0_180, %c0_181] : memref<206x128xf32, #tpu.memory_space<vmem>>, vector<206x128xf32>
      tpu.vector_store %arg19[%c0_180, %c0_181], %608 {strides = array<i32>} : memref<206x128xf32, #tpu.memory_space<vmem>>, vector<206x128xf32>,
    } else {
    }
    %c0_2 = arith.constant 0 : index
    %c0_3 = arith.constant 0 : index
    %6 = vector.load %arg18[%c0_2, %c0_3] : memref<80x128xf32, #tpu.memory_space<vmem>>, vector<40x128xf32>
    %c33 = arith.constant 33 : index
    %c0_4 = arith.constant 0 : index
    %7 = vector.load %arg19[%c33, %c0_4] : memref<206x128xf32, #tpu.memory_space<vmem>>, vector<40x128xf32>
    tpu.vector_store %arg19[%c33, %c0_4], %6 {strides = array<i32>} : memref<206x128xf32, #tpu.memory_space<vmem>>, vector<40x128xf32>,
    %c40 = arith.constant 40 : index
    %c0_5 = arith.constant 0 : index
    %8 = vector.load %arg18[%c40, %c0_5] : memref<80x128xf32, #tpu.memory_space<vmem>>, vector<40x128xf32>
    %c133 = arith.constant 133 : index
    %c0_6 = arith.constant 0 : index
    %9 = vector.load %arg19[%c133, %c0_6] : memref<206x128xf32, #tpu.memory_space<vmem>>, vector<40x128xf32>
    tpu.vector_store %arg19[%c133, %c0_6], %8 {strides = array<i32>} : memref<206x128xf32, #tpu.memory_space<vmem>>, vector<40x128xf32>,
    %c0_7 = arith.constant 0 : index
    %c0_8 = arith.constant 0 : index
    %c0_9 = arith.constant 0 : index
    %10 = vector.load %arg8[%c0_7, %c0_8, %c0_9] : memref<1x49x128xf32, #tpu.memory_space<vmem>>, vector<1x49x128xf32>
    %11 = vector.shape_cast %10 : vector<1x49x128xf32> to vector<49x128xf32>
    %12 = vector.extract_strided_slice %11 {offsets = [0, 0], sizes = [1, 128], strides = [1, 1]} : vector<49x128xf32> to vector<1x128xf32>
    %c0_10 = arith.constant 0 : index
    %c0_11 = arith.constant 0 : index
    %13 = vector.load %arg19[%c0_10, %c0_11] : memref<206x128xf32, #tpu.memory_space<vmem>>, vector<40x128xf32>
    %14 = vector.broadcast %12 : vector<1x128xf32> to vector<40x128xf32>
    %15 = arith.mulf %14, %13 : vector<40x128xf32>
    %16 = vector.extract_strided_slice %11 {offsets = [1, 0], sizes = [1, 128], strides = [1, 1]} : vector<49x128xf32> to vector<1x128xf32>
    %c1 = arith.constant 1 : index
    %c0_12 = arith.constant 0 : index
    %17 = vector.load %arg19[%c1, %c0_12] : memref<206x128xf32, #tpu.memory_space<vmem>>, vector<40x128xf32>
    %18 = vector.broadcast %16 : vector<1x128xf32> to vector<40x128xf32>
    %19 = arith.mulf %18, %17 : vector<40x128xf32>
    %20 = arith.addf %15, %19 : vector<40x128xf32>
    %21 = vector.extract_strided_slice %11 {offsets = [2, 0], sizes = [1, 128], strides = [1, 1]} : vector<49x128xf32> to vector<1x128xf32>
    %c2 = arith.constant 2 : index
    %c0_13 = arith.constant 0 : index
    %22 = vector.load %arg19[%c2, %c0_13] : memref<206x128xf32, #tpu.memory_space<vmem>>, vector<40x128xf32>
    %23 = vector.broadcast %21 : vector<1x128xf32> to vector<40x128xf32>
    %24 = arith.mulf %23, %22 : vector<40x128xf32>
    %25 = arith.addf %20, %24 : vector<40x128xf32>
    %26 = vector.extract_strided_slice %11 {offsets = [3, 0], sizes = [1, 128], strides = [1, 1]} : vector<49x128xf32> to vector<1x128xf32>
    %c3 = arith.constant 3 : index
    %c0_14 = arith.constant 0 : index
    %27 = vector.load %arg19[%c3, %c0_14] : memref<206x128xf32, #tpu.memory_space<vmem>>, vector<40x128xf32>
    %28 = vector.broadcast %26 : vector<1x128xf32> to vector<40x128xf32>
    %29 = arith.mulf %28, %27 : vector<40x128xf32>
    %30 = arith.addf %25, %29 : vector<40x128xf32>
    %31 = vector.extract_strided_slice %11 {offsets = [4, 0], sizes = [1, 128], strides = [1, 1]} : vector<49x128xf32> to vector<1x128xf32>
    %c4 = arith.constant 4 : index
    %c0_15 = arith.constant 0 : index
    %32 = vector.load %arg19[%c4, %c0_15] : memref<206x128xf32, #tpu.memory_space<vmem>>, vector<40x128xf32>
    %33 = vector.broadcast %31 : vector<1x128xf32> to vector<40x128xf32>
    %34 = arith.mulf %33, %32 : vector<40x128xf32>
    %35 = arith.addf %30, %34 : vector<40x128xf32>
    %36 = vector.extract_strided_slice %11 {offsets = [5, 0], sizes = [1, 128], strides = [1, 1]} : vector<49x128xf32> to vector<1x128xf32>
    %c5 = arith.constant 5 : index
    %c0_16 = arith.constant 0 : index
    %37 = vector.load %arg19[%c5, %c0_16] : memref<206x128xf32, #tpu.memory_space<vmem>>, vector<40x128xf32>
    %38 = vector.broadcast %36 : vector<1x128xf32> to vector<40x128xf32>
    %39 = arith.mulf %38, %37 : vector<40x128xf32>
    %40 = arith.addf %35, %39 : vector<40x128xf32>
    %41 = vector.extract_strided_slice %11 {offsets = [6, 0], sizes = [1, 128], strides = [1, 1]} : vector<49x128xf32> to vector<1x128xf32>
    %c6 = arith.constant 6 : index
    %c0_17 = arith.constant 0 : index
    %42 = vector.load %arg19[%c6, %c0_17] : memref<206x128xf32, #tpu.memory_space<vmem>>, vector<40x128xf32>
    %43 = vector.broadcast %41 : vector<1x128xf32> to vector<40x128xf32>
    %44 = arith.mulf %43, %42 : vector<40x128xf32>
    %45 = arith.addf %40, %44 : vector<40x128xf32>
    %46 = vector.extract_strided_slice %11 {offsets = [7, 0], sizes = [1, 128], strides = [1, 1]} : vector<49x128xf32> to vector<1x128xf32>
    %c10 = arith.constant 10 : index
    %c0_18 = arith.constant 0 : index
    %47 = vector.load %arg19[%c10, %c0_18] : memref<206x128xf32, #tpu.memory_space<vmem>>, vector<40x128xf32>
    %48 = vector.broadcast %46 : vector<1x128xf32> to vector<40x128xf32>
    %49 = arith.mulf %48, %47 : vector<40x128xf32>
    %50 = vector.extract_strided_slice %11 {offsets = [8, 0], sizes = [1, 128], strides = [1, 1]} : vector<49x128xf32> to vector<1x128xf32>
    %c11 = arith.constant 11 : index
    %c0_19 = arith.constant 0 : index
    %51 = vector.load %arg19[%c11, %c0_19] : memref<206x128xf32, #tpu.memory_space<vmem>>, vector<40x128xf32>
    %52 = vector.broadcast %50 : vector<1x128xf32> to vector<40x128xf32>
    %53 = arith.mulf %52, %51 : vector<40x128xf32>
    %54 = arith.addf %49, %53 : vector<40x128xf32>
    %55 = vector.extract_strided_slice %11 {offsets = [9, 0], sizes = [1, 128], strides = [1, 1]} : vector<49x128xf32> to vector<1x128xf32>
    %c12 = arith.constant 12 : index
    %c0_20 = arith.constant 0 : index
    %56 = vector.load %arg19[%c12, %c0_20] : memref<206x128xf32, #tpu.memory_space<vmem>>, vector<40x128xf32>
    %57 = vector.broadcast %55 : vector<1x128xf32> to vector<40x128xf32>
    %58 = arith.mulf %57, %56 : vector<40x128xf32>
    %59 = arith.addf %54, %58 : vector<40x128xf32>
    %60 = vector.extract_strided_slice %11 {offsets = [10, 0], sizes = [1, 128], strides = [1, 1]} : vector<49x128xf32> to vector<1x128xf32>
    %c13 = arith.constant 13 : index
    %c0_21 = arith.constant 0 : index
    %61 = vector.load %arg19[%c13, %c0_21] : memref<206x128xf32, #tpu.memory_space<vmem>>, vector<40x128xf32>
    %62 = vector.broadcast %60 : vector<1x128xf32> to vector<40x128xf32>
    %63 = arith.mulf %62, %61 : vector<40x128xf32>
    %64 = arith.addf %59, %63 : vector<40x128xf32>
    %65 = vector.extract_strided_slice %11 {offsets = [11, 0], sizes = [1, 128], strides = [1, 1]} : vector<49x128xf32> to vector<1x128xf32>
    %c14 = arith.constant 14 : index
    %c0_22 = arith.constant 0 : index
    %66 = vector.load %arg19[%c14, %c0_22] : memref<206x128xf32, #tpu.memory_space<vmem>>, vector<40x128xf32>
    %67 = vector.broadcast %65 : vector<1x128xf32> to vector<40x128xf32>
    %68 = arith.mulf %67, %66 : vector<40x128xf32>
    %69 = arith.addf %64, %68 : vector<40x128xf32>
    %70 = vector.extract_strided_slice %11 {offsets = [12, 0], sizes = [1, 128], strides = [1, 1]} : vector<49x128xf32> to vector<1x128xf32>
    %c15 = arith.constant 15 : index
    %c0_23 = arith.constant 0 : index
    %71 = vector.load %arg19[%c15, %c0_23] : memref<206x128xf32, #tpu.memory_space<vmem>>, vector<40x128xf32>
    %72 = vector.broadcast %70 : vector<1x128xf32> to vector<40x128xf32>
    %73 = arith.mulf %72, %71 : vector<40x128xf32>
    %74 = arith.addf %69, %73 : vector<40x128xf32>
    %75 = vector.extract_strided_slice %11 {offsets = [13, 0], sizes = [1, 128], strides = [1, 1]} : vector<49x128xf32> to vector<1x128xf32>
    %c16 = arith.constant 16 : index
    %c0_24 = arith.constant 0 : index
    %76 = vector.load %arg19[%c16, %c0_24] : memref<206x128xf32, #tpu.memory_space<vmem>>, vector<40x128xf32>
    %77 = vector.broadcast %75 : vector<1x128xf32> to vector<40x128xf32>
    %78 = arith.mulf %77, %76 : vector<40x128xf32>
    %79 = arith.addf %74, %78 : vector<40x128xf32>
    %80 = vector.extract_strided_slice %11 {offsets = [14, 0], sizes = [1, 128], strides = [1, 1]} : vector<49x128xf32> to vector<1x128xf32>
    %c20 = arith.constant 20 : index
    %c0_25 = arith.constant 0 : index
    %81 = vector.load %arg19[%c20, %c0_25] : memref<206x128xf32, #tpu.memory_space<vmem>>, vector<40x128xf32>
    %82 = vector.broadcast %80 : vector<1x128xf32> to vector<40x128xf32>
    %83 = arith.mulf %82, %81 : vector<40x128xf32>
    %84 = vector.extract_strided_slice %11 {offsets = [15, 0], sizes = [1, 128], strides = [1, 1]} : vector<49x128xf32> to vector<1x128xf32>
    %c21 = arith.constant 21 : index
    %c0_26 = arith.constant 0 : index
    %85 = vector.load %arg19[%c21, %c0_26] : memref<206x128xf32, #tpu.memory_space<vmem>>, vector<40x128xf32>
    %86 = vector.broadcast %84 : vector<1x128xf32> to vector<40x128xf32>
    %87 = arith.mulf %86, %85 : vector<40x128xf32>
    %88 = arith.addf %83, %87 : vector<40x128xf32>
    %89 = vector.extract_strided_slice %11 {offsets = [16, 0], sizes = [1, 128], strides = [1, 1]} : vector<49x128xf32> to vector<1x128xf32>
    %c22 = arith.constant 22 : index
    %c0_27 = arith.constant 0 : index
    %90 = vector.load %arg19[%c22, %c0_27] : memref<206x128xf32, #tpu.memory_space<vmem>>, vector<40x128xf32>
    %91 = vector.broadcast %89 : vector<1x128xf32> to vector<40x128xf32>
    %92 = arith.mulf %91, %90 : vector<40x128xf32>
    %93 = arith.addf %88, %92 : vector<40x128xf32>
    %94 = vector.extract_strided_slice %11 {offsets = [17, 0], sizes = [1, 128], strides = [1, 1]} : vector<49x128xf32> to vector<1x128xf32>
    %c23 = arith.constant 23 : index
    %c0_28 = arith.constant 0 : index
    %95 = vector.load %arg19[%c23, %c0_28] : memref<206x128xf32, #tpu.memory_space<vmem>>, vector<40x128xf32>
    %96 = vector.broadcast %94 : vector<1x128xf32> to vector<40x128xf32>
    %97 = arith.mulf %96, %95 : vector<40x128xf32>
    %98 = arith.addf %93, %97 : vector<40x128xf32>
    %99 = vector.extract_strided_slice %11 {offsets = [18, 0], sizes = [1, 128], strides = [1, 1]} : vector<49x128xf32> to vector<1x128xf32>
    %c24 = arith.constant 24 : index
    %c0_29 = arith.constant 0 : index
    %100 = vector.load %arg19[%c24, %c0_29] : memref<206x128xf32, #tpu.memory_space<vmem>>, vector<40x128xf32>
    %101 = vector.broadcast %99 : vector<1x128xf32> to vector<40x128xf32>
    %102 = arith.mulf %101, %100 : vector<40x128xf32>
    %103 = arith.addf %98, %102 : vector<40x128xf32>
    %104 = vector.extract_strided_slice %11 {offsets = [19, 0], sizes = [1, 128], strides = [1, 1]} : vector<49x128xf32> to vector<1x128xf32>
    %c25 = arith.constant 25 : index
    %c0_30 = arith.constant 0 : index
    %105 = vector.load %arg19[%c25, %c0_30] : memref<206x128xf32, #tpu.memory_space<vmem>>, vector<40x128xf32>
    %106 = vector.broadcast %104 : vector<1x128xf32> to vector<40x128xf32>
    %107 = arith.mulf %106, %105 : vector<40x128xf32>
    %108 = arith.addf %103, %107 : vector<40x128xf32>
    %109 = vector.extract_strided_slice %11 {offsets = [20, 0], sizes = [1, 128], strides = [1, 1]} : vector<49x128xf32> to vector<1x128xf32>
    %c26 = arith.constant 26 : index
    %c0_31 = arith.constant 0 : index
    %110 = vector.load %arg19[%c26, %c0_31] : memref<206x128xf32, #tpu.memory_space<vmem>>, vector<40x128xf32>
    %111 = vector.broadcast %109 : vector<1x128xf32> to vector<40x128xf32>
    %112 = arith.mulf %111, %110 : vector<40x128xf32>
    %113 = arith.addf %108, %112 : vector<40x128xf32>
    %114 = vector.extract_strided_slice %11 {offsets = [21, 0], sizes = [1, 128], strides = [1, 1]} : vector<49x128xf32> to vector<1x128xf32>
    %c30 = arith.constant 30 : index
    %c0_32 = arith.constant 0 : index
    %115 = vector.load %arg19[%c30, %c0_32] : memref<206x128xf32, #tpu.memory_space<vmem>>, vector<40x128xf32>
    %116 = vector.broadcast %114 : vector<1x128xf32> to vector<40x128xf32>
    %117 = arith.mulf %116, %115 : vector<40x128xf32>
    %118 = vector.extract_strided_slice %11 {offsets = [22, 0], sizes = [1, 128], strides = [1, 1]} : vector<49x128xf32> to vector<1x128xf32>
    %c31 = arith.constant 31 : index
    %c0_33 = arith.constant 0 : index
    %119 = vector.load %arg19[%c31, %c0_33] : memref<206x128xf32, #tpu.memory_space<vmem>>, vector<40x128xf32>
    %120 = vector.broadcast %118 : vector<1x128xf32> to vector<40x128xf32>
    %121 = arith.mulf %120, %119 : vector<40x128xf32>
    %122 = arith.addf %117, %121 : vector<40x128xf32>
    %123 = vector.extract_strided_slice %11 {offsets = [23, 0], sizes = [1, 128], strides = [1, 1]} : vector<49x128xf32> to vector<1x128xf32>
    %c32 = arith.constant 32 : index
    %c0_34 = arith.constant 0 : index
    %124 = vector.load %arg19[%c32, %c0_34] : memref<206x128xf32, #tpu.memory_space<vmem>>, vector<40x128xf32>
    %125 = vector.broadcast %123 : vector<1x128xf32> to vector<40x128xf32>
    %126 = arith.mulf %125, %124 : vector<40x128xf32>
    %127 = arith.addf %122, %126 : vector<40x128xf32>
    %128 = vector.extract_strided_slice %11 {offsets = [24, 0], sizes = [1, 128], strides = [1, 1]} : vector<49x128xf32> to vector<1x128xf32>
    %c33_35 = arith.constant 33 : index
    %c0_36 = arith.constant 0 : index
    %129 = vector.load %arg19[%c33_35, %c0_36] : memref<206x128xf32, #tpu.memory_space<vmem>>, vector<40x128xf32>
    %130 = vector.broadcast %128 : vector<1x128xf32> to vector<40x128xf32>
    %131 = arith.mulf %130, %129 : vector<40x128xf32>
    %132 = arith.addf %127, %131 : vector<40x128xf32>
    %133 = vector.extract_strided_slice %11 {offsets = [25, 0], sizes = [1, 128], strides = [1, 1]} : vector<49x128xf32> to vector<1x128xf32>
    %c34 = arith.constant 34 : index
    %c0_37 = arith.constant 0 : index
    %134 = vector.load %arg19[%c34, %c0_37] : memref<206x128xf32, #tpu.memory_space<vmem>>, vector<40x128xf32>
    %135 = vector.broadcast %133 : vector<1x128xf32> to vector<40x128xf32>
    %136 = arith.mulf %135, %134 : vector<40x128xf32>
    %137 = arith.addf %132, %136 : vector<40x128xf32>
    %138 = vector.extract_strided_slice %11 {offsets = [26, 0], sizes = [1, 128], strides = [1, 1]} : vector<49x128xf32> to vector<1x128xf32>
    %c35 = arith.constant 35 : index
    %c0_38 = arith.constant 0 : index
    %139 = vector.load %arg19[%c35, %c0_38] : memref<206x128xf32, #tpu.memory_space<vmem>>, vector<40x128xf32>
    %140 = vector.broadcast %138 : vector<1x128xf32> to vector<40x128xf32>
    %141 = arith.mulf %140, %139 : vector<40x128xf32>
    %142 = arith.addf %137, %141 : vector<40x128xf32>
    %143 = vector.extract_strided_slice %11 {offsets = [27, 0], sizes = [1, 128], strides = [1, 1]} : vector<49x128xf32> to vector<1x128xf32>
    %c36 = arith.constant 36 : index
    %c0_39 = arith.constant 0 : index
    %144 = vector.load %arg19[%c36, %c0_39] : memref<206x128xf32, #tpu.memory_space<vmem>>, vector<40x128xf32>
    %145 = vector.broadcast %143 : vector<1x128xf32> to vector<40x128xf32>
    %146 = arith.mulf %145, %144 : vector<40x128xf32>
    %147 = arith.addf %142, %146 : vector<40x128xf32>
    %148 = vector.extract_strided_slice %11 {offsets = [28, 0], sizes = [1, 128], strides = [1, 1]} : vector<49x128xf32> to vector<1x128xf32>
    %c40_40 = arith.constant 40 : index
    %c0_41 = arith.constant 0 : index
    %149 = vector.load %arg19[%c40_40, %c0_41] : memref<206x128xf32, #tpu.memory_space<vmem>>, vector<40x128xf32>
    %150 = vector.broadcast %148 : vector<1x128xf32> to vector<40x128xf32>
    %151 = arith.mulf %150, %149 : vector<40x128xf32>
    %152 = vector.extract_strided_slice %11 {offsets = [29, 0], sizes = [1, 128], strides = [1, 1]} : vector<49x128xf32> to vector<1x128xf32>
    %c41 = arith.constant 41 : index
    %c0_42 = arith.constant 0 : index
    %153 = vector.load %arg19[%c41, %c0_42] : memref<206x128xf32, #tpu.memory_space<vmem>>, vector<40x128xf32>
    %154 = vector.broadcast %152 : vector<1x128xf32> to vector<40x128xf32>
    %155 = arith.mulf %154, %153 : vector<40x128xf32>
    %156 = arith.addf %151, %155 : vector<40x128xf32>
    %157 = vector.extract_strided_slice %11 {offsets = [30, 0], sizes = [1, 128], strides = [1, 1]} : vector<49x128xf32> to vector<1x128xf32>
    %c42 = arith.constant 42 : index
    %c0_43 = arith.constant 0 : index
    %158 = vector.load %arg19[%c42, %c0_43] : memref<206x128xf32, #tpu.memory_space<vmem>>, vector<40x128xf32>
    %159 = vector.broadcast %157 : vector<1x128xf32> to vector<40x128xf32>
    %160 = arith.mulf %159, %158 : vector<40x128xf32>
    %161 = arith.addf %156, %160 : vector<40x128xf32>
    %162 = vector.extract_strided_slice %11 {offsets = [31, 0], sizes = [1, 128], strides = [1, 1]} : vector<49x128xf32> to vector<1x128xf32>
    %c43 = arith.constant 43 : index
    %c0_44 = arith.constant 0 : index
    %163 = vector.load %arg19[%c43, %c0_44] : memref<206x128xf32, #tpu.memory_space<vmem>>, vector<40x128xf32>
    %164 = vector.broadcast %162 : vector<1x128xf32> to vector<40x128xf32>
    %165 = arith.mulf %164, %163 : vector<40x128xf32>
    %166 = arith.addf %161, %165 : vector<40x128xf32>
    %167 = vector.extract_strided_slice %11 {offsets = [32, 0], sizes = [1, 128], strides = [1, 1]} : vector<49x128xf32> to vector<1x128xf32>
    %c44 = arith.constant 44 : index
    %c0_45 = arith.constant 0 : index
    %168 = vector.load %arg19[%c44, %c0_45] : memref<206x128xf32, #tpu.memory_space<vmem>>, vector<40x128xf32>
    %169 = vector.broadcast %167 : vector<1x128xf32> to vector<40x128xf32>
    %170 = arith.mulf %169, %168 : vector<40x128xf32>
    %171 = arith.addf %166, %170 : vector<40x128xf32>
    %172 = vector.extract_strided_slice %11 {offsets = [33, 0], sizes = [1, 128], strides = [1, 1]} : vector<49x128xf32> to vector<1x128xf32>
    %c45 = arith.constant 45 : index
    %c0_46 = arith.constant 0 : index
    %173 = vector.load %arg19[%c45, %c0_46] : memref<206x128xf32, #tpu.memory_space<vmem>>, vector<40x128xf32>
    %174 = vector.broadcast %172 : vector<1x128xf32> to vector<40x128xf32>
    %175 = arith.mulf %174, %173 : vector<40x128xf32>
    %176 = arith.addf %171, %175 : vector<40x128xf32>
    %177 = vector.extract_strided_slice %11 {offsets = [34, 0], sizes = [1, 128], strides = [1, 1]} : vector<49x128xf32> to vector<1x128xf32>
    %c46 = arith.constant 46 : index
    %c0_47 = arith.constant 0 : index
    %178 = vector.load %arg19[%c46, %c0_47] : memref<206x128xf32, #tpu.memory_space<vmem>>, vector<40x128xf32>
    %179 = vector.broadcast %177 : vector<1x128xf32> to vector<40x128xf32>
    %180 = arith.mulf %179, %178 : vector<40x128xf32>
    %181 = arith.addf %176, %180 : vector<40x128xf32>
    %182 = vector.extract_strided_slice %11 {offsets = [35, 0], sizes = [1, 128], strides = [1, 1]} : vector<49x128xf32> to vector<1x128xf32>
    %c50 = arith.constant 50 : index
    %c0_48 = arith.constant 0 : index
    %183 = vector.load %arg19[%c50, %c0_48] : memref<206x128xf32, #tpu.memory_space<vmem>>, vector<40x128xf32>
    %184 = vector.broadcast %182 : vector<1x128xf32> to vector<40x128xf32>
    %185 = arith.mulf %184, %183 : vector<40x128xf32>
    %186 = vector.extract_strided_slice %11 {offsets = [36, 0], sizes = [1, 128], strides = [1, 1]} : vector<49x128xf32> to vector<1x128xf32>
    %c51 = arith.constant 51 : index
    %c0_49 = arith.constant 0 : index
    %187 = vector.load %arg19[%c51, %c0_49] : memref<206x128xf32, #tpu.memory_space<vmem>>, vector<40x128xf32>
    %188 = vector.broadcast %186 : vector<1x128xf32> to vector<40x128xf32>
    %189 = arith.mulf %188, %187 : vector<40x128xf32>
    %190 = arith.addf %185, %189 : vector<40x128xf32>
    %191 = vector.extract_strided_slice %11 {offsets = [37, 0], sizes = [1, 128], strides = [1, 1]} : vector<49x128xf32> to vector<1x128xf32>
    %c52 = arith.constant 52 : index
    %c0_50 = arith.constant 0 : index
    %192 = vector.load %arg19[%c52, %c0_50] : memref<206x128xf32, #tpu.memory_space<vmem>>, vector<40x128xf32>
    %193 = vector.broadcast %191 : vector<1x128xf32> to vector<40x128xf32>
    %194 = arith.mulf %193, %192 : vector<40x128xf32>
    %195 = arith.addf %190, %194 : vector<40x128xf32>
    %196 = vector.extract_strided_slice %11 {offsets = [38, 0], sizes = [1, 128], strides = [1, 1]} : vector<49x128xf32> to vector<1x128xf32>
    %c53 = arith.constant 53 : index
    %c0_51 = arith.constant 0 : index
    %197 = vector.load %arg19[%c53, %c0_51] : memref<206x128xf32, #tpu.memory_space<vmem>>, vector<40x128xf32>
    %198 = vector.broadcast %196 : vector<1x128xf32> to vector<40x128xf32>
    %199 = arith.mulf %198, %197 : vector<40x128xf32>
    %200 = arith.addf %195, %199 : vector<40x128xf32>
    %201 = vector.extract_strided_slice %11 {offsets = [39, 0], sizes = [1, 128], strides = [1, 1]} : vector<49x128xf32> to vector<1x128xf32>
    %c54 = arith.constant 54 : index
    %c0_52 = arith.constant 0 : index
    %202 = vector.load %arg19[%c54, %c0_52] : memref<206x128xf32, #tpu.memory_space<vmem>>, vector<40x128xf32>
    %203 = vector.broadcast %201 : vector<1x128xf32> to vector<40x128xf32>
    %204 = arith.mulf %203, %202 : vector<40x128xf32>
    %205 = arith.addf %200, %204 : vector<40x128xf32>
    %206 = vector.extract_strided_slice %11 {offsets = [40, 0], sizes = [1, 128], strides = [1, 1]} : vector<49x128xf32> to vector<1x128xf32>
    %c55 = arith.constant 55 : index
    %c0_53 = arith.constant 0 : index
    %207 = vector.load %arg19[%c55, %c0_53] : memref<206x128xf32, #tpu.memory_space<vmem>>, vector<40x128xf32>
    %208 = vector.broadcast %206 : vector<1x128xf32> to vector<40x128xf32>
    %209 = arith.mulf %208, %207 : vector<40x128xf32>
    %210 = arith.addf %205, %209 : vector<40x128xf32>
    %211 = vector.extract_strided_slice %11 {offsets = [41, 0], sizes = [1, 128], strides = [1, 1]} : vector<49x128xf32> to vector<1x128xf32>
    %c56 = arith.constant 56 : index
    %c0_54 = arith.constant 0 : index
    %212 = vector.load %arg19[%c56, %c0_54] : memref<206x128xf32, #tpu.memory_space<vmem>>, vector<40x128xf32>
    %213 = vector.broadcast %211 : vector<1x128xf32> to vector<40x128xf32>
    %214 = arith.mulf %213, %212 : vector<40x128xf32>
    %215 = arith.addf %210, %214 : vector<40x128xf32>
    %216 = vector.extract_strided_slice %11 {offsets = [42, 0], sizes = [1, 128], strides = [1, 1]} : vector<49x128xf32> to vector<1x128xf32>
    %c60 = arith.constant 60 : index
    %c0_55 = arith.constant 0 : index
    %217 = vector.load %arg19[%c60, %c0_55] : memref<206x128xf32, #tpu.memory_space<vmem>>, vector<40x128xf32>
    %218 = vector.broadcast %216 : vector<1x128xf32> to vector<40x128xf32>
    %219 = arith.mulf %218, %217 : vector<40x128xf32>
    %220 = vector.extract_strided_slice %11 {offsets = [43, 0], sizes = [1, 128], strides = [1, 1]} : vector<49x128xf32> to vector<1x128xf32>
    %c61 = arith.constant 61 : index
    %c0_56 = arith.constant 0 : index
    %221 = vector.load %arg19[%c61, %c0_56] : memref<206x128xf32, #tpu.memory_space<vmem>>, vector<40x128xf32>
    %222 = vector.broadcast %220 : vector<1x128xf32> to vector<40x128xf32>
    %223 = arith.mulf %222, %221 : vector<40x128xf32>
    %224 = arith.addf %219, %223 : vector<40x128xf32>
    %225 = vector.extract_strided_slice %11 {offsets = [44, 0], sizes = [1, 128], strides = [1, 1]} : vector<49x128xf32> to vector<1x128xf32>
    %c62 = arith.constant 62 : index
    %c0_57 = arith.constant 0 : index
    %226 = vector.load %arg19[%c62, %c0_57] : memref<206x128xf32, #tpu.memory_space<vmem>>, vector<40x128xf32>
    %227 = vector.broadcast %225 : vector<1x128xf32> to vector<40x128xf32>
    %228 = arith.mulf %227, %226 : vector<40x128xf32>
    %229 = arith.addf %224, %228 : vector<40x128xf32>
    %230 = vector.extract_strided_slice %11 {offsets = [45, 0], sizes = [1, 128], strides = [1, 1]} : vector<49x128xf32> to vector<1x128xf32>
    %c63 = arith.constant 63 : index
    %c0_58 = arith.constant 0 : index
    %231 = vector.load %arg19[%c63, %c0_58] : memref<206x128xf32, #tpu.memory_space<vmem>>, vector<40x128xf32>
    %232 = vector.broadcast %230 : vector<1x128xf32> to vector<40x128xf32>
    %233 = arith.mulf %232, %231 : vector<40x128xf32>
    %234 = arith.addf %229, %233 : vector<40x128xf32>
    %235 = vector.extract_strided_slice %11 {offsets = [46, 0], sizes = [1, 128], strides = [1, 1]} : vector<49x128xf32> to vector<1x128xf32>
    %c64 = arith.constant 64 : index
    %c0_59 = arith.constant 0 : index
    %236 = vector.load %arg19[%c64, %c0_59] : memref<206x128xf32, #tpu.memory_space<vmem>>, vector<40x128xf32>
    %237 = vector.broadcast %235 : vector<1x128xf32> to vector<40x128xf32>
    %238 = arith.mulf %237, %236 : vector<40x128xf32>
    %239 = arith.addf %234, %238 : vector<40x128xf32>
    %240 = vector.extract_strided_slice %11 {offsets = [47, 0], sizes = [1, 128], strides = [1, 1]} : vector<49x128xf32> to vector<1x128xf32>
    %c65 = arith.constant 65 : index
    %c0_60 = arith.constant 0 : index
    %241 = vector.load %arg19[%c65, %c0_60] : memref<206x128xf32, #tpu.memory_space<vmem>>, vector<40x128xf32>
    %242 = vector.broadcast %240 : vector<1x128xf32> to vector<40x128xf32>
    %243 = arith.mulf %242, %241 : vector<40x128xf32>
    %244 = arith.addf %239, %243 : vector<40x128xf32>
    %245 = vector.extract_strided_slice %11 {offsets = [48, 0], sizes = [1, 128], strides = [1, 1]} : vector<49x128xf32> to vector<1x128xf32>
    %c66 = arith.constant 66 : index
    %c0_61 = arith.constant 0 : index
    %246 = vector.load %arg19[%c66, %c0_61] : memref<206x128xf32, #tpu.memory_space<vmem>>, vector<40x128xf32>
    %247 = vector.broadcast %245 : vector<1x128xf32> to vector<40x128xf32>
    %248 = arith.mulf %247, %246 : vector<40x128xf32>
    %249 = arith.addf %244, %248 : vector<40x128xf32>
    %250 = arith.addf %45, %79 : vector<40x128xf32>
    %251 = arith.addf %250, %113 : vector<40x128xf32>
    %252 = arith.addf %251, %147 : vector<40x128xf32>
    %253 = arith.addf %252, %181 : vector<40x128xf32>
    %254 = arith.addf %253, %215 : vector<40x128xf32>
    %255 = arith.addf %254, %249 : vector<40x128xf32>
    %c0_62 = arith.constant 0 : index
    %c0_63 = arith.constant 0 : index
    %256 = vector.load %arg20[%c0_62, %c0_63] : memref<80x128xf32, #tpu.memory_space<vmem>>, vector<40x128xf32>
    tpu.vector_store %arg20[%c0_62, %c0_63], %255 {strides = array<i32>} : memref<80x128xf32, #tpu.memory_space<vmem>>, vector<40x128xf32>,
    %257 = vector.extract_strided_slice %11 {offsets = [0, 0], sizes = [1, 128], strides = [1, 1]} : vector<49x128xf32> to vector<1x128xf32>
    %c100 = arith.constant 100 : index
    %c0_64 = arith.constant 0 : index
    %258 = vector.load %arg19[%c100, %c0_64] : memref<206x128xf32, #tpu.memory_space<vmem>>, vector<40x128xf32>
    %259 = vector.broadcast %257 : vector<1x128xf32> to vector<40x128xf32>
    %260 = arith.mulf %259, %258 : vector<40x128xf32>
    %261 = vector.extract_strided_slice %11 {offsets = [1, 0], sizes = [1, 128], strides = [1, 1]} : vector<49x128xf32> to vector<1x128xf32>
    %c101 = arith.constant 101 : index
    %c0_65 = arith.constant 0 : index
    %262 = vector.load %arg19[%c101, %c0_65] : memref<206x128xf32, #tpu.memory_space<vmem>>, vector<40x128xf32>
    %263 = vector.broadcast %261 : vector<1x128xf32> to vector<40x128xf32>
    %264 = arith.mulf %263, %262 : vector<40x128xf32>
    %265 = arith.addf %260, %264 : vector<40x128xf32>
    %266 = vector.extract_strided_slice %11 {offsets = [2, 0], sizes = [1, 128], strides = [1, 1]} : vector<49x128xf32> to vector<1x128xf32>
    %c102 = arith.constant 102 : index
    %c0_66 = arith.constant 0 : index
    %267 = vector.load %arg19[%c102, %c0_66] : memref<206x128xf32, #tpu.memory_space<vmem>>, vector<40x128xf32>
    %268 = vector.broadcast %266 : vector<1x128xf32> to vector<40x128xf32>
    %269 = arith.mulf %268, %267 : vector<40x128xf32>
    %270 = arith.addf %265, %269 : vector<40x128xf32>
    %271 = vector.extract_strided_slice %11 {offsets = [3, 0], sizes = [1, 128], strides = [1, 1]} : vector<49x128xf32> to vector<1x128xf32>
    %c103 = arith.constant 103 : index
    %c0_67 = arith.constant 0 : index
    %272 = vector.load %arg19[%c103, %c0_67] : memref<206x128xf32, #tpu.memory_space<vmem>>, vector<40x128xf32>
    %273 = vector.broadcast %271 : vector<1x128xf32> to vector<40x128xf32>
    %274 = arith.mulf %273, %272 : vector<40x128xf32>
    %275 = arith.addf %270, %274 : vector<40x128xf32>
    %276 = vector.extract_strided_slice %11 {offsets = [4, 0], sizes = [1, 128], strides = [1, 1]} : vector<49x128xf32> to vector<1x128xf32>
    %c104 = arith.constant 104 : index
    %c0_68 = arith.constant 0 : index
    %277 = vector.load %arg19[%c104, %c0_68] : memref<206x128xf32, #tpu.memory_space<vmem>>, vector<40x128xf32>
    %278 = vector.broadcast %276 : vector<1x128xf32> to vector<40x128xf32>
    %279 = arith.mulf %278, %277 : vector<40x128xf32>
    %280 = arith.addf %275, %279 : vector<40x128xf32>
    %281 = vector.extract_strided_slice %11 {offsets = [5, 0], sizes = [1, 128], strides = [1, 1]} : vector<49x128xf32> to vector<1x128xf32>
    %c105 = arith.constant 105 : index
    %c0_69 = arith.constant 0 : index
    %282 = vector.load %arg19[%c105, %c0_69] : memref<206x128xf32, #tpu.memory_space<vmem>>, vector<40x128xf32>
    %283 = vector.broadcast %281 : vector<1x128xf32> to vector<40x128xf32>
    %284 = arith.mulf %283, %282 : vector<40x128xf32>
    %285 = arith.addf %280, %284 : vector<40x128xf32>
    %286 = vector.extract_strided_slice %11 {offsets = [6, 0], sizes = [1, 128], strides = [1, 1]} : vector<49x128xf32> to vector<1x128xf32>
    %c106 = arith.constant 106 : index
    %c0_70 = arith.constant 0 : index
    %287 = vector.load %arg19[%c106, %c0_70] : memref<206x128xf32, #tpu.memory_space<vmem>>, vector<40x128xf32>
    %288 = vector.broadcast %286 : vector<1x128xf32> to vector<40x128xf32>
    %289 = arith.mulf %288, %287 : vector<40x128xf32>
    %290 = arith.addf %285, %289 : vector<40x128xf32>
    %291 = vector.extract_strided_slice %11 {offsets = [7, 0], sizes = [1, 128], strides = [1, 1]} : vector<49x128xf32> to vector<1x128xf32>
    %c110 = arith.constant 110 : index
    %c0_71 = arith.constant 0 : index
    %292 = vector.load %arg19[%c110, %c0_71] : memref<206x128xf32, #tpu.memory_space<vmem>>, vector<40x128xf32>
    %293 = vector.broadcast %291 : vector<1x128xf32> to vector<40x128xf32>
    %294 = arith.mulf %293, %292 : vector<40x128xf32>
    %295 = vector.extract_strided_slice %11 {offsets = [8, 0], sizes = [1, 128], strides = [1, 1]} : vector<49x128xf32> to vector<1x128xf32>
    %c111 = arith.constant 111 : index
    %c0_72 = arith.constant 0 : index
    %296 = vector.load %arg19[%c111, %c0_72] : memref<206x128xf32, #tpu.memory_space<vmem>>, vector<40x128xf32>
    %297 = vector.broadcast %295 : vector<1x128xf32> to vector<40x128xf32>
    %298 = arith.mulf %297, %296 : vector<40x128xf32>
    %299 = arith.addf %294, %298 : vector<40x128xf32>
    %300 = vector.extract_strided_slice %11 {offsets = [9, 0], sizes = [1, 128], strides = [1, 1]} : vector<49x128xf32> to vector<1x128xf32>
    %c112 = arith.constant 112 : index
    %c0_73 = arith.constant 0 : index
    %301 = vector.load %arg19[%c112, %c0_73] : memref<206x128xf32, #tpu.memory_space<vmem>>, vector<40x128xf32>
    %302 = vector.broadcast %300 : vector<1x128xf32> to vector<40x128xf32>
    %303 = arith.mulf %302, %301 : vector<40x128xf32>
    %304 = arith.addf %299, %303 : vector<40x128xf32>
    %305 = vector.extract_strided_slice %11 {offsets = [10, 0], sizes = [1, 128], strides = [1, 1]} : vector<49x128xf32> to vector<1x128xf32>
    %c113 = arith.constant 113 : index
    %c0_74 = arith.constant 0 : index
    %306 = vector.load %arg19[%c113, %c0_74] : memref<206x128xf32, #tpu.memory_space<vmem>>, vector<40x128xf32>
    %307 = vector.broadcast %305 : vector<1x128xf32> to vector<40x128xf32>
    %308 = arith.mulf %307, %306 : vector<40x128xf32>
    %309 = arith.addf %304, %308 : vector<40x128xf32>
    %310 = vector.extract_strided_slice %11 {offsets = [11, 0], sizes = [1, 128], strides = [1, 1]} : vector<49x128xf32> to vector<1x128xf32>
    %c114 = arith.constant 114 : index
    %c0_75 = arith.constant 0 : index
    %311 = vector.load %arg19[%c114, %c0_75] : memref<206x128xf32, #tpu.memory_space<vmem>>, vector<40x128xf32>
    %312 = vector.broadcast %310 : vector<1x128xf32> to vector<40x128xf32>
    %313 = arith.mulf %312, %311 : vector<40x128xf32>
    %314 = arith.addf %309, %313 : vector<40x128xf32>
    %315 = vector.extract_strided_slice %11 {offsets = [12, 0], sizes = [1, 128], strides = [1, 1]} : vector<49x128xf32> to vector<1x128xf32>
    %c115 = arith.constant 115 : index
    %c0_76 = arith.constant 0 : index
    %316 = vector.load %arg19[%c115, %c0_76] : memref<206x128xf32, #tpu.memory_space<vmem>>, vector<40x128xf32>
    %317 = vector.broadcast %315 : vector<1x128xf32> to vector<40x128xf32>
    %318 = arith.mulf %317, %316 : vector<40x128xf32>
    %319 = arith.addf %314, %318 : vector<40x128xf32>
    %320 = vector.extract_strided_slice %11 {offsets = [13, 0], sizes = [1, 128], strides = [1, 1]} : vector<49x128xf32> to vector<1x128xf32>
    %c116 = arith.constant 116 : index
    %c0_77 = arith.constant 0 : index
    %321 = vector.load %arg19[%c116, %c0_77] : memref<206x128xf32, #tpu.memory_space<vmem>>, vector<40x128xf32>
    %322 = vector.broadcast %320 : vector<1x128xf32> to vector<40x128xf32>
    %323 = arith.mulf %322, %321 : vector<40x128xf32>
    %324 = arith.addf %319, %323 : vector<40x128xf32>
    %325 = vector.extract_strided_slice %11 {offsets = [14, 0], sizes = [1, 128], strides = [1, 1]} : vector<49x128xf32> to vector<1x128xf32>
    %c120 = arith.constant 120 : index
    %c0_78 = arith.constant 0 : index
    %326 = vector.load %arg19[%c120, %c0_78] : memref<206x128xf32, #tpu.memory_space<vmem>>, vector<40x128xf32>
    %327 = vector.broadcast %325 : vector<1x128xf32> to vector<40x128xf32>
    %328 = arith.mulf %327, %326 : vector<40x128xf32>
    %329 = vector.extract_strided_slice %11 {offsets = [15, 0], sizes = [1, 128], strides = [1, 1]} : vector<49x128xf32> to vector<1x128xf32>
    %c121 = arith.constant 121 : index
    %c0_79 = arith.constant 0 : index
    %330 = vector.load %arg19[%c121, %c0_79] : memref<206x128xf32, #tpu.memory_space<vmem>>, vector<40x128xf32>
    %331 = vector.broadcast %329 : vector<1x128xf32> to vector<40x128xf32>
    %332 = arith.mulf %331, %330 : vector<40x128xf32>
    %333 = arith.addf %328, %332 : vector<40x128xf32>
    %334 = vector.extract_strided_slice %11 {offsets = [16, 0], sizes = [1, 128], strides = [1, 1]} : vector<49x128xf32> to vector<1x128xf32>
    %c122 = arith.constant 122 : index
    %c0_80 = arith.constant 0 : index
    %335 = vector.load %arg19[%c122, %c0_80] : memref<206x128xf32, #tpu.memory_space<vmem>>, vector<40x128xf32>
    %336 = vector.broadcast %334 : vector<1x128xf32> to vector<40x128xf32>
    %337 = arith.mulf %336, %335 : vector<40x128xf32>
    %338 = arith.addf %333, %337 : vector<40x128xf32>
    %339 = vector.extract_strided_slice %11 {offsets = [17, 0], sizes = [1, 128], strides = [1, 1]} : vector<49x128xf32> to vector<1x128xf32>
    %c123 = arith.constant 123 : index
    %c0_81 = arith.constant 0 : index
    %340 = vector.load %arg19[%c123, %c0_81] : memref<206x128xf32, #tpu.memory_space<vmem>>, vector<40x128xf32>
    %341 = vector.broadcast %339 : vector<1x128xf32> to vector<40x128xf32>
    %342 = arith.mulf %341, %340 : vector<40x128xf32>
    %343 = arith.addf %338, %342 : vector<40x128xf32>
    %344 = vector.extract_strided_slice %11 {offsets = [18, 0], sizes = [1, 128], strides = [1, 1]} : vector<49x128xf32> to vector<1x128xf32>
    %c124 = arith.constant 124 : index
    %c0_82 = arith.constant 0 : index
    %345 = vector.load %arg19[%c124, %c0_82] : memref<206x128xf32, #tpu.memory_space<vmem>>, vector<40x128xf32>
    %346 = vector.broadcast %344 : vector<1x128xf32> to vector<40x128xf32>
    %347 = arith.mulf %346, %345 : vector<40x128xf32>
    %348 = arith.addf %343, %347 : vector<40x128xf32>
    %349 = vector.extract_strided_slice %11 {offsets = [19, 0], sizes = [1, 128], strides = [1, 1]} : vector<49x128xf32> to vector<1x128xf32>
    %c125 = arith.constant 125 : index
    %c0_83 = arith.constant 0 : index
    %350 = vector.load %arg19[%c125, %c0_83] : memref<206x128xf32, #tpu.memory_space<vmem>>, vector<40x128xf32>
    %351 = vector.broadcast %349 : vector<1x128xf32> to vector<40x128xf32>
    %352 = arith.mulf %351, %350 : vector<40x128xf32>
    %353 = arith.addf %348, %352 : vector<40x128xf32>
    %354 = vector.extract_strided_slice %11 {offsets = [20, 0], sizes = [1, 128], strides = [1, 1]} : vector<49x128xf32> to vector<1x128xf32>
    %c126 = arith.constant 126 : index
    %c0_84 = arith.constant 0 : index
    %355 = vector.load %arg19[%c126, %c0_84] : memref<206x128xf32, #tpu.memory_space<vmem>>, vector<40x128xf32>
    %356 = vector.broadcast %354 : vector<1x128xf32> to vector<40x128xf32>
    %357 = arith.mulf %356, %355 : vector<40x128xf32>
    %358 = arith.addf %353, %357 : vector<40x128xf32>
    %359 = vector.extract_strided_slice %11 {offsets = [21, 0], sizes = [1, 128], strides = [1, 1]} : vector<49x128xf32> to vector<1x128xf32>
    %c130 = arith.constant 130 : index
    %c0_85 = arith.constant 0 : index
    %360 = vector.load %arg19[%c130, %c0_85] : memref<206x128xf32, #tpu.memory_space<vmem>>, vector<40x128xf32>
    %361 = vector.broadcast %359 : vector<1x128xf32> to vector<40x128xf32>
    %362 = arith.mulf %361, %360 : vector<40x128xf32>
    %363 = vector.extract_strided_slice %11 {offsets = [22, 0], sizes = [1, 128], strides = [1, 1]} : vector<49x128xf32> to vector<1x128xf32>
    %c131 = arith.constant 131 : index
    %c0_86 = arith.constant 0 : index
    %364 = vector.load %arg19[%c131, %c0_86] : memref<206x128xf32, #tpu.memory_space<vmem>>, vector<40x128xf32>
    %365 = vector.broadcast %363 : vector<1x128xf32> to vector<40x128xf32>
    %366 = arith.mulf %365, %364 : vector<40x128xf32>
    %367 = arith.addf %362, %366 : vector<40x128xf32>
    %368 = vector.extract_strided_slice %11 {offsets = [23, 0], sizes = [1, 128], strides = [1, 1]} : vector<49x128xf32> to vector<1x128xf32>
    %c132 = arith.constant 132 : index
    %c0_87 = arith.constant 0 : index
    %369 = vector.load %arg19[%c132, %c0_87] : memref<206x128xf32, #tpu.memory_space<vmem>>, vector<40x128xf32>
    %370 = vector.broadcast %368 : vector<1x128xf32> to vector<40x128xf32>
    %371 = arith.mulf %370, %369 : vector<40x128xf32>
    %372 = arith.addf %367, %371 : vector<40x128xf32>
    %373 = vector.extract_strided_slice %11 {offsets = [24, 0], sizes = [1, 128], strides = [1, 1]} : vector<49x128xf32> to vector<1x128xf32>
    %c133_88 = arith.constant 133 : index
    %c0_89 = arith.constant 0 : index
    %374 = vector.load %arg19[%c133_88, %c0_89] : memref<206x128xf32, #tpu.memory_space<vmem>>, vector<40x128xf32>
    %375 = vector.broadcast %373 : vector<1x128xf32> to vector<40x128xf32>
    %376 = arith.mulf %375, %374 : vector<40x128xf32>
    %377 = arith.addf %372, %376 : vector<40x128xf32>
    %378 = vector.extract_strided_slice %11 {offsets = [25, 0], sizes = [1, 128], strides = [1, 1]} : vector<49x128xf32> to vector<1x128xf32>
    %c134 = arith.constant 134 : index
    %c0_90 = arith.constant 0 : index
    %379 = vector.load %arg19[%c134, %c0_90] : memref<206x128xf32, #tpu.memory_space<vmem>>, vector<40x128xf32>
    %380 = vector.broadcast %378 : vector<1x128xf32> to vector<40x128xf32>
    %381 = arith.mulf %380, %379 : vector<40x128xf32>
    %382 = arith.addf %377, %381 : vector<40x128xf32>
    %383 = vector.extract_strided_slice %11 {offsets = [26, 0], sizes = [1, 128], strides = [1, 1]} : vector<49x128xf32> to vector<1x128xf32>
    %c135 = arith.constant 135 : index
    %c0_91 = arith.constant 0 : index
    %384 = vector.load %arg19[%c135, %c0_91] : memref<206x128xf32, #tpu.memory_space<vmem>>, vector<40x128xf32>
    %385 = vector.broadcast %383 : vector<1x128xf32> to vector<40x128xf32>
    %386 = arith.mulf %385, %384 : vector<40x128xf32>
    %387 = arith.addf %382, %386 : vector<40x128xf32>
    %388 = vector.extract_strided_slice %11 {offsets = [27, 0], sizes = [1, 128], strides = [1, 1]} : vector<49x128xf32> to vector<1x128xf32>
    %c136 = arith.constant 136 : index
    %c0_92 = arith.constant 0 : index
    %389 = vector.load %arg19[%c136, %c0_92] : memref<206x128xf32, #tpu.memory_space<vmem>>, vector<40x128xf32>
    %390 = vector.broadcast %388 : vector<1x128xf32> to vector<40x128xf32>
    %391 = arith.mulf %390, %389 : vector<40x128xf32>
    %392 = arith.addf %387, %391 : vector<40x128xf32>
    %393 = vector.extract_strided_slice %11 {offsets = [28, 0], sizes = [1, 128], strides = [1, 1]} : vector<49x128xf32> to vector<1x128xf32>
    %c140 = arith.constant 140 : index
    %c0_93 = arith.constant 0 : index
    %394 = vector.load %arg19[%c140, %c0_93] : memref<206x128xf32, #tpu.memory_space<vmem>>, vector<40x128xf32>
    %395 = vector.broadcast %393 : vector<1x128xf32> to vector<40x128xf32>
    %396 = arith.mulf %395, %394 : vector<40x128xf32>
    %397 = vector.extract_strided_slice %11 {offsets = [29, 0], sizes = [1, 128], strides = [1, 1]} : vector<49x128xf32> to vector<1x128xf32>
    %c141 = arith.constant 141 : index
    %c0_94 = arith.constant 0 : index
    %398 = vector.load %arg19[%c141, %c0_94] : memref<206x128xf32, #tpu.memory_space<vmem>>, vector<40x128xf32>
    %399 = vector.broadcast %397 : vector<1x128xf32> to vector<40x128xf32>
    %400 = arith.mulf %399, %398 : vector<40x128xf32>
    %401 = arith.addf %396, %400 : vector<40x128xf32>
    %402 = vector.extract_strided_slice %11 {offsets = [30, 0], sizes = [1, 128], strides = [1, 1]} : vector<49x128xf32> to vector<1x128xf32>
    %c142 = arith.constant 142 : index
    %c0_95 = arith.constant 0 : index
    %403 = vector.load %arg19[%c142, %c0_95] : memref<206x128xf32, #tpu.memory_space<vmem>>, vector<40x128xf32>
    %404 = vector.broadcast %402 : vector<1x128xf32> to vector<40x128xf32>
    %405 = arith.mulf %404, %403 : vector<40x128xf32>
    %406 = arith.addf %401, %405 : vector<40x128xf32>
    %407 = vector.extract_strided_slice %11 {offsets = [31, 0], sizes = [1, 128], strides = [1, 1]} : vector<49x128xf32> to vector<1x128xf32>
    %c143 = arith.constant 143 : index
    %c0_96 = arith.constant 0 : index
    %408 = vector.load %arg19[%c143, %c0_96] : memref<206x128xf32, #tpu.memory_space<vmem>>, vector<40x128xf32>
    %409 = vector.broadcast %407 : vector<1x128xf32> to vector<40x128xf32>
    %410 = arith.mulf %409, %408 : vector<40x128xf32>
    %411 = arith.addf %406, %410 : vector<40x128xf32>
    %412 = vector.extract_strided_slice %11 {offsets = [32, 0], sizes = [1, 128], strides = [1, 1]} : vector<49x128xf32> to vector<1x128xf32>
    %c144 = arith.constant 144 : index
    %c0_97 = arith.constant 0 : index
    %413 = vector.load %arg19[%c144, %c0_97] : memref<206x128xf32, #tpu.memory_space<vmem>>, vector<40x128xf32>
    %414 = vector.broadcast %412 : vector<1x128xf32> to vector<40x128xf32>
    %415 = arith.mulf %414, %413 : vector<40x128xf32>
    %416 = arith.addf %411, %415 : vector<40x128xf32>
    %417 = vector.extract_strided_slice %11 {offsets = [33, 0], sizes = [1, 128], strides = [1, 1]} : vector<49x128xf32> to vector<1x128xf32>
    %c145 = arith.constant 145 : index
    %c0_98 = arith.constant 0 : index
    %418 = vector.load %arg19[%c145, %c0_98] : memref<206x128xf32, #tpu.memory_space<vmem>>, vector<40x128xf32>
    %419 = vector.broadcast %417 : vector<1x128xf32> to vector<40x128xf32>
    %420 = arith.mulf %419, %418 : vector<40x128xf32>
    %421 = arith.addf %416, %420 : vector<40x128xf32>
    %422 = vector.extract_strided_slice %11 {offsets = [34, 0], sizes = [1, 128], strides = [1, 1]} : vector<49x128xf32> to vector<1x128xf32>
    %c146 = arith.constant 146 : index
    %c0_99 = arith.constant 0 : index
    %423 = vector.load %arg19[%c146, %c0_99] : memref<206x128xf32, #tpu.memory_space<vmem>>, vector<40x128xf32>
    %424 = vector.broadcast %422 : vector<1x128xf32> to vector<40x128xf32>
    %425 = arith.mulf %424, %423 : vector<40x128xf32>
    %426 = arith.addf %421, %425 : vector<40x128xf32>
    %427 = vector.extract_strided_slice %11 {offsets = [35, 0], sizes = [1, 128], strides = [1, 1]} : vector<49x128xf32> to vector<1x128xf32>
    %c150 = arith.constant 150 : index
    %c0_100 = arith.constant 0 : index
    %428 = vector.load %arg19[%c150, %c0_100] : memref<206x128xf32, #tpu.memory_space<vmem>>, vector<40x128xf32>
    %429 = vector.broadcast %427 : vector<1x128xf32> to vector<40x128xf32>
    %430 = arith.mulf %429, %428 : vector<40x128xf32>
    %431 = vector.extract_strided_slice %11 {offsets = [36, 0], sizes = [1, 128], strides = [1, 1]} : vector<49x128xf32> to vector<1x128xf32>
    %c151 = arith.constant 151 : index
    %c0_101 = arith.constant 0 : index
    %432 = vector.load %arg19[%c151, %c0_101] : memref<206x128xf32, #tpu.memory_space<vmem>>, vector<40x128xf32>
    %433 = vector.broadcast %431 : vector<1x128xf32> to vector<40x128xf32>
    %434 = arith.mulf %433, %432 : vector<40x128xf32>
    %435 = arith.addf %430, %434 : vector<40x128xf32>
    %436 = vector.extract_strided_slice %11 {offsets = [37, 0], sizes = [1, 128], strides = [1, 1]} : vector<49x128xf32> to vector<1x128xf32>
    %c152 = arith.constant 152 : index
    %c0_102 = arith.constant 0 : index
    %437 = vector.load %arg19[%c152, %c0_102] : memref<206x128xf32, #tpu.memory_space<vmem>>, vector<40x128xf32>
    %438 = vector.broadcast %436 : vector<1x128xf32> to vector<40x128xf32>
    %439 = arith.mulf %438, %437 : vector<40x128xf32>
    %440 = arith.addf %435, %439 : vector<40x128xf32>
    %441 = vector.extract_strided_slice %11 {offsets = [38, 0], sizes = [1, 128], strides = [1, 1]} : vector<49x128xf32> to vector<1x128xf32>
    %c153 = arith.constant 153 : index
    %c0_103 = arith.constant 0 : index
    %442 = vector.load %arg19[%c153, %c0_103] : memref<206x128xf32, #tpu.memory_space<vmem>>, vector<40x128xf32>
    %443 = vector.broadcast %441 : vector<1x128xf32> to vector<40x128xf32>
    %444 = arith.mulf %443, %442 : vector<40x128xf32>
    %445 = arith.addf %440, %444 : vector<40x128xf32>
    %446 = vector.extract_strided_slice %11 {offsets = [39, 0], sizes = [1, 128], strides = [1, 1]} : vector<49x128xf32> to vector<1x128xf32>
    %c154 = arith.constant 154 : index
    %c0_104 = arith.constant 0 : index
    %447 = vector.load %arg19[%c154, %c0_104] : memref<206x128xf32, #tpu.memory_space<vmem>>, vector<40x128xf32>
    %448 = vector.broadcast %446 : vector<1x128xf32> to vector<40x128xf32>
    %449 = arith.mulf %448, %447 : vector<40x128xf32>
    %450 = arith.addf %445, %449 : vector<40x128xf32>
    %451 = vector.extract_strided_slice %11 {offsets = [40, 0], sizes = [1, 128], strides = [1, 1]} : vector<49x128xf32> to vector<1x128xf32>
    %c155 = arith.constant 155 : index
    %c0_105 = arith.constant 0 : index
    %452 = vector.load %arg19[%c155, %c0_105] : memref<206x128xf32, #tpu.memory_space<vmem>>, vector<40x128xf32>
    %453 = vector.broadcast %451 : vector<1x128xf32> to vector<40x128xf32>
    %454 = arith.mulf %453, %452 : vector<40x128xf32>
    %455 = arith.addf %450, %454 : vector<40x128xf32>
    %456 = vector.extract_strided_slice %11 {offsets = [41, 0], sizes = [1, 128], strides = [1, 1]} : vector<49x128xf32> to vector<1x128xf32>
    %c156 = arith.constant 156 : index
    %c0_106 = arith.constant 0 : index
    %457 = vector.load %arg19[%c156, %c0_106] : memref<206x128xf32, #tpu.memory_space<vmem>>, vector<40x128xf32>
    %458 = vector.broadcast %456 : vector<1x128xf32> to vector<40x128xf32>
    %459 = arith.mulf %458, %457 : vector<40x128xf32>
    %460 = arith.addf %455, %459 : vector<40x128xf32>
    %461 = vector.extract_strided_slice %11 {offsets = [42, 0], sizes = [1, 128], strides = [1, 1]} : vector<49x128xf32> to vector<1x128xf32>
    %c160 = arith.constant 160 : index
    %c0_107 = arith.constant 0 : index
    %462 = vector.load %arg19[%c160, %c0_107] : memref<206x128xf32, #tpu.memory_space<vmem>>, vector<40x128xf32>
    %463 = vector.broadcast %461 : vector<1x128xf32> to vector<40x128xf32>
    %464 = arith.mulf %463, %462 : vector<40x128xf32>
    %465 = vector.extract_strided_slice %11 {offsets = [43, 0], sizes = [1, 128], strides = [1, 1]} : vector<49x128xf32> to vector<1x128xf32>
    %c161 = arith.constant 161 : index
    %c0_108 = arith.constant 0 : index
    %466 = vector.load %arg19[%c161, %c0_108] : memref<206x128xf32, #tpu.memory_space<vmem>>, vector<40x128xf32>
    %467 = vector.broadcast %465 : vector<1x128xf32> to vector<40x128xf32>
    %468 = arith.mulf %467, %466 : vector<40x128xf32>
    %469 = arith.addf %464, %468 : vector<40x128xf32>
    %470 = vector.extract_strided_slice %11 {offsets = [44, 0], sizes = [1, 128], strides = [1, 1]} : vector<49x128xf32> to vector<1x128xf32>
    %c162 = arith.constant 162 : index
    %c0_109 = arith.constant 0 : index
    %471 = vector.load %arg19[%c162, %c0_109] : memref<206x128xf32, #tpu.memory_space<vmem>>, vector<40x128xf32>
    %472 = vector.broadcast %470 : vector<1x128xf32> to vector<40x128xf32>
    %473 = arith.mulf %472, %471 : vector<40x128xf32>
    %474 = arith.addf %469, %473 : vector<40x128xf32>
    %475 = vector.extract_strided_slice %11 {offsets = [45, 0], sizes = [1, 128], strides = [1, 1]} : vector<49x128xf32> to vector<1x128xf32>
    %c163 = arith.constant 163 : index
    %c0_110 = arith.constant 0 : index
    %476 = vector.load %arg19[%c163, %c0_110] : memref<206x128xf32, #tpu.memory_space<vmem>>, vector<40x128xf32>
    %477 = vector.broadcast %475 : vector<1x128xf32> to vector<40x128xf32>
    %478 = arith.mulf %477, %476 : vector<40x128xf32>
    %479 = arith.addf %474, %478 : vector<40x128xf32>
    %480 = vector.extract_strided_slice %11 {offsets = [46, 0], sizes = [1, 128], strides = [1, 1]} : vector<49x128xf32> to vector<1x128xf32>
    %c164 = arith.constant 164 : index
    %c0_111 = arith.constant 0 : index
    %481 = vector.load %arg19[%c164, %c0_111] : memref<206x128xf32, #tpu.memory_space<vmem>>, vector<40x128xf32>
    %482 = vector.broadcast %480 : vector<1x128xf32> to vector<40x128xf32>
    %483 = arith.mulf %482, %481 : vector<40x128xf32>
    %484 = arith.addf %479, %483 : vector<40x128xf32>
    %485 = vector.extract_strided_slice %11 {offsets = [47, 0], sizes = [1, 128], strides = [1, 1]} : vector<49x128xf32> to vector<1x128xf32>
    %c165 = arith.constant 165 : index
    %c0_112 = arith.constant 0 : index
    %486 = vector.load %arg19[%c165, %c0_112] : memref<206x128xf32, #tpu.memory_space<vmem>>, vector<40x128xf32>
    %487 = vector.broadcast %485 : vector<1x128xf32> to vector<40x128xf32>
    %488 = arith.mulf %487, %486 : vector<40x128xf32>
    %489 = arith.addf %484, %488 : vector<40x128xf32>
    %490 = vector.extract_strided_slice %11 {offsets = [48, 0], sizes = [1, 128], strides = [1, 1]} : vector<49x128xf32> to vector<1x128xf32>
    %c166 = arith.constant 166 : index
    %c0_113 = arith.constant 0 : index
    %491 = vector.load %arg19[%c166, %c0_113] : memref<206x128xf32, #tpu.memory_space<vmem>>, vector<40x128xf32>
    %492 = vector.broadcast %490 : vector<1x128xf32> to vector<40x128xf32>
    %493 = arith.mulf %492, %491 : vector<40x128xf32>
    %494 = arith.addf %489, %493 : vector<40x128xf32>
    %495 = arith.addf %290, %324 : vector<40x128xf32>
    %496 = arith.addf %495, %358 : vector<40x128xf32>
    %497 = arith.addf %496, %392 : vector<40x128xf32>
    %498 = arith.addf %497, %426 : vector<40x128xf32>
    %499 = arith.addf %498, %460 : vector<40x128xf32>
    %500 = arith.addf %499, %494 : vector<40x128xf32>
    %c40_114 = arith.constant 40 : index
    %c0_115 = arith.constant 0 : index
    %501 = vector.load %arg20[%c40_114, %c0_115] : memref<80x128xf32, #tpu.memory_space<vmem>>, vector<40x128xf32>
    tpu.vector_store %arg20[%c40_114, %c0_115], %500 {strides = array<i32>} : memref<80x128xf32, #tpu.memory_space<vmem>>, vector<40x128xf32>,
    %c0_116 = arith.constant 0 : index
    %c0_117 = arith.constant 0 : index
    %502 = vector.load %arg20[%c0_116, %c0_117] : memref<80x128xf32, #tpu.memory_space<vmem>>, vector<80x128xf32>
    %c0_118 = arith.constant 0 : index
    %c0_119 = arith.constant 0 : index
    %c0_120 = arith.constant 0 : index
    %503 = vector.load %arg9[%c0_118, %c0_119, %c0_120] : memref<1x1x128xf32, #tpu.memory_space<vmem>>, vector<1x1x128xf32>
    %504 = vector.shape_cast %503 : vector<1x1x128xf32> to vector<1x128xf32>
    %505 = vector.broadcast %504 : vector<1x128xf32> to vector<80x128xf32>
    %506 = arith.addf %502, %505 : vector<80x128xf32>
    %c0_121 = arith.constant 0 : index
    %c0_122 = arith.constant 0 : index
    %c0_123 = arith.constant 0 : index
    %507 = vector.load %arg10[%c0_121, %c0_122, %c0_123] : memref<1x1x128xf32, #tpu.memory_space<vmem>>, vector<1x1x128xf32>
    %508 = vector.shape_cast %507 : vector<1x1x128xf32> to vector<1x128xf32>
    %c0_124 = arith.constant 0 : index
    %c0_125 = arith.constant 0 : index
    %c0_126 = arith.constant 0 : index
    %509 = vector.load %arg11[%c0_124, %c0_125, %c0_126] : memref<1x1x128xf32, #tpu.memory_space<vmem>>, vector<1x1x128xf32>
    %510 = vector.shape_cast %509 : vector<1x1x128xf32> to vector<1x128xf32>
    %cst_127 = arith.constant dense<0.000000e+00> : vector<80xf32>
    %511 = vector.multi_reduction <add>, %506, %cst_127 [1] : vector<80x128xf32> to vector<80xf32>
    %512 = vector.shape_cast %511 : vector<80xf32> to vector<80x1xf32>
    %cst_128 = arith.constant 1.280000e+02 : f32
    %513 = vector.broadcast %cst_128 : f32 to vector<80x1xf32>
    %514 = arith.divf %512, %513 : vector<80x1xf32>
    %515 = vector.broadcast %514 : vector<80x1xf32> to vector<80x128xf32>
    %516 = arith.subf %506, %515 : vector<80x128xf32>
    %517 = arith.mulf %516, %516 : vector<80x128xf32>
    %cst_129 = arith.constant dense<0.000000e+00> : vector<80xf32>
    %518 = vector.multi_reduction <add>, %517, %cst_129 [1] : vector<80x128xf32> to vector<80xf32>
    %519 = vector.shape_cast %518 : vector<80xf32> to vector<80x1xf32>
    %cst_130 = arith.constant 1.280000e+02 : f32
    %520 = vector.broadcast %cst_130 : f32 to vector<80x1xf32>
    %521 = arith.divf %519, %520 : vector<80x1xf32>
    %cst_131 = arith.constant 9.99999997E-7 : f32
    %522 = vector.broadcast %cst_131 : f32 to vector<80x1xf32>
    %523 = arith.addf %521, %522 : vector<80x1xf32>
    %524 = math.rsqrt %523 : vector<80x1xf32>
    %525 = vector.broadcast %524 : vector<80x1xf32> to vector<80x128xf32>
    %526 = arith.mulf %516, %525 : vector<80x128xf32>
    %527 = vector.broadcast %508 : vector<1x128xf32> to vector<80x128xf32>
    %528 = arith.mulf %526, %527 : vector<80x128xf32>
    %529 = vector.broadcast %510 : vector<1x128xf32> to vector<80x128xf32>
    %530 = arith.addf %528, %529 : vector<80x128xf32>
    %531 = arith.truncf %530 : vector<80x128xf32> to vector<80x128xbf16>
    %c0_132 = arith.constant 0 : index
    %c0_133 = arith.constant 0 : index
    %c0_134 = arith.constant 0 : index
    %532 = vector.load %arg12[%c0_132, %c0_133, %c0_134] : memref<1x128x512xbf16, #tpu.memory_space<vmem>>, vector<1x128x512xbf16>
    %533 = vector.shape_cast %532 : vector<1x128x512xbf16> to vector<128x512xbf16>
    %cst_135 = arith.constant dense<0.000000e+00> : vector<80x512xf32>
    %534 = tpu.matmul %531, %533, %cst_135 {dimension_numbers = #tpu.dot_dimension_numbers<[1], [0], [0], [1], [0, 0, 1, 1], [], []>} : vector<80x128xbf16>, vector<128x512xbf16>, vector<80x512xf32> -> vector<80x512xf32>
    %c0_136 = arith.constant 0 : index
    %c0_137 = arith.constant 0 : index
    %c0_138 = arith.constant 0 : index
    %535 = vector.load %arg13[%c0_136, %c0_137, %c0_138] : memref<1x1x512xf32, #tpu.memory_space<vmem>>, vector<1x1x512xf32>
    %536 = vector.shape_cast %535 : vector<1x1x512xf32> to vector<1x512xf32>
    %537 = vector.broadcast %536 : vector<1x512xf32> to vector<80x512xf32>
    %538 = arith.addf %534, %537 : vector<80x512xf32>
    %cst_139 = arith.constant 5.000000e-01 : f32
    %539 = vector.broadcast %cst_139 : f32 to vector<80x512xf32>
    %540 = arith.mulf %539, %538 : vector<80x512xf32>
    %cst_140 = arith.constant 4.471500e-02 : f32
    %541 = vector.broadcast %cst_140 : f32 to vector<80x512xf32>
    %542 = arith.mulf %541, %538 : vector<80x512xf32>
    %543 = arith.mulf %542, %538 : vector<80x512xf32>
    %544 = arith.mulf %543, %538 : vector<80x512xf32>
    %545 = arith.addf %538, %544 : vector<80x512xf32>
    %cst_141 = arith.constant 0.797884583 : f32
    %546 = vector.broadcast %cst_141 : f32 to vector<80x512xf32>
    %547 = arith.mulf %546, %545 : vector<80x512xf32>
    %548 = math.tanh %547 : vector<80x512xf32>
    %cst_142 = arith.constant 1.000000e+00 : f32
    %549 = vector.broadcast %cst_142 : f32 to vector<80x512xf32>
    %550 = arith.addf %549, %548 : vector<80x512xf32>
    %551 = arith.mulf %540, %550 : vector<80x512xf32>
    %552 = arith.truncf %551 : vector<80x512xf32> to vector<80x512xbf16>
    %c0_143 = arith.constant 0 : index
    %c0_144 = arith.constant 0 : index
    %c0_145 = arith.constant 0 : index
    %553 = vector.load %arg14[%c0_143, %c0_144, %c0_145] : memref<1x512x128xbf16, #tpu.memory_space<vmem>>, vector<1x512x128xbf16>
    %554 = vector.shape_cast %553 : vector<1x512x128xbf16> to vector<512x128xbf16>
    %cst_146 = arith.constant dense<0.000000e+00> : vector<80x128xf32>
    %555 = tpu.matmul %552, %554, %cst_146 {dimension_numbers = #tpu.dot_dimension_numbers<[1], [0], [0], [1], [0, 0, 1, 1], [], []>} : vector<80x512xbf16>, vector<512x128xbf16>, vector<80x128xf32> -> vector<80x128xf32>
    %c0_147 = arith.constant 0 : index
    %c0_148 = arith.constant 0 : index
    %c0_149 = arith.constant 0 : index
    %556 = vector.load %arg15[%c0_147, %c0_148, %c0_149] : memref<1x1x128xf32, #tpu.memory_space<vmem>>, vector<1x1x128xf32>
    %557 = vector.shape_cast %556 : vector<1x1x128xf32> to vector<1x128xf32>
    %558 = vector.broadcast %557 : vector<1x128xf32> to vector<80x128xf32>
    %559 = arith.addf %555, %558 : vector<80x128xf32>
    %c0_150 = arith.constant 0 : index
    %c0_151 = arith.constant 0 : index
    %560 = vector.load %arg18[%c0_150, %c0_151] : memref<80x128xf32, #tpu.memory_space<vmem>>, vector<80x128xf32>
    %c0_152 = arith.constant 0 : index
    %c0_153 = arith.constant 0 : index
    %c0_154 = arith.constant 0 : index
    %561 = vector.load %arg16[%c0_152, %c0_153, %c0_154] : memref<1x1x128xf32, #tpu.memory_space<vmem>>, vector<1x1x128xf32>
    %562 = vector.shape_cast %561 : vector<1x1x128xf32> to vector<1x128xf32>
    %563 = vector.broadcast %562 : vector<1x128xf32> to vector<80x128xf32>
    %564 = arith.mulf %563, %559 : vector<80x128xf32>
    %565 = arith.addf %560, %564 : vector<80x128xf32>
    %cst_155 = arith.constant 0.000000e+00 : f32
    %566 = vector.shape_cast %2 : vector<80x1xi1> to vector<80x1xi1>
    %567 = vector.broadcast %566 : vector<80x1xi1> to vector<80x128xi1>
    %568 = vector.broadcast %cst_155 : f32 to vector<80x128xf32>
    %569 = arith.select %567, %565, %568 : vector<80x128xi1>, vector<80x128xf32>
    %c0_156 = arith.constant 0 : index
    %c0_157 = arith.constant 0 : index
    %570 = vector.load %arg18[%c0_156, %c0_157] : memref<80x128xf32, #tpu.memory_space<vmem>>, vector<80x128xf32>
    tpu.vector_store %arg18[%c0_156, %c0_157], %569 {strides = array<i32>} : memref<80x128xf32, #tpu.memory_space<vmem>>, vector<80x128xf32>,
    %c1_i32 = arith.constant 1 : i32
    %571 = arith.cmpi eq, %arg1, %c1_i32 : i32
    %572 = arith.extui %571 : i1 to i32
    %c0_i32_158 = arith.constant 0 : i32
    %573 = arith.cmpi ne, %572, %c0_i32_158 : i32
    scf.if %573 {
      %c0_159 = arith.constant 0 : index
      %c0_160 = arith.constant 0 : index
      %c0_161 = arith.constant 0 : index
      %574 = vector.load %arg17[%c0_159, %c0_160, %c0_161] : memref<1x80x128xf32, #tpu.memory_space<vmem>>, vector<1x80x128xf32>
      %575 = vector.shape_cast %574 : vector<1x80x128xf32> to vector<80x128xf32>
      %576 = vector.shape_cast %569 : vector<80x128xf32> to vector<1x80x128xf32>
      tpu.vector_store %arg17[%c0_159, %c0_160, %c0_161], %576 {strides = array<i32>} : memref<1x80x128xf32, #tpu.memory_space<vmem>>, vector<1x80x128xf32>,
    } else {
    }
    return
  }
  func.func @transform_0(%arg0: i32, %arg1: i32) -> (i32, i32, i32) {
    %c0_i32 = arith.constant 0 : i32
    %c0_i32_0 = arith.constant 0 : i32
    %c0_i32_1 = arith.constant 0 : i32
    return %arg0, %c0_i32, %c0_i32_0 : i32, i32, i32
  }
  func.func @transform_1(%arg0: i32, %arg1: i32) -> (i32, i32) {
    %c0_i32 = arith.constant 0 : i32
    %c0_i32_0 = arith.constant 0 : i32
    %c0_i32_1 = arith.constant 0 : i32
    return %c0_i32, %c0_i32_0 : i32, i32
  }
  func.func @transform_2(%arg0: i32, %arg1: i32) -> (i32, i32) {
    %c0_i32 = arith.constant 0 : i32
    %c0_i32_0 = arith.constant 0 : i32
    %c0_i32_1 = arith.constant 0 : i32
    return %c0_i32, %c0_i32_0 : i32, i32
  }
  func.func @transform_3(%arg0: i32, %arg1: i32) -> (i32, i32) {
    %c0_i32 = arith.constant 0 : i32
    %c0_i32_0 = arith.constant 0 : i32
    %c0_i32_1 = arith.constant 0 : i32
    return %c0_i32, %c0_i32_0 : i32, i32
  }
  func.func @transform_4(%arg0: i32, %arg1: i32) -> (i32, i32) {
    %c0_i32 = arith.constant 0 : i32
    %c0_i32_0 = arith.constant 0 : i32
    %c0_i32_1 = arith.constant 0 : i32
    return %c0_i32, %c0_i32_0 : i32, i32
  }
  func.func @transform_5(%arg0: i32, %arg1: i32) -> (i32, i32) {
    %c0_i32 = arith.constant 0 : i32
    %c0_i32_0 = arith.constant 0 : i32
    %c0_i32_1 = arith.constant 0 : i32
    return %c0_i32, %c0_i32_0 : i32, i32
  }
  func.func @transform_6(%arg0: i32, %arg1: i32) -> (i32, i32, i32) {
    %c0_i32 = arith.constant 0 : i32
    %c0_i32_0 = arith.constant 0 : i32
    %c0_i32_1 = arith.constant 0 : i32
    return %arg1, %c0_i32, %c0_i32_0 : i32, i32, i32
  }
  func.func @transform_7(%arg0: i32, %arg1: i32) -> (i32, i32, i32) {
    %c0_i32 = arith.constant 0 : i32
    %c0_i32_0 = arith.constant 0 : i32
    %c0_i32_1 = arith.constant 0 : i32
    return %arg1, %c0_i32, %c0_i32_0 : i32, i32, i32
  }
  func.func @transform_8(%arg0: i32, %arg1: i32) -> (i32, i32, i32) {
    %c0_i32 = arith.constant 0 : i32
    %c0_i32_0 = arith.constant 0 : i32
    %c0_i32_1 = arith.constant 0 : i32
    return %arg1, %c0_i32, %c0_i32_0 : i32, i32, i32
  }
  func.func @transform_9(%arg0: i32, %arg1: i32) -> (i32, i32, i32) {
    %c0_i32 = arith.constant 0 : i32
    %c0_i32_0 = arith.constant 0 : i32
    %c0_i32_1 = arith.constant 0 : i32
    return %arg1, %c0_i32, %c0_i32_0 : i32, i32, i32
  }
  func.func @transform_10(%arg0: i32, %arg1: i32) -> (i32, i32, i32) {
    %c0_i32 = arith.constant 0 : i32
    %c0_i32_0 = arith.constant 0 : i32
    %c0_i32_1 = arith.constant 0 : i32
    return %arg1, %c0_i32, %c0_i32_0 : i32, i32, i32
  }
  func.func @transform_11(%arg0: i32, %arg1: i32) -> (i32, i32, i32) {
    %c0_i32 = arith.constant 0 : i32
    %c0_i32_0 = arith.constant 0 : i32
    %c0_i32_1 = arith.constant 0 : i32
    return %arg1, %c0_i32, %c0_i32_0 : i32, i32, i32
  }
  func.func @transform_12(%arg0: i32, %arg1: i32) -> (i32, i32, i32) {
    %c0_i32 = arith.constant 0 : i32
    %c0_i32_0 = arith.constant 0 : i32
    %c0_i32_1 = arith.constant 0 : i32
    return %arg1, %c0_i32, %c0_i32_0 : i32, i32, i32
  }
  func.func @transform_13(%arg0: i32, %arg1: i32) -> (i32, i32, i32) {
    %c0_i32 = arith.constant 0 : i32
    %c0_i32_0 = arith.constant 0 : i32
    %c0_i32_1 = arith.constant 0 : i32
    return %arg1, %c0_i32, %c0_i32_0 : i32, i32, i32
  }
  func.func @transform_14(%arg0: i32, %arg1: i32) -> (i32, i32, i32) {
    %c0_i32 = arith.constant 0 : i32
    %c0_i32_0 = arith.constant 0 : i32
    %c0_i32_1 = arith.constant 0 : i32
    return %arg1, %c0_i32, %c0_i32_0 : i32, i32, i32
  }
  func.func @transform_15(%arg0: i32, %arg1: i32) -> (i32, i32, i32) {
    %c0_i32 = arith.constant 0 : i32
    %c0_i32_0 = arith.constant 0 : i32
    %c0_i32_1 = arith.constant 0 : i32
    return %arg0, %c0_i32, %c0_i32_0 : i32, i32, i32
  }
}

</mosaic_0001>

<bundles_post_ra>
// kernel: tile.8
= control target key start
LH: loop header
LB: loop body
LE: loop exit
PB: predicated region body
PF: predicated region fallthrough
CT: control target
= control target key end

     0   :  { %s22_s0 = inlined_call_operand.vmem [shape: f32[10], index: 0, kind: input, shape index: {}]   ;;  %s23_s1 = inlined_call_operand.vmem [shape: f32[8,10], index: 1, kind: output, shape index: {}]  }
   0x1   :  { %v4_v0 = vld [vmem:[%s22_s0] ss:$0 sm:$0xff] }
   0x2   :  { %5 = vst [vmem:[%s23_s1] sm:$0xff] %v4_v0 }

// kernel: tile.0
= control target key start
LH: loop header
LB: loop body
LE: loop exit
PB: predicated region body
PF: predicated region fallthrough
CT: control target
= control target key end

     0   :  { %s140_s10 = smov 127   ;;  %vm3_vm0 = vcmask 7168   ;;  %s141_s11 = smov 125   ;;  %s295_s0 = inlined_call_operand.vmem [shape: f32[8,10], index: 0, kind: input, shape index: {}]   ;;  %s296_s1 = inlined_call_operand.vmem [shape: f32[80,1], index: 1, kind: output, shape index: {}]  }
   0x1   :  { %v5_v0 = vld.sshfl [vmem:[%s295_s0] sm:$0xff pattern:$0x36251470]   ;;  %s143_s18 = smov 124   ;;  %s144_s19 = smov 123  }
   0x2   :  { %v29_v1 = vld.sshfl [vmem:[%s295_s0] sm:$0xff pattern:$0x62514703]   ;;  %6 = vrot.lane.b32.xlu0 %v5_v0, %s140_s10  ;;  %s145_s20 = smov 122   ;;  %s146_s21 = smov 121  }
   0x3   :  { %30 = vrot.lane.b32.xlu1 %v29_v1, %s141_s11  ;;  %v2_v2 = vld [vmem:[%s295_s0] sm:$0xff]   ;;  %s147_s22 = smov 120   ;;  %s148_s23 = smov 119  }
   0x4   :  { %4 = vst.msk [vmem:[%s296_s1] ss:$10 sm:$0xff] %vm3_vm0, %v2_v2   ;;  %v41_v3 = vld.sshfl [vmem:[%s295_s0] sm:$0xff pattern:$0x25147036]   ;;  %s142_s0 = smov 126  }
   0x6   :  { %18 = vrot.lane.b32.xlu0 %v29_v1, %s142_s0 }
   0x7   :  { %42 = vrot.lane.b32.xlu1 %v41_v3, %s143_s18 }
   0xa   :  { %52 = vrot.lane.b32.xlu0 %v41_v3, %s144_s19 }
   0xb   :  { %62 = vrot.lane.b32.xlu1 %v41_v3, %s145_s20 }
   0xe   :  { %72 = vrot.lane.b32.xlu0 %v41_v3, %s146_s21 }
   0xf   :  { %82 = vrot.lane.b32.xlu1 %v41_v3, %s147_s22 }
  0x12   :  { %92 = vrot.lane.b32.xlu0 %v41_v3, %s148_s23 }
  0x74   :  { %v7_v4 = vpop.permute.xlu0 %6  }
  0x75   :  { %v31_v5 = vpop.permute.xlu1 %30   ;;  %101 = vst.msk [vmem:[%s296_s1 + $0x1] ss:$70 sm:$0x3] %vm3_vm0, %v7_v4   ;;  %102 = vst.msk [vmem:[%s296_s1 + $0x65] ss:$-30 sm:$0xc] %vm3_vm0, %v7_v4  }
  0x76   :  { %103 = vst.msk [vmem:[%s296_s1 + $0xab] ss:$-30 sm:$0x30] %vm3_vm0, %v7_v4   ;;  %104 = vst.msk [vmem:[%s296_s1 + $0xf1] ss:$-30 sm:$0xc0] %vm3_vm0, %v7_v4  }
  0x77   :  { %109 = vst.msk [vmem:[%s296_s1 + $0x21] ss:$-30 sm:$0x3] %vm3_vm0, %v31_v5   ;;  %110 = vst.msk [vmem:[%s296_s1 + $0x85] ss:$-30 sm:$0x1c] %vm3_vm0, %v31_v5  }
  0x78   :  { %111 = vst.msk [vmem:[%s296_s1 + $0xcb] ss:$-30 sm:$0x60] %vm3_vm0, %v31_v5   ;;  %112 = vst.msk [vmem:[%s296_s1 + $0x38] sm:$0x80] %vm3_vm0, %v31_v5   ;;  %v19_v6 = vpop.permute.xlu0 %18  }
  0x79   :  { %v43_v7 = vpop.permute.xlu1 %42   ;;  %105 = vst.msk [vmem:[%s296_s1 + $0x20] ss:$-30 sm:$0x3] %vm3_vm0, %v19_v6   ;;  %106 = vst.msk [vmem:[%s296_s1 + $0x84] ss:$-30 sm:$0x1c] %vm3_vm0, %v19_v6  }
  0x7a   :  { %107 = vst.msk [vmem:[%s296_s1 + $0xca] ss:$-30 sm:$0x60] %vm3_vm0, %v19_v6   ;;  %108 = vst.msk [vmem:[%s296_s1 + $0x37] sm:$0x80] %vm3_vm0, %v19_v6  }
  0x7b   :  { %113 = vst.msk [vmem:[%s296_s1 + $0x40] ss:$-30 sm:$0x7] %vm3_vm0, %v43_v7   ;;  %114 = vst.msk [vmem:[%s296_s1 + $0xa4] ss:$-30 sm:$0x38] %vm3_vm0, %v43_v7  }
  0x7c   :  { %115 = vst.msk [vmem:[%s296_s1 + $0xea] ss:$-30 sm:$0xc0] %vm3_vm0, %v43_v7   ;;  %v53_v8 = vpop.permute.xlu0 %52  }
  0x7d   :  { %v63_v9 = vpop.permute.xlu1 %62   ;;  %116 = vst.msk [vmem:[%s296_s1 + $0x41] ss:$-30 sm:$0x7] %vm3_vm0, %v53_v8   ;;  %117 = vst.msk [vmem:[%s296_s1 + $0xa5] ss:$-30 sm:$0x38] %vm3_vm0, %v53_v8  }
  0x7e   :  { %118 = vst.msk [vmem:[%s296_s1 + $0xeb] ss:$-30 sm:$0xc0] %vm3_vm0, %v53_v8   ;;  %119 = vst.msk [vmem:[%s296_s1 + $0x42] ss:$-30 sm:$0x7] %vm3_vm0, %v63_v9  }
  0x7f   :  { %120 = vst.msk [vmem:[%s296_s1 + $0xa6] ss:$-30 sm:$0x38] %vm3_vm0, %v63_v9   ;;  %121 = vst.msk [vmem:[%s296_s1 + $0xec] ss:$-30 sm:$0xc0] %vm3_vm0, %v63_v9  }
  0x80   :  { %v73_v10 = vpop.permute.xlu0 %72  }
  0x81   :  { %v83_v11 = vpop.permute.xlu1 %82   ;;  %122 = vst.msk [vmem:[%s296_s1 + $0x43] ss:$-30 sm:$0x7] %vm3_vm0, %v73_v10   ;;  %123 = vst.msk [vmem:[%s296_s1 + $0xa7] ss:$-30 sm:$0x38] %vm3_vm0, %v73_v10  }
  0x82   :  { %124 = vst.msk [vmem:[%s296_s1 + $0xed] ss:$-30 sm:$0xc0] %vm3_vm0, %v73_v10   ;;  %125 = vst.msk [vmem:[%s296_s1 + $0x44] ss:$-30 sm:$0x7] %vm3_vm0, %v83_v11  }
  0x83   :  { %126 = vst.msk [vmem:[%s296_s1 + $0xa8] ss:$-30 sm:$0x38] %vm3_vm0, %v83_v11   ;;  %127 = vst.msk [vmem:[%s296_s1 + $0xee] ss:$-30 sm:$0xc0] %vm3_vm0, %v83_v11  }
  0x84   :  { %v93_v12 = vpop.permute.xlu0 %92  }
  0x85   :  { %128 = vst.msk [vmem:[%s296_s1 + $0x45] ss:$-30 sm:$0x7] %vm3_vm0, %v93_v12   ;;  %129 = vst.msk [vmem:[%s296_s1 + $0xa9] ss:$-30 sm:$0x38] %vm3_vm0, %v93_v12  }
  0x86   :  { %130 = vst.msk [vmem:[%s296_s1 + $0xef] ss:$-30 sm:$0xc0] %vm3_vm0, %v93_v12  }

// kernel: convnext_block_forward.1
= control target key start
LH: loop header
LB: loop body
LE: loop exit
PB: predicated region body
PF: predicated region fallthrough
CT: control target
= control target key end

     0   :  { %s4757_s18 = smov 0   ;;  %s4759_s19 = smov 0   ;;  %s7326_s0 = inlined_call_operand.vmem [shape: bf16[1,80,128], index: 0, kind: input, shape index: {}]   ;;  %s7327_s1 = inlined_call_operand.vmem [shape: f32[80,1], index: 1, kind: input, shape index: {}]   ;;  %s7328_s2 = inlined_call_operand.vmem [shape: bf16[128,128], index: 2, kind: input, shape index: {}]   ;;  %s7329_s3 = inlined_call_operand.vmem [shape: f32[1,128], index: 3, kind: input, shape index: {}]   ;;  %s7330_s4 = inlined_call_operand.vmem [shape: f32[1,128], index: 4, kind: input, shape index: {}]   ;;  %s7331_s5 = inlined_call_operand.vmem [shape: f32[1,128], index: 5, kind: input, shape index: {}]   ;;  %s7332_s6 = inlined_call_operand.vmem [shape: f32[2,49,128], index: 6, kind: input, shape index: {}]   ;;  %s7333_s7 = inlined_call_operand.vmem [shape: f32[2,1,128], index: 7, kind: input, shape index: {}]   ;;  %s7334_s8 = inlined_call_operand.vmem [shape: f32[2,1,128], index: 8, kind: input, shape index: {}]   ;;  %s7335_s9 = inlined_call_operand.vmem [shape: f32[2,1,128], index: 9, kind: input, shape index: {}]   ;;  %s7336_s10 = inlined_call_operand.vmem [shape: bf16[2,128,512], index: 10, kind: input, shape index: {}]   ;;  %s7337_s11 = inlined_call_operand.vmem [shape: f32[2,1,512], index: 11, kind: input, shape index: {}]   ;;  %s7338_s12 = inlined_call_operand.vmem [shape: bf16[2,512,128], index: 12, kind: input, shape index: {}]   ;;  %s7339_s13 = inlined_call_operand.vmem [shape: f32[2,1,128], index: 13, kind: input, shape index: {}]   ;;  %s7340_s14 = inlined_call_operand.vmem [shape: f32[2,1,128], index: 14, kind: input, shape index: {}]   ;;  %s7341_s15 = inlined_call_operand.vmem [shape: f32[1,80,128], index: 15, kind: output, shape index: {}]  }
   0x1   :  { %7610 = sst [smem:[#allocation118_spill]] %s7327_s1  ;;  %s4761_s20 = smov 0  }
   0x2   :  { %7611 = sst [smem:[#allocation119_spill]] %s7331_s5 }
   0x3   :  { %7612 = sst [smem:[#allocation120_spill]] %s7333_s7 }
   0x4   :  { %7613 = sst [smem:[#allocation121_spill]] %s7341_s15 }
   0x5 LB: > { %7614 = sst [smem:[#allocation5_spill]] %s4667_s19  ;;  %s34_s21 = sadd.s32 1, %s4667_s19  ;;  %s4671_s20 = sphi %s4761_s20, %s25_s20   ;;  %s4667_s19 = sphi %s4759_s19, %s8175_s19   ;;  %s4663_s18 = sphi %s4757_s18, %s8174_s18  }
   0x6   : > { %7615 = sst [smem:[#allocation6_spill]] %s4671_s20  ;;  %p4132_p0 = scmp.ge.s32.totalorder %s4671_s20, 1 }
   0x7   : > { %p35_p1 = scmp.ge.s32.totalorder %s34_s21, 2  ;;  %p528_p2 = scmp.lt.s32.totalorder %s4671_s20, 3 }
   0x9   : > { %s8177_s21 = smov (%p35_p1, %s34_s21), 0  ;;  %p529_p3 = pnand %p4132_p0, %p528_p2 }
   0xa   : > { %7616 = sst [smem:[#allocation7_spill]] %s8177_s21 }
   0xb   : > { %532 = sbr.rel (%p529_p3) target bundleno = 1758 (0x6de), region = 80 }
  0x12   : > { %p615_p4 = scmp.lt.s32.totalorder %s4663_s18, 1  ;;  %s7617_s1 = sld [smem:[#allocation118_spill]] }
  0x13   : > { %s7628_s7 = sld [smem:[#allocation120_spill]]  ;;  %p4139_p5 = scmp.ne.s32.totalorder %s4663_s18, 0 }
  0x14   : > { %s4812_s23 = scalar_select %p615_p4, %s4663_s18, 1 }
  0x15   : > { %v4420_v10 = vld [vmem:[%s7328_s2] sm:$0xff] (!%p4139_p5)   ;;  %v4673_v11 = vmov (!%p4139_p5), 0.0   ;;  %v4421_v12 = vld [vmem:[%s7328_s2 + $0x8] sm:$0xff] (!%p4139_p5)   ;;  %vm4674_vm10 = vmmov (!%p4139_p5), 0   ;;  %v4422_v13 = vld [vmem:[%s7328_s2 + $0x10] sm:$0xff] (!%p4139_p5)   ;;  %v4675_v24 = vmov (!%p4139_p5), 0  }
  0x16   : > { %s4389_s17 = smul.u32 56, %s4812_s23  ;;  %s4230_s20 = sshll.u32 %s4812_s23, 8  ;;  %4337 = vmatprep.subr.bf16.mxu0 (!%p4139_p5), %v4673_v11  ;;  %1078 = vst [vmem:[#allocation3] sm:$0xff] (!%p4139_p5), %v4673_v11  ;;  %1079 = vst [vmem:[#allocation3 + $0x8] sm:$0xff] (!%p4139_p5), %v4673_v11  ;;  %4373 = vmatprep.subr.bf16.mxu1 (!%p4139_p5), %v4673_v11  ;;  %v4423_v14 = vld [vmem:[%s7328_s2 + $0x18] sm:$0xff] (!%p4139_p5)   ;;  %v4424_v15 = vld [vmem:[%s7328_s2 + $0x20] sm:$0xff] (!%p4139_p5)  }
  0x17   : > { %s4865_s24 = scalar_lea.vmem %s7336_s10, %s4230_s20  ;;  %s4876_s30 = scalar_lea.vmem %s7338_s12, %s4230_s20  ;;  %1080 = vst [vmem:[#allocation3 + $0x10] sm:$0xff] (!%p4139_p5), %v4673_v11  ;;  %1081 = vst [vmem:[#allocation3 + $0x18] sm:$0xff] (!%p4139_p5), %v4673_v11  ;;  %4338 = vmatpush3.bf16.msra.mxu0 (!%p4139_p5), %v4420_v10  ;;  %4381 = vmatpush3.bf16.msra.mxu1 (!%p4139_p5), %v4420_v10  ;;  %v4425_v16 = vld [vmem:[%s7328_s2 + $0x28] sm:$0xff] (!%p4139_p5)   ;;  %v4426_v17 = vld [vmem:[%s7328_s2 + $0x30] sm:$0xff] (!%p4139_p5)  }
  0x18   : > { %v4781_v0 = vld [vmem:[%s7617_s1] sm:$0xff]  ;;  %v4786_v1 = vld [vmem:[%s7617_s1 + $0x8] sm:$0xff]  ;;  %v4791_v2 = vld [vmem:[%s7617_s1 + $0x10] sm:$0xff]  ;;  %s4859_s19 = scalar_lea.vmem %s7332_s6, %s4389_s17  ;;  %s645_s17 = scalar_lea.vmem %s7339_s13, %s4812_s23  ;;  %1082 = vst [vmem:[#allocation3 + $0x20] sm:$0xff] (!%p4139_p5), %v4673_v11  ;;  %4339 = vmatprep.subr.bf16.mxu0 (!%p4139_p5), %v4673_v11  ;;  %4374 = vmatprep.subr.bf16.mxu1 (!%p4139_p5), %v4673_v11 }
  0x19   : > { %7618 = vst [vmem:[#allocation8_spill] sm:$0xff] %v4781_v0  ;;  %7619 = vst [vmem:[#allocation9_spill] sm:$0xff] %v4786_v1  ;;  %v4796_v3 = vld [vmem:[%s7617_s1 + $0x18] sm:$0xff]  ;;  %v4801_v4 = vld [vmem:[%s7617_s1 + $0x20] sm:$0xff]  ;;  %vm665_vm0 = vcmp.gt.f32.partialorder %v4781_v0, 0.0  ;;  %vm666_vm1 = vcmp.gt.f32.partialorder %v4786_v1, 0.0  ;;  %s4845_s25 = scalar_lea.vmem %s7628_s7, %s4812_s23  ;;  %s648_s15 = scalar_lea.vmem %s7340_s14, %s4812_s23  ;;  %4353 = vmatprep.mubr.msk.bf16.mxu0 (!%p4139_p5), %vm4674_vm10, %v4673_v11  ;;  %4365 = vmatprep.mubr.msk.bf16.mxu1 (!%p4139_p5), %vm4674_vm10, %v4673_v11 }
  0x1a   : > { %7620 = vst [vmem:[#allocation10_spill] sm:$0xff] %v4791_v2  ;;  %7621 = vst [vmem:[#allocation11_spill] sm:$0xff] %v4796_v3  ;;  %v4806_v5 = vld [vmem:[%s7617_s1 + $0x28] sm:$0xff]  ;;  %vm667_vm2 = vcmp.gt.f32.partialorder %v4791_v2, 0.0  ;;  %v4817_v6 = vld [vmem:[%s7617_s1 + $0x30] sm:$0xff]  ;;  %vm668_vm3 = vcmp.gt.f32.partialorder %v4796_v3, 0.0  ;;  %4419 = vset.pattern.permute.xlu1 (!%p4139_p5), %v4675_v24  ;;  %4418 = vset.pattern.permute.xlu0 (!%p4139_p5), %v4675_v24 }
  0x1b   : > { %7622 = vst [vmem:[#allocation12_spill] sm:$0xff] %v4801_v4  ;;  %7623 = vst [vmem:[#allocation13_spill] sm:$0xff] %v4806_v5  ;;  %v4822_v7 = vld [vmem:[%s7617_s1 + $0x38] sm:$0xff]  ;;  %v4827_v8 = vld [vmem:[%s7617_s1 + $0x40] sm:$0xff]  ;;  %vm669_vm4 = vcmp.gt.f32.partialorder %v4801_v4, 0.0  ;;  %vm670_vm5 = vcmp.gt.f32.partialorder %v4806_v5, 0.0  ;;  %4340 = vmatpush3.bf16.msra.mxu0 (!%p4139_p5), %v4421_v12  ;;  %4382 = vmatpush3.bf16.msra.mxu1 (!%p4139_p5), %v4421_v12 }
  0x1c   : > { %7624 = vst [vmem:[#allocation14_spill] sm:$0xff] %v4817_v6  ;;  %7625 = vst [vmem:[#allocation15_spill] sm:$0xff] %v4822_v7  ;;  %v4834_v9 = vld [vmem:[%s7617_s1 + $0x48] sm:$0xff]  ;;  %vm671_vm6 = vcmp.gt.f32.partialorder %v4817_v6, 0.0  ;;  %vm672_vm7 = vcmp.gt.f32.partialorder %v4822_v7, 0.0  ;;  %vm673_vm8 = vcmp.gt.f32.partialorder %v4827_v8, 0.0  ;;  %4341 = vmatprep.subr.bf16.mxu0 (!%p4139_p5), %v4673_v11  ;;  %4375 = vmatprep.subr.bf16.mxu1 (!%p4139_p5), %v4673_v11 }
  0x1d   : > { %7626 = vst [vmem:[#allocation16_spill] sm:$0xff] %v4827_v8  ;;  %7627 = vst [vmem:[#allocation17_spill] sm:$0xff] %v4834_v9  ;;  %7629 = sst [smem:[#allocation18_spill]] %s4845_s25  ;;  %vm674_vm9 = vcmp.gt.f32.partialorder %v4834_v9, 0.0  ;;  %s4136_s7 = sshll.u32 %s4812_s23, 2  ;;  %v4427_v18 = vld [vmem:[%s7328_s2 + $0x38] sm:$0xff] (!%p4139_p5)  }
  0x1e   : > { %s4871_s26 = scalar_lea.vmem %s7337_s11, %s4136_s7  ;;  %678 = sbr.rel (%p4139_p5) target bundleno = 670 (0x29e), region = 84  ;;  %1083 = vst [vmem:[#allocation3 + $0x28] sm:$0xff] (!%p4139_p5), %v4673_v11  ;;  %1084 = vst [vmem:[#allocation3 + $0x30] sm:$0xff] (!%p4139_p5), %v4673_v11  ;;  %v4428_v19 = vld [vmem:[%s7326_s0] sm:$0xff] (!%p4139_p5)   ;;  %v4429_v20 = vld [vmem:[%s7326_s0 + $0x18] sm:$0xff] (!%p4139_p5)   ;;  %v1009_v56 = vsel (!%p4139_p5), %vm666_vm1, 1, %v4675_v24 }
  0x1f   : > { %1085 = vst [vmem:[#allocation3 + $0x38] sm:$0xff] (!%p4139_p5), %v4673_v11  ;;  %1086 = vst [vmem:[#allocation3 + $0x40] sm:$0xff] (!%p4139_p5), %v4673_v11  ;;  %4342 = vmatpush3.bf16.msra.mxu0 (!%p4139_p5), %v4422_v13  ;;  %4383 = vmatpush3.bf16.msra.mxu1 (!%p4139_p5), %v4422_v13  ;;  %v4430_v21 = vld [vmem:[%s7326_s0 + $0x8] sm:$0xff] (!%p4139_p5)   ;;  %v4431_v22 = vld [vmem:[%s7326_s0 + $0x20] sm:$0xff] (!%p4139_p5)   ;;  %v1010_v57 = vsel (!%p4139_p5), %vm667_vm2, 1, %v4675_v24  ;;  %v1011_v58 = vsel (!%p4139_p5), %vm668_vm3, 1, %v4675_v24 }
  0x20   : > { %1087 = vst [vmem:[#allocation3 + $0x48] sm:$0xff] (!%p4139_p5), %v4673_v11  ;;  %1088 = vst [vmem:[#allocation3 + $0x50] sm:$0xff] (!%p4139_p5), %v4673_v11  ;;  %4343 = vmatprep.subr.bf16.mxu0 (!%p4139_p5), %v4673_v11  ;;  %4376 = vmatprep.subr.bf16.mxu1 (!%p4139_p5), %v4673_v11  ;;  %v4432_v23 = vld [vmem:[%s7326_s0 + $0x10] sm:$0xff] (!%p4139_p5)   ;;  %v4140_v25 = vld [vmem:[%s7329_s3] ss:$0 sm:$0xff] (!%p4139_p5)  ;;  %v1008_v59 = vsel (!%p4139_p5), %vm665_vm0, 1, %v4675_v24 }
  0x21   : > { %1089 = vst [vmem:[#allocation3 + $0x58] sm:$0xff] (!%p4139_p5), %v4673_v11  ;;  %1090 = vst [vmem:[#allocation3 + $0x60] sm:$0xff] (!%p4139_p5), %v4673_v11  ;;  %v1012_v60 = vsel (!%p4139_p5), %vm669_vm4, 1, %v4675_v24  ;;  %v1013_v61 = vsel (!%p4139_p5), %vm670_vm5, 1, %v4675_v24  ;;  %v1014_v62 = vsel (!%p4139_p5), %vm671_vm6, 1, %v4675_v24  ;;  %v1015_v63 = vsel (!%p4139_p5), %vm672_vm7, 1, %v4675_v24 }
  0x22   : > { %1091 = vst [vmem:[#allocation3 + $0x68] sm:$0xff] (!%p4139_p5), %v4673_v11  ;;  %1092 = vst [vmem:[#allocation3 + $0x70] sm:$0xff] (!%p4139_p5), %v4673_v11  ;;  %s7630_s21 = sld [smem:[#allocation119_spill]] (!%p4139_p5) }
  0x23   : > { %1093 = vst [vmem:[#allocation3 + $0x78] sm:$0xff] (!%p4139_p5), %v4673_v11  ;;  %1094 = vst [vmem:[#allocation3 + $0x80] sm:$0xff] (!%p4139_p5), %v4673_v11  ;;  %4344 = vmatpush3.bf16.msra.mxu0 (!%p4139_p5), %v4423_v14  ;;  %4384 = vmatpush3.bf16.msra.mxu1 (!%p4139_p5), %v4423_v14 }
  0x24   : > { %1095 = vst [vmem:[#allocation3 + $0x88] sm:$0xff] (!%p4139_p5), %v4673_v11  ;;  %1096 = vst [vmem:[#allocation3 + $0x90] sm:$0xff] (!%p4139_p5), %v4673_v11  ;;  %4345 = vmatprep.subr.bf16.mxu0 (!%p4139_p5), %v4673_v11  ;;  %4377 = vmatprep.subr.bf16.mxu1 (!%p4139_p5), %v4673_v11 }
  0x25   : > { %1097 = vst [vmem:[#allocation3 + $0x98] sm:$0xff] %v4673_v11  ;;  %1098 = vst [vmem:[#allocation3 + $0xa0] sm:$0xff] %v4673_v11 }
  0x26   : > { %1099 = vst [vmem:[#allocation3 + $0xa8] sm:$0xff] %v4673_v11  ;;  %1100 = vst [vmem:[#allocation3 + $0xb0] sm:$0xff] %v4673_v11 }
  0x27   : > { %1101 = vst [vmem:[#allocation3 + $0xb8] sm:$0xff] %v4673_v11  ;;  %1102 = vst [vmem:[#allocation3 + $0xc0] sm:$0xff] %v4673_v11  ;;  %4346 = vmatpush3.bf16.msra.mxu0 %v4424_v15  ;;  %4385 = vmatpush3.bf16.msra.mxu1 %v4424_v15 }
  0x28   : > { %1103 = vst [vmem:[#allocation3 + $0xc8] sm:$0x3f] %v4673_v11  ;;  %4347 = vmatprep.subr.bf16.mxu0 %v4673_v11  ;;  %4378 = vmatprep.subr.bf16.mxu1 %v4673_v11 }
  0x2b   : > { %4348 = vmatpush3.bf16.msra.mxu0 %v4425_v16  ;;  %4386 = vmatpush3.bf16.msra.mxu1 %v4425_v16 }
  0x2c   : > { %4349 = vmatprep.subr.bf16.mxu0 %v4673_v11  ;;  %4379 = vmatprep.subr.bf16.mxu1 %v4673_v11 }
  0x2f   : > { %4350 = vmatpush3.bf16.msra.mxu0 %v4426_v17  ;;  %4387 = vmatpush3.bf16.msra.mxu1 %v4426_v17 }
  0x30   : > { %4351 = vmatprep.subr.bf16.mxu0 %v4673_v11  ;;  %4380 = vmatprep.subr.bf16.mxu1 %v4673_v11 }
  0x33   : > { %4352 = vmatpush3.bf16.msra.mxu0 %v4427_v18  ;;  %4388 = vmatpush3.bf16.msra.mxu1 %v4427_v18 }
  0x36   : > { %4354 = vmatmul.mubr.bf16.vlgmr.msra.gmra.mrb[0].mxu0 %v4428_v19  ;;  %4366 = vmatmul.mubr.bf16.vlgmr.msra.gmra.mrb[0].mxu1 %v4429_v20 }
  0x37   : > { %4357 = vmatprep.mubr.msk.bf16.mxu0 %vm4674_vm10, %v4673_v11  ;;  %4369 = vmatprep.mubr.msk.bf16.mxu1 %vm4674_vm10, %v4673_v11 }
  0x3e   : > { %4358 = vmatmul.mubr.bf16.gmra.mrb[4].mxu0 %v4430_v21  ;;  %4370 = vmatmul.mubr.bf16.gmra.mrb[4].mxu1 %v4431_v22 }
  0x3f   : > { %4361 = vmatprep.mubr.msk.bf16.mxu0 %vm4674_vm10, %v4673_v11 }
  0x46   : > { %4362 = vmatmul.mubr.bf16.gmra.mrb[8].mxu0 %v4432_v23 }
 0x109   : > { %v824_v26 = vpop.f32.mrb[0].mxu0  ;;  %v848_v27 = vpop.f32.mrb[0].mxu1 }
 0x10a   : > { %v825_v28 = vadd.f32 %v4140_v25, %v824_v26  ;;  %v4355_v29 = vpop.f32.mrb[1].mxu0  ;;  %v4367_v30 = vpop.f32.mrb[1].mxu1  ;;  %v849_v36 = vadd.f32 %v4140_v25, %v848_v27 }
 0x10b   : > { %v827_v31 = vpop.f32.mrb[2].mxu0  ;;  %v851_v32 = vpop.f32.mrb[2].mxu1 }
 0x10c   : > { %v4983_v33 = vadd.f32 %v4140_v25, %v851_v32  ;;  %v4368_v34 = vpop.f32.mrb[3].mxu1  ;;  %865 = vadd.xlane.f32.xlu0 %v825_v28  ;;  %v4356_v35 = vpop.f32.mrb[3].mxu0  ;;  %v828_v39 = vadd.f32 %v4140_v25, %v827_v31 }
 0x10e   : > { %879 = vadd.xlane.f32.xlu1 %v4983_v33 }
 0x110   : > { %877 = vadd.xlane.f32.xlu0 %v849_v36 }
 0x111   : > { %v832_v37 = vpop.f32.mrb[4].mxu0  ;;  %v856_v38 = vpop.f32.mrb[4].mxu1 }
 0x112   : > { %v833_v40 = vadd.f32 %v4140_v25, %v832_v37  ;;  %v4359_v41 = vpop.f32.mrb[5].mxu0  ;;  %v4371_v42 = vpop.f32.mrb[5].mxu1  ;;  %v857_v55 = vadd.f32 %v4140_v25, %v856_v38 }
 0x113   : > { %v835_v43 = vpop.f32.mrb[6].mxu0  ;;  %v859_v44 = vpop.f32.mrb[6].mxu1 }
 0x114   : > { %867 = vadd.xlane.f32.xlu0 %v828_v39  ;;  %869 = vadd.xlane.f32.xlu1 %v833_v40  ;;  %v4360_v45 = vpop.f32.mrb[7].mxu0  ;;  %v4372_v46 = vpop.f32.mrb[7].mxu1  ;;  %v836_v47 = vadd.f32 %v4140_v25, %v835_v43  ;;  %v860_v49 = vadd.f32 %v4140_v25, %v859_v44 }
 0x118   : > { %871 = vadd.xlane.f32.xlu1 %v836_v47 }
 0x119   : > { %v840_v48 = vpop.f32.mrb[8].mxu0 }
 0x11a   : > { %v4986_v50 = vadd.f32 %v4140_v25, %v840_v48  ;;  %v4363_v51 = vpop.f32.mrb[9].mxu0 }
 0x11b   : > { %v843_v52 = vpop.f32.mrb[10].mxu0 }
 0x11c   : > { %883 = vadd.xlane.f32.xlu1 %v860_v49  ;;  %873 = vadd.xlane.f32.xlu0 %v4986_v50  ;;  %v4989_v53 = vadd.f32 %v4140_v25, %v843_v52  ;;  %v4364_v54 = vpop.f32.mrb[11].mxu0 }
 0x120   : > { %881 = vadd.xlane.f32.xlu0 %v857_v55 }
 0x12d   : > { %1022 = vperm.xlu1 %4419, %v1009_v56  }
 0x131   : > { %1025 = vperm.xlu1 %4419, %v1010_v57  }
 0x135   : > { %1028 = vperm.xlu1 %4419, %v1011_v58  }
 0x136   : > { %1019 = vperm.xlu0 %4418, %v1008_v59   ;;  %v1016_v59 = vsel %vm673_vm8, 1, %v4675_v24 }
 0x139   : > { %1031 = vperm.xlu1 %4419, %v1012_v60  }
 0x13d   : > { %1034 = vperm.xlu1 %4419, %v1013_v61  }
 0x141   : > { %1037 = vperm.xlu1 %4419, %v1014_v62  }
 0x165   : > { %875 = vadd.xlane.f32.xlu1 %v4989_v53 }
 0x176   : > { %1040 = vperm.xlu1 %4419, %v1015_v63  }
 0x199   : > { %v866_v10 = vpop.xlane.xlu0 %865 }
 0x19a   : > { %v886_v11 = vmul.f32 0.0078125, %v866_v10 }
 0x19b   : > { %v880_v13 = vpop.xlane.xlu1 %879 }
 0x19c   : > { %v5016_v12 = vsub.f32 %v825_v28, %v886_v11  ;;  %v893_v20 = vmul.f32 0.0078125, %v880_v13 }
 0x19d   : > { %v878_v14 = vpop.xlane.xlu0 %877 }
 0x19e   : > { %v892_v15 = vmul.f32 0.0078125, %v878_v14  ;;  %v906_v16 = vmul.f32 %v5016_v12, %v5016_v12  ;;  %v5029_v28 = vsub.f32 %v4983_v33, %v893_v20 }
 0x1a0   : > { %v5020_v17 = vsub.f32 %v849_v36, %v892_v15  ;;  %916 = vadd.xlane.f32.xlu0 %v906_v16  ;;  %v913_v37 = vmul.f32 %v5029_v28, %v5029_v28 }
 0x1a1   : > { %v868_v18 = vpop.xlane.xlu0 %867  ;;  %v870_v19 = vpop.xlane.xlu1 %869 }
 0x1a2   : > { %v887_v21 = vmul.f32 0.0078125, %v868_v18  ;;  %v888_v22 = vmul.f32 0.0078125, %v870_v19  ;;  %v912_v23 = vmul.f32 %v5020_v17, %v5020_v17 }
 0x1a4   : > { %v5024_v25 = vsub.f32 %v828_v39, %v887_v21  ;;  %v5026_v26 = vsub.f32 %v833_v40, %v888_v22  ;;  %928 = vadd.xlane.f32.xlu0 %v912_v23  ;;  %v5080_v23 = vld [vmem:[%s7330_s4] ss:$0 sm:$0xff] }
 0x1a5   : > { %v872_v27 = vpop.xlane.xlu1 %871 }
 0x1a6   : > { %v889_v29 = vmul.f32 0.0078125, %v872_v27  ;;  %v908_v30 = vmul.f32 %v5026_v26, %v5026_v26  ;;  %v907_v31 = vmul.f32 %v5024_v25, %v5024_v25 }
 0x1a8   : > { %920 = vadd.xlane.f32.xlu0 %v908_v30  ;;  %918 = vadd.xlane.f32.xlu1 %v907_v31  ;;  %v5035_v35 = vsub.f32 %v836_v47, %v889_v29  ;;  %v1017_v47 = vsel %vm674_vm9, 1, %v4675_v24  ;;  %v5086_v31 = vld [vmem:[%s7630_s21] ss:$0 sm:$0xff] }
 0x1a9   : > { %v884_v32 = vpop.xlane.xlu1 %883  ;;  %v874_v34 = vpop.xlane.xlu0 %873 }
 0x1aa   : > { %v895_v36 = vmul.f32 0.0078125, %v884_v32  ;;  %v890_v39 = vmul.f32 0.0078125, %v874_v34  ;;  %v909_v41 = vmul.f32 %v5035_v35, %v5035_v35 }
 0x1ac   : > { %930 = vadd.xlane.f32.xlu1 %v913_v37  ;;  %v5039_v38 = vsub.f32 %v860_v49, %v895_v36  ;;  %v5046_v43 = vsub.f32 %v4986_v50, %v890_v39 }
 0x1ad   : > { %v882_v33 = vpop.xlane.xlu0 %881  ;;  %v5057_v48 = vpop.permute.xlu1 %1022 }
 0x1ae   : > { %v894_v40 = vmul.f32 0.0078125, %v882_v33  ;;  %v915_v45 = vmul.f32 %v5039_v38, %v5039_v38  ;;  %v910_v46 = vmul.f32 %v5046_v43, %v5046_v43  ;;  %vm1049_vm14 = vcmp.eq.s32.totalorder %v5057_v48, 1 }
 0x1b0   : > { %v5043_v42 = vsub.f32 %v857_v55, %v894_v40  ;;  %922 = vadd.xlane.f32.xlu1 %v909_v41 }
 0x1b1   : > { %v5059_v49 = vpop.permute.xlu1 %1025 }
 0x1b2   : > { %v914_v44 = vmul.f32 %v5043_v42, %v5043_v42  ;;  %vm1050_vm13 = vcmp.eq.s32.totalorder %v5059_v49, 1 }
 0x1b4   : > { %932 = vadd.xlane.f32.xlu0 %v914_v44  ;;  %934 = vadd.xlane.f32.xlu1 %v915_v45 }
 0x1b5   : > { %v5061_v50 = vpop.permute.xlu1 %1028  ;;  %v1020_v60 = vpop.permute.xlu0 %1019 }
 0x1b6   : > { %vm1048_vm11 = vcmp.eq.s32.totalorder %v1020_v60, 1  ;;  %vm1051_vm10 = vcmp.eq.s32.totalorder %v5061_v50, 1 }
 0x1b8   : > { %924 = vadd.xlane.f32.xlu0 %v910_v46 }
 0x1b9   : > { %v5063_v51 = vpop.permute.xlu1 %1031 }
 0x1bd   : > { %v5065_v52 = vpop.permute.xlu1 %1034 }
 0x1c1   : > { %v1038_v54 = vpop.permute.xlu1 %1037 }
 0x1c2   : > { %vm1054_vm12 = vcmp.eq.s32.totalorder %v1038_v54, 1 }
 0x1ce   : > { %1046 = vperm.xlu0 %4418, %v1017_v47  }
 0x1f2   : > { %v876_v55 = vpop.xlane.xlu1 %875 }
 0x1f3   : > { %v891_v56 = vmul.f32 0.0078125, %v876_v55 }
 0x1f5   : > { %v5068_v57 = vsub.f32 %v4989_v53, %v891_v56 }
 0x1f6   : > { %v5075_v10 = vpop.permute.xlu1 %1040 }
 0x1f7   : > { %v911_v58 = vmul.f32 %v5068_v57, %v5068_v57  ;;  %vm1055_vm15 = vcmp.eq.s32.totalorder %v5075_v10, 1 }
 0x1f9   : > { %926 = vadd.xlane.f32.xlu1 %v911_v58 }
 0x20a   : > { %1043 = vperm.xlu1 %4419, %v1016_v59  }
 0x22d   : > { %v917_v61 = vpop.xlane.xlu0 %916 }
 0x22e   : > { %v936_v62 = vmul.f32 0.0078125, %v917_v61 }
 0x230   : > { %v946_v63 = vadd.f32 1e-06, %v936_v62 }
 0x231   : > { %v929_v11 = vpop.xlane.xlu0 %928 }
 0x232   : > { %4433 = vrsqrt.f32 %v946_v63  ;;  %v942_v13 = vmul.f32 0.0078125, %v929_v11 }
 0x234   : > { %v952_v53 = vadd.f32 1e-06, %v942_v13 }
 0x235   : > { %v921_v14 = vpop.xlane.xlu0 %920  ;;  %v919_v15 = vpop.xlane.xlu1 %918 }
 0x236   : > { %4435 = vrsqrt.f32 %v952_v53  ;;  %v938_v16 = vmul.f32 0.0078125, %v921_v14  ;;  %v937_v18 = vmul.f32 0.0078125, %v919_v15 }
 0x238   : > { %v948_v19 = vadd.f32 1e-06, %v938_v16  ;;  %v947_v20 = vadd.f32 1e-06, %v937_v18 }
 0x239   : > { %v931_v21 = vpop.xlane.xlu1 %930 }
 0x23a   : > { %4437 = vrsqrt.f32 %v948_v19  ;;  %v943_v24 = vmul.f32 0.0078125, %v931_v21 }
 0x23b   : > { %4439 = vrsqrt.f32 %v947_v20 }
 0x23c   : > { %v4434_v22 = vpop.eup %4433  ;;  %v953_v27 = vadd.f32 1e-06, %v943_v24 }
 0x23d   : > { %v966_v29 = vmul.f32 %v4434_v22, %v5016_v12  ;;  %v923_v30 = vpop.xlane.xlu1 %922 }
 0x23e   : > { %4441 = vrsqrt.f32 %v953_v27  ;;  %v939_v32 = vmul.f32 0.0078125, %v923_v30 }
 0x23f   : > { %v982_v34 = vmul.f32 %v5080_v23, %v966_v29 }
 0x240   : > { %v4436_v36 = vpop.eup %4435  ;;  %v949_v37 = vadd.f32 1e-06, %v939_v32 }
 0x241   : > { %v998_v33 = vadd.f32 %v5086_v31, %v982_v34  ;;  %v972_v39 = vmul.f32 %v4436_v36, %v5020_v17  ;;  %v933_v40 = vpop.xlane.xlu0 %932  ;;  %v935_v41 = vpop.xlane.xlu1 %934 }
 0x242   : > { %4443 = vrsqrt.f32 %v949_v37  ;;  %v945_v12 = vmul.f32 0.0078125, %v935_v41  ;;  %v944_v50 = vmul.f32 0.0078125, %v933_v40 }
 0x243   : > { %v1058_v44 = vsel %vm1048_vm11, %v998_v33, 0.0  ;;  %v988_v45 = vmul.f32 %v5080_v23, %v972_v39 }
 0x244   : > { %v4438_v46 = vpop.eup %4437  ;;  %1068 = vst [vmem:[#allocation2] sm:$0xff] %v1058_v44  ;;  %v955_v47 = vadd.f32 1e-06, %v945_v12  ;;  %v954_v36 = vadd.f32 1e-06, %v944_v50 }
 0x245   : > { %v4440_v55 = vpop.eup %4439  ;;  %v1004_v56 = vadd.f32 %v5086_v31, %v988_v45  ;;  %v968_v58 = vmul.f32 %v4438_v46, %v5026_v26  ;;  %v925_v59 = vpop.xlane.xlu0 %924 }
 0x246   : > { %v967_v60 = vmul.f32 %v4440_v55, %v5024_v25  ;;  %v940_v17 = vmul.f32 0.0078125, %v925_v59  ;;  %4445 = vrsqrt.f32 %v955_v47 }
 0x247   : > { %v1064_v61 = vsel %vm1054_vm12, %v1004_v56, 0.0  ;;  %v984_v62 = vmul.f32 %v5080_v23, %v968_v58  ;;  %vm1052_vm12 = vcmp.eq.s32.totalorder %v5063_v51, 1 }
 0x248   : > { %v4442_v63 = vpop.eup %4441  ;;  %1074 = vst [vmem:[#allocation2 + $0x30] sm:$0xff] %v1064_v61  ;;  %v983_v11 = vmul.f32 %v5080_v23, %v967_v60  ;;  %v950_v13 = vadd.f32 1e-06, %v940_v17 }
 0x249   : > { %v1000_v53 = vadd.f32 %v5086_v31, %v984_v62  ;;  %v973_v14 = vmul.f32 %v4442_v63, %v5029_v28 }
 0x24a   : > { %v999_v26 = vadd.f32 %v5086_v31, %v983_v11  ;;  %4447 = vrsqrt.f32 %v950_v13 }
 0x24b   : > { %v1060_v25 = vsel %vm1050_vm13, %v1000_v53, 0.0  ;;  %v989_v54 = vmul.f32 %v5080_v23, %v973_v14  ;;  %4449 = vrsqrt.f32 %v954_v36 }
 0x24c   : > { %v4444_v15 = vpop.eup %4443  ;;  %1070 = vst [vmem:[#allocation2 + $0x10] sm:$0xff] %v1060_v25  ;;  %v1059_v16 = vsel %vm1049_vm14, %v999_v26, 0.0  ;;  %vm1053_vm14 = vcmp.eq.s32.totalorder %v5065_v52, 1 }
 0x24d   : > { %1069 = vst [vmem:[#allocation2 + $0x8] sm:$0xff] %v1059_v16  ;;  %v1005_v18 = vadd.f32 %v5086_v31, %v989_v54  ;;  %v969_v19 = vmul.f32 %v4444_v15, %v5035_v35  ;;  %v1047_v27 = vpop.permute.xlu0 %1046 }
 0x24e   : > { %vm1057_vm11 = vcmp.eq.s32.totalorder %v1047_v27, 1 }
 0x24f   : > { %v1065_v28 = vsel %vm1055_vm15, %v1005_v18, 0.0  ;;  %v985_v49 = vmul.f32 %v5080_v23, %v969_v19 }
 0x250   : > { %1075 = vst [vmem:[#allocation2 + $0x38] sm:$0xff] %v1065_v28  ;;  %v4446_v20 = vpop.eup %4445 }
 0x251   : > { %v1001_v48 = vadd.f32 %v5086_v31, %v985_v49  ;;  %v975_v21 = vmul.f32 %v4446_v20, %v5039_v38 }
 0x253   : > { %v1061_v24 = vsel %vm1051_vm10, %v1001_v48, 0.0  ;;  %v991_v29 = vmul.f32 %v5080_v23, %v975_v21 }
 0x254   : > { %v4448_v22 = vpop.eup %4447  ;;  %1071 = vst [vmem:[#allocation2 + $0x18] sm:$0xff] %v1061_v24 }
 0x255   : > { %v970_v35 = vmul.f32 %v4448_v22, %v5046_v43  ;;  %v1007_v10 = vadd.f32 %v5086_v31, %v991_v29  ;;  %v4450_v37 = vpop.eup %4449 }
 0x256   : > { %v974_v33 = vmul.f32 %v4450_v37, %v5043_v42 }
 0x257   : > { %v986_v30 = vmul.f32 %v5080_v23, %v970_v35  ;;  %v1067_v32 = vsel %vm1057_vm11, %v1007_v10, 0.0 }
 0x258   : > { %1077 = vst [vmem:[#allocation2 + $0x48] sm:$0xff] %v1067_v32  ;;  %v990_v39 = vmul.f32 %v5080_v23, %v974_v33 }
 0x259   : > { %v1002_v34 = vadd.f32 %v5086_v31, %v986_v30 }
 0x25a   : > { %v1006_v44 = vadd.f32 %v5086_v31, %v990_v39 }
 0x25b   : > { %v1062_v38 = vsel %vm1052_vm12, %v1002_v34, 0.0 }
 0x25c   : > { %1072 = vst [vmem:[#allocation2 + $0x20] sm:$0xff] %v1062_v38 }
 0x286   : > { %v927_v43 = vpop.xlane.xlu1 %926 }
 0x287   : > { %v941_v41 = vmul.f32 0.0078125, %v927_v43 }
 0x289   : > { %v951_v12 = vadd.f32 1e-06, %v941_v41 }
 0x28a   : > { %v1044_v45 = vpop.permute.xlu1 %1043 }
 0x28b   : > { %4451 = vrsqrt.f32 %v951_v12  ;;  %vm1056_vm13 = vcmp.eq.s32.totalorder %v1044_v45, 1 }
 0x28c   : > { %v1066_v46 = vsel %vm1056_vm13, %v1006_v44, 0.0 }
 0x28d   : > { %1076 = vst [vmem:[#allocation2 + $0x40] sm:$0xff] %v1066_v46 }
 0x295   : > { %v4452_v51 = vpop.eup %4451 }
 0x296   : > { %v971_v40 = vmul.f32 %v4452_v51, %v5068_v57 }
 0x298   : > { %v987_v47 = vmul.f32 %v5080_v23, %v971_v40 }
 0x29a   : > { %v1003_v55 = vadd.f32 %v5086_v31, %v987_v47 }
 0x29c   : > { %v1063_v42 = vsel %vm1053_vm14, %v1003_v55, 0.0 }
 0x29d   : > { %1073 = vst [vmem:[#allocation2 + $0x28] sm:$0xff] %v1063_v42 }
 0x29e PF: > { %v5123_v56 = vld [vmem:[#allocation2] sm:$0xff]  ;;  %v5125_v58 = vld [vmem:[#allocation2 + $0x8] sm:$0xff]  ;;  %v5127_v59 = vld [vmem:[#allocation2 + $0x10] sm:$0xff]  ;;  %v1136_v60 = vlaneseq  ;;  %s7722_s22 = sld [smem:[#allocation18_spill]]  ;;  %s8156_s7 = scalar_lea.vmem %s7334_s8, %s4812_s23 }
 0x29f   : > { %7631 = vst [vmem:[#allocation19_spill] sm:$0xff] %v5123_v56  ;;  %7632 = vst [vmem:[#allocation20_spill] sm:$0xff] %v5127_v59  ;;  %v1107_v17 = vld [vmem:[#allocation2 + $0x18] sm:$0xff]  ;;  %v5129_v61 = vld [vmem:[#allocation2 + $0x20] sm:$0xff]  ;;  %s8157_s28 = scalar_lea.vmem %s7335_s9, %s4812_s23  ;;  %p4226_p6 = scmp.ne.s32.totalorder %s4663_s18, 1 }
 0x2a0   : > { %1109 = vst [vmem:[#allocation3 + $0x21] sm:$0xff] %v5123_v56  ;;  %1110 = vst [vmem:[#allocation3 + $0x29] sm:$0xff] %v5125_v58  ;;  %v1137_v52 = vshrl.u32 %v1136_v60, 7  ;;  %v1124_v57 = vld [vmem:[%s4859_s19] sm:$0xff]  ;;  %v1131_v23 = vld [vmem:[#allocation3] sm:$0xff] }
 0x2a1   : > { %1111 = vst [vmem:[#allocation3 + $0x31] sm:$0xff] %v5127_v59  ;;  %1112 = vst [vmem:[#allocation3 + $0x39] sm:$0xff] %v1107_v17  ;;  %v5142_v11 = vld [vmem:[#allocation3 + $0x10] sm:$0xff]  ;;  %v5144_v13 = vld [vmem:[#allocation3 + $0x18] sm:$0xff] }
 0x2a2   : > { %1113 = vst [vmem:[#allocation3 + $0x41] sm:$0xff] %v5129_v61  ;;  %v5136_v31 = vsub.s32 0, %v1137_v52  ;;  %v5138_v62 = vsub.s32 1, %v1137_v52  ;;  %v5140_v63 = vsub.s32 2, %v1137_v52  ;;  %7636 = vst [vmem:[#allocation24_spill] sm:$0xff] %v5144_v13  ;;  %v1145_v53 = vld [vmem:[#allocation3 + $0x1] sm:$0xff] }
 0x2a3   : > { %v5146_v14 = vsub.s32 3, %v1137_v52  ;;  %v5148_v26 = vsub.s32 4, %v1137_v52  ;;  %v5150_v25 = vsub.s32 5, %v1137_v52  ;;  %v1147_v15 = vld [vmem:[#allocation3 + $0x11] sm:$0xff]  ;;  %v5155_v16 = vld [vmem:[#allocation3 + $0x19] sm:$0xff]  ;;  %v1164_v19 = vld [vmem:[#allocation3 + $0x2] sm:$0xff] }
 0x2a4   : > { %7633 = vst [vmem:[#allocation21_spill] sm:$0xff] %v5136_v31  ;;  %7634 = vst [vmem:[#allocation22_spill] sm:$0xff] %v5138_v62  ;;  %v5153_v54 = vrot.slane %v1124_v57, %v5136_v31  ;;  %v5158_v18 = vrot.slane %v1124_v57, %v5138_v62  ;;  %v5161_v28 = vrot.slane %v1124_v57, %v5140_v63  ;;  %v5163_v49 = vsub.s32 6, %v1137_v52  ;;  %v1183_v20 = vld [vmem:[#allocation3 + $0x3] sm:$0xff]  ;;  %v5183_v32 = vld [vmem:[%s4859_s19 + $0x8] sm:$0xff] }
 0x2a5   : > { %7635 = vst [vmem:[#allocation23_spill] sm:$0xff] %v5140_v63  ;;  %7637 = vst [vmem:[#allocation25_spill] sm:$0xff] %v5146_v14  ;;  %v5166_v48 = vrot.slane %v1124_v57, %v5146_v14  ;;  %v5169_v21 = vrot.slane %v1124_v57, %v5148_v26  ;;  %v5172_v24 = vrot.slane %v1124_v57, %v5150_v25  ;;  %v5174_v22 = vsub.s32 7, %v1137_v52  ;;  %v1202_v30 = vld [vmem:[#allocation3 + $0x4] sm:$0xff]  ;;  %v5262_v7 = vld [vmem:[#allocation3 + $0xe] sm:$0xff] }
 0x2a6   : > { %7638 = vst [vmem:[#allocation26_spill] sm:$0xff] %v5153_v54  ;;  %7639 = vst [vmem:[#allocation27_spill] sm:$0xff] %v5158_v18  ;;  %v1140_v27 = vmul.f32 %v5153_v54, %v1131_v23  ;;  %v1142_v29 = vmul.f32 %v5153_v54, %v5142_v11  ;;  %v1143_v35 = vmul.f32 %v5153_v54, %v5144_v13  ;;  %v1221_v44 = vld [vmem:[#allocation3 + $0x5] sm:$0xff]  ;;  %v5340_v59 = vld [vmem:[#allocation3 + $0x17] sm:$0xff] }
 0x2a7   : > { %7640 = vst [vmem:[#allocation28_spill] sm:$0xff] %v5161_v28  ;;  %7641 = vst [vmem:[#allocation29_spill] sm:$0xff] %v5166_v48  ;;  %v1154_v10 = vmul.f32 %v5158_v18, %v1145_v53  ;;  %v1156_v34 = vmul.f32 %v5158_v18, %v1147_v15  ;;  %v1157_v38 = vmul.f32 %v5158_v18, %v5155_v16  ;;  %v5192_v36 = vld [vmem:[#allocation3 + $0x1a] sm:$0xff]  ;;  %v5195_v33 = vld [vmem:[#allocation3 + $0x23] sm:$0xff] }
 0x2a8   : > { %7642 = vst [vmem:[#allocation30_spill] sm:$0xff] %v5169_v21  ;;  %7643 = vst [vmem:[#allocation31_spill] sm:$0xff] %v5172_v24  ;;  %v5190_v50 = vmul.f32 %v5158_v18, %v5123_v56  ;;  %v1173_v37 = vmul.f32 %v5161_v28, %v1164_v19  ;;  %v1176_v39 = vmul.f32 %v5161_v28, %v5192_v36  ;;  %v5206_v51 = vld [vmem:[#allocation3 + $0xa] sm:$0xff]  ;;  %v5212_v60 = vld [vmem:[#allocation3 + $0x22] sm:$0xff] }
 0x2a9   : > { %v1159_v43 = vadd.f32 %v1154_v10, %v1140_v27  ;;  %v1192_v41 = vmul.f32 %v5166_v48, %v1183_v20  ;;  %v5202_v12 = vmul.f32 %v5166_v48, %v5195_v33  ;;  %v5204_v45 = vadd.f32 %v1156_v34, %v1142_v29  ;;  %v5208_v40 = vld [vmem:[#allocation3 + $0xb] sm:$0xff]  ;;  %v1186_v52 = vld [vmem:[#allocation3 + $0x1b] sm:$0xff]  ;;  %7668 = vst [vmem:[#allocation56_spill] sm:$0xff] %v5340_v59 }
 0x2aa   : > { %7644 = vst [vmem:[#allocation32_spill] sm:$0xff] %v5190_v50  ;;  %v1162_v46 = vadd.f32 %v1157_v38, %v1143_v35  ;;  %v1211_v47 = vmul.f32 %v5169_v21, %v1202_v30  ;;  %v1230_v55 = vmul.f32 %v5172_v24, %v1221_v44  ;;  %v1240_v42 = vld [vmem:[#allocation3 + $0x6] sm:$0xff]  ;;  %v5215_v23 = vrot.slane %v1124_v57, %v5163_v49 }
 0x2ab   : > { %7645 = vst [vmem:[#allocation33_spill] sm:$0xff] %v5202_v12  ;;  %7646 = vst [vmem:[#allocation34_spill] sm:$0xff] %v5204_v45  ;;  %v1178_v17 = vadd.f32 %v1173_v37, %v1159_v43  ;;  %v5217_v53 = vld [vmem:[#allocation3 + $0x2a] sm:$0xff]  ;;  %v5220_v15 = vrot.slane %v1124_v57, %v5174_v22  ;;  %v5224_v19 = vrot.slane %v5183_v32, %v5136_v31 }
 0x2ac   : > { %7647 = vst [vmem:[#allocation35_spill] sm:$0xff] %v5215_v23  ;;  %v5226_v20 = vadd.f32 %v1176_v39, %v1162_v46  ;;  %v5228_v27 = vld [vmem:[#allocation3 + $0xc] sm:$0xff]  ;;  %v5234_v35 = vrot.slane %v5183_v32, %v5138_v62  ;;  %v5238_v10 = vrot.slane %v5183_v32, %v5140_v63  ;;  %v5242_v57 = vrot.slane %v5183_v32, %v5146_v14 }
 0x2ad   : > { %7648 = vst [vmem:[#allocation36_spill] sm:$0xff] %v5220_v15  ;;  %7649 = vst [vmem:[#allocation37_spill] sm:$0xff] %v5224_v19  ;;  %v5230_v29 = vld [vmem:[#allocation3 + $0x2b] sm:$0xff]  ;;  %v1197_v30 = vadd.f32 %v1192_v41, %v1178_v17  ;;  %v1249_v34 = vmul.f32 %v5215_v23, %v1240_v42  ;;  %v1264_v38 = vmul.f32 %v5220_v15, %v5206_v51 }
 0x2ae   : > { %7650 = vst [vmem:[#allocation38_spill] sm:$0xff] %v5226_v20  ;;  %7651 = vst [vmem:[#allocation39_spill] sm:$0xff] %v5234_v35  ;;  %v1266_v37 = vmul.f32 %v5220_v15, %v5192_v36  ;;  %v5249_v43 = vld [vmem:[#allocation3 + $0x2c] sm:$0xff]  ;;  %v1267_v44 = vmul.f32 %v5220_v15, %v5212_v60  ;;  %v1268_v46 = vmul.f32 %v5220_v15, %v5217_v53  ;;  %v5260_v17 = vld [vmem:[#allocation3 + $0x24] sm:$0xff] }
 0x2af   : > { %7652 = vst [vmem:[#allocation40_spill] sm:$0xff] %v5238_v10  ;;  %7653 = vst [vmem:[#allocation41_spill] sm:$0xff] %v5242_v57  ;;  %v5251_v39 = vld [vmem:[#allocation3 + $0xd] sm:$0xff]  ;;  %v1274_v41 = vmul.f32 %v5224_v19, %v5208_v40  ;;  %v1276_v42 = vmul.f32 %v5224_v19, %v1186_v52  ;;  %v1216_v8 = vadd.f32 %v1211_v47, %v1197_v30  ;;  %v5279_v30 = vld [vmem:[%s4859_s19 + $0x10] sm:$0xff] }
 0x2b0   : > { %v1277_v6 = vmul.f32 %v5224_v19, %v5195_v33  ;;  %v1278_v5 = vmul.f32 %v5224_v19, %v5230_v29  ;;  %v1289_v4 = vmul.f32 %v5234_v35, %v5228_v27  ;;  %v5274_v52 = vmul.f32 %v5234_v35, %v5260_v17  ;;  %v5283_v12 = vld [vmem:[#allocation3 + $0x2d] sm:$0xff]  ;;  %v5456_v19 = vld [vmem:[#allocation3 + $0x42] sm:$0xff] }
 0x2b1   : > { %v1279_v3 = vadd.f32 %v1274_v41, %v1264_v38  ;;  %v5270_v9 = vadd.f32 %v1276_v42, %v1266_v37  ;;  %v1293_v47 = vmul.f32 %v5234_v35, %v5249_v43  ;;  %v1235_v2 = vadd.f32 %v1230_v55, %v1216_v8  ;;  %v5287_v37 = vld [vmem:[#allocation3 + $0x2e] sm:$0xff]  ;;  %v5368_v35 = vld [vmem:[#allocation3 + $0x37] sm:$0xff] }
 0x2b2   : > { %7655 = vst [vmem:[#allocation43_spill] sm:$0xff] %v5274_v52  ;;  %v5281_v0 = vadd.f32 %v1277_v6, %v1267_v44  ;;  %v1283_v1 = vadd.f32 %v1278_v5, %v1268_v46  ;;  %v1304_v38 = vmul.f32 %v5238_v10, %v5251_v39  ;;  %v1308_v42 = vmul.f32 %v5238_v10, %v5283_v12  ;;  %v1329_v6 = vld [vmem:[#allocation3 + $0xf] sm:$0xff] }
 0x2b3   : > { %7654 = vst [vmem:[#allocation42_spill] sm:$0xff] %v5270_v9  ;;  %v1294_v41 = vadd.f32 %v1289_v4, %v1279_v3  ;;  %v1319_v50 = vmul.f32 %v5242_v57, %v5262_v7  ;;  %v5295_v8 = vmul.f32 %v5242_v57, %v5287_v37  ;;  %v5297_v5 = vld [vmem:[#allocation3 + $0x14] sm:$0xff]  ;;  %v5299_v55 = vadd.f32 %v1249_v34, %v1235_v2 }
 0x2b4   : > { %7656 = vst [vmem:[#allocation44_spill] sm:$0xff] %v5281_v0  ;;  %7658 = vst [vmem:[#allocation46_spill] sm:$0xff] %v5297_v5  ;;  %v1298_v44 = vadd.f32 %v1293_v47, %v1283_v1  ;;  %v5303_v46 = vrot.slane %v5183_v32, %v5148_v26  ;;  %v5307_v3 = vrot.slane %v5183_v32, %v5150_v25  ;;  %v5309_v4 = vld [vmem:[#allocation3 + $0x15] sm:$0xff] }
 0x2b5   : > { %7657 = vst [vmem:[#allocation45_spill] sm:$0xff] %v5295_v8  ;;  %7661 = vst [vmem:[#allocation49_spill] sm:$0xff] %v5309_v4  ;;  %v1309_v52 = vadd.f32 %v1304_v38, %v1294_v41  ;;  %v5311_v0 = vld [vmem:[#allocation3 + $0x34] sm:$0xff]  ;;  %v5315_v8 = vrot.slane %v5183_v32, %v5163_v49  ;;  %v5321_v1 = vrot.slane %v5183_v32, %v5174_v22 }
 0x2b6   : > { %7659 = vst [vmem:[#allocation47_spill] sm:$0xff] %v5303_v46  ;;  %7660 = vst [vmem:[#allocation48_spill] sm:$0xff] %v5307_v3  ;;  %v5317_v2 = vld [vmem:[#allocation3 + $0x35] sm:$0xff]  ;;  %v5325_v34 = vrot.slane %v5279_v30, %v5136_v31  ;;  %v5329_v20 = vadd.f32 %v1308_v42, %v1298_v44  ;;  %v1338_v38 = vmul.f32 %v5303_v46, %v1329_v6 }
 0x2b7   : > { %7662 = vst [vmem:[#allocation50_spill] sm:$0xff] %v5315_v8  ;;  %7663 = vst [vmem:[#allocation51_spill] sm:$0xff] %v5321_v1  ;;  %v5327_v47 = vld [vmem:[#allocation3 + $0x16] sm:$0xff]  ;;  %v1354_v41 = vmul.f32 %v5307_v3, %v5142_v11  ;;  %v5338_v45 = vrot.slane %v5279_v30, %v5138_v62  ;;  %v1324_v32 = vadd.f32 %v1319_v50, %v1309_v52 }
 0x2b8   : > { %7664 = vst [vmem:[#allocation52_spill] sm:$0xff] %v5325_v34  ;;  %7665 = vst [vmem:[#allocation53_spill] sm:$0xff] %v5327_v47  ;;  %v5334_v9 = vld [vmem:[#allocation3 + $0x36] sm:$0xff]  ;;  %v1369_v57 = vmul.f32 %v5315_v8, %v5297_v5  ;;  %v5346_v42 = vmul.f32 %v5315_v8, %v5260_v17  ;;  %v1372_v6 = vmul.f32 %v5315_v8, %v5249_v43 }
 0x2b9   : > { %7666 = vst [vmem:[#allocation54_spill] sm:$0xff] %v5329_v20  ;;  %7667 = vst [vmem:[#allocation55_spill] sm:$0xff] %v5338_v45  ;;  %v1373_v11 = vmul.f32 %v5315_v8, %v5311_v0  ;;  %v1379_v44 = vmul.f32 %v5321_v1, %v5309_v4  ;;  %v1382_v50 = vmul.f32 %v5321_v1, %v5283_v12 }
 0x2ba   : > { %7669 = vst [vmem:[#allocation57_spill] sm:$0xff] %v5346_v42  ;;  %v1383_v52 = vmul.f32 %v5321_v1, %v5317_v2  ;;  %v1343_v20 = vadd.f32 %v1338_v38, %v1324_v32  ;;  %v1394_v3 = vmul.f32 %v5325_v34, %v5327_v47  ;;  %v5362_v42 = vmul.f32 %v5325_v34, %v5287_v37  ;;  %v5372_v38 = vld [vmem:[#allocation3 + $0x1e] sm:$0xff] }
 0x2bb   : > { %v1398_v8 = vmul.f32 %v5325_v34, %v5334_v9  ;;  %v1384_v46 = vadd.f32 %v1379_v44, %v1369_v57  ;;  %v5366_v10 = vadd.f32 %v1382_v50, %v1372_v6  ;;  %v1409_v1 = vmul.f32 %v5338_v45, %v5340_v59  ;;  %7672 = vst [vmem:[#allocation60_spill] sm:$0xff] %v5372_v38  ;;  %v5386_v6 = vld [vmem:[#allocation3 + $0x1f] sm:$0xff] }
 0x2bc   : > { %7670 = vst [vmem:[#allocation58_spill] sm:$0xff] %v5362_v42  ;;  %v1388_v4 = vadd.f32 %v1383_v52, %v1373_v11  ;;  %v5374_v32 = vadd.f32 %v1354_v41, %v1343_v20  ;;  %v1413_v47 = vmul.f32 %v5338_v45, %v5368_v35  ;;  %v5380_v42 = vrot.slane %v5279_v30, %v5140_v63  ;;  %v5388_v50 = vld [vmem:[#allocation3 + $0x38] sm:$0xff] }
 0x2bd   : > { %7671 = vst [vmem:[#allocation59_spill] sm:$0xff] %v5366_v10  ;;  %v5384_v57 = vrot.slane %v5279_v30, %v5146_v14  ;;  %7675 = vst [vmem:[#allocation63_spill] sm:$0xff] %v5386_v6  ;;  %v1399_v11 = vadd.f32 %v1394_v3, %v1384_v46  ;;  %v5392_v20 = vrot.slane %v5279_v30, %v5148_v26  ;;  %v5394_v41 = vld [vmem:[#allocation3 + $0x3e] sm:$0xff] }
 0x2be   : > { %7673 = vst [vmem:[#allocation61_spill] sm:$0xff] %v5380_v42  ;;  %v1403_v44 = vadd.f32 %v1398_v8, %v1388_v4  ;;  %v5398_v52 = vrot.slane %v5279_v30, %v5150_v25  ;;  %v1424_v10 = vmul.f32 %v5380_v42, %v5144_v13  ;;  %v5404_v46 = vmul.f32 %v5380_v42, %v5388_v50  ;;  %v5408_v3 = vld [vmem:[#allocation3 + $0x3f] sm:$0xff] }
 0x2bf   : > { %7674 = vst [vmem:[#allocation62_spill] sm:$0xff] %v5384_v57  ;;  %7676 = vst [vmem:[#allocation64_spill] sm:$0xff] %v5392_v20  ;;  %v1441_v8 = vmul.f32 %v5384_v57, %v5155_v16  ;;  %v5412_v4 = vrot.slane %v5279_v30, %v5163_v49  ;;  %v1414_v45 = vadd.f32 %v1409_v1, %v1399_v11  ;;  %v5420_v42 = vld [vmem:[#allocation3 + $0x20] sm:$0xff]  ;;  %v1127_v11 = vld [vmem:[%s4859_s19 + $0x18] sm:$0xff] }
 0x2c0   : > { %7677 = vst [vmem:[#allocation65_spill] sm:$0xff] %v5398_v52  ;;  %7678 = vst [vmem:[#allocation66_spill] sm:$0xff] %v5404_v46  ;;  %v5414_v34 = vadd.f32 %v1413_v47, %v1403_v44  ;;  %v1457_v59 = vmul.f32 %v5392_v20, %v5192_v36  ;;  %v1472_v13 = vmul.f32 %v5398_v52, %v5372_v38  ;;  %v5437_v20 = vld [vmem:[#allocation3 + $0x40] sm:$0xff] }
 0x2c1   : > { %7679 = vst [vmem:[#allocation67_spill] sm:$0xff] %v5412_v4  ;;  %7681 = vst [vmem:[#allocation69_spill] sm:$0xff] %v5420_v42  ;;  %v5424_v16 = vmul.f32 %v5398_v52, %v5287_v37  ;;  %v1475_v46 = vmul.f32 %v5398_v52, %v5334_v9  ;;  %v1476_v1 = vmul.f32 %v5398_v52, %v5394_v41 }
 0x2c2   : > { %7680 = vst [vmem:[#allocation68_spill] sm:$0xff] %v5414_v34  ;;  %v1482_v47 = vmul.f32 %v5412_v4, %v5386_v6  ;;  %v1429_v36 = vadd.f32 %v1424_v10, %v1414_v45  ;;  %v1485_v44 = vmul.f32 %v5412_v4, %v5368_v35  ;;  %v1486_v34 = vmul.f32 %v5412_v4, %v5408_v3 }
 0x2c3   : > { %7682 = vst [vmem:[#allocation70_spill] sm:$0xff] %v5424_v16  ;;  %v5441_v16 = vrot.slane %v5279_v30, %v5174_v22  ;;  %v5444_v52 = vrot.slane %v1127_v11, %v5136_v31  ;;  %v5447_v6 = vrot.slane %v1127_v11, %v5138_v62  ;;  %v5450_v45 = vrot.slane %v1127_v11, %v5140_v63 }
 0x2c4   : > { %v1487_v57 = vadd.f32 %v1482_v47, %v1472_v13  ;;  %v1446_v10 = vadd.f32 %v1441_v8, %v1429_v36  ;;  %v5452_v38 = vadd.f32 %v1485_v44, %v1475_v46  ;;  %v1491_v4 = vadd.f32 %v1486_v34, %v1476_v1  ;;  %v1114_v8 = vld [vmem:[#allocation2 + $0x28] sm:$0xff]  ;;  %v1115_v34 = vld [vmem:[#allocation2 + $0x30] sm:$0xff]  ;;  %v1116_v1 = vld [vmem:[#allocation2 + $0x38] sm:$0xff] }
 0x2c5   : > { %7683 = vst [vmem:[#allocation71_spill] sm:$0xff] %v5441_v16  ;;  %7684 = vst [vmem:[#allocation72_spill] sm:$0xff] %v5444_v52  ;;  %v1497_v5 = vmul.f32 %v5441_v16, %v5420_v42  ;;  %v5460_v13 = vmul.f32 %v5441_v16, %v5388_v50  ;;  %v1501_v30 = vmul.f32 %v5441_v16, %v5437_v20  ;;  %v5468_v36 = vld [vmem:[#allocation3 + $0x28] sm:$0xff]  ;;  %v1117_v42 = vld [vmem:[#allocation2 + $0x40] sm:$0xff] }
 0x2c6   : > { %7685 = vst [vmem:[#allocation73_spill] sm:$0xff] %v5447_v6  ;;  %7686 = vst [vmem:[#allocation74_spill] sm:$0xff] %v5450_v45  ;;  %v1512_v47 = vmul.f32 %v5444_v52, %v5123_v56  ;;  %v1516_v46 = vmul.f32 %v5444_v52, %v5129_v61  ;;  %v5470_v44 = vadd.f32 %v1457_v59, %v1446_v10  ;;  %v1118_v56 = vld [vmem:[#allocation2 + $0x48] sm:$0xff] }
 0x2c7   : > { %7687 = vst [vmem:[#allocation75_spill] sm:$0xff] %v5452_v38  ;;  %7688 = vst [vmem:[#allocation76_spill] sm:$0xff] %v5460_v13  ;;  %v1502_v38 = vadd.f32 %v1497_v5, %v1487_v57  ;;  %v1527_v13 = vmul.f32 %v5447_v6, %v5212_v60  ;;  %v5476_v16 = vmul.f32 %v5447_v6, %v5456_v19 }
 0x2c8   : > { %1119 = vst [vmem:[#allocation3 + $0x85] sm:$0xff] %v1114_v8  ;;  %1120 = vst [vmem:[#allocation3 + $0x8d] sm:$0xff] %v1115_v34  ;;  %v1506_v52 = vadd.f32 %v1501_v30, %v1491_v4  ;;  %v1544_v15 = vmul.f32 %v5450_v45, %v5195_v33  ;;  %v5481_v59 = vrot.slane %v1127_v11, %v5146_v14  ;;  %v1129_v45 = vld [vmem:[%s4859_s19 + $0x28] sm:$0xff] }
 0x2c9   : > { %7689 = vst [vmem:[#allocation77_spill] sm:$0xff] %v5476_v16  ;;  %1121 = vst [vmem:[#allocation3 + $0x95] sm:$0xff] %v1116_v1  ;;  %v5484_v5 = vrot.slane %v1127_v11, %v5148_v26  ;;  %v1517_v57 = vadd.f32 %v1512_v47, %v1502_v38  ;;  %v5487_v10 = vrot.slane %v1127_v11, %v5150_v25  ;;  %v5525_v16 = vld [vmem:[#allocation3 + $0x33] sm:$0xff] }
 0x2ca   : > { %7690 = vst [vmem:[#allocation78_spill] sm:$0xff] %v5481_v59  ;;  %1122 = vst [vmem:[#allocation3 + $0x9d] sm:$0xff] %v1117_v42  ;;  %v5490_v8 = vrot.slane %v1127_v11, %v5163_v49  ;;  %v5493_v4 = vrot.slane %v1127_v11, %v5174_v22  ;;  %v5495_v30 = vadd.f32 %v1516_v46, %v1506_v52  ;;  %v1128_v42 = vld [vmem:[%s4859_s19 + $0x20] sm:$0xff] }
 0x2cb   : > { %7691 = vst [vmem:[#allocation79_spill] sm:$0xff] %v5484_v5  ;;  %1123 = vst [vmem:[#allocation3 + $0xa5] sm:$0xff] %v1118_v56  ;;  %v1560_v33 = vmul.f32 %v5481_v59, %v5260_v17  ;;  %v1575_v34 = vmul.f32 %v5484_v5, %v5468_v36  ;;  %v5503_v56 = vmul.f32 %v5484_v5, %v5388_v50 }
 0x2cc   : > { %7692 = vst [vmem:[#allocation80_spill] sm:$0xff] %v5487_v10  ;;  %7693 = vst [vmem:[#allocation81_spill] sm:$0xff] %v5490_v8  ;;  %v1532_v38 = vadd.f32 %v1527_v13, %v1517_v57  ;;  %v1578_v47 = vmul.f32 %v5484_v5, %v5437_v20  ;;  %v1585_v11 = vmul.f32 %v5487_v10, %v5125_v58  ;;  %v5523_v57 = vld [vmem:[#allocation3 + $0x32] sm:$0xff] }
 0x2cd   : > { %7694 = vst [vmem:[#allocation82_spill] sm:$0xff] %v5493_v4  ;;  %7695 = vst [vmem:[#allocation83_spill] sm:$0xff] %v5495_v30  ;;  %v1588_v52 = vmul.f32 %v5487_v10, %v5129_v61  ;;  %v1600_v17 = vmul.f32 %v5490_v8, %v5217_v53  ;;  %v5516_v46 = vmul.f32 %v5490_v8, %v5456_v19 }
 0x2ce   : > { %7696 = vst [vmem:[#allocation84_spill] sm:$0xff] %v5503_v56  ;;  %v1615_v13 = vmul.f32 %v5493_v4, %v5230_v29  ;;  %v5521_v1 = vrot.slane %v1128_v42, %v5136_v31  ;;  %v1549_v30 = vadd.f32 %v1544_v15, %v1532_v38  ;;  %v1590_v56 = vadd.f32 %v1585_v11, %v1575_v34 }
 0x2cf   : > { %7697 = vst [vmem:[#allocation85_spill] sm:$0xff] %v5516_v46  ;;  %v5527_v10 = vadd.f32 %v1588_v52, %v1578_v47  ;;  %v5530_v5 = vrot.slane %v1128_v42, %v5138_v62  ;;  %v5535_v8 = vrot.slane %v1128_v42, %v5140_v63  ;;  %v5538_v4 = vrot.slane %v1128_v42, %v5146_v14 }
 0x2d0   : > { %7698 = vst [vmem:[#allocation86_spill] sm:$0xff] %v5521_v1  ;;  %v1630_v46 = vmul.f32 %v5521_v1, %v5249_v43  ;;  %v5541_v59 = vrot.slane %v1128_v42, %v5148_v26  ;;  %v1565_v15 = vadd.f32 %v1560_v33, %v1549_v30  ;;  %v1605_v34 = vadd.f32 %v1600_v17, %v1590_v56  ;;  %v5559_v33 = vld [vmem:[#allocation3 + $0x3c] sm:$0xff] }
 0x2d1   : > { %7699 = vst [vmem:[#allocation87_spill] sm:$0xff] %v5527_v10  ;;  %7700 = vst [vmem:[#allocation88_spill] sm:$0xff] %v5530_v5  ;;  %v1647_v38 = vmul.f32 %v5530_v5, %v5283_v12  ;;  %v5547_v47 = vrot.slane %v1128_v42, %v5150_v25  ;;  %v1663_v11 = vmul.f32 %v5535_v8, %v5287_v37 }
 0x2d2   : > { %7701 = vst [vmem:[#allocation89_spill] sm:$0xff] %v5535_v8  ;;  %7702 = vst [vmem:[#allocation90_spill] sm:$0xff] %v5538_v4  ;;  %v1678_v52 = vmul.f32 %v5538_v4, %v5523_v57  ;;  %v5555_v10 = vmul.f32 %v5538_v4, %v5456_v19  ;;  %v1688_v30 = vmul.f32 %v5541_v59, %v5525_v16  ;;  %v5569_v8 = vld [vmem:[#allocation3 + $0x3d] sm:$0xff] }
 0x2d3   : > { %7703 = vst [vmem:[#allocation91_spill] sm:$0xff] %v5541_v59  ;;  %7704 = vst [vmem:[#allocation92_spill] sm:$0xff] %v5547_v47  ;;  %v1620_v12 = vadd.f32 %v1615_v13, %v1605_v34  ;;  %v1703_v56 = vmul.f32 %v5547_v47, %v5311_v0  ;;  %v5564_v17 = vrot.slane %v1128_v42, %v5163_v49  ;;  %v5581_v34 = vld [vmem:[%s4859_s19 + $0x30] ss:$0 sm:$0xff] }
 0x2d4   : > { %7705 = vst [vmem:[#allocation93_spill] sm:$0xff] %v5555_v10  ;;  %v5567_v37 = vrot.slane %v1128_v42, %v5174_v22  ;;  %v1693_v5 = vadd.f32 %v1688_v30, %v1678_v52  ;;  %v5572_v10 = vrot.slane %v1129_v45, %v5136_v31  ;;  %v5575_v59 = vrot.slane %v1129_v45, %v5138_v62 }
 0x2d5   : > { %7706 = vst [vmem:[#allocation94_spill] sm:$0xff] %v5564_v17  ;;  %v5578_v13 = vrot.slane %v1129_v45, %v5140_v63  ;;  %7711 = vst [vmem:[#allocation99_spill] sm:$0xff] %v5581_v34  ;;  %v1635_v47 = vadd.f32 %v1630_v46, %v1620_v12  ;;  %v1718_v4 = vmul.f32 %v5564_v17, %v5317_v2 }
 0x2d6   : > { %7707 = vst [vmem:[#allocation95_spill] sm:$0xff] %v5567_v37  ;;  %7708 = vst [vmem:[#allocation96_spill] sm:$0xff] %v5572_v10  ;;  %v1733_v42 = vmul.f32 %v5567_v37, %v5334_v9  ;;  %v5588_v52 = vrot.slane %v1129_v45, %v5146_v14  ;;  %v1708_v30 = vadd.f32 %v1703_v56, %v1693_v5 }
 0x2d7   : > { %7709 = vst [vmem:[#allocation97_spill] sm:$0xff] %v5575_v59  ;;  %7710 = vst [vmem:[#allocation98_spill] sm:$0xff] %v5578_v13  ;;  %v1750_v62 = vmul.f32 %v5572_v10, %v5368_v35  ;;  %v1766_v63 = vmul.f32 %v5575_v59, %v5388_v50  ;;  %v1781_v31 = vmul.f32 %v5578_v13, %v5559_v33 }
 0x2d8   : > { %7712 = vst [vmem:[#allocation100_spill] sm:$0xff] %v5588_v52  ;;  %v1652_v46 = vadd.f32 %v1647_v38, %v1635_v47  ;;  %v1791_v12 = vmul.f32 %v5588_v52, %v5569_v8  ;;  %v5599_v17 = vrot.slane %v1129_v45, %v5148_v26  ;;  %v5602_v14 = vrot.slane %v1129_v45, %v5150_v25  ;;  %v1132_v38 = vld [vmem:[#allocation3 + $0x8] sm:$0xff] }
 0x2d9   : > { %v1723_v5 = vadd.f32 %v1718_v4, %v1708_v30  ;;  %v5605_v56 = vrot.slane %v1129_v45, %v5163_v49  ;;  %v5608_v35 = vrot.slane %v1129_v45, %v5174_v22  ;;  %v1869_v50 = vmul.f32 %v5581_v34, %v5456_v19  ;;  %v1146_v47 = vld [vmem:[#allocation3 + $0x9] sm:$0xff]  ;;  %v5624_v30 = vld [vmem:[#allocation3 + $0x12] sm:$0xff]  ;;  %v5633_v34 = vld [vmem:[#allocation3 + $0x1c] sm:$0xff] }
 0x2da   : > { %7713 = vst [vmem:[#allocation101_spill] sm:$0xff] %v5599_v17  ;;  %7714 = vst [vmem:[#allocation102_spill] sm:$0xff] %v5602_v14  ;;  %v1668_v13 = vadd.f32 %v1663_v11, %v1652_v46  ;;  %v1796_v52 = vadd.f32 %v1791_v12, %v1781_v31  ;;  %v1806_v26 = vmul.f32 %v5599_v17, %v5394_v41 }
 0x2db   : > { %7715 = vst [vmem:[#allocation103_spill] sm:$0xff] %v5605_v56  ;;  %7716 = vst [vmem:[#allocation104_spill] sm:$0xff] %v5608_v35  ;;  %v1821_v25 = vmul.f32 %v5602_v14, %v5408_v3  ;;  %v1738_v4 = vadd.f32 %v1733_v42, %v1723_v5  ;;  %v1836_v49 = vmul.f32 %v5605_v56, %v5437_v20  ;;  %v5628_v42 = vld [vmem:[#allocation3 + $0x13] sm:$0xff] }
 0x2dc   : > { %v1853_v22 = vmul.f32 %v5608_v35, %v5129_v61  ;;  %v1879_v19 = vadd.f32 %v5374_v32, %v5299_v55  ;;  %v1811_v45 = vadd.f32 %v1806_v26, %v1796_v52  ;;  %v1141_v11 = vmul.f32 %v5153_v54, %v1132_v38  ;;  %7717 = vst [vmem:[#allocation105_spill] sm:$0xff] %v5628_v42  ;;  %v5637_v38 = vld [vmem:[#allocation3 + $0x1d] sm:$0xff]  ;;  %v7720_v26 = vld [vmem:[#allocation36_spill] sm:$0xff] }
 0x2dd   : > { %v1155_v31 = vmul.f32 %v5158_v18, %v1146_v47  ;;  %v1174_v46 = vmul.f32 %v5161_v28, %v5206_v51  ;;  %v1755_v12 = vadd.f32 %v1750_v62, %v1738_v4  ;;  %v1193_v61 = vmul.f32 %v5166_v48, %v5208_v40  ;;  %7718 = vst [vmem:[#allocation106_spill] sm:$0xff] %v5633_v34  ;;  %v7721_v4 = vld [vmem:[#allocation37_spill] sm:$0xff]  ;;  %v7726_v54 = vld [vmem:[#allocation40_spill] sm:$0xff] }
 0x2de   : > { %v1884_v5 = vadd.f32 %v1879_v19, %v5470_v44  ;;  %v1212_v55 = vmul.f32 %v5169_v21, %v5228_v27  ;;  %v1826_v32 = vadd.f32 %v1821_v25, %v1811_v45  ;;  %7719 = vst [vmem:[#allocation107_spill] sm:$0xff] %v5637_v38  ;;  %v1231_v51 = vmul.f32 %v5172_v24, %v5251_v39  ;;  %v7723_v45 = vld [vmem:[#allocation46_spill] sm:$0xff]  ;;  %v7725_v18 = vld [vmem:[#allocation49_spill] sm:$0xff]  ;;  %v5651_v21 = vld [vmem:[#allocation3 + $0x26] sm:$0xff] }
 0x2df   : > { %v1160_v52 = vadd.f32 %v1155_v31, %v1141_v11  ;;  %v1250_v62 = vmul.f32 %v5215_v23, %v5262_v7  ;;  %v1771_v47 = vadd.f32 %v1766_v63, %v1755_v12  ;;  %v1265_v40 = vmul.f32 %v7720_v26, %v5624_v30  ;;  %v7724_v11 = vld [vmem:[#allocation39_spill] sm:$0xff]  ;;  %v7727_v63 = vld [vmem:[#allocation53_spill] sm:$0xff] }
 0x2e0   : > { %v1889_v44 = vadd.f32 %v1884_v5, %v1565_v15  ;;  %v1275_v19 = vmul.f32 %v7721_v4, %v5628_v42  ;;  %v1841_v27 = vadd.f32 %v1836_v49, %v1826_v32  ;;  %v1290_v31 = vmul.f32 %v7724_v11, %v7723_v45  ;;  %v7728_v15 = vld [vmem:[#allocation41_spill] sm:$0xff]  ;;  %v7729_v5 = vld [vmem:[#allocation56_spill] sm:$0xff]  ;;  %v7730_v26 = vld [vmem:[#allocation47_spill] sm:$0xff] }
 0x2e1   : > { %v1179_v25 = vadd.f32 %v1174_v46, %v1160_v52  ;;  %v1305_v39 = vmul.f32 %v7726_v54, %v7725_v18  ;;  %v1320_v12 = vmul.f32 %v7728_v15, %v7727_v63  ;;  %v1339_v23 = vmul.f32 %v7730_v26, %v7729_v5  ;;  %v7731_v49 = vld [vmem:[#allocation24_spill] sm:$0xff]  ;;  %v7733_v52 = vld [vmem:[#allocation50_spill] sm:$0xff]  ;;  %v5662_v54 = vld [vmem:[%s7722_s22] ss:$0 sm:$0xff] }
 0x2e2   : > { %v1894_v24 = vadd.f32 %v1889_v44, %v1668_v13  ;;  %v1280_v7 = vadd.f32 %v1275_v19, %v1265_v40  ;;  %v1858_v48 = vadd.f32 %v1853_v22, %v1841_v27  ;;  %v7732_v46 = vld [vmem:[#allocation48_spill] sm:$0xff]  ;;  %v1370_v11 = vmul.f32 %v7733_v52, %v5633_v34  ;;  %7734 = vst [vmem:[#allocation56_spill] sm:$0xff] %v5662_v54  ;;  %v7735_v40 = vld [vmem:[#allocation51_spill] sm:$0xff]  ;;  %v7741_v26 = vld [vmem:[#allocation61_spill] sm:$0xff] }
 0x2e3   : > { %v1198_v4 = vadd.f32 %v1193_v61, %v1179_v25  ;;  %v1355_v32 = vmul.f32 %v7732_v46, %v7731_v49  ;;  %v5664_v44 = vld [vmem:[#allocation3 + $0x27] sm:$0xff]  ;;  %v1380_v19 = vmul.f32 %v7735_v40, %v5637_v38  ;;  %v7740_v46 = vld [vmem:[#allocation69_spill] sm:$0xff]  ;;  %v7744_v34 = vld [vmem:[#allocation62_spill] sm:$0xff] }
 0x2e4   : > { %v1899_v45 = vadd.f32 %v1894_v24, %v1771_v47  ;;  %v1295_v13 = vadd.f32 %v1290_v31, %v1280_v7  ;;  %v7736_v15 = vld [vmem:[#allocation60_spill] sm:$0xff]  ;;  %v1874_v22 = vadd.f32 %v1869_v50, %v1858_v48  ;;  %v7738_v27 = vld [vmem:[#allocation63_spill] sm:$0xff]  ;;  %v1425_v52 = vmul.f32 %v7741_v26, %v7740_v46  ;;  %v5674_v47 = vld [vmem:[#allocation3 + $0x30] sm:$0xff] }
 0x2e5   : > { %v7737_v63 = vld [vmem:[#allocation52_spill] sm:$0xff]  ;;  %v1217_v61 = vadd.f32 %v1212_v55, %v1198_v4  ;;  %v7739_v25 = vld [vmem:[#allocation55_spill] sm:$0xff]  ;;  %7742 = vst [vmem:[#allocation24_spill] sm:$0xff] %v5674_v47  ;;  %v1385_v31 = vadd.f32 %v1380_v19, %v1370_v11  ;;  %v7746_v55 = vld [vmem:[#allocation65_spill] sm:$0xff] }
 0x2e6   : > { %v1395_v5 = vmul.f32 %v7737_v63, %v7736_v15  ;;  %v1410_v49 = vmul.f32 %v7739_v25, %v7738_v27  ;;  %v1310_v24 = vadd.f32 %v1305_v39, %v1295_v13  ;;  %v7743_v7 = vld [vmem:[#allocation19_spill] sm:$0xff]  ;;  %v7745_v40 = vld [vmem:[#allocation64_spill] sm:$0xff]  ;;  %v1904_v48 = vadd.f32 %v1899_v45, %v1874_v22 }
 0x2e7   : > { %v1442_v18 = vmul.f32 %v7744_v34, %v7743_v7  ;;  %v1458_v38 = vmul.f32 %v7745_v40, %v5212_v60  ;;  %v5680_v42 = vld [vmem:[#allocation3 + $0x48] sm:$0xff]  ;;  %v1236_v50 = vadd.f32 %v1231_v51, %v1217_v61  ;;  %v1473_v4 = vmul.f32 %v7746_v55, %v5651_v21  ;;  %v7747_v25 = vld [vmem:[#allocation67_spill] sm:$0xff] }
 0x2e8   : > { %v1483_v26 = vmul.f32 %v7747_v25, %v5664_v44  ;;  %v1325_v39 = vadd.f32 %v1320_v12, %v1310_v24  ;;  %v1400_v13 = vadd.f32 %v1395_v5, %v1385_v31  ;;  %v7748_v11 = vld [vmem:[#allocation71_spill] sm:$0xff]  ;;  %v7749_v7 = vld [vmem:[#allocation72_spill] sm:$0xff]  ;;  %v5691_v60 = vadd.f32 %v5662_v54, %v1904_v48  ;;  %v7752_v5 = vld [vmem:[#allocation74_spill] sm:$0xff] }
 0x2e9   : > { %v1498_v19 = vmul.f32 %v7748_v11, %v5468_v36  ;;  %v1513_v34 = vmul.f32 %v7749_v7, %v5125_v58  ;;  %v1580_v63 = vld [vmem:[#allocation3 + $0x49] sm:$0xff]  ;;  %v5693_v45 = vadd.f32 %v1250_v62, %v1236_v50  ;;  %v1528_v22 = vmul.f32 %v5447_v6, %v5217_v53  ;;  %v5697_v12 = vld [vmem:[#allocation3 + $0x3a] sm:$0xff] }
 0x2ea   : > { %7750 = vst [vmem:[#allocation60_spill] sm:$0xff] %v5691_v60  ;;  %v1488_v51 = vadd.f32 %v1483_v26, %v1473_v4  ;;  %v1344_v61 = vadd.f32 %v1339_v23, %v1325_v39  ;;  %v1415_v55 = vadd.f32 %v1410_v49, %v1400_v13  ;;  %7751 = vst [vmem:[#allocation63_spill] sm:$0xff] %v5697_v12  ;;  %v7753_v31 = vld [vmem:[#allocation78_spill] sm:$0xff]  ;;  %v1595_v7 = vld [vmem:[#allocation3 + $0x4a] sm:$0xff]  ;;  %2533 = vadd.xlane.f32.xlu0 %v5691_v60 }
 0x2eb   : > { %v1545_v24 = vmul.f32 %v7752_v5, %v5230_v29  ;;  %v1561_v58 = vmul.f32 %v7753_v31, %v5249_v43  ;;  %v5704_v62 = vld [vmem:[#allocation3 + $0x3b] sm:$0xff]  ;;  %v7755_v49 = vld [vmem:[#allocation20_spill] sm:$0xff]  ;;  %v7757_v43 = vld [vmem:[#allocation81_spill] sm:$0xff] }
 0x2ec   : > { %v1503_v48 = vadd.f32 %v1498_v19, %v1488_v51  ;;  %v7754_v26 = vld [vmem:[#allocation79_spill] sm:$0xff]  ;;  %v7756_v4 = vld [vmem:[#allocation80_spill] sm:$0xff]  ;;  %v1360_v13 = vadd.f32 %v1355_v32, %v1344_v61  ;;  %v1430_v29 = vadd.f32 %v1425_v52, %v1415_v55  ;;  %v1601_v31 = vmul.f32 %v7757_v43, %v5523_v57  ;;  %v7758_v5 = vld [vmem:[#allocation82_spill] sm:$0xff] }
 0x2ed   : > { %v1576_v50 = vmul.f32 %v7754_v26, %v5674_v47  ;;  %v1579_v23 = vmul.f32 %v7754_v26, %v5680_v42  ;;  %v1586_v39 = vmul.f32 %v7756_v4, %v7755_v49  ;;  %v1589_v54 = vmul.f32 %v7756_v4, %v1580_v63  ;;  %v5718_v26 = vld [vmem:[#allocation3 + $0x4b] sm:$0xff] }
 0x2ee   : > { %v1518_v60 = vadd.f32 %v1513_v34, %v1503_v48  ;;  %v1604_v51 = vmul.f32 %v7757_v43, %v1595_v7  ;;  %v1616_v6 = vmul.f32 %v7758_v5, %v5525_v16  ;;  %v1447_v11 = vadd.f32 %v1442_v18, %v1430_v29  ;;  %7759 = vst [vmem:[#allocation69_spill] sm:$0xff] %v5718_v26  ;;  %v7760_v52 = vld [vmem:[#allocation88_spill] sm:$0xff] }
 0x2ef   : > { %v1591_v19 = vadd.f32 %v1586_v39, %v1576_v50  ;;  %v1594_v47 = vadd.f32 %v1589_v54, %v1579_v23  ;;  %v1631_v32 = vmul.f32 %v5521_v1, %v5311_v0  ;;  %v1648_v55 = vmul.f32 %v7760_v52, %v5317_v2  ;;  %v5724_v49 = vld [vmem:[#allocation3 + $0x44] sm:$0xff]  ;;  %v7762_v39 = vld [vmem:[#allocation89_spill] sm:$0xff]  ;;  %v7763_v54 = vld [vmem:[#allocation90_spill] sm:$0xff] }
 0x2f0   : > { %v1533_v61 = vadd.f32 %v1528_v22, %v1518_v60  ;;  %v5726_v48 = vld [vmem:[#allocation3 + $0x45] sm:$0xff]  ;;  %v1664_v18 = vmul.f32 %v7762_v39, %v5334_v9  ;;  %v1679_v23 = vmul.f32 %v7763_v54, %v5697_v12  ;;  %v1463_v29 = vadd.f32 %v1458_v38, %v1447_v11  ;;  %v7767_v38 = vld [vmem:[#allocation94_spill] sm:$0xff] }
 0x2f1   : > { %v1606_v34 = vadd.f32 %v1601_v31, %v1591_v19  ;;  %v5728_v50 = vld [vmem:[#allocation3 + $0x46] sm:$0xff]  ;;  %v5734_v5 = vadd.f32 %v1604_v51, %v1594_v47  ;;  %v1681_v1 = vmul.f32 %v7763_v54, %v1595_v7  ;;  %v1719_v47 = vmul.f32 %v7767_v38, %v5569_v8 }
 0x2f2   : > { %7761 = vst [vmem:[#allocation19_spill] sm:$0xff] %v5728_v50  ;;  %v7765_v2 = vld [vmem:[#allocation91_spill] sm:$0xff]  ;;  %v1550_v31 = vadd.f32 %v1545_v24, %v1533_v61  ;;  %v7766_v9 = vld [vmem:[#allocation92_spill] sm:$0xff]  ;;  %v1734_v11 = vmul.f32 %v5567_v37, %v5394_v41  ;;  %v1751_v51 = vmul.f32 %v5572_v10, %v5408_v3  ;;  %v1807_v37 = vmul.f32 %v5599_v17, %v5728_v50  ;;  %v7774_v17 = vld [vmem:[#allocation46_spill] sm:$0xff] }
 0x2f3   : > { %7764 = vst [vmem:[#allocation20_spill] sm:$0xff] %v5734_v5  ;;  %v1689_v60 = vmul.f32 %v7765_v2, %v5704_v62  ;;  %v5739_v22 = vld [vmem:[#allocation3 + $0x47] sm:$0xff]  ;;  %v1621_v19 = vadd.f32 %v1616_v6, %v1606_v34  ;;  %v1691_v52 = vmul.f32 %v7765_v2, %v5718_v26  ;;  %v1704_v39 = vmul.f32 %v7766_v9, %v5559_v33  ;;  %v7769_v34 = vld [vmem:[#allocation98_spill] sm:$0xff] }
 0x2f4   : > { %v1566_v5 = vadd.f32 %v1561_v58, %v1550_v31  ;;  %v1767_v6 = vmul.f32 %v5575_v59, %v5437_v20  ;;  %v1822_v3 = vmul.f32 %v5602_v14, %v5739_v22  ;;  %v1854_v58 = vmul.f32 %v5608_v35, %v1580_v63  ;;  %v7775_v14 = vld [vmem:[#allocation30_spill] sm:$0xff] }
 0x2f5   : > { %v1694_v43 = vadd.f32 %v1689_v60, %v1679_v23  ;;  %v1636_v54 = vadd.f32 %v1631_v32, %v1621_v19  ;;  %v5751_v24 = vadd.f32 %v1691_v52, %v1681_v1  ;;  %v1782_v23 = vmul.f32 %v7769_v34, %v5724_v49  ;;  %v7770_v60 = vld [vmem:[#allocation100_spill] sm:$0xff]  ;;  %v7771_v32 = vld [vmem:[#allocation99_spill] sm:$0xff] }
 0x2f6   : > { %v1792_v26 = vmul.f32 %v7770_v60, %v5726_v48  ;;  %v1837_v1 = vmul.f32 %v5605_v56, %v5680_v42  ;;  %v1870_v52 = vmul.f32 %v7771_v32, %v1595_v7  ;;  %v1175_v19 = vmul.f32 %v5161_v28, %v5624_v30  ;;  %v5774_v34 = vld [vmem:[#allocation3 + $0x25] sm:$0xff]  ;;  %v7781_v30 = vld [vmem:[#allocation106_spill] sm:$0xff] }
 0x2f7   : > { %7768 = vst [vmem:[#allocation108_spill] sm:$0xff] %v5751_v24  ;;  %v1709_v61 = vadd.f32 %v1704_v39, %v1694_v43  ;;  %v1653_v38 = vadd.f32 %v1648_v55, %v1636_v54  ;;  %v1880_v39 = vadd.f32 %v1360_v13, %v5693_v45  ;;  %v7772_v24 = vld [vmem:[#allocation105_spill] sm:$0xff]  ;;  %v1213_v60 = vmul.f32 %v7775_v14, %v7774_v17  ;;  %v7782_v28 = vld [vmem:[#allocation39_spill] sm:$0xff] }
 0x2f8   : > { %v1797_v43 = vadd.f32 %v1792_v26, %v1782_v23  ;;  %v7773_v55 = vld [vmem:[#allocation29_spill] sm:$0xff]  ;;  %v7778_v23 = vld [vmem:[#allocation34_spill] sm:$0xff]  ;;  %v1291_v32 = vmul.f32 %v7782_v28, %v7781_v30 }
 0x2f9   : > { %v1724_v20 = vadd.f32 %v1719_v47, %v1709_v61  ;;  %v1669_v31 = vadd.f32 %v1664_v18, %v1653_v38  ;;  %v1194_v54 = vmul.f32 %v7773_v55, %v7772_v24  ;;  %v1885_v47 = vadd.f32 %v1880_v39, %v1463_v29  ;;  %v7776_v26 = vld [vmem:[#allocation49_spill] sm:$0xff]  ;;  %v7777_v61 = vld [vmem:[#allocation31_spill] sm:$0xff]  ;;  %v7784_v55 = vld [vmem:[#allocation40_spill] sm:$0xff] }
 0x2fa   : > { %v1812_v63 = vadd.f32 %v1807_v37, %v1797_v43  ;;  %v1232_v7 = vmul.f32 %v7777_v61, %v7776_v26  ;;  %v1180_v45 = vadd.f32 %v1175_v19, %v7778_v23  ;;  %v7779_v13 = vld [vmem:[#allocation53_spill] sm:$0xff]  ;;  %v7780_v18 = vld [vmem:[#allocation35_spill] sm:$0xff]  ;;  %v7788_v26 = vld [vmem:[#allocation48_spill] sm:$0xff] }
 0x2fb   : > { %v1739_v56 = vadd.f32 %v1734_v11, %v1724_v20  ;;  %v1251_v38 = vmul.f32 %v7780_v18, %v7779_v13  ;;  %v7783_v24 = vld [vmem:[#allocation107_spill] sm:$0xff]  ;;  %v1890_v59 = vadd.f32 %v1885_v47, %v1566_v5  ;;  %v7785_v37 = vld [vmem:[#allocation41_spill] sm:$0xff]  ;;  %v7786_v20 = vld [vmem:[#allocation42_spill] sm:$0xff]  ;;  %v1356_v23 = vmul.f32 %v7788_v26, %v7740_v46 }
 0x2fc   : > { %v1306_v35 = vmul.f32 %v7784_v55, %v7783_v24  ;;  %v1827_v14 = vadd.f32 %v1822_v3, %v1812_v63  ;;  %v1321_v29 = vmul.f32 %v7785_v37, %v7736_v15  ;;  %v1199_v11 = vadd.f32 %v1194_v54, %v1180_v45  ;;  %v7787_v39 = vld [vmem:[#allocation47_spill] sm:$0xff]  ;;  %v5792_v61 = vld [vmem:[#allocation3 + $0x2f] sm:$0xff] }
 0x2fd   : > { %v1756_v17 = vadd.f32 %v1751_v51, %v1739_v56  ;;  %v1296_v43 = vadd.f32 %v1291_v32, %v7786_v20  ;;  %v1340_v19 = vmul.f32 %v7787_v39, %v7738_v27  ;;  %v1895_v18 = vadd.f32 %v1890_v59, %v1669_v31  ;;  %v7789_v56 = vld [vmem:[#allocation51_spill] sm:$0xff]  ;;  %v7790_v54 = vld [vmem:[#allocation52_spill] sm:$0xff]  ;;  %v7792_v20 = vld [vmem:[#allocation57_spill] sm:$0xff] }
 0x2fe   : > { %v1842_v28 = vadd.f32 %v1837_v1, %v1827_v14  ;;  %v1381_v5 = vmul.f32 %v7789_v56, %v5774_v34  ;;  %v1218_v51 = vadd.f32 %v1213_v60, %v1199_v11  ;;  %v1396_v63 = vmul.f32 %v7790_v54, %v5651_v21  ;;  %v7791_v32 = vld [vmem:[#allocation55_spill] sm:$0xff]  ;;  %v7793_v14 = vld [vmem:[#allocation61_spill] sm:$0xff] }
 0x2ff   : > { %v1772_v13 = vadd.f32 %v1767_v6, %v1756_v17  ;;  %v1311_v3 = vadd.f32 %v1306_v35, %v1296_v43  ;;  %v1411_v47 = vmul.f32 %v7791_v32, %v5664_v44  ;;  %v1426_v59 = vmul.f32 %v7793_v14, %v5468_v36  ;;  %v4635_v31 = vld [vmem:[#allocation3 + $0x29] sm:$0xff]  ;;  %v7794_v17 = vld [vmem:[#allocation62_spill] sm:$0xff] }
 0x300   : > { %v1859_v27 = vadd.f32 %v1854_v58, %v1842_v28  ;;  %v1386_v46 = vadd.f32 %v1381_v5, %v7792_v20  ;;  %v1237_v6 = vadd.f32 %v1232_v7, %v1218_v51  ;;  %v1443_v56 = vmul.f32 %v4635_v31, %v7794_v17  ;;  %v7795_v28 = vld [vmem:[#allocation24_spill] sm:$0xff]  ;;  %v7796_v58 = vld [vmem:[#allocation71_spill] sm:$0xff]  ;;  %v5812_v20 = vld [vmem:[#allocation3 + $0x31] sm:$0xff] }
 0x301   : > { %v1900_v45 = vadd.f32 %v1895_v18, %v1772_v13  ;;  %v1326_v1 = vadd.f32 %v1321_v29, %v1311_v3  ;;  %v1459_v35 = vmul.f32 %v7745_v40, %v5217_v53  ;;  %v1484_v43 = vmul.f32 %v7747_v25, %v5792_v61  ;;  %v7797_v7 = vld [vmem:[#allocation72_spill] sm:$0xff]  ;;  %v7798_v51 = vld [vmem:[#allocation73_spill] sm:$0xff]  ;;  %v7800_v31 = vld [vmem:[#allocation74_spill] sm:$0xff] }
 0x302   : > { %v1875_v60 = vadd.f32 %v1870_v52, %v1859_v27  ;;  %v1401_v11 = vadd.f32 %v1396_v63, %v1386_v46  ;;  %v1499_v18 = vmul.f32 %v7796_v58, %v7795_v28  ;;  %v5810_v13 = vadd.f32 %v1251_v38, %v1237_v6  ;;  %v5818_v53 = vld [vmem:[#allocation3 + $0x43] sm:$0xff]  ;;  %v7799_v27 = vld [vmem:[#allocation70_spill] sm:$0xff]  ;;  %v7802_v54 = vld [vmem:[#allocation81_spill] sm:$0xff] }
 0x303   : > { %v1345_v5 = vadd.f32 %v1340_v19, %v1326_v1  ;;  %v1514_v29 = vmul.f32 %v5812_v20, %v7797_v7  ;;  %v1529_v3 = vmul.f32 %v7798_v51, %v5523_v57  ;;  %v1489_v46 = vadd.f32 %v1484_v43, %v7799_v27  ;;  %v7801_v19 = vld [vmem:[#allocation78_spill] sm:$0xff] }
 0x304   : > { %v1905_v52 = vadd.f32 %v1900_v45, %v1875_v60  ;;  %v1416_v63 = vadd.f32 %v1411_v47, %v1401_v11  ;;  %v1546_v58 = vmul.f32 %v7800_v31, %v5525_v16  ;;  %v1562_v6 = vmul.f32 %v7801_v19, %v5311_v0  ;;  %v5825_v1 = vld [vmem:[#allocation3 + $0x39] sm:$0xff]  ;;  %v7803_v45 = vld [vmem:[#allocation56_spill] sm:$0xff] }
 0x305   : > { %v1361_v38 = vadd.f32 %v1356_v23, %v1345_v5  ;;  %v1587_v25 = vmul.f32 %v5825_v1, %v7756_v4  ;;  %v1602_v51 = vmul.f32 %v7802_v54, %v5697_v12  ;;  %v1673_v7 = vld [vmem:[#allocation3 + $0x52] sm:$0xff]  ;;  %v1504_v11 = vadd.f32 %v1499_v18, %v1489_v46  ;;  %v7807_v0 = vld [vmem:[#allocation84_spill] sm:$0xff] }
 0x306   : > { %v5832_v47 = vadd.f32 %v7803_v45, %v1905_v52  ;;  %v1431_v60 = vadd.f32 %v1426_v59, %v1416_v63  ;;  %v7805_v16 = vld [vmem:[#allocation82_spill] sm:$0xff]  ;;  %v7809_v31 = vld [vmem:[#allocation88_spill] sm:$0xff]  ;;  %v7810_v12 = vld [vmem:[#allocation89_spill] sm:$0xff]  ;;  %v1690_v45 = vmul.f32 %v7765_v2, %v5818_v53 }
 0x307   : > { %v1617_v23 = vmul.f32 %v7805_v16, %v5704_v62  ;;  %v1683_v43 = vld [vmem:[#allocation3 + $0x53] sm:$0xff]  ;;  %v1592_v27 = vadd.f32 %v1587_v25, %v7807_v0  ;;  %v1649_v54 = vmul.f32 %v7809_v31, %v5569_v8  ;;  %v1665_v52 = vmul.f32 %v7810_v12, %v5394_v41 }
 0x308   : > { %7804 = vst [vmem:[#allocation105_spill] sm:$0xff] %v5832_v47  ;;  %v5836_v5 = vld [vmem:[#allocation3 + $0x54] sm:$0xff]  ;;  %2535 = vadd.xlane.f32.xlu0 %v5832_v47  ;;  %v1448_v59 = vadd.f32 %v1443_v56, %v1431_v60  ;;  %v1519_v18 = vadd.f32 %v1514_v29, %v1504_v11  ;;  %v5849_v25 = vld [vmem:[#allocation3 + $0x4c] sm:$0xff]  ;;  %v1692_v0 = vmul.f32 %v7765_v2, %v1683_v43  ;;  %v7815_v43 = vld [vmem:[#allocation95_spill] sm:$0xff] }
 0x309   : > { %7806 = vst [vmem:[#allocation46_spill] sm:$0xff] %v5836_v5  ;;  %v7808_v19 = vld [vmem:[#allocation86_spill] sm:$0xff]  ;;  %v1607_v16 = vadd.f32 %v1602_v51, %v1592_v27  ;;  %v1705_v8 = vmul.f32 %v7766_v9, %v5724_v49  ;;  %v1707_v41 = vmul.f32 %v7766_v9, %v5836_v5  ;;  %v5856_v56 = vld [vmem:[#allocation3 + $0x4d] sm:$0xff]  ;;  %v1735_v2 = vmul.f32 %v7815_v43, %v5728_v50 }
 0x30a   : > { %v1632_v4 = vmul.f32 %v7808_v19, %v5559_v33  ;;  %v7811_v63 = vld [vmem:[#allocation90_spill] sm:$0xff]  ;;  %v1464_v12 = vadd.f32 %v1459_v35, %v1448_v59  ;;  %v1534_v47 = vadd.f32 %v1529_v3, %v1519_v18  ;;  %7812 = vst [vmem:[#allocation49_spill] sm:$0xff] %v5856_v56  ;;  %v5858_v29 = vld [vmem:[#allocation3 + $0x4e] sm:$0xff]  ;;  %v1752_v35 = vmul.f32 %v5572_v10, %v5739_v22 }
 0x30b   : > { %v1682_v46 = vmul.f32 %v7811_v63, %v1673_v7  ;;  %v7813_v60 = vld [vmem:[#allocation93_spill] sm:$0xff]  ;;  %v7814_v51 = vld [vmem:[#allocation94_spill] sm:$0xff]  ;;  %v1622_v63 = vadd.f32 %v1617_v23, %v1607_v16 }
 0x30c   : > { %v1695_v11 = vadd.f32 %v1690_v45, %v7813_v60  ;;  %v1720_v27 = vmul.f32 %v7814_v51, %v5726_v48  ;;  %v5865_v19 = vld [vmem:[#allocation3 + $0x4f] sm:$0xff]  ;;  %v1551_v59 = vadd.f32 %v1546_v58, %v1534_v47  ;;  %v7817_v60 = vld [vmem:[#allocation98_spill] sm:$0xff] }
 0x30d   : > { %v1697_v31 = vadd.f32 %v1692_v0, %v1682_v46  ;;  %v5869_v3 = vld [vmem:[#allocation3 + $0x50] sm:$0xff]  ;;  %v1783_v51 = vmul.f32 %v7817_v60, %v5849_v25  ;;  %v1637_v23 = vadd.f32 %v1632_v4, %v1622_v63  ;;  %v7819_v0 = vld [vmem:[#allocation100_spill] sm:$0xff]  ;;  %v7821_v58 = vld [vmem:[#allocation102_spill] sm:$0xff] }
 0x30e   : > { %v1710_v18 = vadd.f32 %v1705_v8, %v1695_v11  ;;  %v7816_v5 = vld [vmem:[#allocation97_spill] sm:$0xff]  ;;  %v1793_v43 = vmul.f32 %v7819_v0, %v5856_v56  ;;  %v1567_v10 = vadd.f32 %v1562_v6, %v1551_v59  ;;  %v1823_v47 = vmul.f32 %v7821_v58, %v5865_v19  ;;  %v4638_v0 = vld [vmem:[#allocation3 + $0x1b] sm:$0xff] }
 0x30f   : > { %v1768_v45 = vmul.f32 %v7816_v5, %v5680_v42  ;;  %v1846_v16 = vld [vmem:[#allocation3 + $0x51] sm:$0xff]  ;;  %v5875_v46 = vadd.f32 %v1707_v41, %v1697_v31  ;;  %v7822_v42 = vld [vmem:[#allocation103_spill] sm:$0xff]  ;;  %v1654_v11 = vadd.f32 %v1649_v54, %v1637_v23  ;;  %v7823_v5 = vld [vmem:[#allocation104_spill] sm:$0xff] }
 0x310   : > { %v7820_v9 = vld [vmem:[#allocation101_spill] sm:$0xff]  ;;  %v1725_v50 = vadd.f32 %v1720_v27, %v1710_v18  ;;  %v1838_v8 = vmul.f32 %v7822_v42, %v5869_v3  ;;  %v1798_v60 = vadd.f32 %v1793_v43, %v1783_v51  ;;  %v1855_v4 = vmul.f32 %v7823_v5, %v1846_v16  ;;  %v7824_v31 = vld [vmem:[#allocation99_spill] sm:$0xff]  ;;  %v7826_v6 = vld [vmem:[#allocation30_spill] sm:$0xff] }
 0x311   : > { %7818 = vst [vmem:[#allocation34_spill] sm:$0xff] %v5875_v46  ;;  %v1808_v22 = vmul.f32 %v7820_v9, %v5858_v29  ;;  %v1871_v63 = vmul.f32 %v7824_v31, %v1673_v7  ;;  %v1881_v46 = vadd.f32 %v1361_v38, %v5810_v13  ;;  %v7825_v56 = vld [vmem:[#allocation29_spill] sm:$0xff]  ;;  %v1214_v27 = vmul.f32 %v7826_v6, %v7781_v30  ;;  %v7827_v58 = vld [vmem:[#allocation31_spill] sm:$0xff]  ;;  %v7829_v7 = vld [vmem:[#allocation38_spill] sm:$0xff] }
 0x312   : > { %v1740_v41 = vadd.f32 %v1735_v2, %v1725_v50  ;;  %v1195_v9 = vmul.f32 %v4638_v0, %v7825_v56  ;;  %v1670_v59 = vadd.f32 %v1665_v52, %v1654_v11  ;;  %v1233_v42 = vmul.f32 %v7827_v58, %v7783_v24  ;;  %v7828_v54 = vld [vmem:[#allocation35_spill] sm:$0xff]  ;;  %v7830_v2 = vld [vmem:[#allocation44_spill] sm:$0xff] }
 0x313   : > { %v1813_v18 = vadd.f32 %v1808_v22, %v1798_v60  ;;  %v1252_v51 = vmul.f32 %v7828_v54, %v7736_v15  ;;  %v1886_v16 = vadd.f32 %v1881_v46, %v1464_v12  ;;  %v7831_v13 = vld [vmem:[#allocation43_spill] sm:$0xff]  ;;  %v1307_v0 = vmul.f32 %v7784_v55, %v5774_v34  ;;  %v7833_v22 = vld [vmem:[#allocation58_spill] sm:$0xff] }
 0x314   : > { %v1757_v43 = vadd.f32 %v1752_v35, %v1740_v41  ;;  %v1200_v50 = vadd.f32 %v1195_v9, %v7829_v7  ;;  %v1297_v38 = vadd.f32 %v7831_v13, %v7830_v2  ;;  %v1322_v30 = vmul.f32 %v7785_v37, %v5651_v21  ;;  %v7832_v46 = vld [vmem:[#allocation59_spill] sm:$0xff]  ;;  %v7836_v13 = vld [vmem:[#allocation72_spill] sm:$0xff] }
 0x315   : > { %v1828_v23 = vadd.f32 %v1823_v47, %v1813_v18  ;;  %v1341_v24 = vmul.f32 %v7787_v39, %v5664_v44  ;;  %v1891_v60 = vadd.f32 %v1886_v16, %v1567_v10  ;;  %v1357_v12 = vmul.f32 %v7788_v26, %v5468_v36  ;;  %v7834_v16 = vld [vmem:[#allocation75_spill] sm:$0xff]  ;;  %v7860_v37 = vld [vmem:[#allocation100_spill] sm:$0xff] }
 0x316   : > { %v1773_v52 = vadd.f32 %v1768_v45, %v1757_v43  ;;  %v1219_v15 = vadd.f32 %v1214_v27, %v1200_v50  ;;  %v1312_v35 = vadd.f32 %v1307_v0, %v1297_v38  ;;  %v1402_v47 = vadd.f32 %v7833_v22, %v7832_v46  ;;  %v7835_v50 = vld [vmem:[#allocation76_spill] sm:$0xff]  ;;  %v7837_v0 = vld [vmem:[#allocation63_spill] sm:$0xff] }
 0x317   : > { %v1843_v9 = vadd.f32 %v1838_v8, %v1828_v23  ;;  %v1412_v11 = vmul.f32 %v7791_v32, %v5792_v61  ;;  %v1896_v41 = vadd.f32 %v1891_v60, %v1670_v59  ;;  %v1427_v7 = vmul.f32 %v7793_v14, %v7795_v28  ;;  %v7838_v60 = vld [vmem:[#allocation73_spill] sm:$0xff]  ;;  %v1863_v14 = vld [vmem:[#allocation3 + $0x5a] sm:$0xff] }
 0x318   : > { %v1238_v18 = vadd.f32 %v1233_v42, %v1219_v15  ;;  %v1444_v10 = vmul.f32 %v5812_v20, %v7794_v17  ;;  %v1327_v45 = vadd.f32 %v1322_v30, %v1312_v35  ;;  %v1460_v36 = vmul.f32 %v7745_v40, %v5523_v57  ;;  %v7839_v30 = vld [vmem:[#allocation74_spill] sm:$0xff] }
 0x319   : > { %v1860_v44 = vadd.f32 %v1855_v4, %v1843_v9  ;;  %v1417_v27 = vadd.f32 %v1412_v11, %v1402_v47  ;;  %v1901_v8 = vadd.f32 %v1896_v41, %v1773_v52  ;;  %v1505_v2 = vadd.f32 %v7835_v50, %v7834_v16  ;;  %v7840_v57 = vld [vmem:[#allocation78_spill] sm:$0xff]  ;;  %v7842_v9 = vld [vmem:[#allocation85_spill] sm:$0xff] }
 0x31a   : > { %v1257_v43 = vadd.f32 %v1252_v51, %v1238_v18  ;;  %v1515_v42 = vmul.f32 %v5825_v1, %v7836_v13  ;;  %v1346_v38 = vadd.f32 %v1341_v24, %v1327_v45  ;;  %v1530_v20 = vmul.f32 %v7838_v60, %v7837_v0  ;;  %v7841_v51 = vld [vmem:[#allocation87_spill] sm:$0xff]  ;;  %v7844_v41 = vld [vmem:[#allocation86_spill] sm:$0xff]  ;;  %v7847_v45 = vld [vmem:[#allocation89_spill] sm:$0xff] }
 0x31b   : > { %v1876_v59 = vadd.f32 %v1871_v63, %v1860_v44  ;;  %v1432_v23 = vadd.f32 %v1427_v7, %v1417_v27  ;;  %v1547_v15 = vmul.f32 %v7839_v30, %v5704_v62  ;;  %v1563_v52 = vmul.f32 %v7840_v57, %v5559_v33  ;;  %v7843_v63 = vld [vmem:[#allocation82_spill] sm:$0xff]  ;;  %v7845_v7 = vld [vmem:[#allocation88_spill] sm:$0xff]  ;;  %v7846_v62 = vld [vmem:[#allocation19_spill] sm:$0xff] }
 0x31c   : > { %v1520_v4 = vadd.f32 %v1515_v42, %v1505_v2  ;;  %v1608_v35 = vadd.f32 %v7842_v9, %v7841_v51  ;;  %v1362_v22 = vadd.f32 %v1357_v12, %v1346_v38  ;;  %v1618_v24 = vmul.f32 %v7843_v63, %v5818_v53  ;;  %v7848_v33 = vld [vmem:[#allocation56_spill] sm:$0xff]  ;;  %v5941_v2 = vld [vmem:[#allocation3 + $0x55] sm:$0xff] }
 0x31d   : > { %v1906_v46 = vadd.f32 %v1901_v8, %v1876_v59  ;;  %v1449_v47 = vadd.f32 %v1444_v10, %v1432_v23  ;;  %v1633_v18 = vmul.f32 %v7844_v41, %v5724_v49  ;;  %v1650_v44 = vmul.f32 %v7845_v7, %v5726_v48  ;;  %v7850_v12 = vld [vmem:[#allocation92_spill] sm:$0xff]  ;;  %v5943_v42 = vld [vmem:[#allocation3 + $0x56] sm:$0xff] }
 0x31e   : > { %v1535_v11 = vadd.f32 %v1530_v20, %v1520_v4  ;;  %v1666_v27 = vmul.f32 %v7847_v45, %v7846_v62  ;;  %v1623_v8 = vadd.f32 %v1618_v24, %v1608_v35  ;;  %v1706_v10 = vmul.f32 %v7850_v12, %v5849_v25  ;;  %7851 = vst [vmem:[#allocation106_spill] sm:$0xff] %v5943_v42  ;;  %v5945_v59 = vld [vmem:[#allocation3 + $0x57] sm:$0xff]  ;;  %v7854_v4 = vld [vmem:[#allocation95_spill] sm:$0xff]  ;;  %v7855_v9 = vld [vmem:[#allocation96_spill] sm:$0xff] }
 0x31f   : > { %v5937_v16 = vadd.f32 %v7848_v33, %v1906_v46  ;;  %v1465_v50 = vadd.f32 %v1460_v36, %v1449_v47  ;;  %v7852_v23 = vld [vmem:[#allocation49_spill] sm:$0xff]  ;;  %v7853_v48 = vld [vmem:[#allocation94_spill] sm:$0xff]  ;;  %v1736_v51 = vmul.f32 %v7854_v4, %v5858_v29  ;;  %v1753_v36 = vmul.f32 %v7855_v9, %v5865_v19  ;;  %v7856_v24 = vld [vmem:[#allocation108_spill] sm:$0xff] }
 0x320   : > { %v1552_v38 = vadd.f32 %v1547_v15, %v1535_v11  ;;  %v1721_v20 = vmul.f32 %v7853_v48, %v7852_v23  ;;  %v5953_v35 = vld [vmem:[#allocation3 + $0x58] sm:$0xff]  ;;  %v1638_v47 = vadd.f32 %v1633_v18, %v1623_v8  ;;  %v1711_v62 = vadd.f32 %v1706_v10, %v7856_v24  ;;  %v7857_v12 = vld [vmem:[#allocation97_spill] sm:$0xff]  ;;  %v7863_v10 = vld [vmem:[#allocation103_spill] sm:$0xff] }
 0x321   : > { %7849 = vst [vmem:[#allocation53_spill] sm:$0xff] %v5937_v16  ;;  %v1847_v46 = vld [vmem:[#allocation3 + $0x59] sm:$0xff]  ;;  %2537 = vadd.xlane.f32.xlu1 %v5937_v16  ;;  %v1769_v15 = vmul.f32 %v7857_v12, %v5869_v3  ;;  %v1794_v55 = vmul.f32 %v7860_v37, %v5941_v2  ;;  %v7861_v19 = vld [vmem:[#allocation101_spill] sm:$0xff]  ;;  %v1839_v24 = vmul.f32 %v7863_v10, %v5953_v35 }
 0x322   : > { %v7858_v11 = vld [vmem:[#allocation46_spill] sm:$0xff]  ;;  %v1568_v32 = vadd.f32 %v1563_v52, %v1552_v38  ;;  %v1809_v56 = vmul.f32 %v7861_v19, %v5943_v42  ;;  %v1655_v18 = vadd.f32 %v1650_v44, %v1638_v47  ;;  %v1726_v8 = vadd.f32 %v1721_v20, %v1711_v62  ;;  %v4639_v38 = vld [vmem:[#allocation3 + $0x20] sm:$0xff]  ;;  %v7865_v42 = vld [vmem:[#allocation28_spill] sm:$0xff] }
 0x323   : > { %v7859_v60 = vld [vmem:[#allocation98_spill] sm:$0xff]  ;;  %v1856_v3 = vmul.f32 %v7823_v5, %v1847_v46  ;;  %v1882_v52 = vadd.f32 %v1362_v22, %v1257_v43  ;;  %v4640_v19 = vld [vmem:[#allocation3 + $0x22] sm:$0xff]  ;;  %v1253_v43 = vmul.f32 %v7828_v54, %v5651_v21  ;;  %v7868_v22 = vld [vmem:[#allocation45_spill] sm:$0xff]  ;;  %v1445_v21 = vmul.f32 %v5825_v1, %v7794_v17 }
 0x324   : > { %v1784_v13 = vmul.f32 %v7859_v60, %v7858_v11  ;;  %v7862_v33 = vld [vmem:[#allocation102_spill] sm:$0xff]  ;;  %v1872_v11 = vmul.f32 %v7824_v31, %v1863_v14  ;;  %v1671_v9 = vadd.f32 %v1666_v27, %v1655_v18  ;;  %v1741_v4 = vadd.f32 %v1736_v51, %v1726_v8  ;;  %v7866_v62 = vld [vmem:[#allocation32_spill] sm:$0xff]  ;;  %v7871_v8 = vld [vmem:[#allocation33_spill] sm:$0xff] }
 0x325   : > { %v1824_v16 = vmul.f32 %v7862_v33, %v5945_v59  ;;  %v7864_v60 = vld [vmem:[#allocation26_spill] sm:$0xff]  ;;  %v1177_v48 = vmul.f32 %v4640_v19, %v7865_v42  ;;  %v4641_v33 = vld [vmem:[#allocation3 + $0x24] sm:$0xff]  ;;  %v1887_v47 = vadd.f32 %v1882_v52, %v1465_v50  ;;  %v1342_v51 = vmul.f32 %v7787_v39, %v5792_v61 }
 0x326   : > { %v1799_v12 = vadd.f32 %v1794_v55, %v1784_v13  ;;  %v1144_v37 = vmul.f32 %v4639_v38, %v7864_v60  ;;  %v1215_v44 = vmul.f32 %v4641_v33, %v7826_v6  ;;  %v1234_v55 = vmul.f32 %v7827_v58, %v5774_v34  ;;  %v7867_v13 = vld [vmem:[#allocation54_spill] sm:$0xff] }
 0x327   : > { %v1758_v14 = vadd.f32 %v1753_v36, %v1741_v4  ;;  %v1328_v27 = vadd.f32 %v7868_v22, %v7867_v13  ;;  %v1892_v19 = vadd.f32 %v1887_v47, %v1568_v32  ;;  %v7870_v34 = vld [vmem:[#allocation66_spill] sm:$0xff]  ;;  %v1461_v61 = vmul.f32 %v7745_v40, %v7837_v0 }
 0x328   : > { %v1814_v20 = vadd.f32 %v1809_v56, %v1799_v12  ;;  %v1163_v10 = vadd.f32 %v7866_v62, %v1144_v37  ;;  %v1358_v56 = vmul.f32 %v7788_v26, %v7795_v28  ;;  %v7869_v12 = vld [vmem:[#allocation68_spill] sm:$0xff]  ;;  %v1564_v1 = vmul.f32 %v7840_v57, %v5724_v49  ;;  %v7874_v62 = vld [vmem:[#allocation69_spill] sm:$0xff] }
 0x329   : > { %v1774_v37 = vadd.f32 %v1769_v15, %v1758_v14  ;;  %v1347_v50 = vadd.f32 %v1342_v51, %v1328_v27  ;;  %v1433_v4 = vadd.f32 %v7870_v34, %v7869_v12  ;;  %v1897_v18 = vadd.f32 %v1892_v19, %v1671_v9  ;;  %v7875_v49 = vld [vmem:[#allocation20_spill] sm:$0xff]  ;;  %v7876_v19 = vld [vmem:[#allocation94_spill] sm:$0xff] }
 0x32a   : > { %v1829_v46 = vadd.f32 %v1824_v16, %v1814_v20  ;;  %v1182_v33 = vadd.f32 %v1177_v48, %v1163_v10  ;;  %v7872_v48 = vld [vmem:[#allocation83_spill] sm:$0xff]  ;;  %v7873_v10 = vld [vmem:[#allocation77_spill] sm:$0xff]  ;;  %v1548_v15 = vmul.f32 %v7839_v30, %v5818_v53  ;;  %v1619_v14 = vmul.f32 %v7843_v63, %v7874_v62 }
 0x32b   : > { %v1363_v32 = vadd.f32 %v1358_v56, %v1347_v50  ;;  %v1450_v16 = vadd.f32 %v1445_v21, %v1433_v4  ;;  %v1536_v28 = vadd.f32 %v7873_v10, %v7872_v48  ;;  %v1902_v20 = vadd.f32 %v1897_v18, %v1774_v37  ;;  %v7877_v56 = vld [vmem:[#allocation106_spill] sm:$0xff]  ;;  %v7878_v37 = vld [vmem:[#allocation95_spill] sm:$0xff] }
 0x32c   : > { %v1844_v36 = vadd.f32 %v1839_v24, %v1829_v46  ;;  %v1201_v52 = vadd.f32 %v7871_v8, %v1182_v33  ;;  %v1634_v0 = vmul.f32 %v7844_v41, %v5849_v25  ;;  %v1651_v27 = vmul.f32 %v7845_v7, %v7852_v23  ;;  %v1801_v25 = vld [vmem:[#allocation3 + $0x5e] sm:$0xff]  ;;  %v7879_v23 = vld [vmem:[#allocation96_spill] sm:$0xff] }
 0x32d   : > { %v1466_v9 = vadd.f32 %v1461_v61, %v1450_v16  ;;  %v1553_v24 = vadd.f32 %v1548_v15, %v1536_v28  ;;  %v1667_v53 = vmul.f32 %v7847_v45, %v5858_v29  ;;  %v1624_v46 = vadd.f32 %v1619_v14, %v7875_v49  ;;  %v7880_v29 = vld [vmem:[#allocation97_spill] sm:$0xff]  ;;  %v7881_v8 = vld [vmem:[#allocation34_spill] sm:$0xff]  ;;  %v7883_v16 = vld [vmem:[#allocation100_spill] sm:$0xff] }
 0x32e   : > { %v1861_v38 = vadd.f32 %v1856_v3, %v1844_v36  ;;  %v1220_v47 = vadd.f32 %v1215_v44, %v1201_v52  ;;  %v1776_v3 = vld [vmem:[#allocation3 + $0x5c] sm:$0xff]  ;;  %v1722_v33 = vmul.f32 %v7876_v19, %v5941_v2  ;;  %v1737_v50 = vmul.f32 %v7878_v37, %v7877_v56  ;;  %v1914_v28 = vld [vmem:[#allocation3 + $0x64] sm:$0xff]  ;;  %v6018_v15 = vld [vmem:[#allocation3 + $0x74] sm:$0xff] }
 0x32f   : > { %v1786_v44 = vld [vmem:[#allocation3 + $0x5d] sm:$0xff]  ;;  %v1569_v51 = vadd.f32 %v1564_v1, %v1553_v24  ;;  %v1754_v4 = vmul.f32 %v7879_v23, %v5945_v59  ;;  %v1770_v21 = vmul.f32 %v7880_v29, %v5953_v35  ;;  %v1639_v18 = vadd.f32 %v1634_v0, %v1624_v46 }
 0x330   : > { %v1877_v13 = vadd.f32 %v1872_v11, %v1861_v38  ;;  %v1239_v22 = vadd.f32 %v1234_v55, %v1220_v47  ;;  %v1816_v11 = vld [vmem:[#allocation3 + $0x5f] sm:$0xff]  ;;  %v1727_v52 = vadd.f32 %v1722_v33, %v7881_v8  ;;  %v1795_v48 = vmul.f32 %v7883_v16, %v1786_v44  ;;  %v7884_v38 = vld [vmem:[#allocation56_spill] sm:$0xff]  ;;  %v1926_v44 = vld [vmem:[#allocation3 + $0x75] sm:$0xff] }
 0x331   : > { %v1831_v55 = vld [vmem:[#allocation3 + $0x60] sm:$0xff]  ;;  %v7882_v61 = vld [vmem:[#allocation98_spill] sm:$0xff]  ;;  %v1656_v14 = vadd.f32 %v1651_v27, %v1639_v18  ;;  %v1919_v56 = vmul.f32 %v1914_v28, %v7864_v60  ;;  %v1984_v28 = vld [vmem:[#allocation3 + $0x69] sm:$0xff] }
 0x332   : > { %v1907_v12 = vadd.f32 %v1902_v20, %v1877_v13  ;;  %v1258_v34 = vadd.f32 %v1253_v43, %v1239_v22  ;;  %v1848_v36 = vld [vmem:[#allocation3 + $0x61] sm:$0xff]  ;;  %v1785_v2 = vmul.f32 %v7882_v61, %v1776_v3  ;;  %v7886_v20 = vld [vmem:[#allocation101_spill] sm:$0xff]  ;;  %v7887_v47 = vld [vmem:[#allocation102_spill] sm:$0xff]  ;;  %v1742_v0 = vadd.f32 %v1737_v50, %v1727_v52 }
 0x333   : > { %v1864_v10 = vld [vmem:[#allocation3 + $0x62] sm:$0xff]  ;;  %v1810_v59 = vmul.f32 %v7886_v20, %v1801_v25  ;;  %v1825_v1 = vmul.f32 %v7887_v47, %v1816_v11  ;;  %v1857_v22 = vmul.f32 %v7823_v5, %v1848_v36  ;;  %v1921_v25 = vmul.f32 %v6018_v15, %v7864_v60 }
 0x334   : > { %v6021_v43 = vadd.f32 %v7884_v38, %v1907_v12  ;;  %v7888_v35 = vld [vmem:[#allocation103_spill] sm:$0xff]  ;;  %v1800_v13 = vadd.f32 %v1795_v48, %v1785_v2  ;;  %v1873_v46 = vmul.f32 %v7824_v31, %v1864_v10  ;;  %v1883_v33 = vadd.f32 %v1363_v32, %v1258_v34  ;;  %v1969_v10 = vld [vmem:[#allocation3 + $0x68] sm:$0xff] }
 0x335   : > { %v1840_v24 = vmul.f32 %v7888_v35, %v1831_v55  ;;  %v6026_v62 = vld [vmem:[#allocation3 + $0x7c] sm:$0xff]  ;;  %v1924_v3 = vld [vmem:[#allocation3 + $0x65] sm:$0xff]  ;;  %v1672_v27 = vadd.f32 %v1667_v53, %v1656_v14  ;;  %v1759_v50 = vadd.f32 %v1754_v4, %v1742_v0  ;;  %v6048_v4 = vld [vmem:[#allocation3 + $0x6e] sm:$0xff] }
 0x336   : > { %7885 = vst [vmem:[#allocation107_spill] sm:$0xff] %v6021_v43  ;;  %7889 = vst [vmem:[#allocation42_spill] sm:$0xff] %v6026_v62  ;;  %v6029_v49 = vld [vmem:[#allocation3 + $0x7d] sm:$0xff]  ;;  %2539 = vadd.xlane.f32.xlu1 %v6021_v43  ;;  %v1939_v11 = vld [vmem:[#allocation3 + $0x66] sm:$0xff]  ;;  %v1815_v55 = vadd.f32 %v1810_v59, %v1800_v13  ;;  %v1922_v12 = vmul.f32 %v6026_v62, %v7864_v60  ;;  %v1888_v36 = vadd.f32 %v1883_v33, %v1466_v9 }
 0x337   : > { %v7890_v18 = vld [vmem:[#allocation27_spill] sm:$0xff]  ;;  %v1775_v34 = vadd.f32 %v1770_v21, %v1759_v50  ;;  %7892 = vst [vmem:[#allocation24_spill] sm:$0xff] %v6048_v4  ;;  %v1944_v9 = vmul.f32 %v1939_v11, %v7865_v42 }
 0x338   : > { %v1929_v8 = vmul.f32 %v1924_v3, %v7890_v18  ;;  %v1931_v52 = vmul.f32 %v1926_v44, %v7890_v18  ;;  %v1932_v31 = vmul.f32 %v6029_v49, %v7890_v18  ;;  %v1954_v32 = vld [vmem:[#allocation3 + $0x67] sm:$0xff]  ;;  %v1830_v2 = vadd.f32 %v1825_v1, %v1815_v55  ;;  %v6053_v3 = vld [vmem:[#allocation3 + $0x7e] sm:$0xff]  ;;  %v7895_v55 = vld [vmem:[#allocation29_spill] sm:$0xff] }
 0x339   : > { %v6042_v48 = vld [vmem:[#allocation3 + $0x85] sm:$0xff]  ;;  %v1893_v59 = vadd.f32 %v1888_v36, %v1569_v51  ;;  %v1947_v50 = vmul.f32 %v6053_v3, %v7865_v42  ;;  %v1959_v11 = vmul.f32 %v1954_v32, %v7895_v55  ;;  %v6076_v32 = vld [vmem:[#allocation3 + $0x70] sm:$0xff] }
 0x33a   : > { %v6046_v53 = vmul.f32 %v6042_v48, %v7890_v18  ;;  %v1934_v14 = vadd.f32 %v1929_v8, %v1919_v56  ;;  %v6051_v0 = vadd.f32 %v1931_v52, %v1921_v25  ;;  %v1937_v13 = vadd.f32 %v1932_v31, %v1922_v12  ;;  %v6055_v21 = vld [vmem:[#allocation3 + $0x87] sm:$0xff]  ;;  %v6066_v12 = vld [vmem:[#allocation3 + $0x6f] sm:$0xff]  ;;  %v6068_v36 = vld [vmem:[#allocation3 + $0x7f] sm:$0xff]  ;;  %7900 = vst [vmem:[#allocation43_spill] sm:$0xff] %v6076_v32 }
 0x33b   : > { %v1999_v1 = vld [vmem:[#allocation3 + $0x6a] sm:$0xff]  ;;  %v1845_v44 = vadd.f32 %v1840_v24, %v1830_v2  ;;  %v6064_v51 = vmul.f32 %v6055_v21, %v7895_v55  ;;  %v1898_v56 = vadd.f32 %v1893_v59, %v1672_v27  ;;  %7897 = vst [vmem:[#allocation99_spill] sm:$0xff] %v6066_v12  ;;  %7898 = vst [vmem:[#allocation38_spill] sm:$0xff] %v6068_v36 }
 0x33c   : > { %7891 = vst [vmem:[#allocation57_spill] sm:$0xff] %v6046_v53  ;;  %7893 = vst [vmem:[#allocation70_spill] sm:$0xff] %v6051_v0  ;;  %v6057_v33 = vld [vmem:[#allocation3 + $0x86] sm:$0xff]  ;;  %v1949_v25 = vadd.f32 %v1944_v9, %v1934_v14  ;;  %v1974_v8 = vmul.f32 %v1969_v10, %v7826_v6  ;;  %v1989_v24 = vmul.f32 %v1984_v28, %v7827_v58  ;;  %v6072_v52 = vld [vmem:[#allocation3 + $0x8e] sm:$0xff] }
 0x33d   : > { %7894 = vst [vmem:[#allocation84_spill] sm:$0xff] %v6057_v33  ;;  %7896 = vst [vmem:[#allocation93_spill] sm:$0xff] %v6064_v51  ;;  %v1862_v31 = vadd.f32 %v1857_v22, %v1845_v44  ;;  %v6074_v2 = vadd.f32 %v1947_v50, %v1937_v13  ;;  %v2004_v43 = vmul.f32 %v1999_v1, %v7828_v54  ;;  %v7901_v51 = vld [vmem:[#allocation36_spill] sm:$0xff]  ;;  %v7903_v1 = vld [vmem:[#allocation37_spill] sm:$0xff] }
 0x33e   : > { %v2015_v27 = vmul.f32 %v6048_v4, %v7901_v51  ;;  %v6081_v9 = vld [vmem:[#allocation3 + $0x8f] sm:$0xff]  ;;  %v1903_v59 = vadd.f32 %v1898_v56, %v1775_v34  ;;  %v1964_v14 = vadd.f32 %v1959_v11, %v1949_v25  ;;  %v2017_v10 = vmul.f32 %v6053_v3, %v7901_v51 }
 0x33f   : > { %7899 = vst [vmem:[#allocation44_spill] sm:$0xff] %v6074_v2  ;;  %v6083_v53 = vld [vmem:[#allocation3 + $0x88] sm:$0xff]  ;;  %v2018_v22 = vmul.f32 %v6057_v33, %v7901_v51  ;;  %v1878_v28 = vadd.f32 %v1873_v46, %v1862_v31  ;;  %v2019_v13 = vmul.f32 %v6072_v52, %v7901_v51  ;;  %v2021_v44 = vmul.f32 %v6066_v12, %v7903_v1  ;;  %v6095_v11 = vld [vmem:[#allocation3 + $0x71] sm:$0xff]  ;;  %v7905_v2 = vld [vmem:[#allocation39_spill] sm:$0xff] }
 0x340   : > { %7902 = vst [vmem:[#allocation59_spill] sm:$0xff] %v6083_v53  ;;  %v2023_v50 = vmul.f32 %v6068_v36, %v7903_v1  ;;  %v1979_v34 = vadd.f32 %v1974_v8, %v1964_v14  ;;  %7904 = vst [vmem:[#allocation58_spill] sm:$0xff] %v6095_v11  ;;  %v2024_v56 = vmul.f32 %v6055_v21, %v7903_v1  ;;  %v6103_v0 = vld [vmem:[#allocation3 + $0x72] sm:$0xff]  ;;  %v6192_v12 = vld [vmem:[#allocation3 + $0x83] sm:$0xff] }
 0x341   : > { %v2025_v25 = vmul.f32 %v6081_v9, %v7903_v1  ;;  %v2032_v46 = vmul.f32 %v6076_v32, %v7905_v2  ;;  %v1908_v31 = vadd.f32 %v1903_v59, %v1878_v28  ;;  %7906 = vst [vmem:[#allocation75_spill] sm:$0xff] %v6103_v0  ;;  %v2026_v51 = vadd.f32 %v2021_v44, %v2015_v27  ;;  %v6107_v58 = vld [vmem:[#allocation3 + $0x90] sm:$0xff]  ;;  %v6113_v14 = vld [vmem:[#allocation3 + $0x78] sm:$0xff] }
 0x342   : > { %v6105_v54 = vadd.f32 %v2023_v50, %v2017_v10  ;;  %v6111_v8 = vmul.f32 %v6083_v53, %v7905_v2  ;;  %7909 = vst [vmem:[#allocation87_spill] sm:$0xff] %v6113_v14  ;;  %v1994_v36 = vadd.f32 %v1989_v24, %v1979_v34  ;;  %v6115_v6 = vadd.f32 %v2024_v56, %v2018_v22  ;;  %v6119_v28 = vld [vmem:[#allocation3 + $0x91] sm:$0xff]  ;;  %v7912_v50 = vld [vmem:[#allocation40_spill] sm:$0xff]  ;;  %v6188_v32 = vld [vmem:[#allocation3 + $0x9c] sm:$0xff] }
 0x343   : > { %v2030_v1 = vadd.f32 %v2025_v25, %v2019_v13  ;;  %v2036_v59 = vmul.f32 %v6107_v58, %v7905_v2  ;;  %v2064_v27 = vld [vmem:[#allocation3 + $0x73] sm:$0xff]  ;;  %v6122_v10 = vadd.f32 %v7884_v38, %v1908_v31  ;;  %v2037_v44 = vadd.f32 %v2032_v46, %v2026_v51  ;;  %7927 = vst [vmem:[#allocation83_spill] sm:$0xff] %v6192_v12 }
 0x344   : > { %7907 = vst [vmem:[#allocation76_spill] sm:$0xff] %v6105_v54  ;;  %7908 = vst [vmem:[#allocation63_spill] sm:$0xff] %v6111_v8  ;;  %v2043_v54 = vmul.f32 %v6095_v11, %v7912_v50  ;;  %v2047_v8 = vmul.f32 %v6119_v28, %v7912_v50  ;;  %v6128_v24 = vld [vmem:[#allocation3 + $0x92] sm:$0xff]  ;;  %v6134_v34 = vadd.f32 %v2004_v43, %v1994_v36  ;;  %v6145_v31 = vld [vmem:[#allocation3 + $0x7a] sm:$0xff] }
 0x345   : > { %7910 = vst [vmem:[#allocation85_spill] sm:$0xff] %v6115_v6  ;;  %7911 = vst [vmem:[#allocation19_spill] sm:$0xff] %v6122_v10  ;;  %v6130_v22 = vld [vmem:[#allocation3 + $0x98] sm:$0xff]  ;;  %v2041_v56 = vadd.f32 %v2036_v59, %v2030_v1  ;;  %v7914_v25 = vld [vmem:[#allocation41_spill] sm:$0xff]  ;;  %2541 = vadd.xlane.f32.xlu0 %v6122_v10  ;;  %v2069_v43 = vmul.f32 %v2064_v27, %v7787_v39  ;;  %v2081_v36 = vmul.f32 %v6018_v15, %v7788_v26 }
 0x346   : > { %v6132_v13 = vld [vmem:[#allocation3 + $0x79] sm:$0xff]  ;;  %v2054_v38 = vmul.f32 %v6103_v0, %v7914_v25  ;;  %v6140_v51 = vmul.f32 %v6128_v24, %v7914_v25  ;;  %7916 = vst [vmem:[#allocation46_spill] sm:$0xff] %v6145_v31  ;;  %v2048_v6 = vadd.f32 %v2043_v54, %v2037_v44 }
 0x347   : > { %7913 = vst [vmem:[#allocation49_spill] sm:$0xff] %v6132_v13  ;;  %v6142_v46 = vld [vmem:[#allocation3 + $0x99] sm:$0xff]  ;;  %v6154_v2 = vadd.f32 %v2047_v8, %v2041_v56 }
 0x348   : > { %7915 = vst [vmem:[#allocation108_spill] sm:$0xff] %v6140_v51  ;;  %v6147_v50 = vld [vmem:[#allocation3 + $0x7b] sm:$0xff]  ;;  %v2059_v44 = vadd.f32 %v2054_v38, %v2048_v6 }
 0x349   : > { %7917 = vst [vmem:[#allocation32_spill] sm:$0xff] %v6147_v50  ;;  %v7918_v1 = vld [vmem:[#allocation50_spill] sm:$0xff]  ;;  %7919 = vst [vmem:[#allocation54_spill] sm:$0xff] %v6154_v2  ;;  %v7921_v27 = vld [vmem:[#allocation51_spill] sm:$0xff] }
 0x34a   : > { %v2092_v59 = vmul.f32 %v6113_v14, %v7918_v1  ;;  %v6158_v51 = vmul.f32 %v6083_v53, %v7918_v1  ;;  %v2095_v10 = vmul.f32 %v6107_v58, %v7918_v1  ;;  %v2096_v54 = vmul.f32 %v6130_v22, %v7918_v1  ;;  %v6170_v56 = vld [vmem:[#allocation3 + $0x9a] sm:$0xff]  ;;  %v6172_v2 = vld [vmem:[#allocation3 + $0x82] sm:$0xff] }
 0x34b   : > { %v2098_v39 = vmul.f32 %v6132_v13, %v7921_v27  ;;  %v2101_v15 = vmul.f32 %v6119_v28, %v7921_v27  ;;  %v2102_v8 = vmul.f32 %v6142_v46, %v7921_v27  ;;  %7922 = vst [vmem:[#allocation68_spill] sm:$0xff] %v6172_v2  ;;  %v7925_v38 = vld [vmem:[#allocation55_spill] sm:$0xff]  ;;  %v2074_v13 = vadd.f32 %v2069_v43, %v2059_v44 }
 0x34c   : > { %7920 = vst [vmem:[#allocation45_spill] sm:$0xff] %v6158_v51  ;;  %v7923_v51 = vld [vmem:[#allocation52_spill] sm:$0xff]  ;;  %v2120_v25 = vmul.f32 %v6147_v50, %v7925_v38  ;;  %v6186_v11 = vld [vmem:[#allocation3 + $0x9b] sm:$0xff]  ;;  %v7941_v50 = vld [vmem:[#allocation73_spill] sm:$0xff] }
 0x34d   : > { %v2109_v26 = vmul.f32 %v6145_v31, %v7923_v51  ;;  %v6178_v1 = vmul.f32 %v6128_v24, %v7923_v51  ;;  %v2113_v6 = vmul.f32 %v6170_v56, %v7923_v51  ;;  %v2103_v14 = vadd.f32 %v2098_v39, %v2092_v59  ;;  %v6190_v31 = vld [vmem:[#allocation3 + $0xa2] sm:$0xff]  ;;  %v7928_v51 = vld [vmem:[#allocation61_spill] sm:$0xff] }
 0x34e   : > { %v6184_v27 = vadd.f32 %v2101_v15, %v2095_v10  ;;  %v2107_v0 = vadd.f32 %v2102_v8, %v2096_v54  ;;  %v2131_v55 = vmul.f32 %v6026_v62, %v7928_v51  ;;  %v6200_v39 = vmul.f32 %v6188_v32, %v7928_v51  ;;  %v6204_v43 = vld [vmem:[#allocation3 + $0x84] sm:$0xff] }
 0x34f   : > { %7924 = vst [vmem:[#allocation66_spill] sm:$0xff] %v6178_v1  ;;  %v2124_v1 = vmul.f32 %v6186_v11, %v7925_v38  ;;  %v2144_v10 = vmul.f32 %v6029_v49, %v7794_v17  ;;  %7930 = vst [vmem:[#allocation69_spill] sm:$0xff] %v6204_v43  ;;  %v6206_v59 = vadd.f32 %v2081_v36, %v2074_v13  ;;  %v6210_v8 = vld [vmem:[#allocation3 + $0xa3] sm:$0xff] }
 0x350   : > { %7926 = vst [vmem:[#allocation33_spill] sm:$0xff] %v6184_v27  ;;  %7929 = vst [vmem:[#allocation77_spill] sm:$0xff] %v6200_v39  ;;  %v2114_v54 = vadd.f32 %v2109_v26, %v2103_v14  ;;  %v2118_v44 = vadd.f32 %v2113_v6, %v2107_v0  ;;  %v2156_v15 = vmul.f32 %v6053_v3, %v7745_v40  ;;  %v7932_v27 = vld [vmem:[#allocation65_spill] sm:$0xff]  ;;  %v7935_v14 = vld [vmem:[#allocation67_spill] sm:$0xff] }
 0x351   : > { %7931 = vst [vmem:[#allocation20_spill] sm:$0xff] %v6210_v8  ;;  %v2167_v38 = vmul.f32 %v6172_v2, %v7932_v27  ;;  %v6216_v39 = vmul.f32 %v6128_v24, %v7932_v27  ;;  %v2170_v49 = vmul.f32 %v6170_v56, %v7932_v27  ;;  %v2171_v13 = vmul.f32 %v6190_v31, %v7932_v27  ;;  %v6228_v6 = vld [vmem:[#allocation3 + $0xa4] sm:$0xff]  ;;  %v6230_v40 = vld [vmem:[#allocation3 + $0x8c] sm:$0xff] }
 0x352   : > { %v2125_v26 = vadd.f32 %v2120_v25, %v2114_v54  ;;  %v6222_v0 = vadd.f32 %v2124_v1, %v2118_v44  ;;  %v2173_v3 = vmul.f32 %v6192_v12, %v7935_v14  ;;  %v2176_v36 = vmul.f32 %v6186_v11, %v7935_v14  ;;  %7936 = vst [vmem:[#allocation56_spill] sm:$0xff] %v6228_v6  ;;  %v7937_v17 = vld [vmem:[#allocation71_spill] sm:$0xff]  ;;  %v7940_v27 = vld [vmem:[#allocation72_spill] sm:$0xff] }
 0x353   : > { %7933 = vst [vmem:[#allocation106_spill] sm:$0xff] %v6216_v39  ;;  %v2177_v39 = vmul.f32 %v6210_v8, %v7935_v14  ;;  %v2184_v51 = vmul.f32 %v6204_v43, %v7937_v17  ;;  %v6238_v25 = vmul.f32 %v6188_v32, %v7937_v17  ;;  %v2188_v1 = vmul.f32 %v6228_v6, %v7937_v17  ;;  %v4643_v62 = vld [vmem:[#allocation3 + $0xa5] sm:$0xff] }
 0x354   : > { %7934 = vst [vmem:[#allocation34_spill] sm:$0xff] %v6222_v0  ;;  %v2136_v54 = vadd.f32 %v2131_v55, %v2125_v26  ;;  %v2178_v44 = vadd.f32 %v2173_v3, %v2167_v38  ;;  %v6242_v0 = vadd.f32 %v2176_v36, %v2170_v49  ;;  %v2195_v12 = vmul.f32 %v6042_v48, %v7940_v27  ;;  %v7942_v38 = vld [vmem:[#allocation79_spill] sm:$0xff]  ;;  %v6261_v3 = vld [vmem:[#allocation3 + $0x8d] sm:$0xff] }
 0x355   : > { %7938 = vst [vmem:[#allocation27_spill] sm:$0xff] %v6238_v25  ;;  %v2182_v2 = vadd.f32 %v2177_v39, %v2171_v13  ;;  %v2199_v14 = vmul.f32 %v4643_v62, %v7940_v27  ;;  %v2206_v43 = vmul.f32 %v6057_v33, %v7941_v50  ;;  %v2219_v25 = vmul.f32 %v6055_v21, %v7839_v30  ;;  %v7944_v36 = vld [vmem:[#allocation80_spill] sm:$0xff]  ;;  %v6278_v50 = vld [vmem:[#allocation3 + $0xa0] sm:$0xff] }
 0x356   : > { %7939 = vst [vmem:[#allocation109_spill] sm:$0xff] %v6242_v0  ;;  %v2149_v4 = vadd.f32 %v2144_v10, %v2136_v54  ;;  %v2189_v42 = vadd.f32 %v2184_v51, %v2178_v44  ;;  %v2231_v55 = vmul.f32 %v6083_v53, %v7840_v57  ;;  %v2242_v49 = vmul.f32 %v6230_v40, %v7942_v38  ;;  %v6265_v51 = vld [vmem:[#allocation3 + $0x96] sm:$0xff] }
 0x357   : > { %v2193_v26 = vadd.f32 %v2188_v1, %v2182_v2  ;;  %v6257_v39 = vmul.f32 %v6188_v32, %v7942_v38  ;;  %v2245_v13 = vmul.f32 %v6228_v6, %v7942_v38  ;;  %v2248_v21 = vmul.f32 %v6261_v3, %v7944_v36  ;;  %v6267_v44 = vld [vmem:[#allocation3 + $0x97] sm:$0xff]  ;;  %7947 = vst [vmem:[#allocation112_spill] sm:$0xff] %v6278_v50 }
 0x358   : > { %v2161_v10 = vadd.f32 %v2156_v15, %v2149_v4  ;;  %v2200_v54 = vadd.f32 %v2195_v12, %v2189_v42  ;;  %v2251_v2 = vmul.f32 %v4643_v62, %v7944_v36  ;;  %v7945_v1 = vld [vmem:[#allocation81_spill] sm:$0xff]  ;;  %v2270_v38 = vmul.f32 %v6081_v9, %v7843_v63 }
 0x359   : > { %7943 = vst [vmem:[#allocation110_spill] sm:$0xff] %v6257_v39  ;;  %v2259_v53 = vmul.f32 %v6072_v52, %v7945_v1  ;;  %v6272_v0 = vadd.f32 %v2199_v14, %v2193_v26  ;;  %v2253_v39 = vadd.f32 %v2248_v21, %v2242_v49  ;;  %v2281_v57 = vmul.f32 %v6107_v58, %v7844_v41  ;;  %v6286_v14 = vld [vmem:[#allocation3 + $0xa1] sm:$0xff]  ;;  %v7950_v49 = vld [vmem:[#allocation90_spill] sm:$0xff] }
 0x35a   : > { %v2211_v30 = vadd.f32 %v2206_v43, %v2200_v54  ;;  %v6280_v42 = vadd.f32 %v2251_v2, %v2245_v13  ;;  %v2294_v4 = vmul.f32 %v6119_v28, %v7845_v7  ;;  %v2306_v12 = vmul.f32 %v6128_v24, %v7847_v45  ;;  %7949 = vst [vmem:[#allocation114_spill] sm:$0xff] %v6286_v14  ;;  %v7951_v21 = vld [vmem:[#allocation91_spill] sm:$0xff]  ;;  %v7952_v43 = vld [vmem:[#allocation92_spill] sm:$0xff] }
 0x35b   : > { %7946 = vst [vmem:[#allocation111_spill] sm:$0xff] %v6272_v0  ;;  %v2264_v15 = vadd.f32 %v2259_v53, %v2253_v39  ;;  %v2317_v26 = vmul.f32 %v6265_v51, %v7950_v49  ;;  %v2323_v0 = vmul.f32 %v6267_v44, %v7951_v21  ;;  %v2334_v54 = vmul.f32 %v6130_v22, %v7952_v43  ;;  %v1915_v43 = vld [vmem:[#allocation3 + $0x6c] sm:$0xff] }
 0x35c   : > { %7948 = vst [vmem:[#allocation113_spill] sm:$0xff] %v6280_v42  ;;  %v2224_v13 = vadd.f32 %v2219_v25, %v2211_v30  ;;  %v2345_v2 = vmul.f32 %v6142_v46, %v7876_v19  ;;  %v2356_v28 = vmul.f32 %v6170_v56, %v7878_v37  ;;  %v2369_v53 = vmul.f32 %v6186_v11, %v7879_v23  ;;  %v7965_v23 = vld [vmem:[#allocation35_spill] sm:$0xff] }
 0x35d   : > { %v2275_v24 = vadd.f32 %v2270_v38, %v2264_v15  ;;  %v2328_v39 = vadd.f32 %v2323_v0, %v2317_v26  ;;  %v2381_v42 = vmul.f32 %v6188_v32, %v7880_v29  ;;  %v2392_v21 = vmul.f32 %v6278_v50, %v7882_v61  ;;  %v1925_v38 = vld [vmem:[#allocation3 + $0x6d] sm:$0xff] }
 0x35e   : > { %v2236_v30 = vadd.f32 %v2231_v55, %v2224_v13  ;;  %v2398_v25 = vmul.f32 %v6286_v14, %v7883_v16  ;;  %v2409_v37 = vmul.f32 %v6190_v31, %v7886_v20  ;;  %v2420_v11 = vmul.f32 %v6210_v8, %v7887_v47  ;;  %v6313_v61 = vld [vmem:[#allocation3 + $0xa6] sm:$0xff]  ;;  %v6316_v13 = vld [vmem:[%s4859_s19 + $0x30] ss:$0 sm:$0xff]  ;;  %v7959_v29 = vld [vmem:[#allocation29_spill] sm:$0xff] }
 0x35f   : > { %v2286_v15 = vadd.f32 %v2281_v57, %v2275_v24  ;;  %v2339_v0 = vadd.f32 %v2334_v54, %v2328_v39  ;;  %v2431_v32 = vmul.f32 %v6228_v6, %v7888_v35  ;;  %v2444_v26 = vmul.f32 %v4643_v62, %v7823_v5  ;;  %7953 = vst [vmem:[#allocation115_spill] sm:$0xff] %v6313_v61  ;;  %v6324_v39 = vld [vmem:[#allocation3 + $0x76] sm:$0xff]  ;;  %v7956_v62 = vld [vmem:[#allocation28_spill] sm:$0xff] }
 0x360   : > { %v2403_v55 = vadd.f32 %v2398_v25, %v2392_v21  ;;  %7954 = vst [vmem:[#allocation116_spill] sm:$0xff] %v6316_v13  ;;  %v2459_v16 = vmul.f32 %v6316_v13, %v6313_v61  ;;  %v2469_v20 = vadd.f32 %v6206_v59, %v6134_v34  ;;  %v1920_v47 = vmul.f32 %v1915_v43, %v7864_v60  ;;  %v7957_v5 = vld [vmem:[#allocation24_spill] sm:$0xff]  ;;  %v6328_v6 = vld [vmem:[#allocation3 + $0x77] sm:$0xff]  ;;  %v7960_v61 = vld [vmem:[#allocation99_spill] sm:$0xff] }
 0x361   : > { %v2299_v57 = vadd.f32 %v2294_v4, %v2286_v15  ;;  %v2350_v54 = vadd.f32 %v2345_v2, %v2339_v0  ;;  %v1930_v24 = vmul.f32 %v1925_v38, %v7890_v18  ;;  %7955 = vst [vmem:[#allocation117_spill] sm:$0xff] %v6324_v39  ;;  %v1945_v35 = vmul.f32 %v7957_v5, %v7956_v62  ;;  %v7961_v8 = vld [vmem:[#allocation30_spill] sm:$0xff]  ;;  %v7962_v34 = vld [vmem:[#allocation43_spill] sm:$0xff] }
 0x362   : > { %v2414_v21 = vadd.f32 %v2409_v37, %v2403_v55  ;;  %v2474_v25 = vadd.f32 %v2469_v20, %v2161_v10  ;;  %7958 = vst [vmem:[#allocation24_spill] sm:$0xff] %v6328_v6  ;;  %v1960_v13 = vmul.f32 %v7960_v61, %v7959_v29  ;;  %v1975_v59 = vmul.f32 %v7962_v34, %v7961_v8  ;;  %v7963_v15 = vld [vmem:[#allocation31_spill] sm:$0xff]  ;;  %v7964_v18 = vld [vmem:[#allocation58_spill] sm:$0xff]  ;;  %v7967_v20 = vld [vmem:[#allocation36_spill] sm:$0xff] }
 0x363   : > { %v2311_v43 = vadd.f32 %v2306_v12, %v2299_v57  ;;  %v2361_v4 = vadd.f32 %v2356_v28, %v2350_v54  ;;  %v1935_v2 = vadd.f32 %v1930_v24, %v1920_v47  ;;  %v1990_v38 = vmul.f32 %v7964_v18, %v7963_v15  ;;  %v7966_v5 = vld [vmem:[#allocation75_spill] sm:$0xff]  ;;  %v7968_v12 = vld [vmem:[#allocation37_spill] sm:$0xff]  ;;  %v7971_v24 = vld [vmem:[#allocation40_spill] sm:$0xff] }
 0x364   : > { %v2425_v0 = vadd.f32 %v2420_v11, %v2414_v21  ;;  %v2479_v60 = vadd.f32 %v2474_v25, %v2236_v30  ;;  %v2005_v37 = vmul.f32 %v7966_v5, %v7965_v23  ;;  %v2016_v10 = vmul.f32 %v6324_v39, %v7967_v20  ;;  %v6340_v61 = vld [vmem:[#allocation3 + $0x80] sm:$0xff]  ;;  %v7972_v21 = vld [vmem:[#allocation49_spill] sm:$0xff]  ;;  %v7974_v18 = vld [vmem:[#allocation46_spill] sm:$0xff] }
 0x365   : > { %v2374_v55 = vadd.f32 %v2369_v53, %v2361_v4  ;;  %v1950_v62 = vadd.f32 %v1945_v35, %v1935_v2  ;;  %v6342_v29 = vld [vmem:[#allocation3 + $0x81] sm:$0xff]  ;;  %v2022_v47 = vmul.f32 %v6328_v6, %v7968_v12  ;;  %v2044_v25 = vmul.f32 %v7972_v21, %v7971_v24  ;;  %v7973_v34 = vld [vmem:[#allocation41_spill] sm:$0xff]  ;;  %v7978_v12 = vld [vmem:[#allocation42_spill] sm:$0xff] }
 0x366   : > { %v7969_v28 = vld [vmem:[#allocation39_spill] sm:$0xff]  ;;  %v2436_v11 = vadd.f32 %v2431_v32, %v2425_v0  ;;  %v2484_v30 = vadd.f32 %v2479_v60, %v2311_v43  ;;  %v2055_v5 = vmul.f32 %v7974_v18, %v7973_v34  ;;  %v7976_v20 = vld [vmem:[#allocation32_spill] sm:$0xff]  ;;  %v7979_v39 = vld [vmem:[#allocation50_spill] sm:$0xff] }
 0x367   : > { %v7970_v57 = vld [vmem:[#allocation87_spill] sm:$0xff]  ;;  %v2386_v53 = vadd.f32 %v2381_v42, %v2374_v55  ;;  %v1965_v35 = vadd.f32 %v1960_v13, %v1950_v62  ;;  %v2027_v4 = vadd.f32 %v2022_v47, %v2016_v10  ;;  %v7977_v8 = vld [vmem:[#allocation48_spill] sm:$0xff]  ;;  %v2093_v32 = vmul.f32 %v6340_v61, %v7979_v39  ;;  %v7986_v39 = vld [vmem:[#allocation69_spill] sm:$0xff] }
 0x368   : > { %v2033_v54 = vmul.f32 %v7970_v57, %v7969_v28  ;;  %v7975_v2 = vld [vmem:[#allocation47_spill] sm:$0xff]  ;;  %v2449_v15 = vadd.f32 %v2444_v26, %v2436_v11  ;;  %v2082_v6 = vmul.f32 %v7978_v12, %v7977_v8  ;;  %v6360_v28 = vld [vmem:[#allocation3 + $0x8a] sm:$0xff]  ;;  %v6374_v34 = vld [vmem:[#allocation3 + $0x94] sm:$0xff] }
 0x369   : > { %v2070_v23 = vmul.f32 %v7976_v20, %v7975_v2  ;;  %v7980_v60 = vld [vmem:[#allocation51_spill] sm:$0xff]  ;;  %v2489_v0 = vadd.f32 %v2484_v30, %v2386_v53  ;;  %v1980_v24 = vadd.f32 %v1975_v59, %v1965_v35  ;;  %v6362_v13 = vld [vmem:[#allocation3 + $0x8b] sm:$0xff]  ;;  %v7987_v59 = vld [vmem:[#allocation62_spill] sm:$0xff] }
 0x36a   : > { %v2099_v43 = vmul.f32 %v6342_v29, %v7980_v60  ;;  %v2038_v42 = vadd.f32 %v2033_v54, %v2027_v4  ;;  %v7981_v62 = vld [vmem:[#allocation52_spill] sm:$0xff]  ;;  %v2464_v26 = vadd.f32 %v2459_v16, %v2449_v15  ;;  %v7983_v11 = vld [vmem:[#allocation55_spill] sm:$0xff]  ;;  %v7985_v8 = vld [vmem:[#allocation61_spill] sm:$0xff]  ;;  %v2145_v53 = vmul.f32 %v6042_v48, %v7987_v59 }
 0x36b   : > { %v7982_v10 = vld [vmem:[#allocation68_spill] sm:$0xff]  ;;  %v7984_v20 = vld [vmem:[#allocation83_spill] sm:$0xff]  ;;  %v2132_v2 = vmul.f32 %v7986_v39, %v7985_v8  ;;  %v1995_v60 = vadd.f32 %v1990_v38, %v1980_v24  ;;  %v7989_v15 = vld [vmem:[#allocation65_spill] sm:$0xff]  ;;  %v2185_v24 = vmul.f32 %v6230_v40, %v7937_v17  ;;  %v2196_v48 = vmul.f32 %v6261_v3, %v7940_v27 }
 0x36c   : > { %v2110_v55 = vmul.f32 %v7982_v10, %v7981_v62  ;;  %v2104_v47 = vadd.f32 %v2099_v43, %v2093_v32  ;;  %v2121_v12 = vmul.f32 %v7984_v20, %v7983_v11  ;;  %v2049_v30 = vadd.f32 %v2044_v25, %v2038_v42  ;;  %v7988_v54 = vld [vmem:[#allocation64_spill] sm:$0xff]  ;;  %v7990_v43 = vld [vmem:[#allocation67_spill] sm:$0xff] }
 0x36d   : > { %v2157_v35 = vmul.f32 %v6057_v33, %v7988_v54  ;;  %v2494_v4 = vadd.f32 %v2489_v0, %v2464_v26  ;;  %v2168_v32 = vmul.f32 %v6360_v28, %v7989_v15  ;;  %v2174_v11 = vmul.f32 %v6362_v13, %v7990_v43  ;;  %v6386_v25 = vld [vmem:[#allocation3 + $0xac] sm:$0xff]  ;;  %v7995_v33 = vld [vmem:[#allocation78_spill] sm:$0xff]  ;;  %v7996_v17 = vld [vmem:[#allocation79_spill] sm:$0xff] }
 0x36e   : > { %v2115_v16 = vadd.f32 %v2110_v55, %v2104_v47  ;;  %v6380_v62 = vadd.f32 %v2005_v37, %v1995_v60  ;;  %v2060_v38 = vadd.f32 %v2055_v5, %v2049_v30  ;;  %v6389_v0 = vld [vmem:[%s7722_s22] ss:$0 sm:$0xff]  ;;  %v7994_v30 = vld [vmem:[#allocation74_spill] sm:$0xff]  ;;  %v2232_v27 = vmul.f32 %v6107_v58, %v7995_v33 }
 0x36f   : > { %7991 = vst [vmem:[#allocation99_spill] sm:$0xff] %v6389_v0  ;;  %v6392_v42 = vadd.f32 %v6389_v0, %v2494_v4  ;;  %v2179_v26 = vadd.f32 %v2174_v11, %v2168_v32  ;;  %v7993_v47 = vld [vmem:[#allocation73_spill] sm:$0xff]  ;;  %v2220_v15 = vmul.f32 %v6081_v9, %v7994_v30  ;;  %v2243_v43 = vmul.f32 %v6374_v34, %v7996_v17  ;;  %v6411_v32 = vld [vmem:[#allocation3 + $0x9e] sm:$0xff] }
 0x370   : > { %v2126_v55 = vadd.f32 %v2121_v12, %v2115_v16  ;;  %v2207_v37 = vmul.f32 %v6072_v52, %v7993_v47  ;;  %v2247_v60 = vld [vmem:[#allocation3 + $0xad] sm:$0xff]  ;;  %v2075_v5 = vadd.f32 %v2070_v23, %v2060_v38  ;;  %v2246_v11 = vmul.f32 %v6386_v25, %v7996_v17  ;;  %v6405_v12 = vld [vmem:[#allocation3 + $0x95] sm:$0xff]  ;;  %7998 = vst [vmem:[#allocation75_spill] sm:$0xff] %v6411_v32 }
 0x371   : > { %7992 = vst [vmem:[#allocation43_spill] sm:$0xff] %v6392_v42  ;;  %2543 = vadd.xlane.f32.xlu1 %v6392_v42  ;;  %v2190_v0 = vadd.f32 %v2185_v24, %v2179_v26  ;;  %v2249_v23 = vmul.f32 %v6405_v12, %v7944_v36  ;;  %v6409_v16 = vld [vmem:[#allocation3 + $0xae] sm:$0xff]  ;;  %v2252_v58 = vmul.f32 %v2247_v60, %v7944_v36 }
 0x372   : > { %v2137_v4 = vadd.f32 %v2132_v2, %v2126_v55  ;;  %7997 = vst [vmem:[#allocation58_spill] sm:$0xff] %v6409_v16  ;;  %v2087_v9 = vadd.f32 %v2082_v6, %v2075_v5  ;;  %v2260_v38 = vmul.f32 %v6265_v51, %v7945_v1  ;;  %v2263_v2 = vmul.f32 %v6409_v16, %v7945_v1  ;;  %v6418_v55 = vld [vmem:[#allocation3 + $0x9f] sm:$0xff] }
 0x373   : > { %v2201_v17 = vadd.f32 %v2196_v48, %v2190_v0  ;;  %7999 = vst [vmem:[#allocation36_spill] sm:$0xff] %v6418_v55  ;;  %v2254_v26 = vadd.f32 %v2249_v23, %v2243_v43  ;;  %v2271_v42 = vmul.f32 %v6267_v44, %v7843_v63  ;;  %v2257_v33 = vadd.f32 %v2252_v58, %v2246_v11  ;;  %v6430_v0 = vld [vmem:[#allocation3 + $0xa9] sm:$0xff]  ;;  %v8004_v23 = vld [vmem:[#allocation91_spill] sm:$0xff] }
 0x374   : > { %v2150_v24 = vadd.f32 %v2145_v53, %v2137_v4  ;;  %v2282_v6 = vmul.f32 %v6130_v22, %v7844_v41  ;;  %v2295_v5 = vmul.f32 %v6142_v46, %v7845_v7  ;;  %v2307_v36 = vmul.f32 %v6170_v56, %v7847_v45  ;;  %v6428_v53 = vld [vmem:[#allocation3 + $0xa8] sm:$0xff]  ;;  %8001 = vst [vmem:[#allocation87_spill] sm:$0xff] %v6430_v0  ;;  %v8009_v45 = vld [vmem:[#allocation97_spill] sm:$0xff]  ;;  %v8011_v41 = vld [vmem:[#allocation98_spill] sm:$0xff] }
 0x375   : > { %v2212_v1 = vadd.f32 %v2207_v37, %v2201_v17  ;;  %8000 = vst [vmem:[#allocation37_spill] sm:$0xff] %v6428_v53  ;;  %v2265_v48 = vadd.f32 %v2260_v38, %v2254_v26  ;;  %v2318_v43 = vmul.f32 %v6411_v32, %v7950_v49  ;;  %v6434_v4 = vadd.f32 %v2263_v2, %v2257_v33  ;;  %v6436_v11 = vld [vmem:[#allocation3 + $0xaa] sm:$0xff]  ;;  %v8006_v17 = vld [vmem:[#allocation95_spill] sm:$0xff] }
 0x376   : > { %v2162_v30 = vadd.f32 %v2157_v35, %v2150_v24  ;;  %8003 = vst [vmem:[#allocation46_spill] sm:$0xff] %v6436_v11  ;;  %v2324_v46 = vmul.f32 %v6418_v55, %v8004_v23  ;;  %v8005_v58 = vld [vmem:[#allocation92_spill] sm:$0xff]  ;;  %v2346_v35 = vmul.f32 %v6286_v14, %v7876_v19  ;;  %v2357_v26 = vmul.f32 %v6190_v31, %v8006_v17 }
 0x377   : > { %8002 = vst [vmem:[#allocation49_spill] sm:$0xff] %v6434_v4  ;;  %v2335_v56 = vmul.f32 %v6278_v50, %v8005_v58  ;;  %v6444_v37 = vld [vmem:[#allocation3 + $0xab] sm:$0xff]  ;;  %v2225_v38 = vadd.f32 %v2220_v15, %v2212_v1  ;;  %v2276_v24 = vadd.f32 %v2271_v42, %v2265_v48  ;;  %v2393_v58 = vmul.f32 %v6428_v53, %v8011_v41  ;;  %v8014_v15 = vld [vmem:[#allocation102_spill] sm:$0xff] }
 0x378   : > { %v8007_v33 = vld [vmem:[#allocation96_spill] sm:$0xff]  ;;  %v2329_v49 = vadd.f32 %v2324_v46, %v2318_v43  ;;  %v8013_v1 = vld [vmem:[#allocation101_spill] sm:$0xff]  ;;  %v2421_v48 = vmul.f32 %v6444_v37, %v8014_v15  ;;  %v8015_v43 = vld [vmem:[#allocation103_spill] sm:$0xff] }
 0x379   : > { %v8008_v2 = vld [vmem:[#allocation20_spill] sm:$0xff]  ;;  %v2237_v14 = vadd.f32 %v2232_v27, %v2225_v38  ;;  %v2287_v55 = vadd.f32 %v2282_v6, %v2276_v24  ;;  %v2410_v42 = vmul.f32 %v6436_v11, %v8013_v1  ;;  %v2432_v46 = vmul.f32 %v6386_v25, %v8015_v43  ;;  %v8019_v38 = vld [vmem:[#allocation117_spill] sm:$0xff] }
 0x37a   : > { %v2370_v4 = vmul.f32 %v8008_v2, %v8007_v33  ;;  %v8010_v7 = vld [vmem:[#allocation56_spill] sm:$0xff]  ;;  %v2340_v17 = vadd.f32 %v2335_v56, %v2329_v49  ;;  %v2470_v27 = vadd.f32 %v2087_v9, %v6380_v62  ;;  %v8020_v11 = vld [vmem:[#allocation29_spill] sm:$0xff] }
 0x37b   : > { %v2382_v23 = vmul.f32 %v8010_v7, %v8009_v45  ;;  %v8012_v50 = vld [vmem:[#allocation100_spill] sm:$0xff]  ;;  %v2300_v33 = vadd.f32 %v2295_v5, %v2287_v55  ;;  %v8024_v5 = vld [vmem:[#allocation31_spill] sm:$0xff] }
 0x37c   : > { %v2399_v19 = vmul.f32 %v6430_v0, %v8012_v50  ;;  %v8016_v7 = vld [vmem:[#allocation104_spill] sm:$0xff]  ;;  %v2351_v1 = vadd.f32 %v2346_v35, %v2340_v17  ;;  %v2475_v43 = vadd.f32 %v2470_v27, %v2162_v30  ;;  %v8026_v17 = vld [vmem:[#allocation39_spill] sm:$0xff]  ;;  %v8028_v30 = vld [vmem:[#allocation41_spill] sm:$0xff] }
 0x37d   : > { %v2445_v45 = vmul.f32 %v2247_v60, %v8016_v7  ;;  %v8017_v41 = vld [vmem:[#allocation116_spill] sm:$0xff]  ;;  %v2312_v56 = vadd.f32 %v2307_v36, %v2300_v33  ;;  %v8023_v60 = vld [vmem:[#allocation70_spill] sm:$0xff]  ;;  %v2056_v33 = vmul.f32 %v7982_v10, %v8028_v30 }
 0x37e   : > { %v2404_v2 = vadd.f32 %v2399_v19, %v2393_v58  ;;  %v2460_v53 = vmul.f32 %v8017_v41, %v6409_v16  ;;  %v8018_v6 = vld [vmem:[#allocation28_spill] sm:$0xff]  ;;  %v8022_v19 = vld [vmem:[#allocation30_spill] sm:$0xff]  ;;  %v1991_v16 = vmul.f32 %v7972_v21, %v8024_v5  ;;  %v2362_v41 = vadd.f32 %v2357_v26, %v2351_v1  ;;  %v8030_v1 = vld [vmem:[#allocation47_spill] sm:$0xff] }
 0x37f   : > { %v1946_v24 = vmul.f32 %v8019_v38, %v8018_v6  ;;  %v8021_v15 = vld [vmem:[#allocation24_spill] sm:$0xff]  ;;  %v1976_v58 = vmul.f32 %v7970_v57, %v8022_v19  ;;  %v8025_v38 = vld [vmem:[#allocation35_spill] sm:$0xff] }
 0x380   : > { %v2415_v50 = vadd.f32 %v2410_v42, %v2404_v2  ;;  %v1961_v49 = vmul.f32 %v8021_v15, %v8020_v11  ;;  %v6475_v9 = vld [vmem:[#allocation3 + $0x89] sm:$0xff]  ;;  %v2006_v35 = vmul.f32 %v7974_v18, %v8025_v38  ;;  %v2034_v42 = vmul.f32 %v6340_v61, %v8026_v17 }
 0x381   : > { %v1951_v55 = vadd.f32 %v1946_v24, %v8023_v60  ;;  %v2480_v15 = vadd.f32 %v2475_v43, %v2237_v14  ;;  %v8027_v57 = vld [vmem:[#allocation40_spill] sm:$0xff]  ;;  %v2375_v27 = vadd.f32 %v2370_v4, %v2362_v41  ;;  %v8032_v14 = vld [vmem:[#allocation51_spill] sm:$0xff] }
 0x382   : > { %v2426_v62 = vadd.f32 %v2421_v48, %v2415_v50  ;;  %v2045_v36 = vmul.f32 %v6342_v29, %v8027_v57  ;;  %v8029_v26 = vld [vmem:[#allocation76_spill] sm:$0xff]  ;;  %v2071_v48 = vmul.f32 %v7984_v20, %v8030_v1  ;;  %v2100_v43 = vmul.f32 %v6475_v9, %v8032_v14  ;;  %v6492_v57 = vld [vmem:[#allocation3 + $0x93] sm:$0xff]  ;;  %v8035_v20 = vld [vmem:[#allocation55_spill] sm:$0xff] }
 0x383   : > { %v1966_v2 = vadd.f32 %v1961_v49, %v1951_v55  ;;  %v2039_v50 = vadd.f32 %v2034_v42, %v8029_v26  ;;  %v2485_v24 = vadd.f32 %v2480_v15, %v2312_v56  ;;  %v8031_v60 = vld [vmem:[#allocation48_spill] sm:$0xff]  ;;  %v2387_v49 = vadd.f32 %v2382_v23, %v2375_v27  ;;  %v8037_v14 = vld [vmem:[#allocation71_spill] sm:$0xff] }
 0x384   : > { %v2437_v21 = vadd.f32 %v2432_v46, %v2426_v62  ;;  %v2083_v17 = vmul.f32 %v7986_v39, %v8031_v60  ;;  %v8033_v41 = vld [vmem:[#allocation52_spill] sm:$0xff]  ;;  %v8034_v62 = vld [vmem:[#allocation45_spill] sm:$0xff]  ;;  %v2133_v56 = vmul.f32 %v6230_v40, %v7985_v8  ;;  %v2158_v27 = vmul.f32 %v6072_v52, %v7988_v54  ;;  %v8052_v39 = vld [vmem:[#allocation114_spill] sm:$0xff] }
 0x385   : > { %v1981_v18 = vadd.f32 %v1976_v58, %v1966_v2  ;;  %v2050_v6 = vadd.f32 %v2045_v36, %v2039_v50  ;;  %v2111_v4 = vmul.f32 %v6360_v28, %v8033_v41  ;;  %v2105_v42 = vadd.f32 %v2100_v43, %v8034_v62  ;;  %v8038_v41 = vld [vmem:[#allocation72_spill] sm:$0xff] }
 0x386   : > { %v2450_v55 = vadd.f32 %v2445_v45, %v2437_v21  ;;  %v2122_v58 = vmul.f32 %v6362_v13, %v8035_v20  ;;  %v2490_v2 = vadd.f32 %v2485_v24, %v2387_v49  ;;  %v2146_v45 = vmul.f32 %v6261_v3, %v7987_v59  ;;  %v8041_v49 = vld [vmem:[#allocation99_spill] sm:$0xff] }
 0x387   : > { %v1996_v46 = vadd.f32 %v1991_v16, %v1981_v18  ;;  %v2061_v26 = vadd.f32 %v2056_v33, %v2050_v6  ;;  %v2116_v36 = vadd.f32 %v2111_v4, %v2105_v42  ;;  %v8036_v16 = vld [vmem:[#allocation67_spill] sm:$0xff]  ;;  %v2186_v43 = vmul.f32 %v6374_v34, %v8037_v14  ;;  %v8039_v33 = vld [vmem:[#allocation106_spill] sm:$0xff]  ;;  %v8050_v14 = vld [vmem:[#allocation112_spill] sm:$0xff] }
 0x388   : > { %v2465_v15 = vadd.f32 %v2460_v53, %v2450_v55  ;;  %v2175_v21 = vmul.f32 %v6492_v57, %v8036_v16  ;;  %v2197_v53 = vmul.f32 %v6405_v12, %v8038_v41  ;;  %v2208_v3 = vmul.f32 %v6265_v51, %v7993_v47  ;;  %v6523_v42 = vld [vmem:[#allocation3 + $0x9d] sm:$0xff]  ;;  %v8064_v47 = vld [vmem:[#allocation97_spill] sm:$0xff] }
 0x389   : > { %v2011_v23 = vadd.f32 %v2006_v35, %v1996_v46  ;;  %v2076_v18 = vadd.f32 %v2071_v48, %v2061_v26  ;;  %v2127_v6 = vadd.f32 %v2122_v58, %v2116_v36  ;;  %v8040_v35 = vld [vmem:[#allocation74_spill] sm:$0xff]  ;;  %v6519_v48 = vld [vmem:[#allocation3 + $0xa7] sm:$0xff]  ;;  %v8046_v36 = vld [vmem:[#allocation81_spill] sm:$0xff] }
 0x38a   : > { %v2495_v50 = vadd.f32 %v2490_v2, %v2465_v15  ;;  %v2180_v24 = vadd.f32 %v2175_v21, %v8039_v33  ;;  %v2221_v52 = vmul.f32 %v6267_v44, %v8040_v35  ;;  %8043 = vst [vmem:[#allocation42_spill] sm:$0xff] %v6519_v48  ;;  %v8044_v46 = vld [vmem:[#allocation78_spill] sm:$0xff]  ;;  %v8045_v58 = vld [vmem:[#allocation80_spill] sm:$0xff]  ;;  %v2261_v16 = vmul.f32 %v6411_v32, %v8046_v36  ;;  %v8055_v36 = vld [vmem:[#allocation115_spill] sm:$0xff] }
 0x38b   : > { %v2088_v4 = vadd.f32 %v2083_v17, %v2076_v18  ;;  %v2233_v62 = vmul.f32 %v6130_v22, %v8044_v46  ;;  %v2250_v15 = vmul.f32 %v6523_v42, %v8045_v58  ;;  %v2138_v2 = vadd.f32 %v2133_v56, %v2127_v6  ;;  %v8047_v44 = vld [vmem:[#allocation36_spill] sm:$0xff]  ;;  %v8048_v17 = vld [vmem:[#allocation110_spill] sm:$0xff]  ;;  %v8053_v46 = vld [vmem:[#allocation89_spill] sm:$0xff] }
 0x38c   : > { %v6517_v55 = vadd.f32 %v8041_v49, %v2495_v50  ;;  %v2191_v26 = vadd.f32 %v2186_v43, %v2180_v24  ;;  %v2272_v21 = vmul.f32 %v8047_v44, %v7843_v63  ;;  %v8049_v18 = vld [vmem:[#allocation86_spill] sm:$0xff]  ;;  %v8051_v33 = vld [vmem:[#allocation88_spill] sm:$0xff]  ;;  %v2308_v56 = vmul.f32 %v6190_v31, %v8053_v46  ;;  %v6539_v24 = vld [vmem:[#allocation3 + $0xb0] sm:$0xff] }
 0x38d   : > { %v2255_v50 = vadd.f32 %v2250_v15, %v8048_v17  ;;  %v2283_v22 = vmul.f32 %v8050_v14, %v8049_v18  ;;  %v2296_v49 = vmul.f32 %v8052_v39, %v8051_v33  ;;  %v2151_v43 = vadd.f32 %v2146_v45, %v2138_v2  ;;  %v6541_v58 = vld [vmem:[#allocation3 + $0xb1] sm:$0xff]  ;;  %v8056_v44 = vld [vmem:[#allocation91_spill] sm:$0xff]  ;;  %v8058_v14 = vld [vmem:[#allocation92_spill] sm:$0xff] }
 0x38e   : > { %8042 = vst [vmem:[#allocation32_spill] sm:$0xff] %v6517_v55  ;;  %2545 = vadd.xlane.f32.xlu0 %v6517_v55  ;;  %v2202_v6 = vadd.f32 %v2197_v53, %v2191_v26  ;;  %v8054_v63 = vld [vmem:[#allocation90_spill] sm:$0xff]  ;;  %v2325_v15 = vmul.f32 %v6519_v48, %v8056_v44  ;;  %v8059_v39 = vld [vmem:[#allocation37_spill] sm:$0xff]  ;;  %v8061_v45 = vld [vmem:[#allocation95_spill] sm:$0xff] }
 0x38f   : > { %v2319_v55 = vmul.f32 %v8055_v36, %v8054_v63  ;;  %v2266_v17 = vadd.f32 %v2261_v16, %v2255_v50  ;;  %v6547_v18 = vld [vmem:[#allocation3 + $0xb2] sm:$0xff]  ;;  %v2336_v33 = vmul.f32 %v8059_v39, %v8058_v14  ;;  %v2163_v46 = vadd.f32 %v2158_v27, %v2151_v43  ;;  %v8063_v36 = vld [vmem:[#allocation96_spill] sm:$0xff] }
 0x390   : > { %8057 = vst [vmem:[#allocation50_spill] sm:$0xff] %v6547_v18  ;;  %v8060_v35 = vld [vmem:[#allocation94_spill] sm:$0xff]  ;;  %v2213_v32 = vadd.f32 %v2208_v3, %v2202_v6  ;;  %v2371_v44 = vmul.f32 %v6444_v37, %v8063_v36  ;;  %v2383_v14 = vmul.f32 %v6386_v25, %v8064_v47  ;;  %v8067_v3 = vld [vmem:[#allocation101_spill] sm:$0xff] }
 0x391   : > { %v2347_v31 = vmul.f32 %v6430_v0, %v8060_v35  ;;  %v8062_v53 = vld [vmem:[#allocation46_spill] sm:$0xff]  ;;  %v2330_v63 = vadd.f32 %v2325_v15, %v2319_v55  ;;  %v2277_v48 = vadd.f32 %v2272_v21, %v2266_v17  ;;  %v8066_v0 = vld [vmem:[#allocation100_spill] sm:$0xff]  ;;  %v2411_v55 = vmul.f32 %v6547_v18, %v8067_v3  ;;  %v8069_v21 = vld [vmem:[#allocation103_spill] sm:$0xff] }
 0x392   : > { %v2358_v2 = vmul.f32 %v8062_v53, %v8061_v45  ;;  %v6555_v26 = vld [vmem:[#allocation3 + $0xb3] sm:$0xff]  ;;  %v2400_v45 = vmul.f32 %v6541_v58, %v8066_v0  ;;  %v2226_v53 = vadd.f32 %v2221_v52, %v2213_v32  ;;  %v8071_v32 = vld [vmem:[#allocation116_spill] sm:$0xff]  ;;  %v2471_v52 = vadd.f32 %v2088_v4, %v2011_v23  ;;  %v8075_v4 = vld [vmem:[#allocation63_spill] sm:$0xff] }
 0x393   : > { %v6559_v16 = vld [vmem:[#allocation3 + $0xb4] sm:$0xff]  ;;  %v2341_v27 = vadd.f32 %v2336_v33, %v2330_v63  ;;  %v2288_v6 = vadd.f32 %v2283_v22, %v2277_v48 }
 0x394   : > { %v2441_v50 = vld [vmem:[#allocation3 + $0xb5] sm:$0xff]  ;;  %v2433_v17 = vmul.f32 %v6559_v16, %v8069_v21  ;;  %v2476_v22 = vadd.f32 %v2471_v52, %v2163_v46  ;;  %v2057_v46 = vmul.f32 %v6360_v28, %v8028_v30  ;;  %v2123_v52 = vmul.f32 %v6492_v57, %v8035_v20 }
 0x395   : > { %v8065_v39 = vld [vmem:[#allocation98_spill] sm:$0xff]  ;;  %v2446_v25 = vmul.f32 %v2441_v50, %v8016_v7  ;;  %v2352_v36 = vadd.f32 %v2347_v31, %v2341_v27  ;;  %v2301_v33 = vadd.f32 %v2296_v49, %v2288_v6  ;;  %v8073_v50 = vld [vmem:[#allocation44_spill] sm:$0xff]  ;;  %v8074_v49 = vld [vmem:[#allocation85_spill] sm:$0xff]  ;;  %v2134_v30 = vmul.f32 %v6374_v34, %v7985_v8 }
 0x396   : > { %v2394_v35 = vmul.f32 %v6539_v24, %v8065_v39  ;;  %v8068_v43 = vld [vmem:[#allocation102_spill] sm:$0xff]  ;;  %v2238_v39 = vadd.f32 %v2233_v62, %v2226_v53  ;;  %v2007_v62 = vmul.f32 %v7982_v10, %v8025_v38  ;;  %v2040_v27 = vadd.f32 %v8075_v4, %v8074_v49  ;;  %v8082_v8 = vld [vmem:[#allocation75_spill] sm:$0xff]  ;;  %v8084_v49 = vld [vmem:[#allocation36_spill] sm:$0xff] }
 0x397   : > { %v2422_v37 = vmul.f32 %v6555_v26, %v8068_v43  ;;  %v6574_v47 = vld [vmem:[#allocation3 + $0xb6] sm:$0xff]  ;;  %v2363_v48 = vadd.f32 %v2358_v2, %v2352_v36  ;;  %v2313_v31 = vadd.f32 %v2308_v56, %v2301_v33  ;;  %v2072_v10 = vmul.f32 %v6362_v13, %v8030_v1 }
 0x398   : > { %v2405_v15 = vadd.f32 %v2400_v45, %v2394_v35  ;;  %8070 = vst [vmem:[#allocation68_spill] sm:$0xff] %v6574_v47  ;;  %v2461_v63 = vmul.f32 %v8071_v32, %v6574_v47  ;;  %v8072_v0 = vld [vmem:[#allocation38_spill] sm:$0xff]  ;;  %v1977_v35 = vmul.f32 %v6340_v61, %v8022_v19  ;;  %v1992_v45 = vmul.f32 %v6342_v29, %v8024_v5  ;;  %v8113_v47 = vld [vmem:[#allocation100_spill] sm:$0xff] }
 0x399   : > { %v1962_v43 = vmul.f32 %v8072_v0, %v8020_v11  ;;  %v2481_v0 = vadd.f32 %v2476_v22, %v2238_v39  ;;  %v8076_v11 = vld [vmem:[#allocation40_spill] sm:$0xff]  ;;  %v2084_v56 = vmul.f32 %v6230_v40, %v8031_v60  ;;  %v2147_v13 = vmul.f32 %v6405_v12, %v7987_v59  ;;  %v8079_v22 = vld [vmem:[#allocation109_spill] sm:$0xff] }
 0x39a   : > { %v2416_v3 = vadd.f32 %v2411_v55, %v2405_v15  ;;  %v2376_v55 = vadd.f32 %v2371_v44, %v2363_v48  ;;  %v2046_v61 = vmul.f32 %v6475_v9, %v8076_v11  ;;  %v8078_v44 = vld [vmem:[#allocation66_spill] sm:$0xff]  ;;  %v2159_v40 = vmul.f32 %v6265_v51, %v7988_v54  ;;  %v8086_v51 = vld [vmem:[#allocation112_spill] sm:$0xff] }
 0x39b   : > { %v1967_v23 = vadd.f32 %v1962_v43, %v8073_v50  ;;  %v2198_v20 = vmul.f32 %v6523_v42, %v8038_v41  ;;  %v8090_v41 = vld [vmem:[#allocation42_spill] sm:$0xff] }
 0x39c   : > { %v2427_v53 = vadd.f32 %v2422_v37, %v2416_v3  ;;  %v2388_v2 = vadd.f32 %v2383_v14, %v2376_v55  ;;  %v2486_v3 = vadd.f32 %v2481_v0, %v2313_v31  ;;  %v2051_v43 = vadd.f32 %v2046_v61, %v2040_v27  ;;  %v8077_v37 = vld [vmem:[#allocation33_spill] sm:$0xff]  ;;  %v8085_v55 = vld [vmem:[#allocation78_spill] sm:$0xff]  ;;  %v8088_v0 = vld [vmem:[#allocation115_spill] sm:$0xff] }
 0x39d   : > { %v1982_v29 = vadd.f32 %v1977_v35, %v1967_v23  ;;  %v2117_v39 = vadd.f32 %v8078_v44, %v8077_v37  ;;  %v8083_v23 = vld [vmem:[#allocation74_spill] sm:$0xff]  ;;  %v6619_v61 = vld [vmem:[#allocation3 + $0xaf] sm:$0xff]  ;;  %v8093_v37 = vld [vmem:[#allocation99_spill] sm:$0xff] }
 0x39e   : > { %v2438_v36 = vadd.f32 %v2433_v17, %v2427_v53  ;;  %v2491_v17 = vadd.f32 %v2486_v3, %v2388_v2  ;;  %v2062_v33 = vadd.f32 %v2057_v46, %v2051_v43  ;;  %v8081_v53 = vld [vmem:[#allocation73_spill] sm:$0xff]  ;;  %v2222_v4 = vmul.f32 %v8084_v49, %v8083_v23  ;;  %v8091_v2 = vld [vmem:[#allocation86_spill] sm:$0xff] }
 0x39f   : > { %v1997_v15 = vadd.f32 %v1992_v45, %v1982_v29  ;;  %v2128_v48 = vadd.f32 %v2123_v52, %v2117_v39  ;;  %v2209_v50 = vmul.f32 %v8082_v8, %v8081_v53  ;;  %v8089_v29 = vld [vmem:[#allocation82_spill] sm:$0xff]  ;;  %v8092_v3 = vld [vmem:[#allocation37_spill] sm:$0xff]  ;;  %v8096_v52 = vld [vmem:[#allocation88_spill] sm:$0xff] }
 0x3a0   : > { %v2451_v6 = vadd.f32 %v2446_v25, %v2438_v36  ;;  %v8080_v25 = vld [vmem:[#allocation27_spill] sm:$0xff]  ;;  %v2077_v31 = vadd.f32 %v2072_v10, %v2062_v33  ;;  %v2273_v10 = vmul.f32 %v8090_v41, %v8089_v29  ;;  %v2284_v43 = vmul.f32 %v8092_v3, %v8091_v2  ;;  %v6637_v49 = vld [vmem:[#allocation3 + $0xb8] sm:$0xff] }
 0x3a1   : > { %v2012_v35 = vadd.f32 %v2007_v62, %v1997_v15  ;;  %v2192_v45 = vadd.f32 %v8080_v25, %v8079_v22  ;;  %v2139_v27 = vadd.f32 %v2134_v30, %v2128_v48  ;;  %v8087_v62 = vld [vmem:[#allocation81_spill] sm:$0xff]  ;;  %v8097_v30 = vld [vmem:[#allocation87_spill] sm:$0xff]  ;;  %v8099_v48 = vld [vmem:[#allocation46_spill] sm:$0xff]  ;;  %8103 = vst [vmem:[#allocation61_spill] sm:$0xff] %v6637_v49 }
 0x3a2   : > { %v2466_v14 = vadd.f32 %v2461_v63, %v2451_v6  ;;  %v2234_v63 = vmul.f32 %v8086_v51, %v8085_v55  ;;  %v2262_v11 = vmul.f32 %v8088_v0, %v8087_v62  ;;  %v2089_v46 = vadd.f32 %v2084_v56, %v2077_v31  ;;  %v8095_v6 = vld [vmem:[#allocation113_spill] sm:$0xff]  ;;  %v8100_v22 = vld [vmem:[#allocation90_spill] sm:$0xff]  ;;  %v8102_v31 = vld [vmem:[#allocation91_spill] sm:$0xff] }
 0x3a3   : > { %v2203_v36 = vadd.f32 %v2198_v20, %v2192_v45  ;;  %v2152_v39 = vadd.f32 %v2147_v13, %v2139_v27  ;;  %v8101_v25 = vld [vmem:[#allocation58_spill] sm:$0xff]  ;;  %v2326_v20 = vmul.f32 %v6619_v61, %v8102_v31  ;;  %v8105_v51 = vld [vmem:[#allocation92_spill] sm:$0xff] }
 0x3a4   : > { %v2496_v12 = vadd.f32 %v2491_v17, %v2466_v14  ;;  %v2267_v15 = vadd.f32 %v2262_v11, %v8095_v6  ;;  %v2297_v17 = vmul.f32 %v8097_v30, %v8096_v52  ;;  %v8098_v14 = vld [vmem:[#allocation89_spill] sm:$0xff]  ;;  %v2320_v45 = vmul.f32 %v8101_v25, %v8100_v22  ;;  %v8106_v62 = vld [vmem:[#allocation94_spill] sm:$0xff]  ;;  %v8108_v25 = vld [vmem:[#allocation95_spill] sm:$0xff] }
 0x3a5   : > { %v2214_v33 = vadd.f32 %v2209_v50, %v2203_v36  ;;  %v2309_v56 = vmul.f32 %v8099_v48, %v8098_v14  ;;  %v2164_v13 = vadd.f32 %v2159_v40, %v2152_v39  ;;  %v2337_v50 = vmul.f32 %v6539_v24, %v8105_v51  ;;  %v6646_v36 = vld [vmem:[#allocation3 + $0xba] sm:$0xff] }
 0x3a6   : > { %v6626_v44 = vadd.f32 %v8093_v37, %v2496_v12  ;;  %v6639_v12 = vld [vmem:[#allocation3 + $0xb9] sm:$0xff]  ;;  %v2278_v27 = vadd.f32 %v2273_v10, %v2267_v15  ;;  %v2348_v11 = vmul.f32 %v6541_v58, %v8106_v62  ;;  %8107 = vst [vmem:[#allocation64_spill] sm:$0xff] %v6646_v36  ;;  %v2331_v48 = vadd.f32 %v2326_v20, %v2320_v45  ;;  %v8109_v37 = vld [vmem:[#allocation96_spill] sm:$0xff]  ;;  %v8111_v15 = vld [vmem:[#allocation97_spill] sm:$0xff] }
 0x3a7   : > { %8104 = vst [vmem:[#allocation62_spill] sm:$0xff] %v6639_v12  ;;  %v6648_v6 = vld [vmem:[#allocation3 + $0xbb] sm:$0xff]  ;;  %v2227_v30 = vadd.f32 %v2222_v4, %v2214_v33  ;;  %v2359_v14 = vmul.f32 %v6547_v18, %v8108_v25  ;;  %v2384_v51 = vmul.f32 %v6559_v16, %v8111_v15  ;;  %v2401_v4 = vmul.f32 %v6639_v12, %v8113_v47  ;;  %v8114_v25 = vld [vmem:[#allocation101_spill] sm:$0xff] }
 0x3a8   : > { %8094 = vst [vmem:[#allocation83_spill] sm:$0xff] %v6626_v44  ;;  %2547 = vadd.xlane.f32.xlu1 %v6626_v44  ;;  %v2372_v44 = vmul.f32 %v6555_v26, %v8109_v37  ;;  %v6654_v40 = vld [vmem:[#allocation3 + $0xbc] sm:$0xff]  ;;  %v2289_v39 = vadd.f32 %v2284_v43, %v2278_v27  ;;  %v2342_v20 = vadd.f32 %v2337_v50, %v2331_v48 }
 0x3a9   : > { %8110 = vst [vmem:[#allocation65_spill] sm:$0xff] %v6654_v40  ;;  %v2442_v10 = vld [vmem:[#allocation3 + $0xbd] sm:$0xff]  ;;  %v2239_v45 = vadd.f32 %v2234_v63, %v2227_v30  ;;  %v2412_v18 = vmul.f32 %v6646_v36, %v8114_v25  ;;  %v2434_v16 = vmul.f32 %v6654_v40, %v8069_v21  ;;  %v2472_v47 = vadd.f32 %v2089_v46, %v2012_v35  ;;  %v8117_v63 = vld [vmem:[#allocation69_spill] sm:$0xff]  ;;  %v8118_v36 = vld [vmem:[#allocation28_spill] sm:$0xff] }
 0x3aa   : > { %v8112_v62 = vld [vmem:[#allocation98_spill] sm:$0xff]  ;;  %v2302_v22 = vadd.f32 %v2297_v17, %v2289_v39  ;;  %v2447_v27 = vmul.f32 %v2442_v10, %v8016_v7  ;;  %v2353_v15 = vadd.f32 %v2348_v11, %v2342_v20  ;;  %v8119_v25 = vld [vmem:[#allocation84_spill] sm:$0xff]  ;;  %v8120_v17 = vld [vmem:[#allocation59_spill] sm:$0xff]  ;;  %v1993_v11 = vmul.f32 %v6475_v9, %v8024_v5 }
 0x3ab   : > { %v2395_v31 = vmul.f32 %v6637_v49, %v8112_v62  ;;  %v2457_v33 = vld [vmem:[#allocation3 + $0xbe] sm:$0xff]  ;;  %v1948_v49 = vmul.f32 %v8119_v25, %v8118_v36  ;;  %v8121_v40 = vld [vmem:[#allocation57_spill] sm:$0xff]  ;;  %v2008_v35 = vmul.f32 %v6360_v28, %v8025_v38  ;;  %v2148_v28 = vmul.f32 %v6523_v42, %v7987_v59 }
 0x3ac   : > { %v8115_v26 = vld [vmem:[#allocation102_spill] sm:$0xff]  ;;  %v2462_v62 = vmul.f32 %v8071_v32, %v2457_v33  ;;  %v2314_v30 = vadd.f32 %v2309_v56, %v2302_v22  ;;  %v2364_v39 = vadd.f32 %v2359_v14, %v2353_v15  ;;  %v8123_v56 = vld [vmem:[#allocation108_spill] sm:$0xff]  ;;  %v2073_v22 = vmul.f32 %v6492_v57, %v8030_v1  ;;  %v8125_v5 = vld [vmem:[#allocation77_spill] sm:$0xff] }
 0x3ad   : > { %v2423_v37 = vmul.f32 %v6648_v6, %v8115_v26  ;;  %v2406_v43 = vadd.f32 %v2401_v4, %v2395_v31  ;;  %v8116_v12 = vld [vmem:[#allocation26_spill] sm:$0xff]  ;;  %v1978_v31 = vmul.f32 %v8120_v17, %v8022_v19  ;;  %v2477_v4 = vadd.f32 %v2472_v47, %v2164_v13 }
 0x3ae   : > { %v1923_v50 = vmul.f32 %v8117_v63, %v8116_v12  ;;  %v8122_v46 = vld [vmem:[#allocation54_spill] sm:$0xff]  ;;  %v2377_v12 = vadd.f32 %v2372_v44, %v2364_v39  ;;  %v2085_v47 = vmul.f32 %v6374_v34, %v8031_v60  ;;  %v2160_v57 = vmul.f32 %v8082_v8, %v7988_v54  ;;  %v2391_v63 = vld [vmem:[#allocation3 + $0xc0] sm:$0xff] }
 0x3af   : > { %v2417_v48 = vadd.f32 %v2412_v18, %v2406_v43  ;;  %v2063_v18 = vadd.f32 %v8123_v56, %v8122_v46  ;;  %v2482_v36 = vadd.f32 %v2477_v4, %v2239_v45  ;;  %v8124_v25 = vld [vmem:[#allocation34_spill] sm:$0xff]  ;;  %v2210_v34 = vmul.f32 %v8088_v0, %v8081_v53  ;;  %v8127_v45 = vld [vmem:[#allocation111_spill] sm:$0xff] }
 0x3b0   : > { %v1938_v21 = vadd.f32 %v8121_v40, %v1923_v50  ;;  %v2140_v9 = vadd.f32 %v8125_v5, %v8124_v25  ;;  %v2389_v38 = vadd.f32 %v2384_v51, %v2377_v12  ;;  %v8126_v40 = vld [vmem:[#allocation93_spill] sm:$0xff]  ;;  %v2223_v33 = vmul.f32 %v8090_v41, %v8083_v23  ;;  %v2408_v39 = vld [vmem:[#allocation3 + $0xc2] sm:$0xff]  ;;  %v8137_v56 = vld [vmem:[#allocation98_spill] sm:$0xff] }
 0x3b1   : > { %v2428_v10 = vadd.f32 %v2423_v37, %v2417_v48  ;;  %v2078_v13 = vadd.f32 %v2073_v22, %v2063_v18  ;;  %v2487_v37 = vadd.f32 %v2482_v36, %v2314_v30  ;;  %v2235_v59 = vmul.f32 %v8092_v3, %v8085_v55  ;;  %v2322_v8 = vld [vmem:[#allocation3 + $0xb7] sm:$0xff]  ;;  %v8130_v3 = vld [vmem:[#allocation68_spill] sm:$0xff]  ;;  %v8131_v30 = vld [vmem:[#allocation91_spill] sm:$0xff] }
 0x3b2   : > { %v1953_v19 = vadd.f32 %v1948_v49, %v1938_v21  ;;  %v2153_v44 = vadd.f32 %v2148_v28, %v2140_v9  ;;  %v2215_v20 = vadd.f32 %v2210_v34, %v8127_v45  ;;  %v2274_v54 = vmul.f32 %v6619_v61, %v8089_v29  ;;  %v8128_v41 = vld [vmem:[#allocation49_spill] sm:$0xff]  ;;  %v8129_v55 = vld [vmem:[#allocation90_spill] sm:$0xff]  ;;  %v8132_v61 = vld [vmem:[#allocation92_spill] sm:$0xff]  ;;  %v2538_v34 = vpop.xlane.xlu1 %2537 }
 0x3b3   : > { %v2439_v14 = vadd.f32 %v2434_v16, %v2428_v10  ;;  %v2090_v21 = vadd.f32 %v2085_v47, %v2078_v13  ;;  %v2492_v60 = vadd.f32 %v2487_v37, %v2389_v38  ;;  %v2285_v53 = vmul.f32 %v6539_v24, %v8091_v2  ;;  %v8133_v29 = vld [vmem:[#allocation61_spill] sm:$0xff]  ;;  %v8134_v24 = vld [vmem:[#allocation99_spill] sm:$0xff]  ;;  %v8136_v10 = vld [vmem:[#allocation62_spill] sm:$0xff] }
 0x3b4   : > { %v1968_v15 = vadd.f32 %v8126_v40, %v1953_v19  ;;  %v2165_v51 = vadd.f32 %v2160_v57, %v2153_v44  ;;  %v2298_v0 = vmul.f32 %v6541_v58, %v8096_v52  ;;  %v2228_v23 = vadd.f32 %v2223_v33, %v2215_v20  ;;  %v2419_v22 = vld [vmem:[#allocation3 + $0xc3] sm:$0xff]  ;;  %v8138_v36 = vld [vmem:[#allocation89_spill] sm:$0xff]  ;;  %v8139_v19 = vld [vmem:[#allocation50_spill] sm:$0xff] }
 0x3b5   : > { %v2452_v1 = vadd.f32 %v2447_v27, %v2439_v14  ;;  %v2279_v27 = vadd.f32 %v2274_v54, %v8128_v41  ;;  %v2327_v48 = vmul.f32 %v2322_v8, %v8131_v30  ;;  %v2338_v17 = vmul.f32 %v8133_v29, %v8132_v61  ;;  %v8140_v14 = vld [vmem:[#allocation100_spill] sm:$0xff]  ;;  %v8141_v25 = vld [vmem:[#allocation101_spill] sm:$0xff]  ;;  %v8142_v38 = vld [vmem:[#allocation95_spill] sm:$0xff] }
 0x3b6   : > { %v1983_v49 = vadd.f32 %v1978_v31, %v1968_v15  ;;  %v2397_v31 = vld [vmem:[#allocation3 + $0xc1] sm:$0xff]  ;;  %v2240_v58 = vadd.f32 %v2235_v59, %v2228_v23  ;;  %v2396_v18 = vmul.f32 %v2391_v63, %v8137_v56  ;;  %v2310_v47 = vmul.f32 %v8139_v19, %v8138_v36  ;;  %v8147_v23 = vld [vmem:[#allocation97_spill] sm:$0xff]  ;;  %v4457_v19 = vld [vmem:[%s4865_s24 + $0xc] ss:$16 sps:$4 sm:$0xff]  }
 0x3b7   : > { %v2467_v42 = vadd.f32 %v2462_v62, %v2452_v1  ;;  %v2321_v62 = vmul.f32 %v8130_v3, %v8129_v55  ;;  %v2290_v52 = vadd.f32 %v2285_v53, %v2279_v27  ;;  %v2402_v13 = vmul.f32 %v2397_v31, %v8140_v14  ;;  %v2430_v9 = vld [vmem:[#allocation3 + $0xc4] sm:$0xff]  ;;  %v8149_v27 = vld [vmem:[#allocation53_spill] sm:$0xff]  ;;  %2978 = vmatprep.subr.bf16.mxu1 %v4457_v19  ;;  %v4493_v19 = vld [vmem:[%s4865_s24 + $0xcc] ss:$16 sps:$4 sm:$0xff]  }
 0x3b8   : > { %v1998_v43 = vadd.f32 %v1993_v11, %v1983_v49  ;;  %v8135_v11 = vld [vmem:[#allocation94_spill] sm:$0xff]  ;;  %v2413_v5 = vmul.f32 %v2408_v39, %v8141_v25  ;;  %v8143_v37 = vld [vmem:[#allocation64_spill] sm:$0xff]  ;;  %v2424_v57 = vmul.f32 %v2419_v22, %v8115_v26  ;;  %v8145_v59 = vld [vmem:[#allocation103_spill] sm:$0xff]  ;;  %v2556_v20 = vmul.f32 0.0078125, %v2538_v34 }
 0x3b9   : > { %v2497_v16 = vadd.f32 %v2492_v60, %v2467_v42  ;;  %v2332_v4 = vadd.f32 %v2327_v48, %v2321_v62  ;;  %v2349_v46 = vmul.f32 %v8136_v10, %v8135_v11  ;;  %v2303_v12 = vadd.f32 %v2298_v0, %v2290_v52  ;;  %v8144_v49 = vld [vmem:[#allocation96_spill] sm:$0xff]  ;;  %v8148_v26 = vld [vmem:[#allocation65_spill] sm:$0xff]  ;;  %v8152_v14 = vld [vmem:[#allocation19_spill] sm:$0xff] }
 0x3ba   : > { %v2013_v50 = vadd.f32 %v2008_v35, %v1998_v43  ;;  %v2534_v35 = vpop.xlane.xlu0 %2533  ;;  %v2360_v40 = vmul.f32 %v8143_v37, %v8142_v38  ;;  %v2407_v15 = vadd.f32 %v2402_v13, %v2396_v18  ;;  %v2373_v33 = vmul.f32 %v6648_v6, %v8144_v49  ;;  %v2443_v45 = vld [vmem:[#allocation3 + $0xc5] sm:$0xff]  ;;  %v4465_v38 = vld [vmem:[%s4865_s24 + $0x20] ss:$16 sps:$4 sm:$0xff]  }
 0x3bb   : > { %v6714_v2 = vadd.f32 %v8134_v24, %v2497_v16  ;;  %v2343_v28 = vadd.f32 %v2338_v17, %v2332_v4  ;;  %v2554_v44 = vmul.f32 0.0078125, %v2534_v35  ;;  %v2435_v42 = vmul.f32 %v2430_v9, %v8145_v59  ;;  %v8146_v53 = vld [vmem:[#allocation60_spill] sm:$0xff]  ;;  %v8150_v4 = vld [vmem:[#allocation105_spill] sm:$0xff]  ;;  %v8151_v18 = vld [vmem:[#allocation107_spill] sm:$0xff] }
 0x3bc   : > { %v2473_v1 = vadd.f32 %v2090_v21, %v2013_v50  ;;  %v2315_v54 = vadd.f32 %v2310_v47, %v2303_v12  ;;  %v2418_v8 = vadd.f32 %v2413_v5, %v2407_v15  ;;  %v2385_v21 = vmul.f32 %v8148_v26, %v8147_v23  ;;  %v2458_v41 = vld [vmem:[#allocation3 + $0xc6] sm:$0xff]  ;;  %v4459_v47 = vld [vmem:[%s4865_s24] ss:$16 sps:$4 sm:$0xff]  }
 0x3bd   : > { %2549 = vadd.xlane.f32.xlu0 %v6714_v2  ;;  %v2354_v60 = vadd.f32 %v2349_v46, %v2343_v28  ;;  %v6731_v0 = vsub.f32 %v8146_v53, %v2554_v44  ;;  %v6736_v55 = vsub.f32 %v8149_v27, %v2556_v20  ;;  %v2448_v6 = vmul.f32 %v2443_v45, %v8016_v7  ;;  %v4455_v36 = vld [vmem:[%s4865_s24 + $0x4] ss:$16 sps:$4 sm:$0xff]   ;;  %v4460_v25 = vld [vmem:[%s4865_s24 + $0x8] ss:$16 sps:$4 sm:$0xff]   ;;  %v4463_v9 = vld [vmem:[%s4865_s24 + $0x2c] ss:$16 sps:$4 sm:$0xff]  }
 0x3be   : > { %v2478_v43 = vadd.f32 %v2473_v1, %v2165_v51  ;;  %v2429_v3 = vadd.f32 %v2424_v57, %v2418_v8  ;;  %v2536_v51 = vpop.xlane.xlu0 %2535  ;;  %v2463_v48 = vmul.f32 %v8071_v32, %v2458_v41  ;;  %v4461_v5 = vld [vmem:[%s4865_s24 + $0x24] ss:$16 sps:$4 sm:$0xff]   ;;  %2895 = vmatprep.subr.bf16.mxu0 %v4455_v36  ;;  %2979 = vmatpush1.bf16.msra.mxu1 %v4460_v25  ;;  %v4466_v37 = vld [vmem:[%s4865_s24 + $0x28] ss:$16 sps:$4 sm:$0xff]   ;;  %v4469_v15 = vld [vmem:[%s4865_s24 + $0x4c] ss:$16 sps:$4 sm:$0xff]  }
 0x3bf   : > { %v2365_v16 = vadd.f32 %v2360_v40, %v2354_v60  ;;  %v2574_v63 = vmul.f32 %v6731_v0, %v6731_v0  ;;  %v2576_v29 = vmul.f32 %v6736_v55, %v6736_v55  ;;  %v2555_v39 = vmul.f32 0.0078125, %v2536_v51  ;;  %2896 = vmatpush1.bf16.msra.mxu0 %v4459_v47  ;;  %2980 = vmatprep.subr.bf16.mxu1 %v4463_v9  ;;  %v4467_v40 = vld [vmem:[%s4865_s24 + $0x44] ss:$16 sps:$4 sm:$0xff]   ;;  %v4471_v57 = vld [vmem:[%s4865_s24 + $0x40] ss:$16 sps:$4 sm:$0xff]  }
 0x3c0   : > { %v2483_v62 = vadd.f32 %v2478_v43, %v2240_v58  ;;  %v2440_v30 = vadd.f32 %v2435_v42, %v2429_v3  ;;  %2897 = vmatprep.subr.bf16.mxu0 %v4461_v5  ;;  %v4472_v1 = vld [vmem:[%s4865_s24 + $0x48] ss:$16 sps:$4 sm:$0xff]   ;;  %v4473_v44 = vld [vmem:[%s4865_s24 + $0x64] ss:$16 sps:$4 sm:$0xff]   ;;  %v4475_v34 = vld [vmem:[%s4865_s24 + $0x6c] ss:$16 sps:$4 sm:$0xff]  }
 0x3c1   : > { %v2378_v50 = vadd.f32 %v2373_v33, %v2365_v16  ;;  %2584 = vadd.xlane.f32.xlu0 %v2574_v63  ;;  %v6745_v11 = vsub.f32 %v8150_v4, %v2555_v39  ;;  %v4477_v60 = vld [vmem:[%s4865_s24 + $0x60] ss:$16 sps:$4 sm:$0xff]   ;;  %v4478_v49 = vld [vmem:[%s4865_s24 + $0x68] ss:$16 sps:$4 sm:$0xff]   ;;  %v4479_v33 = vld [vmem:[%s4865_s24 + $0x84] ss:$16 sps:$4 sm:$0xff]  }
 0x3c2   : > { %v2488_v61 = vadd.f32 %v2483_v62, %v2315_v54  ;;  %v2453_v31 = vadd.f32 %v2448_v6, %v2440_v30  ;;  %2981 = vmatpush1.bf16.msra.mxu1 %v4466_v37  ;;  %v4481_v59 = vld [vmem:[%s4865_s24 + $0x8c] ss:$16 sps:$4 sm:$0xff]   ;;  %v8153_v20 = vld [vmem:[#allocation43_spill] sm:$0xff]  ;;  %v4484_v62 = vld [vmem:[%s4865_s24 + $0x88] ss:$16 sps:$4 sm:$0xff]  }
 0x3c3   : > { %v2390_v17 = vadd.f32 %v2385_v21, %v2378_v50  ;;  %v2575_v10 = vmul.f32 %v6745_v11, %v6745_v11  ;;  %v2540_v46 = vpop.xlane.xlu1 %2539  ;;  %2898 = vmatpush1.bf16.msra.mxu0 %v4465_v38  ;;  %2982 = vmatprep.subr.bf16.mxu1 %v4469_v15  ;;  %v8154_v16 = vld [vmem:[#allocation32_spill] sm:$0xff]  ;;  %v8155_v27 = vld [vmem:[#allocation83_spill] sm:$0xff]  ;;  %v6820_v9 = vld [vmem:[%s8156_s7] ss:$0 sm:$0xff] }
 0x3c4   : > { %v2468_v7 = vadd.f32 %v2463_v48, %v2453_v31  ;;  %v2557_v56 = vmul.f32 0.0078125, %v2540_v46  ;;  %2899 = vmatprep.subr.bf16.mxu0 %v4467_v40  ;;  %v4483_v6 = vld [vmem:[%s4865_s24 + $0x80] ss:$16 sps:$4 sm:$0xff]   ;;  %v4485_v63 = vld [vmem:[%s4865_s24 + $0xa4] ss:$16 sps:$4 sm:$0xff]  }
 0x3c5   : > { %v2493_v52 = vadd.f32 %v2488_v61, %v2390_v17  ;;  %2588 = vadd.xlane.f32.xlu0 %v2576_v29  ;;  %v4487_v50 = vld [vmem:[%s4865_s24 + $0xac] ss:$16 sps:$4 sm:$0xff]   ;;  %v4491_v36 = vld [vmem:[%s4865_s24 + $0xc4] ss:$16 sps:$4 sm:$0xff]   ;;  %v4495_v38 = vld [vmem:[%s4865_s24 + $0xc0] ss:$16 sps:$4 sm:$0xff]  }
 0x3c6   : > { %v6754_v22 = vsub.f32 %v8151_v18, %v2557_v56  ;;  %2983 = vmatpush1.bf16.msra.mxu1 %v4472_v1  ;;  %v4496_v37 = vld [vmem:[%s4865_s24 + $0xc8] ss:$16 sps:$4 sm:$0xff]   ;;  %v4497_v1 = vld [vmem:[%s4865_s24 + $0xe4] ss:$16 sps:$4 sm:$0xff]  }
 0x3c7   : > { %v2498_v58 = vadd.f32 %v2493_v52, %v2468_v7  ;;  %2900 = vmatpush1.bf16.msra.mxu0 %v4471_v57  ;;  %2984 = vmatprep.subr.bf16.mxu1 %v4475_v34 }
 0x3c8   : > { %v2577_v35 = vmul.f32 %v6754_v22, %v6754_v22  ;;  %2901 = vmatprep.subr.bf16.mxu0 %v4473_v44  ;;  %v4499_v44 = vld [vmem:[%s4865_s24 + $0xec] ss:$16 sps:$4 sm:$0xff]  }
 0x3c9   : > { %v6748_v32 = vadd.f32 %v8134_v24, %v2498_v58 }
 0x3ca   : > { %2985 = vmatpush1.bf16.msra.mxu1 %v4478_v49  ;;  %v4502_v49 = vld [vmem:[%s4865_s24 + $0xe8] ss:$16 sps:$4 sm:$0xff]  }
 0x3cb   : > { %2551 = vadd.xlane.f32.xlu1 %v6748_v32  ;;  %2902 = vmatpush1.bf16.msra.mxu0 %v4477_v60  ;;  %v4501_v60 = vld [vmem:[%s4865_s24 + $0xe0] ss:$16 sps:$4 sm:$0xff]  }
 0x3cc   : > { %2903 = vmatprep.subr.bf16.mxu0 %v4479_v33  ;;  %2986 = vmatprep.subr.bf16.mxu1 %v4481_v59 }
 0x3ce   : > { %2987 = vmatpush1.bf16.msra.mxu1 %v4484_v62  ;;  %v4508_v62 = vld [vmem:[%s4876_s30 + $0x8] sm:$0xff]  }
 0x3cf   : > { %2586 = vadd.xlane.f32.xlu1 %v2575_v10  ;;  %2904 = vmatpush1.bf16.msra.mxu0 %v4483_v6  ;;  %v4507_v6 = vld [vmem:[%s4876_s30 + $0x48] sm:$0xff]  }
 0x3d0   : > { %2905 = vmatprep.subr.bf16.mxu0 %v4485_v63  ;;  %2988 = vmatprep.subr.bf16.mxu1 %v4487_v50 }
 0x3d2   : > { %v2542_v24 = vpop.xlane.xlu0 %2541 }
 0x3d3   : > { %2590 = vadd.xlane.f32.xlu1 %v2577_v35  ;;  %v2558_v12 = vmul.f32 0.0078125, %v2542_v24  ;;  %v4489_v24 = vld [vmem:[%s4865_s24 + $0xa0] ss:$16 sps:$4 sm:$0xff]  }
 0x3d4   : > { %2906 = vmatpush1.bf16.msra.mxu0 %v4489_v24 }
 0x3d5   : > { %v6762_v13 = vsub.f32 %v8152_v14, %v2558_v12  ;;  %v4490_v12 = vld [vmem:[%s4865_s24 + $0xa8] ss:$16 sps:$4 sm:$0xff]   ;;  %2907 = vmatprep.subr.bf16.mxu0 %v4491_v36 }
 0x3d6   : > { %2989 = vmatpush1.bf16.msra.mxu1 %v4490_v12 }
 0x3d7   : > { %v2578_v28 = vmul.f32 %v6762_v13, %v6762_v13  ;;  %2990 = vmatprep.subr.bf16.mxu1 %v4493_v19 }
 0x3d8   : > { %2908 = vmatpush1.bf16.msra.mxu0 %v4495_v38  ;;  %v4512_v38 = vld [vmem:[%s4876_s30 + $0x10] sm:$0xff]  }
 0x3d9   : > { %2592 = vadd.xlane.f32.xlu0 %v2578_v28  ;;  %2909 = vmatprep.subr.bf16.mxu0 %v4497_v1  ;;  %v4516_v1 = vld [vmem:[%s4876_s30 + $0x18] sm:$0xff]  }
 0x3da   : > { %2991 = vmatpush1.bf16.msra.mxu1 %v4496_v37  ;;  %v4513_v37 = vld [vmem:[%s4876_s30 + $0xd0] sm:$0xff]  }
 0x3db   : > { %2992 = vmatprep.subr.bf16.mxu1 %v4499_v44  ;;  %v4517_v44 = vld [vmem:[%s4876_s30 + $0xd8] sm:$0xff]  }
 0x3dc   : > { %2910 = vmatpush1.bf16.msra.mxu0 %v4501_v60  ;;  %v4519_v60 = vld [vmem:[%s4876_s30 + $0x60] sm:$0xff]  }
 0x3de   : > { %2993 = vmatpush1.bf16.msra.mxu1 %v4502_v49 }
 0x3fe   : > { %v2544_v42 = vpop.xlane.xlu1 %2543 }
 0x3ff   : > { %v2559_v45 = vmul.f32 0.0078125, %v2544_v42 }
 0x401   : > { %v6782_v54 = vsub.f32 %v8153_v20, %v2559_v45  ;;  %v4676_v45 = vmov 0  }
 0x402   : > { %2927 = vmatprep.mubr.bf16.mxu0 %v4676_v45  ;;  %3010 = vmatprep.mubr.bf16.mxu1 %v4676_v45 }
 0x403   : > { %v2579_v8 = vmul.f32 %v6782_v54, %v6782_v54  ;;  %4454 = vset.pattern.permute.xlu1 %v4676_v45  ;;  %4453 = vset.pattern.permute.xlu0 %v4676_v45 }
 0x405   : > { %2594 = vadd.xlane.f32.xlu1 %v2579_v8 }
 0x41b   : > { %v2546_v43 = vpop.xlane.xlu0 %2545 }
 0x41c   : > { %v2560_v53 = vmul.f32 0.0078125, %v2546_v43 }
 0x41e   : > { %v6787_v23 = vsub.f32 %v8154_v16, %v2560_v53 }
 0x420   : > { %v2580_v26 = vmul.f32 %v6787_v23, %v6787_v23 }
 0x422   : > { %2596 = vadd.xlane.f32.xlu0 %v2580_v26  ;;  %v4503_v26 = vld [vmem:[%s4876_s30 + $0x40] sm:$0xff]  }
 0x423   : > { %4245 = vmatprep.subr.bf16.mxu0 %v4503_v26 }
 0x435   : > { %v2548_v21 = vpop.xlane.xlu1 %2547 }
 0x436   : > { %v2561_v41 = vmul.f32 0.0078125, %v2548_v21  ;;  %v4504_v21 = vld [vmem:[%s4876_s30] sm:$0xff]  }
 0x438   : > { %v6792_v3 = vsub.f32 %v8155_v27, %v2561_v41  ;;  %v4505_v41 = vld [vmem:[%s4876_s30 + $0xc0] sm:$0xff]  }
 0x439   : > { %v4506_v27 = vld [vmem:[%s4876_s30 + $0x80] sm:$0xff]   ;;  %4291 = vmatprep.subr.bf16.mxu1 %v4505_v41 }
 0x43a   : > { %v2581_v51 = vmul.f32 %v6792_v3, %v6792_v3 }
 0x43c   : > { %2598 = vadd.xlane.f32.xlu1 %v2581_v51 }
 0x44a   : > { %v2550_v30 = vpop.xlane.xlu0 %2549 }
 0x44b   : > { %v2562_v48 = vmul.f32 0.0078125, %v2550_v30 }
 0x44d   : > { %v6801_v61 = vsub.f32 %v6714_v2, %v2562_v48 }
 0x44e   : > { %v2585_v17 = vpop.xlane.xlu0 %2584 }
 0x44f   : > { %v2582_v29 = vmul.f32 %v6801_v61, %v6801_v61  ;;  %v2604_v31 = vmul.f32 0.0078125, %v2585_v17 }
 0x451   : > { %2600 = vadd.xlane.f32.xlu0 %v2582_v29  ;;  %v2614_v39 = vadd.f32 1e-06, %v2604_v31 }
 0x452   : > { %v2589_v52 = vpop.xlane.xlu0 %2588 }
 0x453   : > { %v2606_v4 = vmul.f32 0.0078125, %v2589_v52  ;;  %4535 = vrsqrt.f32 %v2614_v39 }
 0x455   : > { %v2616_v18 = vadd.f32 1e-06, %v2606_v4 }
 0x458   : > { %v2552_v7 = vpop.xlane.xlu1 %2551 }
 0x459   : > { %v2563_v58 = vmul.f32 0.0078125, %v2552_v7 }
 0x45b   : > { %v6806_v10 = vsub.f32 %v6748_v32, %v2563_v58 }
 0x45c   : > { %v2587_v2 = vpop.xlane.xlu1 %2586 }
 0x45d   : > { %v2583_v46 = vmul.f32 %v6806_v10, %v6806_v10  ;;  %v2605_v56 = vmul.f32 0.0078125, %v2587_v2  ;;  %v4536_v14 = vpop.eup %4535 }
 0x45e   : > { %v2634_v5 = vmul.f32 %v4536_v14, %v6731_v0  ;;  %v6831_v0 = vld [vmem:[%s8157_s28] ss:$0 sm:$0xff] }
 0x45f   : > { %2602 = vadd.xlane.f32.xlu1 %v2583_v46  ;;  %v2615_v35 = vadd.f32 1e-06, %v2605_v56 }
 0x460   : > { %v2591_v32 = vpop.xlane.xlu1 %2590  ;;  %v2650_v15 = vmul.f32 %v6820_v9, %v2634_v5 }
 0x461   : > { %4537 = vrsqrt.f32 %v2615_v35  ;;  %v2607_v47 = vmul.f32 0.0078125, %v2591_v32  ;;  %v4509_v32 = vld [vmem:[%s4876_s30 + $0xc8] sm:$0xff]  }
 0x462   : > { %4539 = vrsqrt.f32 %v2616_v18 }
 0x463   : > { %v2617_v25 = vadd.f32 1e-06, %v2607_v47  ;;  %v4510_v47 = vld [vmem:[%s4876_s30 + $0x88] sm:$0xff]  }
 0x465   : > { %4541 = vrsqrt.f32 %v2617_v25 }
 0x466   : > { %v2593_v63 = vpop.xlane.xlu0 %2592 }
 0x467   : > { %v2608_v50 = vmul.f32 0.0078125, %v2593_v63  ;;  %v4525_v63 = vld [vmem:[%s4876_s30 + $0xe8] sm:$0xff]  }
 0x469   : > { %v2618_v51 = vadd.f32 1e-06, %v2608_v50  ;;  %v4526_v50 = vld [vmem:[%s4876_s30 + $0xa8] sm:$0xff]  }
 0x46b   : > { %v4538_v28 = vpop.eup %4537  ;;  %4543 = vrsqrt.f32 %v2618_v51  ;;  %v4529_v51 = vld [vmem:[%s4876_s30 + $0xf0] sm:$0xff]  }
 0x46c   : > { %v2635_v40 = vmul.f32 %v4538_v28, %v6745_v11  ;;  %v4540_v57 = vpop.eup %4539  ;;  %v2666_v11 = vadd.f32 %v6831_v0, %v2650_v15  ;;  %v4511_v28 = vld [vmem:[%s4876_s30 + $0x50] sm:$0xff]   ;;  %v4515_v15 = vld [vmem:[%s4876_s30 + $0x58] sm:$0xff]  }
 0x46d   : > { %v2636_v59 = vmul.f32 %v4540_v57, %v6736_v55 }
 0x46e   : > { %v2651_v34 = vmul.f32 %v6820_v9, %v2635_v40  ;;  %v4514_v40 = vld [vmem:[%s4876_s30 + $0x90] sm:$0xff]  }
 0x46f   : > { %v4542_v42 = vpop.eup %4541  ;;  %v2652_v55 = vmul.f32 %v6820_v9, %v2636_v59 }
 0x470   : > { %v2667_v33 = vadd.f32 %v6831_v0, %v2651_v34  ;;  %v2637_v8 = vmul.f32 %v4542_v42, %v6754_v22  ;;  %v4518_v34 = vld [vmem:[%s4876_s30 + $0x98] sm:$0xff]  }
 0x471   : > { %v2668_v53 = vadd.f32 %v6831_v0, %v2652_v55 }
 0x472   : > { %v2676_v20 = vpack.c.bf16 %v2667_v33, %v2666_v11  ;;  %v2653_v43 = vmul.f32 %v6820_v9, %v2637_v8  ;;  %v4520_v11 = vld [vmem:[%s4876_s30 + $0x20] sm:$0xff]  }
 0x473   : > { %v4521_v33 = vld [vmem:[%s4876_s30 + $0xe0] sm:$0xff]  }
 0x474   : > { %2928 = vmatmul.mubr.bf16.vlgmr.msra.gmra.mrb[0].mxu0 %v2676_v20  ;;  %3011 = vmatmul.mubr.bf16.vlgmr.msra.gmra.mrb[0].mxu1 %v2676_v20  ;;  %v2669_v22 = vadd.f32 %v6831_v0, %v2653_v43 }
 0x475   : > { %2937 = vmatprep.mubr.bf16.mxu0 %v4676_v45  ;;  %3020 = vmatprep.mubr.bf16.mxu1 %v4676_v45  ;;  %v4544_v17 = vpop.eup %4543 }
 0x476   : > { %v2677_v16 = vpack.c.bf16 %v2669_v22, %v2668_v53  ;;  %4246 = vmatpush3.bf16.msra.mxu0 %v4504_v21  ;;  %4292 = vmatpush3.bf16.msra.mxu1 %v4506_v27  ;;  %v2638_v31 = vmul.f32 %v4544_v17, %v6762_v13  ;;  %v4533_v17 = vld [vmem:[%s4876_s30 + $0xf8] sm:$0xff]  }
 0x477   : > { %4247 = vmatprep.subr.bf16.mxu0 %v4507_v6  ;;  %4293 = vmatprep.subr.bf16.mxu1 %v4509_v32 }
 0x478   : > { %v2654_v7 = vmul.f32 %v6820_v9, %v2638_v31  ;;  %v4534_v31 = vld [vmem:[%s4876_s30 + $0xb8] sm:$0xff]  }
 0x47a   : > { %4248 = vmatpush3.bf16.msra.mxu0 %v4508_v62  ;;  %v2670_v4 = vadd.f32 %v6831_v0, %v2654_v7  ;;  %4294 = vmatpush3.bf16.msra.mxu1 %v4510_v47  ;;  %v4522_v62 = vld [vmem:[%s4876_s30 + $0xa0] sm:$0xff]  }
 0x47b   : > { %4249 = vmatprep.subr.bf16.mxu0 %v4511_v28  ;;  %4295 = vmatprep.subr.bf16.mxu1 %v4513_v37 }
 0x47c   : > { %2938 = vmatmul.mubr.bf16.gmra.mrb[4].mxu0 %v2677_v16  ;;  %3021 = vmatmul.mubr.bf16.gmra.mrb[4].mxu1 %v2677_v16 }
 0x47d   : > { %2947 = vmatprep.mubr.bf16.mxu0 %v4676_v45  ;;  %3030 = vmatprep.mubr.bf16.mxu1 %v4676_v45 }
 0x47e   : > { %4250 = vmatpush3.bf16.msra.mxu0 %v4512_v38  ;;  %4296 = vmatpush3.bf16.msra.mxu1 %v4514_v40 }
 0x47f   : > { %4251 = vmatprep.subr.bf16.mxu0 %v4515_v15  ;;  %4297 = vmatprep.subr.bf16.mxu1 %v4517_v44 }
 0x482   : > { %4252 = vmatpush3.bf16.msra.mxu0 %v4516_v1  ;;  %4298 = vmatpush3.bf16.msra.mxu1 %v4518_v34 }
 0x483   : > { %4253 = vmatprep.subr.bf16.mxu0 %v4519_v60  ;;  %4299 = vmatprep.subr.bf16.mxu1 %v4521_v33 }
 0x486   : > { %4254 = vmatpush3.bf16.msra.mxu0 %v4520_v11  ;;  %4300 = vmatpush3.bf16.msra.mxu1 %v4522_v62 }
 0x487   : > { %4301 = vmatprep.subr.bf16.mxu1 %v4525_v63 }
 0x48a   : > { %4302 = vmatpush3.bf16.msra.mxu1 %v4526_v50 }
 0x48b   : > { %4303 = vmatprep.subr.bf16.mxu1 %v4529_v51 }
 0x492   : > { %v2595_v30 = vpop.xlane.xlu1 %2594 }
 0x493   : > { %v2609_v48 = vmul.f32 0.0078125, %v2595_v30  ;;  %v4530_v30 = vld [vmem:[%s4876_s30 + $0xb0] sm:$0xff]  }
 0x494   : > { %4304 = vmatpush3.bf16.msra.mxu1 %v4530_v30 }
 0x495   : > { %v2619_v29 = vadd.f32 1e-06, %v2609_v48  ;;  %v4531_v48 = vld [vmem:[%s4876_s30 + $0x78] sm:$0xff]   ;;  %4305 = vmatprep.subr.bf16.mxu1 %v4533_v17 }
 0x497   : > { %4545 = vrsqrt.f32 %v2619_v29  ;;  %v4532_v29 = vld [vmem:[%s4876_s30 + $0x38] sm:$0xff]  }
 0x498   : > { %4306 = vmatpush3.bf16.msra.mxu1 %v4534_v31 }
 0x4a1   : > { %v4546_v39 = vpop.eup %4545 }
 0x4a2   : > { %v2639_v52 = vmul.f32 %v4546_v39, %v6782_v54  ;;  %v2713_v39 = vld [vmem:[%s4871_s26] sm:$0xf] }
 0x4a4   : > { %v2655_v58 = vmul.f32 %v6820_v9, %v2639_v52  ;;  %v8158_v52 = vld [vmem:[#allocation21_spill] sm:$0xff] }
 0x4a5   : > { %v6910_v7 = vrot.slane %v2713_v39, %v8158_v52 }
 0x4a6   : > { %v2671_v2 = vadd.f32 %v6831_v0, %v2655_v58  ;;  %v8159_v58 = vld [vmem:[#allocation23_spill] sm:$0xff] }
 0x4a8   : > { %v2678_v46 = vpack.c.bf16 %v2671_v2, %v2670_v4  ;;  %v6913_v4 = vrot.slane %v2713_v39, %v8159_v58 }
 0x4aa   : > { %2948 = vmatmul.mubr.bf16.gmra.mrb[8].mxu0 %v2678_v46  ;;  %3031 = vmatmul.mubr.bf16.gmra.mrb[8].mxu1 %v2678_v46 }
 0x4ab   : > { %2957 = vmatprep.mubr.bf16.mxu0 %v4676_v45  ;;  %3040 = vmatprep.mubr.bf16.mxu1 %v4676_v45 }
 0x4af   : > { %v2597_v13 = vpop.xlane.xlu0 %2596 }
 0x4b0   : > { %v2610_v56 = vmul.f32 0.0078125, %v2597_v13  ;;  %v8160_v13 = vld [vmem:[#allocation22_spill] sm:$0xff] }
 0x4b2   : > { %v2620_v54 = vadd.f32 1e-06, %v2610_v56  ;;  %v6916_v56 = vrot.slane %v2713_v39, %v8160_v13 }
 0x4b4   : > { %4547 = vrsqrt.f32 %v2620_v54 }
 0x4be   : > { %v4548_v12 = vpop.eup %4547 }
 0x4bf   : > { %v2640_v36 = vmul.f32 %v4548_v12, %v6787_v23  ;;  %v8161_v12 = vld [vmem:[#allocation25_spill] sm:$0xff] }
 0x4c1   : > { %v2656_v25 = vmul.f32 %v6820_v9, %v2640_v36  ;;  %v6921_v36 = vrot.slane %v2713_v39, %v8161_v12 }
 0x4c3   : > { %v2672_v23 = vadd.f32 %v6831_v0, %v2656_v25 }
 0x4c9   : > { %v2599_v18 = vpop.xlane.xlu1 %2598 }
 0x4ca   : > { %v2611_v35 = vmul.f32 0.0078125, %v2599_v18 }
 0x4cc   : > { %v2621_v24 = vadd.f32 1e-06, %v2611_v35 }
 0x4ce   : > { %4549 = vrsqrt.f32 %v2621_v24 }
 0x4d8   : > { %v4550_v19 = vpop.eup %4549 }
 0x4d9   : > { %v2641_v14 = vmul.f32 %v4550_v19, %v6792_v3 }
 0x4db   : > { %v2657_v5 = vmul.f32 %v6820_v9, %v2641_v14 }
 0x4dd   : > { %v2673_v57 = vadd.f32 %v6831_v0, %v2657_v5 }
 0x4de   : > { %v2601_v49 = vpop.xlane.xlu0 %2600 }
 0x4df   : > { %v2679_v3 = vpack.c.bf16 %v2673_v57, %v2672_v23  ;;  %v2612_v59 = vmul.f32 0.0078125, %v2601_v49 }
 0x4e1   : > { %2958 = vmatmul.mubr.bf16.gmra.mrb[12].mxu0 %v2679_v3  ;;  %3041 = vmatmul.mubr.bf16.gmra.mrb[12].mxu1 %v2679_v3  ;;  %v2622_v42 = vadd.f32 1e-06, %v2612_v59 }
 0x4e2   : > { %2967 = vmatprep.mubr.bf16.mxu0 %v4676_v45  ;;  %3050 = vmatprep.mubr.bf16.mxu1 %v4676_v45 }
 0x4e3   : > { %4551 = vrsqrt.f32 %v2622_v42 }
 0x4ec   : > { %v2603_v20 = vpop.xlane.xlu1 %2602 }
 0x4ed   : > { %v2613_v8 = vmul.f32 0.0078125, %v2603_v20  ;;  %v4552_v43 = vpop.eup %4551 }
 0x4ee   : > { %v2642_v22 = vmul.f32 %v4552_v43, %v6801_v61  ;;  %v4523_v61 = vld [vmem:[%s4876_s30 + $0x68] sm:$0xff]  }
 0x4ef   : > { %v2623_v55 = vadd.f32 1e-06, %v2613_v8  ;;  %4255 = vmatprep.subr.bf16.mxu0 %v4523_v61 }
 0x4f0   : > { %v2658_v26 = vmul.f32 %v6820_v9, %v2642_v22 }
 0x4f1   : > { %4553 = vrsqrt.f32 %v2623_v55 }
 0x4f2   : > { %v2674_v41 = vadd.f32 %v6831_v0, %v2658_v26 }
 0x4fb   : > { %v4554_v53 = vpop.eup %4553 }
 0x4fc   : > { %v2643_v16 = vmul.f32 %v4554_v53, %v6806_v10  ;;  %v4524_v10 = vld [vmem:[%s4876_s30 + $0x28] sm:$0xff]  }
 0x4fd   : > { %4256 = vmatpush3.bf16.msra.mxu0 %v4524_v10 }
 0x4fe   : > { %v2659_v21 = vmul.f32 %v6820_v9, %v2643_v16  ;;  %v4527_v9 = vld [vmem:[%s4876_s30 + $0x70] sm:$0xff]  }
 0x4ff   : > { %4257 = vmatprep.subr.bf16.mxu0 %v4527_v9 }
 0x500   : > { %v2675_v27 = vadd.f32 %v6831_v0, %v2659_v21  ;;  %v4528_v0 = vld [vmem:[%s4876_s30 + $0x30] sm:$0xff]  }
 0x501   : > { %4258 = vmatpush3.bf16.msra.mxu0 %v4528_v0 }
 0x502   : > { %v2680_v6 = vpack.c.bf16 %v2675_v27, %v2674_v41  ;;  %4259 = vmatprep.subr.bf16.mxu0 %v4531_v48 }
 0x504   : > { %2968 = vmatmul.mubr.bf16.gmra.mrb[16].mxu0 %v2680_v6  ;;  %3051 = vmatmul.mubr.bf16.gmra.mrb[16].mxu1 %v2680_v6 }
 0x505   : > { %4260 = vmatpush3.bf16.msra.mxu0 %v4532_v29 }
 0x547   : > { %v2929_v2 = vpop.f32.mrb[0].mxu0  ;;  %v3012_v46 = vpop.f32.mrb[0].mxu1 }
 0x548   : > { %v2930_v54 = vadd.f32 %v2929_v2, %v6910_v7  ;;  %v3013_v18 = vadd.f32 %v3012_v46, %v6913_v4  ;;  %v2931_v35 = vpop.f32.mrb[1].mxu0  ;;  %v3014_v24 = vpop.f32.mrb[1].mxu1 }
 0x549   : > { %v2933_v19 = vpop.f32.mrb[2].mxu0  ;;  %v3016_v32 = vpop.f32.mrb[2].mxu1  ;;  %v6924_v25 = vadd.f32 %v2931_v35, %v6916_v56  ;;  %v6934_v57 = vadd.f32 %v3014_v24, %v6921_v36 }
 0x54a   : > { %v3101_v47 = vmul.f32 0.044715, %v2930_v54  ;;  %v3103_v14 = vmul.f32 0.044715, %v3013_v18  ;;  %v2934_v5 = vadd.f32 %v2933_v19, %v6910_v7  ;;  %v6928_v28 = vadd.f32 %v3016_v32, %v6913_v4  ;;  %v2935_v38 = vpop.f32.mrb[3].mxu0  ;;  %v3018_v37 = vpop.f32.mrb[3].mxu1 }
 0x54b   : > { %v6931_v23 = vadd.f32 %v2935_v38, %v6916_v56  ;;  %v6937_v1 = vadd.f32 %v3018_v37, %v6921_v36  ;;  %v6939_v44 = vmul.f32 0.5, %v2930_v54  ;;  %v3102_v11 = vmul.f32 0.044715, %v6924_v25 }
 0x54c   : > { %v3141_v40 = vmul.f32 %v3101_v47, %v2930_v54  ;;  %v3143_v15 = vmul.f32 %v3103_v14, %v3013_v18  ;;  %v3105_v3 = vmul.f32 0.044715, %v2934_v5  ;;  %v3107_v49 = vmul.f32 0.044715, %v6928_v28 }
 0x54d   : > { %v3106_v59 = vmul.f32 0.044715, %v6931_v23  ;;  %v6944_v55 = vmul.f32 0.5, %v3013_v18  ;;  %v3104_v26 = vmul.f32 0.044715, %v6934_v57  ;;  %v3142_v0 = vmul.f32 %v3102_v11, %v6924_v25 }
 0x54e   : > { %v3181_v34 = vmul.f32 %v3141_v40, %v2930_v54  ;;  %v3183_v60 = vmul.f32 %v3143_v15, %v3013_v18  ;;  %v3145_v33 = vmul.f32 %v3105_v3, %v2934_v5  ;;  %v3147_v22 = vmul.f32 %v3107_v49, %v6928_v28 }
 0x54f   : > { %v2939_v42 = vpop.f32.mrb[4].mxu0  ;;  %v3022_v20 = vpop.f32.mrb[4].mxu1  ;;  %v3108_v41 = vmul.f32 0.044715, %v6937_v1  ;;  %v3146_v30 = vmul.f32 %v3106_v59, %v6931_v23  ;;  %v3144_v39 = vmul.f32 %v3104_v26, %v6934_v57  ;;  %v3065_v47 = vmul.f32 0.5, %v2934_v5 }
 0x550   : > { %v3221_v8 = vadd.f32 %v3181_v34, %v2930_v54  ;;  %v3223_v43 = vadd.f32 %v3183_v60, %v3013_v18  ;;  %v2941_v53 = vpop.f32.mrb[5].mxu0  ;;  %v3024_v16 = vpop.f32.mrb[5].mxu1  ;;  %v3185_v21 = vmul.f32 %v3145_v33, %v2934_v5  ;;  %v6950_v27 = vadd.f32 %v2939_v42, %v6910_v7 }
 0x551   : > { %v2943_v6 = vpop.f32.mrb[6].mxu0  ;;  %v3026_v62 = vpop.f32.mrb[6].mxu1  ;;  %v3187_v63 = vmul.f32 %v3147_v22, %v6928_v28  ;;  %v6956_v48 = vadd.f32 %v3022_v20, %v6913_v4  ;;  %v6961_v31 = vadd.f32 %v2941_v53, %v6916_v56  ;;  %v3148_v58 = vmul.f32 %v3108_v41, %v6937_v1 }
 0x552   : > { %v3261_v61 = vmul.f32 0.7978846, %v3221_v8  ;;  %v3263_v10 = vmul.f32 0.7978846, %v3223_v43  ;;  %v2945_v50 = vpop.f32.mrb[7].mxu0  ;;  %v3028_v9 = vpop.f32.mrb[7].mxu1  ;;  %v3225_v51 = vadd.f32 %v3185_v21, %v2934_v5  ;;  %v6967_v13 = vadd.f32 %v3024_v16, %v6921_v36 }
 0x553   : > { %v3227_v29 = vadd.f32 %v3187_v63, %v6928_v28  ;;  %v3109_v17 = vmul.f32 0.044715, %v6950_v27  ;;  %v3110_v46 = vmul.f32 0.044715, %v6961_v31  ;;  %v6970_v54 = vadd.f32 %v2943_v6, %v6910_v7 }
 0x554   : > { %4555 = vtanh.f32 %v3261_v61  ;;  %v3265_v52 = vmul.f32 0.7978846, %v3225_v51  ;;  %v3182_v18 = vmul.f32 %v3142_v0, %v6924_v25  ;;  %v3186_v35 = vmul.f32 %v3146_v30, %v6931_v23 }
 0x555   : > { %4557 = vtanh.f32 %v3263_v10  ;;  %v3267_v2 = vmul.f32 0.7978846, %v3227_v29  ;;  %v6975_v24 = vadd.f32 %v3026_v62, %v6913_v4  ;;  %v3149_v12 = vmul.f32 %v3109_v17, %v6950_v27 }
 0x556   : > { %4559 = vtanh.f32 %v3265_v52  ;;  %v3111_v19 = vmul.f32 0.044715, %v6956_v48  ;;  %v3112_v32 = vmul.f32 0.044715, %v6967_v13  ;;  %v3150_v14 = vmul.f32 %v3110_v46, %v6961_v31 }
 0x557   : > { %4561 = vtanh.f32 %v3267_v2  ;;  %v6982_v38 = vadd.f32 %v2945_v50, %v6916_v56  ;;  %v6985_v37 = vadd.f32 %v3028_v9, %v6921_v36  ;;  %v3184_v40 = vmul.f32 %v3144_v39, %v6934_v57 }
 0x558   : > { %v3188_v15 = vmul.f32 %v3148_v58, %v6937_v1  ;;  %v3113_v3 = vmul.f32 0.044715, %v6970_v54  ;;  %v3115_v34 = vmul.f32 0.044715, %v6975_v24  ;;  %v3152_v60 = vmul.f32 %v3112_v32, %v6967_v13 }
 0x559   : > { %v3114_v5 = vmul.f32 0.044715, %v6982_v38  ;;  %v3116_v49 = vmul.f32 0.044715, %v6985_v37  ;;  %v3222_v11 = vadd.f32 %v3182_v18, %v6924_v25  ;;  %v3067_v33 = vmul.f32 0.5, %v6928_v28 }
 0x55a   : > { %v3189_v59 = vmul.f32 %v3149_v12, %v6950_v27  ;;  %v3151_v42 = vmul.f32 %v3111_v19, %v6956_v48  ;;  %v3226_v20 = vadd.f32 %v3186_v35, %v6931_v23  ;;  %v3190_v8 = vmul.f32 %v3150_v14, %v6961_v31 }
 0x55b   : > { %v3154_v43 = vmul.f32 %v3114_v5, %v6982_v38  ;;  %v3156_v22 = vmul.f32 %v3116_v49, %v6985_v37  ;;  %v3262_v53 = vmul.f32 0.7978846, %v3222_v11  ;;  %v3153_v26 = vmul.f32 %v3113_v3, %v6970_v54 }
 0x55c   : > { %v3266_v21 = vmul.f32 0.7978846, %v3226_v20  ;;  %v3224_v41 = vadd.f32 %v3184_v40, %v6934_v57  ;;  %v3228_v28 = vadd.f32 %v3188_v15, %v6937_v1  ;;  %v3192_v62 = vmul.f32 %v3152_v60, %v6967_v13 }
 0x55d   : > { %v3155_v61 = vmul.f32 %v3115_v34, %v6975_v24  ;;  %v3194_v10 = vmul.f32 %v3154_v43, %v6982_v38  ;;  %4563 = vtanh.f32 %v3262_v53  ;;  %v3191_v51 = vmul.f32 %v3151_v42, %v6956_v48 }
 0x55e   : > { %v4556_v16 = vpop.eup %4555  ;;  %4565 = vtanh.f32 %v3266_v21  ;;  %v3264_v63 = vmul.f32 0.7978846, %v3224_v41  ;;  %v3268_v50 = vmul.f32 0.7978846, %v3228_v28  ;;  %v3196_v30 = vmul.f32 %v3156_v22, %v6985_v37 }
 0x55f   : > { %v4558_v6 = vpop.eup %4557  ;;  %v3341_v9 = vadd.f32 1.0, %v4556_v16  ;;  %v3230_v17 = vadd.f32 %v3190_v8, %v6961_v31  ;;  %v3193_v52 = vmul.f32 %v3153_v26, %v6970_v54  ;;  %v3234_v2 = vadd.f32 %v3194_v10, %v6982_v38 }
 0x560   : > { %v4560_v0 = vpop.eup %4559  ;;  %v3343_v29 = vadd.f32 1.0, %v4558_v6  ;;  %4567 = vtanh.f32 %v3264_v63  ;;  %v3195_v46 = vmul.f32 %v3155_v61, %v6975_v24  ;;  %v3232_v14 = vadd.f32 %v3192_v62, %v6967_v13 }
 0x561   : > { %v4562_v39 = vpop.eup %4561  ;;  %v3345_v58 = vadd.f32 1.0, %v4560_v0  ;;  %4569 = vtanh.f32 %v3268_v50  ;;  %v3270_v35 = vmul.f32 0.7978846, %v3230_v17  ;;  %v3381_v12 = vmul.f32 %v3341_v9, %v6939_v44 }
 0x562   : > { %v3347_v18 = vadd.f32 1.0, %v4562_v39  ;;  %v3274_v32 = vmul.f32 0.7978846, %v3234_v2  ;;  %v3383_v40 = vmul.f32 %v3343_v29, %v6944_v55  ;;  %v3236_v3 = vadd.f32 %v3196_v30, %v6985_v37 }
 0x563   : > { %v3385_v19 = vmul.f32 %v3345_v58, %v3065_v47  ;;  %4571 = vtanh.f32 %v3270_v35  ;;  %v3272_v60 = vmul.f32 0.7978846, %v3232_v14  ;;  %v3229_v11 = vadd.f32 %v3189_v59, %v6950_v27 }
 0x564   : > { %v3387_v15 = vmul.f32 %v3347_v18, %v3067_v33  ;;  %4573 = vtanh.f32 %v3274_v32  ;;  %v3276_v49 = vmul.f32 0.7978846, %v3236_v3  ;;  %v3233_v42 = vadd.f32 %v3193_v52, %v6970_v54 }
 0x565   : > { %v3421_v34 = vpack.c.bf16 %v3385_v19, %v3381_v12  ;;  %4575 = vtanh.f32 %v3272_v60  ;;  %v3231_v44 = vadd.f32 %v3191_v51, %v6956_v48  ;;  %v3269_v20 = vmul.f32 0.7978846, %v3229_v11 }
 0x566   : > { %v3423_v5 = vpack.c.bf16 %v3387_v15, %v3383_v40  ;;  %4577 = vtanh.f32 %v3276_v49  ;;  %v3273_v55 = vmul.f32 0.7978846, %v3233_v42  ;;  %v3235_v33 = vadd.f32 %v3195_v46, %v6975_v24 }
 0x567   : > { %v4564_v47 = vpop.eup %4563  ;;  %v3062_v43 = vmul.f32 0.5, %v6924_v25  ;;  %v3271_v53 = vmul.f32 0.7978846, %v3231_v44  ;;  %v3066_v16 = vmul.f32 0.5, %v6931_v23  ;;  %4579 = vtanh.f32 %v3269_v20 }
 0x568   : > { %v4566_v8 = vpop.eup %4565  ;;  %v3342_v22 = vadd.f32 1.0, %v4564_v47  ;;  %v3275_v59 = vmul.f32 0.7978846, %v3235_v33  ;;  %4581 = vtanh.f32 %v3273_v55  ;;  %v3064_v61 = vmul.f32 0.5, %v6934_v57 }
 0x569   : > { %v3346_v26 = vadd.f32 1.0, %v4566_v8  ;;  %4583 = vtanh.f32 %v3271_v53  ;;  %v3068_v10 = vmul.f32 0.5, %v6937_v1  ;;  %v3070_v30 = vmul.f32 0.5, %v6961_v31 }
 0x56a   : > { %v4568_v21 = vpop.eup %4567  ;;  %v3382_v28 = vmul.f32 %v3342_v22, %v3062_v43  ;;  %4585 = vtanh.f32 %v3275_v59  ;;  %v3074_v29 = vmul.f32 0.5, %v6982_v38  ;;  %v3072_v46 = vmul.f32 0.5, %v6967_v13 }
 0x56b   : > { %v4570_v41 = vpop.eup %4569  ;;  %v3386_v6 = vmul.f32 %v3346_v26, %v3066_v16  ;;  %v3344_v62 = vadd.f32 1.0, %v4568_v21  ;;  %v3076_v18 = vmul.f32 0.5, %v6985_v37  ;;  %v3069_v15 = vmul.f32 0.5, %v6950_v27 }
 0x56c   : > { %v3348_v63 = vadd.f32 1.0, %v4570_v41  ;;  %v3073_v3 = vmul.f32 0.5, %v6970_v54  ;;  %v3071_v13 = vmul.f32 0.5, %v6956_v48  ;;  %v3888_v54 = vsel %vm666_vm1, 1, %v4676_v45 }
 0x56d   : > { %v4572_v25 = vpop.eup %4571  ;;  %v3422_v50 = vpack.c.bf16 %v3386_v6, %v3382_v28  ;;  %v3384_v23 = vmul.f32 %v3344_v62, %v3064_v61  ;;  %3901 = vperm.xlu1 %4454, %v3888_v54   ;;  %v3887_v48 = vsel %vm665_vm0, 1, %v4676_v45  ;;  %v3896_v53 = vsel %vm674_vm9, 1, %v4676_v45 }
 0x56e   : > { %v4574_v9 = vpop.eup %4573  ;;  %v3388_v0 = vmul.f32 %v3348_v63, %v3068_v10  ;;  %v3350_v51 = vadd.f32 1.0, %v4572_v25  ;;  %3898 = vperm.xlu0 %4453, %v3887_v48   ;;  %v3890_v62 = vsel %vm668_vm3, 1, %v4676_v45  ;;  %v3893_v43 = vsel %vm671_vm6, 1, %v4676_v45 }
 0x56f   : > { %3736 = vmatprep.mubr.bf16.mxu0 %v3422_v50  ;;  %v3354_v17 = vadd.f32 1.0, %v4574_v9  ;;  %v4576_v39 = vpop.eup %4575 }
 0x570   : > { %v3424_v52 = vpack.c.bf16 %v3388_v0, %v3384_v23  ;;  %3737 = vmatmul.mubr.bf16.vlgmr.msra.gmra.mrb[20].mxu0 %v3421_v34  ;;  %v4578_v57 = vpop.eup %4577  ;;  %v3390_v58 = vmul.f32 %v3350_v51, %v3070_v30  ;;  %v3352_v2 = vadd.f32 1.0, %v4576_v39 }
 0x571   : > { %v3394_v1 = vmul.f32 %v3354_v17, %v3074_v29  ;;  %v3356_v35 = vadd.f32 1.0, %v4578_v57  ;;  %v4580_v12 = vpop.eup %4579 }
 0x572   : > { %3809 = vmatprep.mubr.bf16.mxu1 %v3424_v52  ;;  %v4582_v31 = vpop.eup %4581  ;;  %v3392_v32 = vmul.f32 %v3352_v2, %v3072_v46  ;;  %v3349_v14 = vadd.f32 1.0, %v4580_v12  ;;  %3925 = vperm.xlu0 %4453, %v3896_v53   ;;  %v3891_v46 = vsel %vm669_vm4, 1, %v4676_v45 }
 0x573   : > { %3810 = vmatmul.mubr.bf16.vlgmr.msra.gmra.mrb[20].mxu1 %v3423_v5  ;;  %v3426_v19 = vpack.c.bf16 %v3394_v1, %v3390_v58  ;;  %v3396_v38 = vmul.f32 %v3356_v35, %v3076_v18  ;;  %v4584_v40 = vpop.eup %4583  ;;  %v3353_v34 = vadd.f32 1.0, %v4582_v31  ;;  %v3075_v5 = vmul.f32 0.5, %v6975_v24 }
 0x574   : > { %v4586_v60 = vpop.eup %4585  ;;  %v3351_v37 = vadd.f32 1.0, %v4584_v40  ;;  %v3389_v11 = vmul.f32 %v3349_v14, %v3069_v15  ;;  %v3889_v24 = vsel %vm667_vm2, 1, %v4676_v45 }
 0x575   : > { %3744 = vmatprep.mubr.bf16.mxu0 %v3426_v19  ;;  %v3428_v49 = vpack.c.bf16 %v3396_v38, %v3392_v32  ;;  %v3393_v42 = vmul.f32 %v3353_v34, %v3073_v3  ;;  %v3355_v44 = vadd.f32 1.0, %v4586_v60  ;;  %3904 = vperm.xlu1 %4454, %v3889_v24  }
 0x576   : > { %v3391_v20 = vmul.f32 %v3351_v37, %v3071_v13  ;;  %v3892_v13 = vsel %vm670_vm5, 1, %v4676_v45 }
 0x577   : > { %3817 = vmatprep.mubr.bf16.mxu1 %v3428_v49  ;;  %v3425_v47 = vpack.c.bf16 %v3393_v42, %v3389_v11  ;;  %v3395_v55 = vmul.f32 %v3355_v44, %v3075_v5 }
 0x579   : > { %3745 = vmatmul.mubr.bf16.gmra.mrb[24].mxu0 %v3425_v47  ;;  %v3427_v33 = vpack.c.bf16 %v3395_v55, %v3391_v20  ;;  %3907 = vperm.xlu1 %4454, %v3890_v62  }
 0x57b   : > { %3818 = vmatmul.mubr.bf16.gmra.mrb[24].mxu1 %v3427_v33 }
 0x57d   : > { %v2949_v16 = vpop.f32.mrb[8].mxu0  ;;  %v3032_v26 = vpop.f32.mrb[8].mxu1  ;;  %3910 = vperm.xlu1 %4454, %v3891_v46  }
 0x57e   : > { %v7047_v59 = vadd.f32 %v2949_v16, %v6910_v7  ;;  %v7050_v21 = vadd.f32 %v3032_v26, %v6913_v4  ;;  %v2951_v41 = vpop.f32.mrb[9].mxu0  ;;  %v3034_v28 = vpop.f32.mrb[9].mxu1 }
 0x57f   : > { %v7056_v61 = vadd.f32 %v2951_v41, %v6916_v56  ;;  %v7059_v10 = vadd.f32 %v3034_v28, %v6921_v36  ;;  %v2953_v63 = vpop.f32.mrb[10].mxu0  ;;  %v3036_v25 = vpop.f32.mrb[10].mxu1 }
 0x580   : > { %v3117_v50 = vmul.f32 0.044715, %v7047_v59  ;;  %v3119_v9 = vmul.f32 0.044715, %v7050_v21  ;;  %v7064_v23 = vadd.f32 %v2953_v63, %v6910_v7  ;;  %v7067_v0 = vadd.f32 %v3036_v25, %v6913_v4  ;;  %v2955_v51 = vpop.f32.mrb[11].mxu0  ;;  %v3038_v30 = vpop.f32.mrb[11].mxu1 }
 0x581   : > { %v3118_v29 = vmul.f32 0.044715, %v7056_v61  ;;  %v3120_v17 = vmul.f32 0.044715, %v7059_v10  ;;  %v7072_v39 = vadd.f32 %v2955_v51, %v6916_v56  ;;  %v7075_v52 = vadd.f32 %v3038_v30, %v6921_v36  ;;  %3913 = vperm.xlu1 %4454, %v3892_v13  }
 0x582   : > { %v3157_v57 = vmul.f32 %v3117_v50, %v7047_v59  ;;  %v3121_v58 = vmul.f32 0.044715, %v7064_v23  ;;  %v3123_v1 = vmul.f32 0.044715, %v7067_v0  ;;  %v3159_v32 = vmul.f32 %v3119_v9, %v7050_v21 }
 0x583   : > { %v3158_v18 = vmul.f32 %v3118_v29, %v7056_v61  ;;  %v3160_v35 = vmul.f32 %v3120_v17, %v7059_v10  ;;  %v3122_v12 = vmul.f32 0.044715, %v7072_v39  ;;  %v3124_v19 = vmul.f32 0.044715, %v7075_v52 }
 0x584   : > { %v3197_v31 = vmul.f32 %v3157_v57, %v7047_v59  ;;  %v3161_v38 = vmul.f32 %v3121_v58, %v7064_v23  ;;  %v3163_v14 = vmul.f32 %v3123_v1, %v7067_v0  ;;  %v3199_v5 = vmul.f32 %v3159_v32, %v7050_v21 }
 0x585   : > { %v3198_v40 = vmul.f32 %v3158_v18, %v7056_v61  ;;  %v3200_v15 = vmul.f32 %v3160_v35, %v7059_v10  ;;  %v3162_v3 = vmul.f32 %v3122_v12, %v7072_v39  ;;  %v3164_v34 = vmul.f32 %v3124_v19, %v7075_v52  ;;  %3916 = vperm.xlu1 %4454, %v3893_v43  }
 0x586   : > { %v3201_v60 = vmul.f32 %v3161_v38, %v7064_v23  ;;  %v3203_v44 = vmul.f32 %v3163_v14, %v7067_v0  ;;  %v3237_v27 = vadd.f32 %v3197_v31, %v7047_v59  ;;  %v3239_v26 = vadd.f32 %v3199_v5, %v7050_v21 }
 0x587   : > { %v3202_v37 = vmul.f32 %v3162_v3, %v7072_v39  ;;  %v3204_v11 = vmul.f32 %v3164_v34, %v7075_v52  ;;  %v3238_v42 = vadd.f32 %v3198_v40, %v7056_v61  ;;  %v3240_v47 = vadd.f32 %v3200_v15, %v7059_v10 }
 0x588   : > { %v3241_v8 = vadd.f32 %v3201_v60, %v7064_v23  ;;  %v3277_v53 = vmul.f32 0.7978846, %v3237_v27  ;;  %v3243_v41 = vadd.f32 %v3203_v44, %v7067_v0  ;;  %v3279_v28 = vmul.f32 0.7978846, %v3239_v26 }
 0x589   : > { %v3242_v20 = vadd.f32 %v3202_v37, %v7072_v39  ;;  %v3278_v55 = vmul.f32 0.7978846, %v3238_v42  ;;  %v3244_v33 = vadd.f32 %v3204_v11, %v7075_v52  ;;  %v3280_v54 = vmul.f32 0.7978846, %v3240_v47 }
 0x58a   : > { %v3281_v16 = vmul.f32 0.7978846, %v3241_v8  ;;  %v3283_v6 = vmul.f32 0.7978846, %v3243_v41  ;;  %v3894_v63 = vsel %vm672_vm7, 1, %v4676_v45  ;;  %v3895_v50 = vsel %vm673_vm8, 1, %v4676_v45 }
 0x58b   : > { %v3282_v24 = vmul.f32 0.7978846, %v3242_v20  ;;  %4587 = vtanh.f32 %v3278_v55  ;;  %v3284_v22 = vmul.f32 0.7978846, %v3244_v33  ;;  %3919 = vperm.xlu1 %4454, %v3894_v63   ;;  %v3078_v58 = vmul.f32 0.5, %v7056_v61 }
 0x58c   : > { %4589 = vtanh.f32 %v3280_v54  ;;  %v3082_v1 = vmul.f32 0.5, %v7072_v39  ;;  %v3080_v18 = vmul.f32 0.5, %v7059_v10  ;;  %v3084_v35 = vmul.f32 0.5, %v7075_v52 }
 0x58d   : > { %4591 = vtanh.f32 %v3282_v24  ;;  %v3077_v32 = vmul.f32 0.5, %v7047_v59  ;;  %v3081_v61 = vmul.f32 0.5, %v7064_v23  ;;  %v3079_v60 = vmul.f32 0.5, %v7050_v21 }
 0x58e   : > { %4593 = vtanh.f32 %v3284_v22  ;;  %v3083_v10 = vmul.f32 0.5, %v7067_v0 }
 0x58f   : > { %4595 = vtanh.f32 %v3277_v53  ;;  %3922 = vperm.xlu1 %4454, %v3895_v50  }
 0x590   : > { %4597 = vtanh.f32 %v3281_v16 }
 0x591   : > { %4599 = vtanh.f32 %v3279_v28 }
 0x592   : > { %4601 = vtanh.f32 %v3283_v6 }
 0x595   : > { %v4588_v9 = vpop.eup %4587 }
 0x596   : > { %v4590_v51 = vpop.eup %4589  ;;  %v3358_v30 = vadd.f32 1.0, %v4588_v9 }
 0x597   : > { %v4592_v29 = vpop.eup %4591  ;;  %v3360_v17 = vadd.f32 1.0, %v4590_v51 }
 0x598   : > { %v4594_v57 = vpop.eup %4593  ;;  %v3362_v2 = vadd.f32 1.0, %v4592_v29  ;;  %v3398_v45 = vmul.f32 %v3358_v30, %v3078_v58 }
 0x599   : > { %v4596_v46 = vpop.eup %4595  ;;  %v3364_v12 = vadd.f32 1.0, %v4594_v57  ;;  %v3400_v40 = vmul.f32 %v3360_v17, %v3080_v18 }
 0x59a   : > { %v4598_v19 = vpop.eup %4597  ;;  %v3402_v31 = vmul.f32 %v3362_v2, %v3082_v1  ;;  %v3357_v38 = vadd.f32 1.0, %v4596_v46 }
 0x59b   : > { %v4600_v14 = vpop.eup %4599  ;;  %v3404_v15 = vmul.f32 %v3364_v12, %v3084_v35  ;;  %v3361_v3 = vadd.f32 1.0, %v4598_v19 }
 0x59c   : > { %v4602_v39 = vpop.eup %4601  ;;  %v3430_v34 = vpack.c.bf16 %v3402_v31, %v3398_v45  ;;  %v3359_v52 = vadd.f32 1.0, %v4600_v14  ;;  %v3397_v13 = vmul.f32 %v3357_v38, %v3077_v32 }
 0x59d   : > { %v3432_v49 = vpack.c.bf16 %v3404_v15, %v3400_v40  ;;  %v3401_v37 = vmul.f32 %v3361_v3, %v3081_v61  ;;  %v3363_v11 = vadd.f32 1.0, %v4602_v39 }
 0x59e   : > { %3752 = vmatprep.mubr.bf16.mxu0 %v3430_v34  ;;  %v3399_v42 = vmul.f32 %v3359_v52, %v3079_v60 }
 0x59f   : > { %3825 = vmatprep.mubr.bf16.mxu1 %v3432_v49  ;;  %v3429_v59 = vpack.c.bf16 %v3401_v37, %v3397_v13  ;;  %v3403_v5 = vmul.f32 %v3363_v11, %v3083_v10 }
 0x5a1   : > { %3753 = vmatmul.mubr.bf16.gmra.mrb[28].mxu0 %v3429_v59  ;;  %v3431_v44 = vpack.c.bf16 %v3403_v5, %v3399_v42 }
 0x5a3   : > { %3826 = vmatmul.mubr.bf16.gmra.mrb[28].mxu1 %v3431_v44 }
 0x5b4   : > { %v2959_v23 = vpop.f32.mrb[12].mxu0  ;;  %v3042_v47 = vpop.f32.mrb[12].mxu1 }
 0x5b5   : > { %v7129_v20 = vadd.f32 %v2959_v23, %v6910_v7  ;;  %v7132_v21 = vadd.f32 %v3042_v47, %v6913_v4  ;;  %v2961_v0 = vpop.f32.mrb[13].mxu0  ;;  %v3044_v55 = vpop.f32.mrb[13].mxu1 }
 0x5b6   : > { %v7135_v33 = vadd.f32 %v2961_v0, %v6916_v56  ;;  %v7138_v27 = vadd.f32 %v3044_v55, %v6921_v36  ;;  %v2963_v54 = vpop.f32.mrb[14].mxu0  ;;  %v3046_v8 = vpop.f32.mrb[14].mxu1 }
 0x5b7   : > { %v3125_v48 = vmul.f32 0.044715, %v7129_v20  ;;  %v3127_v43 = vmul.f32 0.044715, %v7132_v21  ;;  %v7143_v24 = vadd.f32 %v2963_v54, %v6910_v7  ;;  %v7146_v22 = vadd.f32 %v3046_v8, %v6913_v4  ;;  %v2965_v53 = vpop.f32.mrb[15].mxu0  ;;  %v3048_v16 = vpop.f32.mrb[15].mxu1 }
 0x5b8   : > { %v3126_v26 = vmul.f32 0.044715, %v7135_v33  ;;  %v3128_v41 = vmul.f32 0.044715, %v7138_v27  ;;  %v2966_v28 = vadd.f32 %v2965_v53, %v6916_v56  ;;  %v3049_v6 = vadd.f32 %v3048_v16, %v6921_v36 }
 0x5b9   : > { %v3165_v62 = vmul.f32 %v3125_v48, %v7129_v20  ;;  %v3129_v63 = vmul.f32 0.044715, %v7143_v24  ;;  %v3131_v25 = vmul.f32 0.044715, %v7146_v22  ;;  %v3167_v17 = vmul.f32 %v3127_v43, %v7132_v21 }
 0x5ba   : > { %v3166_v50 = vmul.f32 %v3126_v26, %v7135_v33  ;;  %v3168_v9 = vmul.f32 %v3128_v41, %v7138_v27  ;;  %v3130_v51 = vmul.f32 0.044715, %v2966_v28  ;;  %v3132_v30 = vmul.f32 0.044715, %v3049_v6 }
 0x5bb   : > { %v3205_v29 = vmul.f32 %v3165_v62, %v7129_v20  ;;  %v3169_v57 = vmul.f32 %v3129_v63, %v7143_v24  ;;  %v3171_v58 = vmul.f32 %v3131_v25, %v7146_v22  ;;  %v3207_v31 = vmul.f32 %v3167_v17, %v7132_v21 }
 0x5bc   : > { %v3206_v1 = vmul.f32 %v3166_v50, %v7135_v33  ;;  %v3208_v2 = vmul.f32 %v3168_v9, %v7138_v27  ;;  %v3170_v46 = vmul.f32 %v3130_v51, %v2966_v28  ;;  %v3172_v18 = vmul.f32 %v3132_v30, %v3049_v6 }
 0x5bd   : > { %v3209_v35 = vmul.f32 %v3169_v57, %v7143_v24  ;;  %v3211_v32 = vmul.f32 %v3171_v58, %v7146_v22  ;;  %v3245_v61 = vadd.f32 %v3205_v29, %v7129_v20  ;;  %v3247_v49 = vadd.f32 %v3207_v31, %v7132_v21 }
 0x5be   : > { %v3210_v12 = vmul.f32 %v3170_v46, %v2966_v28  ;;  %v3212_v19 = vmul.f32 %v3172_v18, %v3049_v6  ;;  %v3246_v45 = vadd.f32 %v3206_v1, %v7135_v33  ;;  %v3248_v38 = vadd.f32 %v3208_v2, %v7138_v27 }
 0x5bf   : > { %v3249_v39 = vadd.f32 %v3209_v35, %v7143_v24  ;;  %v3285_v10 = vmul.f32 0.7978846, %v3245_v61  ;;  %v3251_v13 = vadd.f32 %v3211_v32, %v7146_v22  ;;  %v3287_v37 = vmul.f32 0.7978846, %v3247_v49 }
 0x5c0   : > { %v3250_v14 = vadd.f32 %v3210_v12, %v2966_v28  ;;  %v3286_v40 = vmul.f32 0.7978846, %v3246_v45  ;;  %v3252_v15 = vadd.f32 %v3212_v19, %v3049_v6  ;;  %v3288_v3 = vmul.f32 0.7978846, %v3248_v38 }
 0x5c1   : > { %v3289_v52 = vmul.f32 0.7978846, %v3249_v39  ;;  %v3291_v11 = vmul.f32 0.7978846, %v3251_v13  ;;  %v3086_v0 = vmul.f32 0.5, %v7135_v33  ;;  %v3090_v55 = vmul.f32 0.5, %v2966_v28 }
 0x5c2   : > { %v3290_v34 = vmul.f32 0.7978846, %v3250_v14  ;;  %4603 = vtanh.f32 %v3286_v40  ;;  %v3292_v60 = vmul.f32 0.7978846, %v3252_v15  ;;  %v3088_v48 = vmul.f32 0.5, %v7138_v27 }
 0x5c3   : > { %4605 = vtanh.f32 %v3288_v3  ;;  %v3092_v43 = vmul.f32 0.5, %v3049_v6  ;;  %v3085_v62 = vmul.f32 0.5, %v7129_v20  ;;  %v3089_v51 = vmul.f32 0.5, %v7143_v24 }
 0x5c4   : > { %4607 = vtanh.f32 %v3290_v34  ;;  %v3087_v29 = vmul.f32 0.5, %v7132_v21  ;;  %v3091_v27 = vmul.f32 0.5, %v7146_v22 }
 0x5c5   : > { %4609 = vtanh.f32 %v3292_v60 }
 0x5c6   : > { %4611 = vtanh.f32 %v3285_v10 }
 0x5c7   : > { %4613 = vtanh.f32 %v3289_v52 }
 0x5c8   : > { %4615 = vtanh.f32 %v3287_v37 }
 0x5c9   : > { %4617 = vtanh.f32 %v3291_v11 }
 0x5cc   : > { %v4604_v59 = vpop.eup %4603 }
 0x5cd   : > { %v4606_v42 = vpop.eup %4605  ;;  %v3366_v5 = vadd.f32 1.0, %v4604_v59 }
 0x5ce   : > { %v4608_v44 = vpop.eup %4607  ;;  %v3368_v23 = vadd.f32 1.0, %v4606_v42 }
 0x5cf   : > { %v4610_v47 = vpop.eup %4609  ;;  %v3370_v54 = vadd.f32 1.0, %v4608_v44  ;;  %v3406_v26 = vmul.f32 %v3366_v5, %v3086_v0 }
 0x5d0   : > { %v4612_v8 = vpop.eup %4611  ;;  %v3372_v53 = vadd.f32 1.0, %v4610_v47  ;;  %v3408_v50 = vmul.f32 %v3368_v23, %v3088_v48 }
 0x5d1   : > { %v4614_v16 = vpop.eup %4613  ;;  %v3410_v41 = vmul.f32 %v3370_v54, %v3090_v55  ;;  %v3365_v63 = vadd.f32 1.0, %v4612_v8 }
 0x5d2   : > { %v4616_v25 = vpop.eup %4615  ;;  %v3412_v9 = vmul.f32 %v3372_v53, %v3092_v43  ;;  %v3369_v30 = vadd.f32 1.0, %v4614_v16 }
 0x5d3   : > { %v4618_v33 = vpop.eup %4617  ;;  %v3434_v28 = vpack.c.bf16 %v3410_v41, %v3406_v26  ;;  %v3367_v6 = vadd.f32 1.0, %v4616_v25  ;;  %v3405_v57 = vmul.f32 %v3365_v63, %v3085_v62 }
 0x5d4   : > { %v3436_v17 = vpack.c.bf16 %v3412_v9, %v3408_v50  ;;  %v3409_v58 = vmul.f32 %v3369_v30, %v3089_v51  ;;  %v3371_v1 = vadd.f32 1.0, %v4618_v33 }
 0x5d5   : > { %3760 = vmatprep.mubr.bf16.mxu0 %v3434_v28  ;;  %v3407_v2 = vmul.f32 %v3367_v6, %v3087_v29 }
 0x5d6   : > { %3833 = vmatprep.mubr.bf16.mxu1 %v3436_v17  ;;  %v3433_v20 = vpack.c.bf16 %v3409_v58, %v3405_v57  ;;  %v3411_v46 = vmul.f32 %v3371_v1, %v3091_v27 }
 0x5d7   : > { %v2969_v24 = vpop.f32.mrb[16].mxu0  ;;  %v3052_v35 = vpop.f32.mrb[16].mxu1 }
 0x5d8   : > { %3761 = vmatmul.mubr.bf16.gmra.mrb[32].mxu0 %v3433_v20  ;;  %v3435_v18 = vpack.c.bf16 %v3411_v46, %v3407_v2  ;;  %v7179_v12 = vadd.f32 %v2969_v24, %v6910_v7  ;;  %v7182_v21 = vadd.f32 %v3052_v35, %v6913_v4  ;;  %v2971_v22 = vpop.f32.mrb[17].mxu0  ;;  %v3054_v19 = vpop.f32.mrb[17].mxu1 }
 0x5d9   : > { %v7185_v45 = vadd.f32 %v2971_v22, %v6916_v56  ;;  %v7188_v31 = vadd.f32 %v3054_v19, %v6921_v36  ;;  %v2973_v32 = vpop.f32.mrb[18].mxu0  ;;  %v3056_v38 = vpop.f32.mrb[18].mxu1 }
 0x5da   : > { %3834 = vmatmul.mubr.bf16.gmra.mrb[32].mxu1 %v3435_v18  ;;  %v3133_v14 = vmul.f32 0.044715, %v7179_v12  ;;  %v3135_v40 = vmul.f32 0.044715, %v7182_v21  ;;  %v7193_v15 = vadd.f32 %v2973_v32, %v6910_v7  ;;  %v7196_v61 = vadd.f32 %v3056_v38, %v6913_v4  ;;  %v2975_v3 = vpop.f32.mrb[19].mxu0  ;;  %v3058_v39 = vpop.f32.mrb[19].mxu1 }
 0x5db   : > { %v3134_v34 = vmul.f32 0.044715, %v7185_v45  ;;  %v3136_v60 = vmul.f32 0.044715, %v7188_v31  ;;  %v2976_v10 = vadd.f32 %v2975_v3, %v6916_v56  ;;  %v3059_v52 = vadd.f32 %v3058_v39, %v6921_v36 }
 0x5dc   : > { %v3173_v49 = vmul.f32 %v3133_v14, %v7179_v12  ;;  %v3137_v13 = vmul.f32 0.044715, %v7193_v15  ;;  %v3139_v7 = vmul.f32 0.044715, %v7196_v61  ;;  %v3175_v5 = vmul.f32 %v3135_v40, %v7182_v21 }
 0x5dd   : > { %v3174_v37 = vmul.f32 %v3134_v34, %v7185_v45  ;;  %v3176_v4 = vmul.f32 %v3136_v60, %v7188_v31  ;;  %v3138_v11 = vmul.f32 0.044715, %v2976_v10  ;;  %v3140_v59 = vmul.f32 0.044715, %v3059_v52 }
 0x5de   : > { %v3213_v42 = vmul.f32 %v3173_v49, %v7179_v12  ;;  %v3177_v56 = vmul.f32 %v3137_v13, %v7193_v15  ;;  %v3179_v36 = vmul.f32 %v3139_v7, %v7196_v61  ;;  %v3215_v43 = vmul.f32 %v3175_v5, %v7182_v21 }
 0x5df   : > { %v3214_v44 = vmul.f32 %v3174_v37, %v7185_v45  ;;  %v3216_v23 = vmul.f32 %v3176_v4, %v7188_v31  ;;  %v3178_v47 = vmul.f32 %v3138_v11, %v2976_v10  ;;  %v3180_v0 = vmul.f32 %v3140_v59, %v3059_v52 }
 0x5e0   : > { %v3217_v55 = vmul.f32 %v3177_v56, %v7193_v15  ;;  %v3219_v53 = vmul.f32 %v3179_v36, %v7196_v61  ;;  %v3253_v63 = vadd.f32 %v3213_v42, %v7179_v12  ;;  %v3255_v28 = vadd.f32 %v3215_v43, %v7182_v21 }
 0x5e1   : > { %v3218_v54 = vmul.f32 %v3178_v47, %v2976_v10  ;;  %v3220_v8 = vmul.f32 %v3180_v0, %v3059_v52  ;;  %v3254_v48 = vadd.f32 %v3214_v44, %v7185_v45  ;;  %v3256_v16 = vadd.f32 %v3216_v23, %v7188_v31 }
 0x5e2   : > { %v3257_v50 = vadd.f32 %v3217_v55, %v7193_v15  ;;  %v3293_v30 = vmul.f32 0.7978846, %v3253_v63  ;;  %v3259_v29 = vadd.f32 %v3219_v53, %v7196_v61  ;;  %v3295_v27 = vmul.f32 0.7978846, %v3255_v28  ;;  %v7241_v53 = vld [vmem:[%s648_s15] ss:$0 sm:$0xff] }
 0x5e3   : > { %v3258_v26 = vadd.f32 %v3218_v54, %v2976_v10  ;;  %v3294_v41 = vmul.f32 0.7978846, %v3254_v48  ;;  %v3260_v62 = vadd.f32 %v3220_v8, %v3059_v52  ;;  %v3296_v25 = vmul.f32 0.7978846, %v3256_v16  ;;  %s8172_s15 = sld [smem:[#allocation121_spill]] (!%p4226_p6) }
 0x5e4   : > { %v3297_v33 = vmul.f32 0.7978846, %v3257_v50  ;;  %v3299_v6 = vmul.f32 0.7978846, %v3259_v29  ;;  %v3094_v46 = vmul.f32 0.5, %v7185_v45  ;;  %v3098_v18 = vmul.f32 0.5, %v2976_v10 }
 0x5e5   : > { %v3298_v9 = vmul.f32 0.7978846, %v3258_v26  ;;  %4619 = vtanh.f32 %v3294_v41  ;;  %v3300_v51 = vmul.f32 0.7978846, %v3260_v62  ;;  %v3096_v22 = vmul.f32 0.5, %v7188_v31 }
 0x5e6   : > { %4621 = vtanh.f32 %v3296_v25  ;;  %v3100_v19 = vmul.f32 0.5, %v3059_v52  ;;  %v3093_v3 = vmul.f32 0.5, %v7179_v12  ;;  %v3097_v13 = vmul.f32 0.5, %v7193_v15  ;;  %v3850_v25 = vld [vmem:[#allocation2] sm:$0xff] }
 0x5e7   : > { %4623 = vtanh.f32 %v3298_v9  ;;  %v3095_v37 = vmul.f32 0.5, %v7182_v21  ;;  %v3099_v31 = vmul.f32 0.5, %v7196_v61  ;;  %v7233_v21 = vld [vmem:[%s645_s17] ss:$0 sm:$0xff] }
 0x5e8   : > { %4625 = vtanh.f32 %v3300_v51  ;;  %v3851_v51 = vld [vmem:[#allocation2 + $0x8] sm:$0xff] }
 0x5e9   : > { %4627 = vtanh.f32 %v3293_v30 }
 0x5ea   : > { %4629 = vtanh.f32 %v3297_v33 }
 0x5eb   : > { %4631 = vtanh.f32 %v3295_v27 }
 0x5ec   : > { %4633 = vtanh.f32 %v3299_v6  ;;  %v3902_v30 = vpop.permute.xlu1 %3901 }
 0x5ed   : > { %v3899_v63 = vpop.permute.xlu0 %3898  ;;  %vm3928_vm1 = vcmp.eq.s32.totalorder %v3902_v30, 1 }
 0x5ee   : > { %vm3927_vm0 = vcmp.eq.s32.totalorder %v3899_v63, 1 }
 0x5ef   : > { %v4620_v17 = vpop.eup %4619 }
 0x5f0   : > { %v4622_v57 = vpop.eup %4621  ;;  %v3374_v58 = vadd.f32 1.0, %v4620_v17 }
 0x5f1   : > { %v4624_v1 = vpop.eup %4623  ;;  %v3376_v20 = vadd.f32 1.0, %v4622_v57 }
 0x5f2   : > { %v4626_v2 = vpop.eup %4625  ;;  %v3378_v24 = vadd.f32 1.0, %v4624_v1  ;;  %v3414_v14 = vmul.f32 %v3374_v58, %v3094_v46 }
 0x5f3   : > { %v4628_v35 = vpop.eup %4627  ;;  %v3380_v32 = vadd.f32 1.0, %v4626_v2  ;;  %v3416_v60 = vmul.f32 %v3376_v20, %v3096_v22 }
 0x5f4   : > { %v4630_v38 = vpop.eup %4629  ;;  %v3418_v40 = vmul.f32 %v3378_v24, %v3098_v18  ;;  %v3373_v39 = vadd.f32 1.0, %v4628_v35 }
 0x5f5   : > { %v4632_v34 = vpop.eup %4631  ;;  %v3420_v49 = vmul.f32 %v3380_v32, %v3100_v19  ;;  %v3377_v7 = vadd.f32 1.0, %v4630_v38  ;;  %v3905_v32 = vpop.permute.xlu1 %3904 }
 0x5f6   : > { %v4634_v45 = vpop.eup %4633  ;;  %v3438_v10 = vpack.c.bf16 %v3418_v40, %v3414_v14  ;;  %v3375_v52 = vadd.f32 1.0, %v4632_v34  ;;  %v3413_v11 = vmul.f32 %v3373_v39, %v3093_v3  ;;  %v3852_v3 = vld [vmem:[#allocation2 + $0x10] sm:$0xff]  ;;  %vm3929_vm2 = vcmp.eq.s32.totalorder %v3905_v32, 1 }
 0x5f7   : > { %v3440_v4 = vpack.c.bf16 %v3420_v49, %v3416_v60  ;;  %v3417_v59 = vmul.f32 %v3377_v7, %v3097_v13  ;;  %v3379_v42 = vadd.f32 1.0, %v4634_v45  ;;  %v3853_v60 = vld [vmem:[#allocation2 + $0x18] sm:$0xff] }
 0x5f8   : > { %3768 = vmatprep.mubr.bf16.mxu0 %v3438_v10  ;;  %v3415_v5 = vmul.f32 %v3375_v52, %v3095_v37 }
 0x5f9   : > { %3841 = vmatprep.mubr.bf16.mxu1 %v3440_v4  ;;  %v3437_v12 = vpack.c.bf16 %v3417_v59, %v3413_v11  ;;  %v3419_v56 = vmul.f32 %v3379_v42, %v3099_v31  ;;  %v3908_v7 = vpop.permute.xlu1 %3907 }
 0x5fa   : > { %vm3930_vm3 = vcmp.eq.s32.totalorder %v3908_v7, 1 }
 0x5fb   : > { %3769 = vmatmul.mubr.bf16.gmra.mrb[36].mxu0 %v3437_v12  ;;  %v3439_v15 = vpack.c.bf16 %v3419_v56, %v3415_v5 }
 0x5fd   : > { %3842 = vmatmul.mubr.bf16.gmra.mrb[36].mxu1 %v3439_v15 }
 0x643   : > { %v4261_v36 = vpop.f32.mrb[20].mxu0 }
 0x644   : > { %v4262_v61 = vpop.f32.mrb[21].mxu0 }
 0x645   : > { %v4263_v44 = vadd.f32 %v4262_v61, %v4261_v36  ;;  %v4264_v23 = vpop.f32.mrb[22].mxu0 }
 0x646   : > { %v4307_v47 = vpop.f32.mrb[20].mxu1  ;;  %v4265_v0 = vpop.f32.mrb[23].mxu0 }
 0x647   : > { %v3739_v55 = vadd.f32 %v4263_v44, %v7233_v21  ;;  %v4308_v54 = vpop.f32.mrb[21].mxu1  ;;  %v4266_v8 = vadd.f32 %v4265_v0, %v4264_v23  ;;  %v3911_v44 = vpop.permute.xlu1 %3910 }
 0x648   : > { %v4309_v48 = vadd.f32 %v4308_v54, %v4307_v47  ;;  %v4310_v43 = vpop.f32.mrb[22].mxu1  ;;  %vm3931_vm4 = vcmp.eq.s32.totalorder %v3911_v44, 1 }
 0x649   : > { %v3742_v16 = vadd.f32 %v4266_v8, %v7233_v21  ;;  %v4311_v26 = vpop.f32.mrb[23].mxu1 }
 0x64a   : > { %v3812_v41 = vadd.f32 %v4309_v48, %v3739_v55  ;;  %v4312_v62 = vadd.f32 %v4311_v26, %v4310_v43  ;;  %v3854_v55 = vld [vmem:[#allocation2 + $0x20] sm:$0xff]  ;;  %v3855_v48 = vld [vmem:[#allocation2 + $0x28] sm:$0xff] }
 0x64b   : > { %v3914_v26 = vpop.permute.xlu1 %3913 }
 0x64c   : > { %v3867_v50 = vmul.f32 %v7241_v53, %v3812_v41  ;;  %v3815_v9 = vadd.f32 %v4312_v62, %v3742_v16  ;;  %v4267_v28 = vpop.f32.mrb[24].mxu0  ;;  %vm3932_vm5 = vcmp.eq.s32.totalorder %v3914_v26, 1 }
 0x64d   : > { %v4268_v27 = vpop.f32.mrb[25].mxu0 }
 0x64e   : > { %v3868_v33 = vmul.f32 %v7241_v53, %v3815_v9  ;;  %v3877_v29 = vadd.f32 %v3867_v50, %v3850_v25  ;;  %v4313_v17 = vpop.f32.mrb[24].mxu1  ;;  %v4269_v57 = vadd.f32 %v4268_v27, %v4267_v28  ;;  %v4270_v58 = vpop.f32.mrb[26].mxu0 }
 0x64f   : > { %v4314_v20 = vpop.f32.mrb[25].mxu1  ;;  %v4271_v2 = vpop.f32.mrb[27].mxu0 }
 0x650   : > { %v3878_v6 = vadd.f32 %v3868_v33, %v3851_v51  ;;  %v7246_v1 = vsel %vm3927_vm0, %v3877_v29, 0.0  ;;  %v3747_v18 = vadd.f32 %v4269_v57, %v7233_v21  ;;  %v4315_v24 = vadd.f32 %v4314_v20, %v4313_v17  ;;  %v4316_v35 = vpop.f32.mrb[26].mxu1 }
 0x651   : > { %3947 = vst [vmem:[#allocation2] sm:$0xff] %v7246_v1  ;;  %v4272_v22 = vadd.f32 %v4271_v2, %v4270_v58  ;;  %v4317_v19 = vpop.f32.mrb[27].mxu1  ;;  %v3917_v58 = vpop.permute.xlu1 %3916  ;;  %3961 = vst [vmem:[%s8172_s15] sm:$0xff] (!%p4226_p6), %v7246_v1 }
 0x652   : > { %v7249_v46 = vsel %vm3928_vm1, %v3878_v6, 0.0  ;;  %v3820_v38 = vadd.f32 %v4315_v24, %v3747_v18  ;;  %v4318_v40 = vadd.f32 %v4317_v19, %v4316_v35  ;;  %v3856_v24 = vld [vmem:[#allocation2 + $0x30] sm:$0xff]  ;;  %v3857_v19 = vld [vmem:[#allocation2 + $0x38] sm:$0xff]  ;;  %vm3933_vm6 = vcmp.eq.s32.totalorder %v3917_v58, 1 }
 0x653   : > { %3948 = vst [vmem:[#allocation2 + $0x8] sm:$0xff] %v7249_v46  ;;  %v3750_v14 = vadd.f32 %v4272_v22, %v7233_v21  ;;  %3962 = vst [vmem:[%s8172_s15 + $0x8] sm:$0xff] (!%p4226_p6), %v7249_v46 }
 0x654   : > { %v3869_v39 = vmul.f32 %v7241_v53, %v3820_v38 }
 0x655   : > { %v3823_v34 = vadd.f32 %v4318_v40, %v3750_v14  ;;  %v3920_v14 = vpop.permute.xlu1 %3919 }
 0x656   : > { %v3879_v49 = vadd.f32 %v3869_v39, %v3852_v3  ;;  %vm3934_vm7 = vcmp.eq.s32.totalorder %v3920_v14, 1 }
 0x657   : > { %v3870_v13 = vmul.f32 %v7241_v53, %v3823_v34 }
 0x658   : > { %v7256_v45 = vsel %vm3929_vm2, %v3879_v49, 0.0 }
 0x659   : > { %v3880_v10 = vadd.f32 %v3870_v13, %v3853_v60  ;;  %3949 = vst [vmem:[#allocation2 + $0x10] sm:$0xff] %v7256_v45  ;;  %3963 = vst [vmem:[%s8172_s15 + $0x10] sm:$0xff] (!%p4226_p6), %v7256_v45 }
 0x65b   : > { %v7259_v37 = vsel %vm3930_vm3, %v3880_v10, 0.0 }
 0x65c   : > { %3950 = vst [vmem:[#allocation2 + $0x18] sm:$0xff] %v7259_v37  ;;  %3964 = vst [vmem:[%s8172_s15 + $0x18] sm:$0xff] (!%p4226_p6), %v7259_v37 }
 0x674   : > { %v4273_v31 = vpop.f32.mrb[28].mxu0 }
 0x675   : > { %v4274_v52 = vpop.f32.mrb[29].mxu0 }
 0x676   : > { %v4319_v4 = vpop.f32.mrb[28].mxu1  ;;  %v4275_v11 = vadd.f32 %v4274_v52, %v4273_v31  ;;  %v4276_v59 = vpop.f32.mrb[30].mxu0 }
 0x677   : > { %v4320_v42 = vpop.f32.mrb[29].mxu1  ;;  %v4277_v12 = vpop.f32.mrb[31].mxu0 }
 0x678   : > { %v3755_v5 = vadd.f32 %v4275_v11, %v7233_v21  ;;  %v4321_v56 = vadd.f32 %v4320_v42, %v4319_v4  ;;  %v4322_v15 = vpop.f32.mrb[30].mxu1  ;;  %v4278_v36 = vadd.f32 %v4277_v12, %v4276_v59 }
 0x679   : > { %v4323_v61 = vpop.f32.mrb[31].mxu1 }
 0x67a   : > { %v3828_v23 = vadd.f32 %v4321_v56, %v3755_v5  ;;  %v3758_v47 = vadd.f32 %v4278_v36, %v7233_v21  ;;  %v4324_v0 = vadd.f32 %v4323_v61, %v4322_v15  ;;  %v3858_v15 = vld [vmem:[#allocation2 + $0x40] sm:$0xff]  ;;  %v3923_v36 = vpop.permute.xlu1 %3922 }
 0x67b   : > { %vm3935_vm8 = vcmp.eq.s32.totalorder %v3923_v36, 1 }
 0x67c   : > { %v3871_v54 = vmul.f32 %v7241_v53, %v3828_v23  ;;  %v3831_v8 = vadd.f32 %v4324_v0, %v3758_v47  ;;  %v3859_v23 = vld [vmem:[#allocation2 + $0x48] sm:$0xff] }
 0x67e   : > { %v3881_v43 = vadd.f32 %v3871_v54, %v3854_v55  ;;  %v3872_v16 = vmul.f32 %v7241_v53, %v3831_v8  ;;  %v3926_v55 = vpop.permute.xlu0 %3925 }
 0x67f   : > { %vm3936_vm9 = vcmp.eq.s32.totalorder %v3926_v55, 1 }
 0x680   : > { %v7266_v41 = vsel %vm3931_vm4, %v3881_v43, 0.0  ;;  %v3882_v62 = vadd.f32 %v3872_v16, %v3855_v48 }
 0x681   : > { %3951 = vst [vmem:[#allocation2 + $0x20] sm:$0xff] %v7266_v41  ;;  %3965 = vst [vmem:[%s8172_s15 + $0x20] sm:$0xff] (!%p4226_p6), %v7266_v41 }
 0x682   : > { %v7269_v63 = vsel %vm3932_vm5, %v3882_v62, 0.0 }
 0x683   : > { %3952 = vst [vmem:[#allocation2 + $0x28] sm:$0xff] %v7269_v63  ;;  %3966 = vst [vmem:[%s8172_s15 + $0x28] sm:$0xff] (!%p4226_p6), %v7269_v63 }
 0x6ab   : > { %v4279_v25 = vpop.f32.mrb[32].mxu0 }
 0x6ac   : > { %v4280_v50 = vpop.f32.mrb[33].mxu0 }
 0x6ad   : > { %v4325_v9 = vpop.f32.mrb[32].mxu1  ;;  %v4281_v51 = vadd.f32 %v4280_v50, %v4279_v25  ;;  %v4282_v30 = vpop.f32.mrb[34].mxu0 }
 0x6ae   : > { %v4326_v33 = vpop.f32.mrb[33].mxu1  ;;  %v4283_v28 = vpop.f32.mrb[35].mxu0 }
 0x6af   : > { %v3763_v29 = vadd.f32 %v4281_v51, %v7233_v21  ;;  %v4327_v27 = vadd.f32 %v4326_v33, %v4325_v9  ;;  %v4328_v6 = vpop.f32.mrb[34].mxu1  ;;  %v4284_v17 = vadd.f32 %v4283_v28, %v4282_v30 }
 0x6b0   : > { %v4329_v57 = vpop.f32.mrb[35].mxu1 }
 0x6b1   : > { %v3836_v20 = vadd.f32 %v4327_v27, %v3763_v29  ;;  %v3766_v2 = vadd.f32 %v4284_v17, %v7233_v21  ;;  %v4330_v18 = vadd.f32 %v4329_v57, %v4328_v6 }
 0x6b3   : > { %v3873_v35 = vmul.f32 %v7241_v53, %v3836_v20  ;;  %v3839_v22 = vadd.f32 %v4330_v18, %v3766_v2 }
 0x6b5   : > { %v3883_v32 = vadd.f32 %v3873_v35, %v3856_v24  ;;  %v3874_v38 = vmul.f32 %v7241_v53, %v3839_v22 }
 0x6b7   : > { %v3943_v40 = vsel %vm3933_vm6, %v3883_v32, 0.0  ;;  %v3884_v3 = vadd.f32 %v3874_v38, %v3857_v19 }
 0x6b8   : > { %3953 = vst [vmem:[#allocation2 + $0x30] sm:$0xff] %v3943_v40  ;;  %3967 = vst [vmem:[%s8172_s15 + $0x30] sm:$0xff] (!%p4226_p6), %v3943_v40 }
 0x6b9   : > { %v3944_v39 = vsel %vm3934_vm7, %v3884_v3, 0.0 }
 0x6ba   : > { %3954 = vst [vmem:[#allocation2 + $0x38] sm:$0xff] %v3944_v39  ;;  %3968 = vst [vmem:[%s8172_s15 + $0x38] sm:$0xff] (!%p4226_p6), %v3944_v39 }
 0x6ce   : > { %v4285_v34 = vpop.f32.mrb[36].mxu0 }
 0x6cf   : > { %v4286_v60 = vpop.f32.mrb[37].mxu0 }
 0x6d0   : > { %v4331_v49 = vpop.f32.mrb[36].mxu1  ;;  %v4287_v13 = vadd.f32 %v4286_v60, %v4285_v34  ;;  %v4288_v7 = vpop.f32.mrb[38].mxu0 }
 0x6d1   : > { %v4332_v10 = vpop.f32.mrb[37].mxu1  ;;  %v4289_v31 = vpop.f32.mrb[39].mxu0 }
 0x6d2   : > { %v3771_v52 = vadd.f32 %v4287_v13, %v7233_v21  ;;  %v4333_v4 = vadd.f32 %v4332_v10, %v4331_v49  ;;  %v4334_v11 = vpop.f32.mrb[38].mxu1  ;;  %v4290_v59 = vadd.f32 %v4289_v31, %v4288_v7 }
 0x6d3   : > { %v4335_v42 = vpop.f32.mrb[39].mxu1 }
 0x6d4   : > { %v3844_v12 = vadd.f32 %v4333_v4, %v3771_v52  ;;  %v3774_v5 = vadd.f32 %v4290_v59, %v7233_v21  ;;  %v4336_v56 = vadd.f32 %v4335_v42, %v4334_v11 }
 0x6d6   : > { %v3875_v61 = vmul.f32 %v7241_v53, %v3844_v12  ;;  %v3847_v44 = vadd.f32 %v4336_v56, %v3774_v5 }
 0x6d7   : > { %3960 = sbr.rel (%p4226_p6) target bundleno = 1758 (0x6de), region = 88 }
 0x6d8   : > { %v3885_v47 = vadd.f32 %v3875_v61, %v3858_v15  ;;  %v3876_v0 = vmul.f32 %v7241_v53, %v3847_v44 }
 0x6da   : > { %v3945_v54 = vsel %vm3935_vm8, %v3885_v47, 0.0  ;;  %v3886_v8 = vadd.f32 %v3876_v0, %v3859_v23 }
 0x6db   : > { %3955 = vst [vmem:[#allocation2 + $0x40] sm:$0xff] %v3945_v54  ;;  %3969 = vst [vmem:[%s8172_s15 + $0x40] sm:$0xff] (!%p4226_p6), %v3945_v54 }
 0x6dc   : > { %v3946_v48 = vsel %vm3936_vm9, %v3886_v8, 0.0 }
 0x6dd   : > { %3956 = vst [vmem:[#allocation2 + $0x48] sm:$0xff] %v3946_v48  ;;  %3970 = vst [vmem:[%s8172_s15 + $0x48] sm:$0xff] (!%p4226_p6), %v3946_v48 }
 0x6de PF: > { %s8173_s27 = sld [smem:[#allocation6_spill]]  ;;  %s8174_s18 = sld [smem:[#allocation5_spill]] }
 0x6df   : > { %s8175_s19 = sld [smem:[#allocation7_spill]] }
 0x6e4   : > { %s25_s20 = sadd.s32 1, %s8173_s27  }
 0x6e5   : > { %p22_p7 = scmp.ge.s32.totalorder %s25_s20, 4  }
 0x6e7   :  { %24 = sbr.rel (!%p22_p7) target bundleno = 5 (0x5), region = 145 }

</bundles_post_ra>
